<compile_context>
chip_gen: v7x
topology: tpu7x:2x2x1
jax: 0.10.0
libtpu: 0.0.40
codegen_flags: <defaults>
</compile_context>

<pallas_src>
import functools

import jax
import jax.numpy as jnp
from jax.experimental import pallas as pl
from jax.experimental.pallas import tpu as pltpu

LANE = 128
COMPUTE_DTYPE = jnp.bfloat16   # MXU operand dtype (weights + im2col); acc is f32


def _round_up(x, m):
    return (x + m - 1) // m * m


def _pick_rows(H, W, Cp, wbytes, row_chunk=None):
    """Rows per chunk: ~1 MiB output chunk, scratch <= ~6 MiB, divisor of H."""
    if row_chunk is None:
        t = max(1, (1 << 20) // max(1, W * Cp * 4))
        t = min(t, max(1, (6 << 20) // max(1, W * 9 * Cp * wbytes)))
        t = min(t, 32)          # bound unrolled per-row halo loads / code size
    else:
        t = int(row_chunk)
    t = max(1, min(H, t))
    while H % t:
        t -= 1
    return t


def _vmem_limit(need_bytes):
    """Generation-aware scoped-VMEM limit (capped at ~90% of physical VMEM)."""
    cap = 128 << 20
    try:
        cap = int(pltpu.get_tpu_info().vmem_capacity_bytes)
    except Exception:
        pass
    return int(min(int(0.9 * cap), max(need_bytes + (4 << 20), 32 << 20)))


def _dilated_conv_kernel(x_ref, w_ref, b_ref, *rest,
                         H, W, Cp, th, tco, d, n_res):
    """One row-chunk of a dilated 3x3 conv + bias + ReLU (+ fused residuals).

    x_ref   : (1, H, W, Cp)   full input image (f32), resident across r and j
    w_ref   : (9*Cp, tco)     im2col-layout weight tile (compute dtype)
    b_ref   : (1, tco)        bias tile (f32)
    rest    : n_res residual chunk refs (1, th, W, tco) f32,
              then y_ref (1, th, W, tco) f32, then imcol scratch (th*W, 9*Cp).
    """
    res_refs = rest[:n_res]
    y_ref = rest[n_res]
    imcol_ref = rest[n_res + 1]

    r = pl.program_id(1)
    j = pl.program_id(2)
    h0 = r * th
    if th & (th - 1) == 0:
        h0 = pl.multiple_of(h0, th)
    cdt = imcol_ref.dtype

    # Build the per-chunk im2col scratch once; reuse it for every Cout tile
    # (j is the innermost, "arbitrary" grid axis, so the scratch persists).
    @pl.when(j == 0)
    def _build_im2col():
        for kh in range(3):
            dy = (kh - 1) * d
            if dy == 0:
                shifted = x_ref[0, pl.ds(h0, th)]               # (th, W, Cp)
            else:
                rows = []
                for o in range(th):
                    s = h0 + o + dy
                    sc = jnp.clip(s, 0, H - 1)
                    row = x_ref[0, pl.ds(sc, 1)]                # (1, W, Cp)
                    ok = jnp.logical_and(s >= 0, s < H)
                    rows.append(row * ok.astype(row.dtype))     # zero halo row
                shifted = (jnp.concatenate(rows, axis=0) if th > 1
                           else rows[0])
            shifted = shifted.astype(cdt)
            for kw in range(3):
                dx = (kw - 1) * d
                k = kh * 3 + kw
                if dx == 0:
                    col = shifted
                elif dx > 0:
                    pad = jnp.zeros((th, min(dx, W), Cp), cdt)
                    col = pad if dx >= W else jnp.concatenate(
                        [shifted[:, dx:, :], pad], axis=1)
                else:
                    pad = jnp.zeros((th, min(-dx, W), Cp), cdt)
                    col = pad if -dx >= W else jnp.concatenate(
                        [pad, shifted[:, :W + dx, :]], axis=1)
                imcol_ref[:, k * Cp:(k + 1) * Cp] = col.reshape(th * W, Cp)

    # One fat MXU matmul for the whole chunk: (th*W, 9*Cp) @ (9*Cp, tco).
    acc = jnp.dot(imcol_ref[...], w_ref[...],
                  preferred_element_type=jnp.float32)           # (th*W, tco)
    acc = jnp.maximum(acc + b_ref[...].astype(jnp.float32), 0.0)
    out = acc.reshape(1, th, W, tco)
    for res in res_refs:                                        # fused residual
        out = out + res[...].astype(jnp.float32)
    y_ref[...] = out.astype(y_ref.dtype)


def conv3x3_relu(x, w_mat, b_row, dilation, residuals=(), row_chunk=None):
    """y = relu(dilated_conv3x3(x) + b) [+ sum(residuals)]; NHWC, Cp % 128 == 0."""
    B, H, W, Cp = x.shape
    wbytes = jnp.dtype(w_mat.dtype).itemsize
    tco = 256 if Cp % 256 == 0 else LANE    # (128 is also a fine choice on v5e)
    n_co = Cp // tco
    th = _pick_rows(H, W, Cp, wbytes, row_chunk)
    n_rows = H // th
    n_res = len(residuals)

    # Double-buffered blocks + scratch + matmul accumulator / build temporaries.
    blocks = (H * W * Cp * 4 + 9 * Cp * tco * wbytes + tco * 4
              + (1 + n_res) * th * W * tco * 4)
    temps = th * W * tco * 4 + 2 * th * W * 9 * Cp * wbytes
    need = 2 * blocks + th * W * 9 * Cp * wbytes + temps

    kernel = functools.partial(_dilated_conv_kernel, H=H, W=W, Cp=Cp, th=th,
                               tco=tco, d=int(dilation), n_res=n_res)
    chunk_spec = pl.BlockSpec((1, th, W, tco), lambda b, r, j: (b, r, 0, j))
    in_specs = ([pl.BlockSpec((1, H, W, Cp), lambda b, r, j: (b, 0, 0, 0)),
                 pl.BlockSpec((9 * Cp, tco), lambda b, r, j: (0, j)),
                 pl.BlockSpec((1, tco), lambda b, r, j: (0, j))]
                + [chunk_spec] * n_res)
    return pl.pallas_call(
        kernel,
        out_shape=jax.ShapeDtypeStruct((B, H, W, Cp), jnp.float32),
        grid=(B, n_rows, n_co),
        in_specs=in_specs,
        out_specs=chunk_spec,
        scratch_shapes=[pltpu.VMEM((th * W, 9 * Cp), w_mat.dtype)],
        compiler_params=pltpu.CompilerParams(
            dimension_semantics=("parallel", "parallel", "arbitrary"),
            vmem_limit_bytes=_vmem_limit(need)),
    )(x, w_mat, b_row, *residuals)


def _prep_params(params, C, Cp, compute_dtype):
    """Zero-pad channels to Cp and flatten HWIO weights to (9*Cp, Cp)."""
    prepped = []
    for w, b in params:
        wp = jnp.zeros((3, 3, Cp, Cp), compute_dtype)
        wp = wp.at[:, :, :C, :C].set(w.astype(compute_dtype))
        w_mat = wp.reshape(9 * Cp, Cp)          # row index = (kh*3+kw)*Cp + cin
        b_row = jnp.zeros((1, Cp), jnp.float32).at[0, :C].set(
            b.astype(jnp.float32))
        prepped.append((w_mat, b_row))
    return prepped


@functools.partial(jax.jit, static_argnames=("compute_dtype", "row_chunk"))
def dilated_block_forward(x_nchw, params, compute_dtype=COMPUTE_DTYPE,
                          row_chunk=None):
    """params: tuple of 4 (w_hwio, bias) pairs for dilations (1, 2, 4, 8)."""
    B, C, H, W = x_nchw.shape
    Cp = _round_up(C, LANE)
    x = jnp.transpose(x_nchw, (0, 2, 3, 1)).astype(jnp.float32)   # NCHW->NHWC
    if Cp != C:
        x = jnp.pad(x, ((0, 0), (0, 0), (0, 0), (0, Cp - C)))     # lane-dense
    (w1, b1), (w2, b2), (w3, b3), (w4, b4) = _prep_params(
        params, C, Cp, compute_dtype)

    x1 = conv3x3_relu(x, w1, b1, 1, row_chunk=row_chunk)
    x2 = conv3x3_relu(x1, w2, b2, 2, row_chunk=row_chunk)
    x3 = conv3x3_relu(x2, w3, b3, 4, row_chunk=row_chunk)
    # Last conv fuses the residual sum: out = x + x1 + x2 + x3 + relu(conv4(x3)).
    out = conv3x3_relu(x3, w4, b4, 8, residuals=(x, x1, x2, x3),
                       row_chunk=row_chunk)
    return jnp.transpose(out[..., :C], (0, 3, 1, 2))              # NHWC->NCHW


def init_params(key, channels):
    """Deterministic init mimicking PyTorch Conv2d default (U(+-1/sqrt(fan_in)))."""
    params = []
    fan_in = channels * 3 * 3
    bound = 1.0 / (fan_in ** 0.5)
    for _ in range(4):
        key, kw, kb = jax.random.split(key, 3)
        w = jax.random.uniform(kw, (3, 3, channels, channels), jnp.float32,
                               -bound, bound)   # HWIO
        b = jax.random.uniform(kb, (channels,), jnp.float32, -bound, bound)
        params.append((w, b))
    return key, tuple(params)


def reference_forward(x_nchw, params):
    """Pure-JAX reference matching the PyTorch forward."""
    def conv(x, w, b, d):
        y = jax.lax.conv_general_dilated(
            x, w, window_strides=(1, 1), padding=((d, d), (d, d)),
            rhs_dilation=(d, d),
            dimension_numbers=('NCHW', 'HWIO', 'NCHW'),
            precision=jax.lax.Precision.HIGHEST)
        return jax.nn.relu(y + b[None, :, None, None])

    x1 = conv(x_nchw, params[0][0], params[0][1], 1)
    x2 = conv(x1, params[1][0], params[1][1], 2)
    x3 = conv(x2, params[2][0], params[2][1], 4)
    x4 = conv(x3, params[3][0], params[3][1], 8)
    return x_nchw + x1 + x2 + x3 + x4


if __name__ == "__main__":
    B, C, H, W = 2, 4, 16, 16
    key = jax.random.PRNGKey(0)
    key, params = init_params(key, C)
    key, kx = jax.random.split(key)
    x = jax.random.normal(kx, (B, C, H, W), jnp.float32)

    ref = reference_forward(x, params)

    # f32 path with a forced 8-row chunk (exercises multi-chunk row halos):
    out_f32 = jax.block_until_ready(
        dilated_block_forward(x, params, compute_dtype=jnp.float32,
                              row_chunk=8))
    assert out_f32.shape == ref.shape, (out_f32.shape, ref.shape)
    assert jnp.allclose(out_f32, ref, rtol=1e-3, atol=1e-3), \
        float(jnp.max(jnp.abs(out_f32 - ref)))

    # Default bf16 MXU-operand path (f32 accumulation): looser tolerance for
    # the bf16 operand rounding across the 4 chained convs.
    out_bf16 = jax.block_until_ready(dilated_block_forward(x, params))
    assert out_bf16.shape == ref.shape, (out_bf16.shape, ref.shape)
    assert jnp.allclose(out_bf16, ref, rtol=2e-2, atol=2e-2), \
        float(jnp.max(jnp.abs(out_bf16 - ref)))

    print("KERNEL_OK")
</pallas_src>

<mosaic_0001>
module attributes {stable_mosaic.version = 11 : i64} {
  func.func @_dilated_conv_kernel(%arg0: i32, %arg1: i32, %arg2: i32, %arg3: memref<1x16x16x128xf32, #tpu.memory_space<vmem>>, %arg4: memref<1152x128xf32, #tpu.memory_space<vmem>>, %arg5: memref<1x128xf32, #tpu.memory_space<vmem>>, %arg6: memref<1x8x16x128xf32, #tpu.memory_space<vmem>>, %arg7: memref<128x1152xf32, #tpu.memory_space<vmem>>) attributes {dimension_semantics = [#tpu.dimension_semantics<parallel>, #tpu.dimension_semantics<parallel>, #tpu.dimension_semantics<arbitrary>], iteration_bounds = array<i64: 2, 2, 1>, scalar_prefetch = 0 : i64, scratch_operands = 1 : i64, tpu.core_type = #tpu.core_type<tc>, window_params = [{transform_indices = @transform_0, window_bounds = array<i64: 1, 16, 16, 128>}, {transform_indices = @transform_1, window_bounds = array<i64: 1152, 128>}, {transform_indices = @transform_2, window_bounds = array<i64: 1, 128>}, {transform_indices = @transform_3, window_bounds = array<i64: 1, 8, 16, 128>}]} {
    %c8_i32 = arith.constant 8 : i32
    %0 = arith.muli %arg1, %c8_i32 : i32
    %1 = tpu.assume_multiple %0, 8 : i32
    %c0_i32 = arith.constant 0 : i32
    %2 = arith.cmpi eq, %arg2, %c0_i32 : i32
    %3 = arith.extui %2 : i1 to i32
    %c0_i32_0 = arith.constant 0 : i32
    %4 = arith.cmpi ne, %3, %c0_i32_0 : i32
    scf.if %4 {
      %c0_i32_11 = arith.constant 0 : i32
      %15 = arith.addi %1, %c0_i32_11 : i32
      %c-2_i32 = arith.constant -2 : i32
      %16 = arith.addi %15, %c-2_i32 : i32
      %c0_i32_12 = arith.constant 0 : i32
      %c15_i32 = arith.constant 15 : i32
      %17 = arith.maxsi %c0_i32_12, %16 : i32
      %18 = arith.minsi %c15_i32, %17 : i32
      %c0_13 = arith.constant 0 : index
      %19 = arith.index_cast %18 : i32 to index
      %c0_14 = arith.constant 0 : index
      %c0_15 = arith.constant 0 : index
      %20 = vector.load %arg3[%c0_13, %19, %c0_14, %c0_15] : memref<1x16x16x128xf32, #tpu.memory_space<vmem>>, vector<1x1x16x128xf32>
      %21 = vector.shape_cast %20 : vector<1x1x16x128xf32> to vector<1x16x128xf32>
      %c0_i32_16 = arith.constant 0 : i32
      %22 = arith.cmpi sge, %16, %c0_i32_16 : i32
      %c16_i32 = arith.constant 16 : i32
      %23 = arith.cmpi slt, %16, %c16_i32 : i32
      %24 = arith.andi %22, %23 : i1
      %25 = arith.extui %24 : i1 to i32
      %26 = arith.sitofp %25 : i32 to f32
      %27 = vector.broadcast %26 : f32 to vector<1x16x128xf32>
      %28 = arith.mulf %21, %27 : vector<1x16x128xf32>
      %c1_i32 = arith.constant 1 : i32
      %29 = arith.addi %1, %c1_i32 : i32
      %c-2_i32_17 = arith.constant -2 : i32
      %30 = arith.addi %29, %c-2_i32_17 : i32
      %c0_i32_18 = arith.constant 0 : i32
      %c15_i32_19 = arith.constant 15 : i32
      %31 = arith.maxsi %c0_i32_18, %30 : i32
      %32 = arith.minsi %c15_i32_19, %31 : i32
      %c0_20 = arith.constant 0 : index
      %33 = arith.index_cast %32 : i32 to index
      %c0_21 = arith.constant 0 : index
      %c0_22 = arith.constant 0 : index
      %34 = vector.load %arg3[%c0_20, %33, %c0_21, %c0_22] : memref<1x16x16x128xf32, #tpu.memory_space<vmem>>, vector<1x1x16x128xf32>
      %35 = vector.shape_cast %34 : vector<1x1x16x128xf32> to vector<1x16x128xf32>
      %c0_i32_23 = arith.constant 0 : i32
      %36 = arith.cmpi sge, %30, %c0_i32_23 : i32
      %c16_i32_24 = arith.constant 16 : i32
      %37 = arith.cmpi slt, %30, %c16_i32_24 : i32
      %38 = arith.andi %36, %37 : i1
      %39 = arith.extui %38 : i1 to i32
      %40 = arith.sitofp %39 : i32 to f32
      %41 = vector.broadcast %40 : f32 to vector<1x16x128xf32>
      %42 = arith.mulf %35, %41 : vector<1x16x128xf32>
      %c2_i32 = arith.constant 2 : i32
      %43 = arith.addi %1, %c2_i32 : i32
      %c-2_i32_25 = arith.constant -2 : i32
      %44 = arith.addi %43, %c-2_i32_25 : i32
      %c0_i32_26 = arith.constant 0 : i32
      %c15_i32_27 = arith.constant 15 : i32
      %45 = arith.maxsi %c0_i32_26, %44 : i32
      %46 = arith.minsi %c15_i32_27, %45 : i32
      %c0_28 = arith.constant 0 : index
      %47 = arith.index_cast %46 : i32 to index
      %c0_29 = arith.constant 0 : index
      %c0_30 = arith.constant 0 : index
      %48 = vector.load %arg3[%c0_28, %47, %c0_29, %c0_30] : memref<1x16x16x128xf32, #tpu.memory_space<vmem>>, vector<1x1x16x128xf32>
      %49 = vector.shape_cast %48 : vector<1x1x16x128xf32> to vector<1x16x128xf32>
      %c0_i32_31 = arith.constant 0 : i32
      %50 = arith.cmpi sge, %44, %c0_i32_31 : i32
      %c16_i32_32 = arith.constant 16 : i32
      %51 = arith.cmpi slt, %44, %c16_i32_32 : i32
      %52 = arith.andi %50, %51 : i1
      %53 = arith.extui %52 : i1 to i32
      %54 = arith.sitofp %53 : i32 to f32
      %55 = vector.broadcast %54 : f32 to vector<1x16x128xf32>
      %56 = arith.mulf %49, %55 : vector<1x16x128xf32>
      %c3_i32 = arith.constant 3 : i32
      %57 = arith.addi %1, %c3_i32 : i32
      %c-2_i32_33 = arith.constant -2 : i32
      %58 = arith.addi %57, %c-2_i32_33 : i32
      %c0_i32_34 = arith.constant 0 : i32
      %c15_i32_35 = arith.constant 15 : i32
      %59 = arith.maxsi %c0_i32_34, %58 : i32
      %60 = arith.minsi %c15_i32_35, %59 : i32
      %c0_36 = arith.constant 0 : index
      %61 = arith.index_cast %60 : i32 to index
      %c0_37 = arith.constant 0 : index
      %c0_38 = arith.constant 0 : index
      %62 = vector.load %arg3[%c0_36, %61, %c0_37, %c0_38] : memref<1x16x16x128xf32, #tpu.memory_space<vmem>>, vector<1x1x16x128xf32>
      %63 = vector.shape_cast %62 : vector<1x1x16x128xf32> to vector<1x16x128xf32>
      %c0_i32_39 = arith.constant 0 : i32
      %64 = arith.cmpi sge, %58, %c0_i32_39 : i32
      %c16_i32_40 = arith.constant 16 : i32
      %65 = arith.cmpi slt, %58, %c16_i32_40 : i32
      %66 = arith.andi %64, %65 : i1
      %67 = arith.extui %66 : i1 to i32
      %68 = arith.sitofp %67 : i32 to f32
      %69 = vector.broadcast %68 : f32 to vector<1x16x128xf32>
      %70 = arith.mulf %63, %69 : vector<1x16x128xf32>
      %c4_i32 = arith.constant 4 : i32
      %71 = arith.addi %1, %c4_i32 : i32
      %c-2_i32_41 = arith.constant -2 : i32
      %72 = arith.addi %71, %c-2_i32_41 : i32
      %c0_i32_42 = arith.constant 0 : i32
      %c15_i32_43 = arith.constant 15 : i32
      %73 = arith.maxsi %c0_i32_42, %72 : i32
      %74 = arith.minsi %c15_i32_43, %73 : i32
      %c0_44 = arith.constant 0 : index
      %75 = arith.index_cast %74 : i32 to index
      %c0_45 = arith.constant 0 : index
      %c0_46 = arith.constant 0 : index
      %76 = vector.load %arg3[%c0_44, %75, %c0_45, %c0_46] : memref<1x16x16x128xf32, #tpu.memory_space<vmem>>, vector<1x1x16x128xf32>
      %77 = vector.shape_cast %76 : vector<1x1x16x128xf32> to vector<1x16x128xf32>
      %c0_i32_47 = arith.constant 0 : i32
      %78 = arith.cmpi sge, %72, %c0_i32_47 : i32
      %c16_i32_48 = arith.constant 16 : i32
      %79 = arith.cmpi slt, %72, %c16_i32_48 : i32
      %80 = arith.andi %78, %79 : i1
      %81 = arith.extui %80 : i1 to i32
      %82 = arith.sitofp %81 : i32 to f32
      %83 = vector.broadcast %82 : f32 to vector<1x16x128xf32>
      %84 = arith.mulf %77, %83 : vector<1x16x128xf32>
      %c5_i32 = arith.constant 5 : i32
      %85 = arith.addi %1, %c5_i32 : i32
      %c-2_i32_49 = arith.constant -2 : i32
      %86 = arith.addi %85, %c-2_i32_49 : i32
      %c0_i32_50 = arith.constant 0 : i32
      %c15_i32_51 = arith.constant 15 : i32
      %87 = arith.maxsi %c0_i32_50, %86 : i32
      %88 = arith.minsi %c15_i32_51, %87 : i32
      %c0_52 = arith.constant 0 : index
      %89 = arith.index_cast %88 : i32 to index
      %c0_53 = arith.constant 0 : index
      %c0_54 = arith.constant 0 : index
      %90 = vector.load %arg3[%c0_52, %89, %c0_53, %c0_54] : memref<1x16x16x128xf32, #tpu.memory_space<vmem>>, vector<1x1x16x128xf32>
      %91 = vector.shape_cast %90 : vector<1x1x16x128xf32> to vector<1x16x128xf32>
      %c0_i32_55 = arith.constant 0 : i32
      %92 = arith.cmpi sge, %86, %c0_i32_55 : i32
      %c16_i32_56 = arith.constant 16 : i32
      %93 = arith.cmpi slt, %86, %c16_i32_56 : i32
      %94 = arith.andi %92, %93 : i1
      %95 = arith.extui %94 : i1 to i32
      %96 = arith.sitofp %95 : i32 to f32
      %97 = vector.broadcast %96 : f32 to vector<1x16x128xf32>
      %98 = arith.mulf %91, %97 : vector<1x16x128xf32>
      %c6_i32 = arith.constant 6 : i32
      %99 = arith.addi %1, %c6_i32 : i32
      %c-2_i32_57 = arith.constant -2 : i32
      %100 = arith.addi %99, %c-2_i32_57 : i32
      %c0_i32_58 = arith.constant 0 : i32
      %c15_i32_59 = arith.constant 15 : i32
      %101 = arith.maxsi %c0_i32_58, %100 : i32
      %102 = arith.minsi %c15_i32_59, %101 : i32
      %c0_60 = arith.constant 0 : index
      %103 = arith.index_cast %102 : i32 to index
      %c0_61 = arith.constant 0 : index
      %c0_62 = arith.constant 0 : index
      %104 = vector.load %arg3[%c0_60, %103, %c0_61, %c0_62] : memref<1x16x16x128xf32, #tpu.memory_space<vmem>>, vector<1x1x16x128xf32>
      %105 = vector.shape_cast %104 : vector<1x1x16x128xf32> to vector<1x16x128xf32>
      %c0_i32_63 = arith.constant 0 : i32
      %106 = arith.cmpi sge, %100, %c0_i32_63 : i32
      %c16_i32_64 = arith.constant 16 : i32
      %107 = arith.cmpi slt, %100, %c16_i32_64 : i32
      %108 = arith.andi %106, %107 : i1
      %109 = arith.extui %108 : i1 to i32
      %110 = arith.sitofp %109 : i32 to f32
      %111 = vector.broadcast %110 : f32 to vector<1x16x128xf32>
      %112 = arith.mulf %105, %111 : vector<1x16x128xf32>
      %c7_i32 = arith.constant 7 : i32
      %113 = arith.addi %1, %c7_i32 : i32
      %c-2_i32_65 = arith.constant -2 : i32
      %114 = arith.addi %113, %c-2_i32_65 : i32
      %c0_i32_66 = arith.constant 0 : i32
      %c15_i32_67 = arith.constant 15 : i32
      %115 = arith.maxsi %c0_i32_66, %114 : i32
      %116 = arith.minsi %c15_i32_67, %115 : i32
      %c0_68 = arith.constant 0 : index
      %117 = arith.index_cast %116 : i32 to index
      %c0_69 = arith.constant 0 : index
      %c0_70 = arith.constant 0 : index
      %118 = vector.load %arg3[%c0_68, %117, %c0_69, %c0_70] : memref<1x16x16x128xf32, #tpu.memory_space<vmem>>, vector<1x1x16x128xf32>
      %119 = vector.shape_cast %118 : vector<1x1x16x128xf32> to vector<1x16x128xf32>
      %c0_i32_71 = arith.constant 0 : i32
      %120 = arith.cmpi sge, %114, %c0_i32_71 : i32
      %c16_i32_72 = arith.constant 16 : i32
      %121 = arith.cmpi slt, %114, %c16_i32_72 : i32
      %122 = arith.andi %120, %121 : i1
      %123 = arith.extui %122 : i1 to i32
      %124 = arith.sitofp %123 : i32 to f32
      %125 = vector.broadcast %124 : f32 to vector<1x16x128xf32>
      %126 = arith.mulf %119, %125 : vector<1x16x128xf32>
      %127 = tpu.concatenate %28, %42, %56, %70, %84, %98, %112, %126 in 0 : vector<1x16x128xf32>, vector<1x16x128xf32>, vector<1x16x128xf32>, vector<1x16x128xf32>, vector<1x16x128xf32>, vector<1x16x128xf32>, vector<1x16x128xf32>, vector<1x16x128xf32> -> vector<8x16x128xf32>
      %cst_73 = arith.constant 0.000000e+00 : f32
      %128 = vector.broadcast %cst_73 : f32 to vector<8x2x128xf32>
      %129 = vector.extract_strided_slice %127 {offsets = [0, 0, 0], sizes = [8, 14, 128], strides = [1, 1, 1]} : vector<8x16x128xf32> to vector<8x14x128xf32>
      %130 = tpu.concatenate %128, %129 in 1 : vector<8x2x128xf32>, vector<8x14x128xf32> -> vector<8x16x128xf32>
      %131 = vector.shape_cast %130 : vector<8x16x128xf32> to vector<128x128xf32>
      %c0_74 = arith.constant 0 : index
      %c0_75 = arith.constant 0 : index
      %132 = vector.load %arg7[%c0_74, %c0_75] : memref<128x1152xf32, #tpu.memory_space<vmem>>, vector<128x128xf32>
      tpu.vector_store %arg7[%c0_74, %c0_75], %131 {strides = array<i32>} : memref<128x1152xf32, #tpu.memory_space<vmem>>, vector<128x128xf32>,
      %133 = vector.shape_cast %127 : vector<8x16x128xf32> to vector<128x128xf32>
      %c0_76 = arith.constant 0 : index
      %c128 = arith.constant 128 : index
      %134 = vector.load %arg7[%c0_76, %c128] : memref<128x1152xf32, #tpu.memory_space<vmem>>, vector<128x128xf32>
      tpu.vector_store %arg7[%c0_76, %c128], %133 {strides = array<i32>} : memref<128x1152xf32, #tpu.memory_space<vmem>>, vector<128x128xf32>,
      %cst_77 = arith.constant 0.000000e+00 : f32
      %135 = vector.broadcast %cst_77 : f32 to vector<8x2x128xf32>
      %136 = vector.extract_strided_slice %127 {offsets = [0, 2, 0], sizes = [8, 14, 128], strides = [1, 1, 1]} : vector<8x16x128xf32> to vector<8x14x128xf32>
      %137 = tpu.concatenate %136, %135 in 1 : vector<8x14x128xf32>, vector<8x2x128xf32> -> vector<8x16x128xf32>
      %138 = vector.shape_cast %137 : vector<8x16x128xf32> to vector<128x128xf32>
      %c0_78 = arith.constant 0 : index
      %c256 = arith.constant 256 : index
      %139 = vector.load %arg7[%c0_78, %c256] : memref<128x1152xf32, #tpu.memory_space<vmem>>, vector<128x128xf32>
      tpu.vector_store %arg7[%c0_78, %c256], %138 {strides = array<i32>} : memref<128x1152xf32, #tpu.memory_space<vmem>>, vector<128x128xf32>,
      %c0_79 = arith.constant 0 : index
      %140 = arith.index_cast %1 : i32 to index
      %c0_80 = arith.constant 0 : index
      %c0_81 = arith.constant 0 : index
      %141 = vector.load %arg3[%c0_79, %140, %c0_80, %c0_81] : memref<1x16x16x128xf32, #tpu.memory_space<vmem>>, vector<1x8x16x128xf32>
      %142 = vector.shape_cast %141 : vector<1x8x16x128xf32> to vector<8x16x128xf32>
      %cst_82 = arith.constant 0.000000e+00 : f32
      %143 = vector.broadcast %cst_82 : f32 to vector<8x2x128xf32>
      %144 = vector.extract_strided_slice %142 {offsets = [0, 0, 0], sizes = [8, 14, 128], strides = [1, 1, 1]} : vector<8x16x128xf32> to vector<8x14x128xf32>
      %145 = tpu.concatenate %143, %144 in 1 : vector<8x2x128xf32>, vector<8x14x128xf32> -> vector<8x16x128xf32>
      %146 = vector.shape_cast %145 : vector<8x16x128xf32> to vector<128x128xf32>
      %c0_83 = arith.constant 0 : index
      %c384 = arith.constant 384 : index
      %147 = vector.load %arg7[%c0_83, %c384] : memref<128x1152xf32, #tpu.memory_space<vmem>>, vector<128x128xf32>
      tpu.vector_store %arg7[%c0_83, %c384], %146 {strides = array<i32>} : memref<128x1152xf32, #tpu.memory_space<vmem>>, vector<128x128xf32>,
      %148 = vector.shape_cast %142 : vector<8x16x128xf32> to vector<128x128xf32>
      %c0_84 = arith.constant 0 : index
      %c512 = arith.constant 512 : index
      %149 = vector.load %arg7[%c0_84, %c512] : memref<128x1152xf32, #tpu.memory_space<vmem>>, vector<128x128xf32>
      tpu.vector_store %arg7[%c0_84, %c512], %148 {strides = array<i32>} : memref<128x1152xf32, #tpu.memory_space<vmem>>, vector<128x128xf32>,
      %cst_85 = arith.constant 0.000000e+00 : f32
      %150 = vector.broadcast %cst_85 : f32 to vector<8x2x128xf32>
      %151 = vector.extract_strided_slice %142 {offsets = [0, 2, 0], sizes = [8, 14, 128], strides = [1, 1, 1]} : vector<8x16x128xf32> to vector<8x14x128xf32>
      %152 = tpu.concatenate %151, %150 in 1 : vector<8x14x128xf32>, vector<8x2x128xf32> -> vector<8x16x128xf32>
      %153 = vector.shape_cast %152 : vector<8x16x128xf32> to vector<128x128xf32>
      %c0_86 = arith.constant 0 : index
      %c640 = arith.constant 640 : index
      %154 = vector.load %arg7[%c0_86, %c640] : memref<128x1152xf32, #tpu.memory_space<vmem>>, vector<128x128xf32>
      tpu.vector_store %arg7[%c0_86, %c640], %153 {strides = array<i32>} : memref<128x1152xf32, #tpu.memory_space<vmem>>, vector<128x128xf32>,
      %c0_i32_87 = arith.constant 0 : i32
      %155 = arith.addi %1, %c0_i32_87 : i32
      %c2_i32_88 = arith.constant 2 : i32
      %156 = arith.addi %155, %c2_i32_88 : i32
      %c0_i32_89 = arith.constant 0 : i32
      %c15_i32_90 = arith.constant 15 : i32
      %157 = arith.maxsi %c0_i32_89, %156 : i32
      %158 = arith.minsi %c15_i32_90, %157 : i32
      %c0_91 = arith.constant 0 : index
      %159 = arith.index_cast %158 : i32 to index
      %c0_92 = arith.constant 0 : index
      %c0_93 = arith.constant 0 : index
      %160 = vector.load %arg3[%c0_91, %159, %c0_92, %c0_93] : memref<1x16x16x128xf32, #tpu.memory_space<vmem>>, vector<1x1x16x128xf32>
      %161 = vector.shape_cast %160 : vector<1x1x16x128xf32> to vector<1x16x128xf32>
      %c0_i32_94 = arith.constant 0 : i32
      %162 = arith.cmpi sge, %156, %c0_i32_94 : i32
      %c16_i32_95 = arith.constant 16 : i32
      %163 = arith.cmpi slt, %156, %c16_i32_95 : i32
      %164 = arith.andi %162, %163 : i1
      %165 = arith.extui %164 : i1 to i32
      %166 = arith.sitofp %165 : i32 to f32
      %167 = vector.broadcast %166 : f32 to vector<1x16x128xf32>
      %168 = arith.mulf %161, %167 : vector<1x16x128xf32>
      %c1_i32_96 = arith.constant 1 : i32
      %169 = arith.addi %1, %c1_i32_96 : i32
      %c2_i32_97 = arith.constant 2 : i32
      %170 = arith.addi %169, %c2_i32_97 : i32
      %c0_i32_98 = arith.constant 0 : i32
      %c15_i32_99 = arith.constant 15 : i32
      %171 = arith.maxsi %c0_i32_98, %170 : i32
      %172 = arith.minsi %c15_i32_99, %171 : i32
      %c0_100 = arith.constant 0 : index
      %173 = arith.index_cast %172 : i32 to index
      %c0_101 = arith.constant 0 : index
      %c0_102 = arith.constant 0 : index
      %174 = vector.load %arg3[%c0_100, %173, %c0_101, %c0_102] : memref<1x16x16x128xf32, #tpu.memory_space<vmem>>, vector<1x1x16x128xf32>
      %175 = vector.shape_cast %174 : vector<1x1x16x128xf32> to vector<1x16x128xf32>
      %c0_i32_103 = arith.constant 0 : i32
      %176 = arith.cmpi sge, %170, %c0_i32_103 : i32
      %c16_i32_104 = arith.constant 16 : i32
      %177 = arith.cmpi slt, %170, %c16_i32_104 : i32
      %178 = arith.andi %176, %177 : i1
      %179 = arith.extui %178 : i1 to i32
      %180 = arith.sitofp %179 : i32 to f32
      %181 = vector.broadcast %180 : f32 to vector<1x16x128xf32>
      %182 = arith.mulf %175, %181 : vector<1x16x128xf32>
      %c2_i32_105 = arith.constant 2 : i32
      %183 = arith.addi %1, %c2_i32_105 : i32
      %c2_i32_106 = arith.constant 2 : i32
      %184 = arith.addi %183, %c2_i32_106 : i32
      %c0_i32_107 = arith.constant 0 : i32
      %c15_i32_108 = arith.constant 15 : i32
      %185 = arith.maxsi %c0_i32_107, %184 : i32
      %186 = arith.minsi %c15_i32_108, %185 : i32
      %c0_109 = arith.constant 0 : index
      %187 = arith.index_cast %186 : i32 to index
      %c0_110 = arith.constant 0 : index
      %c0_111 = arith.constant 0 : index
      %188 = vector.load %arg3[%c0_109, %187, %c0_110, %c0_111] : memref<1x16x16x128xf32, #tpu.memory_space<vmem>>, vector<1x1x16x128xf32>
      %189 = vector.shape_cast %188 : vector<1x1x16x128xf32> to vector<1x16x128xf32>
      %c0_i32_112 = arith.constant 0 : i32
      %190 = arith.cmpi sge, %184, %c0_i32_112 : i32
      %c16_i32_113 = arith.constant 16 : i32
      %191 = arith.cmpi slt, %184, %c16_i32_113 : i32
      %192 = arith.andi %190, %191 : i1
      %193 = arith.extui %192 : i1 to i32
      %194 = arith.sitofp %193 : i32 to f32
      %195 = vector.broadcast %194 : f32 to vector<1x16x128xf32>
      %196 = arith.mulf %189, %195 : vector<1x16x128xf32>
      %c3_i32_114 = arith.constant 3 : i32
      %197 = arith.addi %1, %c3_i32_114 : i32
      %c2_i32_115 = arith.constant 2 : i32
      %198 = arith.addi %197, %c2_i32_115 : i32
      %c0_i32_116 = arith.constant 0 : i32
      %c15_i32_117 = arith.constant 15 : i32
      %199 = arith.maxsi %c0_i32_116, %198 : i32
      %200 = arith.minsi %c15_i32_117, %199 : i32
      %c0_118 = arith.constant 0 : index
      %201 = arith.index_cast %200 : i32 to index
      %c0_119 = arith.constant 0 : index
      %c0_120 = arith.constant 0 : index
      %202 = vector.load %arg3[%c0_118, %201, %c0_119, %c0_120] : memref<1x16x16x128xf32, #tpu.memory_space<vmem>>, vector<1x1x16x128xf32>
      %203 = vector.shape_cast %202 : vector<1x1x16x128xf32> to vector<1x16x128xf32>
      %c0_i32_121 = arith.constant 0 : i32
      %204 = arith.cmpi sge, %198, %c0_i32_121 : i32
      %c16_i32_122 = arith.constant 16 : i32
      %205 = arith.cmpi slt, %198, %c16_i32_122 : i32
      %206 = arith.andi %204, %205 : i1
      %207 = arith.extui %206 : i1 to i32
      %208 = arith.sitofp %207 : i32 to f32
      %209 = vector.broadcast %208 : f32 to vector<1x16x128xf32>
      %210 = arith.mulf %203, %209 : vector<1x16x128xf32>
      %c4_i32_123 = arith.constant 4 : i32
      %211 = arith.addi %1, %c4_i32_123 : i32
      %c2_i32_124 = arith.constant 2 : i32
      %212 = arith.addi %211, %c2_i32_124 : i32
      %c0_i32_125 = arith.constant 0 : i32
      %c15_i32_126 = arith.constant 15 : i32
      %213 = arith.maxsi %c0_i32_125, %212 : i32
      %214 = arith.minsi %c15_i32_126, %213 : i32
      %c0_127 = arith.constant 0 : index
      %215 = arith.index_cast %214 : i32 to index
      %c0_128 = arith.constant 0 : index
      %c0_129 = arith.constant 0 : index
      %216 = vector.load %arg3[%c0_127, %215, %c0_128, %c0_129] : memref<1x16x16x128xf32, #tpu.memory_space<vmem>>, vector<1x1x16x128xf32>
      %217 = vector.shape_cast %216 : vector<1x1x16x128xf32> to vector<1x16x128xf32>
      %c0_i32_130 = arith.constant 0 : i32
      %218 = arith.cmpi sge, %212, %c0_i32_130 : i32
      %c16_i32_131 = arith.constant 16 : i32
      %219 = arith.cmpi slt, %212, %c16_i32_131 : i32
      %220 = arith.andi %218, %219 : i1
      %221 = arith.extui %220 : i1 to i32
      %222 = arith.sitofp %221 : i32 to f32
      %223 = vector.broadcast %222 : f32 to vector<1x16x128xf32>
      %224 = arith.mulf %217, %223 : vector<1x16x128xf32>
      %c5_i32_132 = arith.constant 5 : i32
      %225 = arith.addi %1, %c5_i32_132 : i32
      %c2_i32_133 = arith.constant 2 : i32
      %226 = arith.addi %225, %c2_i32_133 : i32
      %c0_i32_134 = arith.constant 0 : i32
      %c15_i32_135 = arith.constant 15 : i32
      %227 = arith.maxsi %c0_i32_134, %226 : i32
      %228 = arith.minsi %c15_i32_135, %227 : i32
      %c0_136 = arith.constant 0 : index
      %229 = arith.index_cast %228 : i32 to index
      %c0_137 = arith.constant 0 : index
      %c0_138 = arith.constant 0 : index
      %230 = vector.load %arg3[%c0_136, %229, %c0_137, %c0_138] : memref<1x16x16x128xf32, #tpu.memory_space<vmem>>, vector<1x1x16x128xf32>
      %231 = vector.shape_cast %230 : vector<1x1x16x128xf32> to vector<1x16x128xf32>
      %c0_i32_139 = arith.constant 0 : i32
      %232 = arith.cmpi sge, %226, %c0_i32_139 : i32
      %c16_i32_140 = arith.constant 16 : i32
      %233 = arith.cmpi slt, %226, %c16_i32_140 : i32
      %234 = arith.andi %232, %233 : i1
      %235 = arith.extui %234 : i1 to i32
      %236 = arith.sitofp %235 : i32 to f32
      %237 = vector.broadcast %236 : f32 to vector<1x16x128xf32>
      %238 = arith.mulf %231, %237 : vector<1x16x128xf32>
      %c6_i32_141 = arith.constant 6 : i32
      %239 = arith.addi %1, %c6_i32_141 : i32
      %c2_i32_142 = arith.constant 2 : i32
      %240 = arith.addi %239, %c2_i32_142 : i32
      %c0_i32_143 = arith.constant 0 : i32
      %c15_i32_144 = arith.constant 15 : i32
      %241 = arith.maxsi %c0_i32_143, %240 : i32
      %242 = arith.minsi %c15_i32_144, %241 : i32
      %c0_145 = arith.constant 0 : index
      %243 = arith.index_cast %242 : i32 to index
      %c0_146 = arith.constant 0 : index
      %c0_147 = arith.constant 0 : index
      %244 = vector.load %arg3[%c0_145, %243, %c0_146, %c0_147] : memref<1x16x16x128xf32, #tpu.memory_space<vmem>>, vector<1x1x16x128xf32>
      %245 = vector.shape_cast %244 : vector<1x1x16x128xf32> to vector<1x16x128xf32>
      %c0_i32_148 = arith.constant 0 : i32
      %246 = arith.cmpi sge, %240, %c0_i32_148 : i32
      %c16_i32_149 = arith.constant 16 : i32
      %247 = arith.cmpi slt, %240, %c16_i32_149 : i32
      %248 = arith.andi %246, %247 : i1
      %249 = arith.extui %248 : i1 to i32
      %250 = arith.sitofp %249 : i32 to f32
      %251 = vector.broadcast %250 : f32 to vector<1x16x128xf32>
      %252 = arith.mulf %245, %251 : vector<1x16x128xf32>
      %c7_i32_150 = arith.constant 7 : i32
      %253 = arith.addi %1, %c7_i32_150 : i32
      %c2_i32_151 = arith.constant 2 : i32
      %254 = arith.addi %253, %c2_i32_151 : i32
      %c0_i32_152 = arith.constant 0 : i32
      %c15_i32_153 = arith.constant 15 : i32
      %255 = arith.maxsi %c0_i32_152, %254 : i32
      %256 = arith.minsi %c15_i32_153, %255 : i32
      %c0_154 = arith.constant 0 : index
      %257 = arith.index_cast %256 : i32 to index
      %c0_155 = arith.constant 0 : index
      %c0_156 = arith.constant 0 : index
      %258 = vector.load %arg3[%c0_154, %257, %c0_155, %c0_156] : memref<1x16x16x128xf32, #tpu.memory_space<vmem>>, vector<1x1x16x128xf32>
      %259 = vector.shape_cast %258 : vector<1x1x16x128xf32> to vector<1x16x128xf32>
      %c0_i32_157 = arith.constant 0 : i32
      %260 = arith.cmpi sge, %254, %c0_i32_157 : i32
      %c16_i32_158 = arith.constant 16 : i32
      %261 = arith.cmpi slt, %254, %c16_i32_158 : i32
      %262 = arith.andi %260, %261 : i1
      %263 = arith.extui %262 : i1 to i32
      %264 = arith.sitofp %263 : i32 to f32
      %265 = vector.broadcast %264 : f32 to vector<1x16x128xf32>
      %266 = arith.mulf %259, %265 : vector<1x16x128xf32>
      %267 = tpu.concatenate %168, %182, %196, %210, %224, %238, %252, %266 in 0 : vector<1x16x128xf32>, vector<1x16x128xf32>, vector<1x16x128xf32>, vector<1x16x128xf32>, vector<1x16x128xf32>, vector<1x16x128xf32>, vector<1x16x128xf32>, vector<1x16x128xf32> -> vector<8x16x128xf32>
      %cst_159 = arith.constant 0.000000e+00 : f32
      %268 = vector.broadcast %cst_159 : f32 to vector<8x2x128xf32>
      %269 = vector.extract_strided_slice %267 {offsets = [0, 0, 0], sizes = [8, 14, 128], strides = [1, 1, 1]} : vector<8x16x128xf32> to vector<8x14x128xf32>
      %270 = tpu.concatenate %268, %269 in 1 : vector<8x2x128xf32>, vector<8x14x128xf32> -> vector<8x16x128xf32>
      %271 = vector.shape_cast %270 : vector<8x16x128xf32> to vector<128x128xf32>
      %c0_160 = arith.constant 0 : index
      %c768 = arith.constant 768 : index
      %272 = vector.load %arg7[%c0_160, %c768] : memref<128x1152xf32, #tpu.memory_space<vmem>>, vector<128x128xf32>
      tpu.vector_store %arg7[%c0_160, %c768], %271 {strides = array<i32>} : memref<128x1152xf32, #tpu.memory_space<vmem>>, vector<128x128xf32>,
      %273 = vector.shape_cast %267 : vector<8x16x128xf32> to vector<128x128xf32>
      %c0_161 = arith.constant 0 : index
      %c896 = arith.constant 896 : index
      %274 = vector.load %arg7[%c0_161, %c896] : memref<128x1152xf32, #tpu.memory_space<vmem>>, vector<128x128xf32>
      tpu.vector_store %arg7[%c0_161, %c896], %273 {strides = array<i32>} : memref<128x1152xf32, #tpu.memory_space<vmem>>, vector<128x128xf32>,
      %cst_162 = arith.constant 0.000000e+00 : f32
      %275 = vector.broadcast %cst_162 : f32 to vector<8x2x128xf32>
      %276 = vector.extract_strided_slice %267 {offsets = [0, 2, 0], sizes = [8, 14, 128], strides = [1, 1, 1]} : vector<8x16x128xf32> to vector<8x14x128xf32>
      %277 = tpu.concatenate %276, %275 in 1 : vector<8x14x128xf32>, vector<8x2x128xf32> -> vector<8x16x128xf32>
      %278 = vector.shape_cast %277 : vector<8x16x128xf32> to vector<128x128xf32>
      %c0_163 = arith.constant 0 : index
      %c1024 = arith.constant 1024 : index
      %279 = vector.load %arg7[%c0_163, %c1024] : memref<128x1152xf32, #tpu.memory_space<vmem>>, vector<128x128xf32>
      tpu.vector_store %arg7[%c0_163, %c1024], %278 {strides = array<i32>} : memref<128x1152xf32, #tpu.memory_space<vmem>>, vector<128x128xf32>,
    } else {
    }
    %c0 = arith.constant 0 : index
    %c0_1 = arith.constant 0 : index
    %5 = vector.load %arg7[%c0, %c0_1] : memref<128x1152xf32, #tpu.memory_space<vmem>>, vector<128x1152xf32>
    %c0_2 = arith.constant 0 : index
    %c0_3 = arith.constant 0 : index
    %6 = vector.load %arg4[%c0_2, %c0_3] : memref<1152x128xf32, #tpu.memory_space<vmem>>, vector<1152x128xf32>
    %cst = arith.constant dense<0.000000e+00> : vector<128x128xf32>
    %7 = tpu.matmul %5, %6, %cst {dimension_numbers = #tpu.dot_dimension_numbers<[1], [0], [0], [1], [0, 0, 1, 1], [], []>} : vector<128x1152xf32>, vector<1152x128xf32>, vector<128x128xf32> -> vector<128x128xf32>
    %c0_4 = arith.constant 0 : index
    %c0_5 = arith.constant 0 : index
    %8 = vector.load %arg5[%c0_4, %c0_5] : memref<1x128xf32, #tpu.memory_space<vmem>>, vector<1x128xf32>
    %9 = vector.broadcast %8 : vector<1x128xf32> to vector<128x128xf32>
    %10 = arith.addf %7, %9 : vector<128x128xf32>
    %cst_6 = arith.constant 0.000000e+00 : f32
    %11 = vector.broadcast %cst_6 : f32 to vector<128x128xf32>
    %12 = arith.maximumf %10, %11 : vector<128x128xf32>
    %13 = vector.shape_cast %12 : vector<128x128xf32> to vector<1x8x16x128xf32>
    %c0_7 = arith.constant 0 : index
    %c0_8 = arith.constant 0 : index
    %c0_9 = arith.constant 0 : index
    %c0_10 = arith.constant 0 : index
    %14 = vector.load %arg6[%c0_7, %c0_8, %c0_9, %c0_10] : memref<1x8x16x128xf32, #tpu.memory_space<vmem>>, vector<1x8x16x128xf32>
    tpu.vector_store %arg6[%c0_7, %c0_8, %c0_9, %c0_10], %13 {strides = array<i32>} : memref<1x8x16x128xf32, #tpu.memory_space<vmem>>, vector<1x8x16x128xf32>,
    return
  }
  func.func @transform_0(%arg0: i32, %arg1: i32, %arg2: i32) -> (i32, i32, i32, i32) {
    %c0_i32 = arith.constant 0 : i32
    %c0_i32_0 = arith.constant 0 : i32
    %c0_i32_1 = arith.constant 0 : i32
    %c0_i32_2 = arith.constant 0 : i32
    return %arg0, %c0_i32, %c0_i32_0, %c0_i32_1 : i32, i32, i32, i32
  }
  func.func @transform_1(%arg0: i32, %arg1: i32, %arg2: i32) -> (i32, i32) {
    %c0_i32 = arith.constant 0 : i32
    %c0_i32_0 = arith.constant 0 : i32
    return %c0_i32, %arg2 : i32, i32
  }
  func.func @transform_2(%arg0: i32, %arg1: i32, %arg2: i32) -> (i32, i32) {
    %c0_i32 = arith.constant 0 : i32
    %c0_i32_0 = arith.constant 0 : i32
    return %c0_i32, %arg2 : i32, i32
  }
  func.func @transform_3(%arg0: i32, %arg1: i32, %arg2: i32) -> (i32, i32, i32, i32) {
    %c0_i32 = arith.constant 0 : i32
    %c0_i32_0 = arith.constant 0 : i32
    return %arg0, %arg1, %c0_i32, %arg2 : i32, i32, i32, i32
  }
}

module attributes {stable_mosaic.version = 11 : i64} {
  func.func @_dilated_conv_kernel(%arg0: i32, %arg1: i32, %arg2: i32, %arg3: memref<1x16x16x128xf32, #tpu.memory_space<vmem>>, %arg4: memref<1152x128xf32, #tpu.memory_space<vmem>>, %arg5: memref<1x128xf32, #tpu.memory_space<vmem>>, %arg6: memref<1x8x16x128xf32, #tpu.memory_space<vmem>>, %arg7: memref<128x1152xf32, #tpu.memory_space<vmem>>) attributes {dimension_semantics = [#tpu.dimension_semantics<parallel>, #tpu.dimension_semantics<parallel>, #tpu.dimension_semantics<arbitrary>], iteration_bounds = array<i64: 2, 2, 1>, scalar_prefetch = 0 : i64, scratch_operands = 1 : i64, tpu.core_type = #tpu.core_type<tc>, window_params = [{transform_indices = @transform_0, window_bounds = array<i64: 1, 16, 16, 128>}, {transform_indices = @transform_1, window_bounds = array<i64: 1152, 128>}, {transform_indices = @transform_2, window_bounds = array<i64: 1, 128>}, {transform_indices = @transform_3, window_bounds = array<i64: 1, 8, 16, 128>}]} {
    %c8_i32 = arith.constant 8 : i32
    %0 = arith.muli %arg1, %c8_i32 : i32
    %1 = tpu.assume_multiple %0, 8 : i32
    %c0_i32 = arith.constant 0 : i32
    %2 = arith.cmpi eq, %arg2, %c0_i32 : i32
    %3 = arith.extui %2 : i1 to i32
    %c0_i32_0 = arith.constant 0 : i32
    %4 = arith.cmpi ne, %3, %c0_i32_0 : i32
    scf.if %4 {
      %c0_i32_11 = arith.constant 0 : i32
      %15 = arith.addi %1, %c0_i32_11 : i32
      %c-4_i32 = arith.constant -4 : i32
      %16 = arith.addi %15, %c-4_i32 : i32
      %c0_i32_12 = arith.constant 0 : i32
      %c15_i32 = arith.constant 15 : i32
      %17 = arith.maxsi %c0_i32_12, %16 : i32
      %18 = arith.minsi %c15_i32, %17 : i32
      %c0_13 = arith.constant 0 : index
      %19 = arith.index_cast %18 : i32 to index
      %c0_14 = arith.constant 0 : index
      %c0_15 = arith.constant 0 : index
      %20 = vector.load %arg3[%c0_13, %19, %c0_14, %c0_15] : memref<1x16x16x128xf32, #tpu.memory_space<vmem>>, vector<1x1x16x128xf32>
      %21 = vector.shape_cast %20 : vector<1x1x16x128xf32> to vector<1x16x128xf32>
      %c0_i32_16 = arith.constant 0 : i32
      %22 = arith.cmpi sge, %16, %c0_i32_16 : i32
      %c16_i32 = arith.constant 16 : i32
      %23 = arith.cmpi slt, %16, %c16_i32 : i32
      %24 = arith.andi %22, %23 : i1
      %25 = arith.extui %24 : i1 to i32
      %26 = arith.sitofp %25 : i32 to f32
      %27 = vector.broadcast %26 : f32 to vector<1x16x128xf32>
      %28 = arith.mulf %21, %27 : vector<1x16x128xf32>
      %c1_i32 = arith.constant 1 : i32
      %29 = arith.addi %1, %c1_i32 : i32
      %c-4_i32_17 = arith.constant -4 : i32
      %30 = arith.addi %29, %c-4_i32_17 : i32
      %c0_i32_18 = arith.constant 0 : i32
      %c15_i32_19 = arith.constant 15 : i32
      %31 = arith.maxsi %c0_i32_18, %30 : i32
      %32 = arith.minsi %c15_i32_19, %31 : i32
      %c0_20 = arith.constant 0 : index
      %33 = arith.index_cast %32 : i32 to index
      %c0_21 = arith.constant 0 : index
      %c0_22 = arith.constant 0 : index
      %34 = vector.load %arg3[%c0_20, %33, %c0_21, %c0_22] : memref<1x16x16x128xf32, #tpu.memory_space<vmem>>, vector<1x1x16x128xf32>
      %35 = vector.shape_cast %34 : vector<1x1x16x128xf32> to vector<1x16x128xf32>
      %c0_i32_23 = arith.constant 0 : i32
      %36 = arith.cmpi sge, %30, %c0_i32_23 : i32
      %c16_i32_24 = arith.constant 16 : i32
      %37 = arith.cmpi slt, %30, %c16_i32_24 : i32
      %38 = arith.andi %36, %37 : i1
      %39 = arith.extui %38 : i1 to i32
      %40 = arith.sitofp %39 : i32 to f32
      %41 = vector.broadcast %40 : f32 to vector<1x16x128xf32>
      %42 = arith.mulf %35, %41 : vector<1x16x128xf32>
      %c2_i32 = arith.constant 2 : i32
      %43 = arith.addi %1, %c2_i32 : i32
      %c-4_i32_25 = arith.constant -4 : i32
      %44 = arith.addi %43, %c-4_i32_25 : i32
      %c0_i32_26 = arith.constant 0 : i32
      %c15_i32_27 = arith.constant 15 : i32
      %45 = arith.maxsi %c0_i32_26, %44 : i32
      %46 = arith.minsi %c15_i32_27, %45 : i32
      %c0_28 = arith.constant 0 : index
      %47 = arith.index_cast %46 : i32 to index
      %c0_29 = arith.constant 0 : index
      %c0_30 = arith.constant 0 : index
      %48 = vector.load %arg3[%c0_28, %47, %c0_29, %c0_30] : memref<1x16x16x128xf32, #tpu.memory_space<vmem>>, vector<1x1x16x128xf32>
      %49 = vector.shape_cast %48 : vector<1x1x16x128xf32> to vector<1x16x128xf32>
      %c0_i32_31 = arith.constant 0 : i32
      %50 = arith.cmpi sge, %44, %c0_i32_31 : i32
      %c16_i32_32 = arith.constant 16 : i32
      %51 = arith.cmpi slt, %44, %c16_i32_32 : i32
      %52 = arith.andi %50, %51 : i1
      %53 = arith.extui %52 : i1 to i32
      %54 = arith.sitofp %53 : i32 to f32
      %55 = vector.broadcast %54 : f32 to vector<1x16x128xf32>
      %56 = arith.mulf %49, %55 : vector<1x16x128xf32>
      %c3_i32 = arith.constant 3 : i32
      %57 = arith.addi %1, %c3_i32 : i32
      %c-4_i32_33 = arith.constant -4 : i32
      %58 = arith.addi %57, %c-4_i32_33 : i32
      %c0_i32_34 = arith.constant 0 : i32
      %c15_i32_35 = arith.constant 15 : i32
      %59 = arith.maxsi %c0_i32_34, %58 : i32
      %60 = arith.minsi %c15_i32_35, %59 : i32
      %c0_36 = arith.constant 0 : index
      %61 = arith.index_cast %60 : i32 to index
      %c0_37 = arith.constant 0 : index
      %c0_38 = arith.constant 0 : index
      %62 = vector.load %arg3[%c0_36, %61, %c0_37, %c0_38] : memref<1x16x16x128xf32, #tpu.memory_space<vmem>>, vector<1x1x16x128xf32>
      %63 = vector.shape_cast %62 : vector<1x1x16x128xf32> to vector<1x16x128xf32>
      %c0_i32_39 = arith.constant 0 : i32
      %64 = arith.cmpi sge, %58, %c0_i32_39 : i32
      %c16_i32_40 = arith.constant 16 : i32
      %65 = arith.cmpi slt, %58, %c16_i32_40 : i32
      %66 = arith.andi %64, %65 : i1
      %67 = arith.extui %66 : i1 to i32
      %68 = arith.sitofp %67 : i32 to f32
      %69 = vector.broadcast %68 : f32 to vector<1x16x128xf32>
      %70 = arith.mulf %63, %69 : vector<1x16x128xf32>
      %c4_i32 = arith.constant 4 : i32
      %71 = arith.addi %1, %c4_i32 : i32
      %c-4_i32_41 = arith.constant -4 : i32
      %72 = arith.addi %71, %c-4_i32_41 : i32
      %c0_i32_42 = arith.constant 0 : i32
      %c15_i32_43 = arith.constant 15 : i32
      %73 = arith.maxsi %c0_i32_42, %72 : i32
      %74 = arith.minsi %c15_i32_43, %73 : i32
      %c0_44 = arith.constant 0 : index
      %75 = arith.index_cast %74 : i32 to index
      %c0_45 = arith.constant 0 : index
      %c0_46 = arith.constant 0 : index
      %76 = vector.load %arg3[%c0_44, %75, %c0_45, %c0_46] : memref<1x16x16x128xf32, #tpu.memory_space<vmem>>, vector<1x1x16x128xf32>
      %77 = vector.shape_cast %76 : vector<1x1x16x128xf32> to vector<1x16x128xf32>
      %c0_i32_47 = arith.constant 0 : i32
      %78 = arith.cmpi sge, %72, %c0_i32_47 : i32
      %c16_i32_48 = arith.constant 16 : i32
      %79 = arith.cmpi slt, %72, %c16_i32_48 : i32
      %80 = arith.andi %78, %79 : i1
      %81 = arith.extui %80 : i1 to i32
      %82 = arith.sitofp %81 : i32 to f32
      %83 = vector.broadcast %82 : f32 to vector<1x16x128xf32>
      %84 = arith.mulf %77, %83 : vector<1x16x128xf32>
      %c5_i32 = arith.constant 5 : i32
      %85 = arith.addi %1, %c5_i32 : i32
      %c-4_i32_49 = arith.constant -4 : i32
      %86 = arith.addi %85, %c-4_i32_49 : i32
      %c0_i32_50 = arith.constant 0 : i32
      %c15_i32_51 = arith.constant 15 : i32
      %87 = arith.maxsi %c0_i32_50, %86 : i32
      %88 = arith.minsi %c15_i32_51, %87 : i32
      %c0_52 = arith.constant 0 : index
      %89 = arith.index_cast %88 : i32 to index
      %c0_53 = arith.constant 0 : index
      %c0_54 = arith.constant 0 : index
      %90 = vector.load %arg3[%c0_52, %89, %c0_53, %c0_54] : memref<1x16x16x128xf32, #tpu.memory_space<vmem>>, vector<1x1x16x128xf32>
      %91 = vector.shape_cast %90 : vector<1x1x16x128xf32> to vector<1x16x128xf32>
      %c0_i32_55 = arith.constant 0 : i32
      %92 = arith.cmpi sge, %86, %c0_i32_55 : i32
      %c16_i32_56 = arith.constant 16 : i32
      %93 = arith.cmpi slt, %86, %c16_i32_56 : i32
      %94 = arith.andi %92, %93 : i1
      %95 = arith.extui %94 : i1 to i32
      %96 = arith.sitofp %95 : i32 to f32
      %97 = vector.broadcast %96 : f32 to vector<1x16x128xf32>
      %98 = arith.mulf %91, %97 : vector<1x16x128xf32>
      %c6_i32 = arith.constant 6 : i32
      %99 = arith.addi %1, %c6_i32 : i32
      %c-4_i32_57 = arith.constant -4 : i32
      %100 = arith.addi %99, %c-4_i32_57 : i32
      %c0_i32_58 = arith.constant 0 : i32
      %c15_i32_59 = arith.constant 15 : i32
      %101 = arith.maxsi %c0_i32_58, %100 : i32
      %102 = arith.minsi %c15_i32_59, %101 : i32
      %c0_60 = arith.constant 0 : index
      %103 = arith.index_cast %102 : i32 to index
      %c0_61 = arith.constant 0 : index
      %c0_62 = arith.constant 0 : index
      %104 = vector.load %arg3[%c0_60, %103, %c0_61, %c0_62] : memref<1x16x16x128xf32, #tpu.memory_space<vmem>>, vector<1x1x16x128xf32>
      %105 = vector.shape_cast %104 : vector<1x1x16x128xf32> to vector<1x16x128xf32>
      %c0_i32_63 = arith.constant 0 : i32
      %106 = arith.cmpi sge, %100, %c0_i32_63 : i32
      %c16_i32_64 = arith.constant 16 : i32
      %107 = arith.cmpi slt, %100, %c16_i32_64 : i32
      %108 = arith.andi %106, %107 : i1
      %109 = arith.extui %108 : i1 to i32
      %110 = arith.sitofp %109 : i32 to f32
      %111 = vector.broadcast %110 : f32 to vector<1x16x128xf32>
      %112 = arith.mulf %105, %111 : vector<1x16x128xf32>
      %c7_i32 = arith.constant 7 : i32
      %113 = arith.addi %1, %c7_i32 : i32
      %c-4_i32_65 = arith.constant -4 : i32
      %114 = arith.addi %113, %c-4_i32_65 : i32
      %c0_i32_66 = arith.constant 0 : i32
      %c15_i32_67 = arith.constant 15 : i32
      %115 = arith.maxsi %c0_i32_66, %114 : i32
      %116 = arith.minsi %c15_i32_67, %115 : i32
      %c0_68 = arith.constant 0 : index
      %117 = arith.index_cast %116 : i32 to index
      %c0_69 = arith.constant 0 : index
      %c0_70 = arith.constant 0 : index
      %118 = vector.load %arg3[%c0_68, %117, %c0_69, %c0_70] : memref<1x16x16x128xf32, #tpu.memory_space<vmem>>, vector<1x1x16x128xf32>
      %119 = vector.shape_cast %118 : vector<1x1x16x128xf32> to vector<1x16x128xf32>
      %c0_i32_71 = arith.constant 0 : i32
      %120 = arith.cmpi sge, %114, %c0_i32_71 : i32
      %c16_i32_72 = arith.constant 16 : i32
      %121 = arith.cmpi slt, %114, %c16_i32_72 : i32
      %122 = arith.andi %120, %121 : i1
      %123 = arith.extui %122 : i1 to i32
      %124 = arith.sitofp %123 : i32 to f32
      %125 = vector.broadcast %124 : f32 to vector<1x16x128xf32>
      %126 = arith.mulf %119, %125 : vector<1x16x128xf32>
      %127 = tpu.concatenate %28, %42, %56, %70, %84, %98, %112, %126 in 0 : vector<1x16x128xf32>, vector<1x16x128xf32>, vector<1x16x128xf32>, vector<1x16x128xf32>, vector<1x16x128xf32>, vector<1x16x128xf32>, vector<1x16x128xf32>, vector<1x16x128xf32> -> vector<8x16x128xf32>
      %cst_73 = arith.constant 0.000000e+00 : f32
      %128 = vector.broadcast %cst_73 : f32 to vector<8x4x128xf32>
      %129 = vector.extract_strided_slice %127 {offsets = [0, 0, 0], sizes = [8, 12, 128], strides = [1, 1, 1]} : vector<8x16x128xf32> to vector<8x12x128xf32>
      %130 = tpu.concatenate %128, %129 in 1 : vector<8x4x128xf32>, vector<8x12x128xf32> -> vector<8x16x128xf32>
      %131 = vector.shape_cast %130 : vector<8x16x128xf32> to vector<128x128xf32>
      %c0_74 = arith.constant 0 : index
      %c0_75 = arith.constant 0 : index
      %132 = vector.load %arg7[%c0_74, %c0_75] : memref<128x1152xf32, #tpu.memory_space<vmem>>, vector<128x128xf32>
      tpu.vector_store %arg7[%c0_74, %c0_75], %131 {strides = array<i32>} : memref<128x1152xf32, #tpu.memory_space<vmem>>, vector<128x128xf32>,
      %133 = vector.shape_cast %127 : vector<8x16x128xf32> to vector<128x128xf32>
      %c0_76 = arith.constant 0 : index
      %c128 = arith.constant 128 : index
      %134 = vector.load %arg7[%c0_76, %c128] : memref<128x1152xf32, #tpu.memory_space<vmem>>, vector<128x128xf32>
      tpu.vector_store %arg7[%c0_76, %c128], %133 {strides = array<i32>} : memref<128x1152xf32, #tpu.memory_space<vmem>>, vector<128x128xf32>,
      %cst_77 = arith.constant 0.000000e+00 : f32
      %135 = vector.broadcast %cst_77 : f32 to vector<8x4x128xf32>
      %136 = vector.extract_strided_slice %127 {offsets = [0, 4, 0], sizes = [8, 12, 128], strides = [1, 1, 1]} : vector<8x16x128xf32> to vector<8x12x128xf32>
      %137 = tpu.concatenate %136, %135 in 1 : vector<8x12x128xf32>, vector<8x4x128xf32> -> vector<8x16x128xf32>
      %138 = vector.shape_cast %137 : vector<8x16x128xf32> to vector<128x128xf32>
      %c0_78 = arith.constant 0 : index
      %c256 = arith.constant 256 : index
      %139 = vector.load %arg7[%c0_78, %c256] : memref<128x1152xf32, #tpu.memory_space<vmem>>, vector<128x128xf32>
      tpu.vector_store %arg7[%c0_78, %c256], %138 {strides = array<i32>} : memref<128x1152xf32, #tpu.memory_space<vmem>>, vector<128x128xf32>,
      %c0_79 = arith.constant 0 : index
      %140 = arith.index_cast %1 : i32 to index
      %c0_80 = arith.constant 0 : index
      %c0_81 = arith.constant 0 : index
      %141 = vector.load %arg3[%c0_79, %140, %c0_80, %c0_81] : memref<1x16x16x128xf32, #tpu.memory_space<vmem>>, vector<1x8x16x128xf32>
      %142 = vector.shape_cast %141 : vector<1x8x16x128xf32> to vector<8x16x128xf32>
      %cst_82 = arith.constant 0.000000e+00 : f32
      %143 = vector.broadcast %cst_82 : f32 to vector<8x4x128xf32>
      %144 = vector.extract_strided_slice %142 {offsets = [0, 0, 0], sizes = [8, 12, 128], strides = [1, 1, 1]} : vector<8x16x128xf32> to vector<8x12x128xf32>
      %145 = tpu.concatenate %143, %144 in 1 : vector<8x4x128xf32>, vector<8x12x128xf32> -> vector<8x16x128xf32>
      %146 = vector.shape_cast %145 : vector<8x16x128xf32> to vector<128x128xf32>
      %c0_83 = arith.constant 0 : index
      %c384 = arith.constant 384 : index
      %147 = vector.load %arg7[%c0_83, %c384] : memref<128x1152xf32, #tpu.memory_space<vmem>>, vector<128x128xf32>
      tpu.vector_store %arg7[%c0_83, %c384], %146 {strides = array<i32>} : memref<128x1152xf32, #tpu.memory_space<vmem>>, vector<128x128xf32>,
      %148 = vector.shape_cast %142 : vector<8x16x128xf32> to vector<128x128xf32>
      %c0_84 = arith.constant 0 : index
      %c512 = arith.constant 512 : index
      %149 = vector.load %arg7[%c0_84, %c512] : memref<128x1152xf32, #tpu.memory_space<vmem>>, vector<128x128xf32>
      tpu.vector_store %arg7[%c0_84, %c512], %148 {strides = array<i32>} : memref<128x1152xf32, #tpu.memory_space<vmem>>, vector<128x128xf32>,
      %cst_85 = arith.constant 0.000000e+00 : f32
      %150 = vector.broadcast %cst_85 : f32 to vector<8x4x128xf32>
      %151 = vector.extract_strided_slice %142 {offsets = [0, 4, 0], sizes = [8, 12, 128], strides = [1, 1, 1]} : vector<8x16x128xf32> to vector<8x12x128xf32>
      %152 = tpu.concatenate %151, %150 in 1 : vector<8x12x128xf32>, vector<8x4x128xf32> -> vector<8x16x128xf32>
      %153 = vector.shape_cast %152 : vector<8x16x128xf32> to vector<128x128xf32>
      %c0_86 = arith.constant 0 : index
      %c640 = arith.constant 640 : index
      %154 = vector.load %arg7[%c0_86, %c640] : memref<128x1152xf32, #tpu.memory_space<vmem>>, vector<128x128xf32>
      tpu.vector_store %arg7[%c0_86, %c640], %153 {strides = array<i32>} : memref<128x1152xf32, #tpu.memory_space<vmem>>, vector<128x128xf32>,
      %c0_i32_87 = arith.constant 0 : i32
      %155 = arith.addi %1, %c0_i32_87 : i32
      %c4_i32_88 = arith.constant 4 : i32
      %156 = arith.addi %155, %c4_i32_88 : i32
      %c0_i32_89 = arith.constant 0 : i32
      %c15_i32_90 = arith.constant 15 : i32
      %157 = arith.maxsi %c0_i32_89, %156 : i32
      %158 = arith.minsi %c15_i32_90, %157 : i32
      %c0_91 = arith.constant 0 : index
      %159 = arith.index_cast %158 : i32 to index
      %c0_92 = arith.constant 0 : index
      %c0_93 = arith.constant 0 : index
      %160 = vector.load %arg3[%c0_91, %159, %c0_92, %c0_93] : memref<1x16x16x128xf32, #tpu.memory_space<vmem>>, vector<1x1x16x128xf32>
      %161 = vector.shape_cast %160 : vector<1x1x16x128xf32> to vector<1x16x128xf32>
      %c0_i32_94 = arith.constant 0 : i32
      %162 = arith.cmpi sge, %156, %c0_i32_94 : i32
      %c16_i32_95 = arith.constant 16 : i32
      %163 = arith.cmpi slt, %156, %c16_i32_95 : i32
      %164 = arith.andi %162, %163 : i1
      %165 = arith.extui %164 : i1 to i32
      %166 = arith.sitofp %165 : i32 to f32
      %167 = vector.broadcast %166 : f32 to vector<1x16x128xf32>
      %168 = arith.mulf %161, %167 : vector<1x16x128xf32>
      %c1_i32_96 = arith.constant 1 : i32
      %169 = arith.addi %1, %c1_i32_96 : i32
      %c4_i32_97 = arith.constant 4 : i32
      %170 = arith.addi %169, %c4_i32_97 : i32
      %c0_i32_98 = arith.constant 0 : i32
      %c15_i32_99 = arith.constant 15 : i32
      %171 = arith.maxsi %c0_i32_98, %170 : i32
      %172 = arith.minsi %c15_i32_99, %171 : i32
      %c0_100 = arith.constant 0 : index
      %173 = arith.index_cast %172 : i32 to index
      %c0_101 = arith.constant 0 : index
      %c0_102 = arith.constant 0 : index
      %174 = vector.load %arg3[%c0_100, %173, %c0_101, %c0_102] : memref<1x16x16x128xf32, #tpu.memory_space<vmem>>, vector<1x1x16x128xf32>
      %175 = vector.shape_cast %174 : vector<1x1x16x128xf32> to vector<1x16x128xf32>
      %c0_i32_103 = arith.constant 0 : i32
      %176 = arith.cmpi sge, %170, %c0_i32_103 : i32
      %c16_i32_104 = arith.constant 16 : i32
      %177 = arith.cmpi slt, %170, %c16_i32_104 : i32
      %178 = arith.andi %176, %177 : i1
      %179 = arith.extui %178 : i1 to i32
      %180 = arith.sitofp %179 : i32 to f32
      %181 = vector.broadcast %180 : f32 to vector<1x16x128xf32>
      %182 = arith.mulf %175, %181 : vector<1x16x128xf32>
      %c2_i32_105 = arith.constant 2 : i32
      %183 = arith.addi %1, %c2_i32_105 : i32
      %c4_i32_106 = arith.constant 4 : i32
      %184 = arith.addi %183, %c4_i32_106 : i32
      %c0_i32_107 = arith.constant 0 : i32
      %c15_i32_108 = arith.constant 15 : i32
      %185 = arith.maxsi %c0_i32_107, %184 : i32
      %186 = arith.minsi %c15_i32_108, %185 : i32
      %c0_109 = arith.constant 0 : index
      %187 = arith.index_cast %186 : i32 to index
      %c0_110 = arith.constant 0 : index
      %c0_111 = arith.constant 0 : index
      %188 = vector.load %arg3[%c0_109, %187, %c0_110, %c0_111] : memref<1x16x16x128xf32, #tpu.memory_space<vmem>>, vector<1x1x16x128xf32>
      %189 = vector.shape_cast %188 : vector<1x1x16x128xf32> to vector<1x16x128xf32>
      %c0_i32_112 = arith.constant 0 : i32
      %190 = arith.cmpi sge, %184, %c0_i32_112 : i32
      %c16_i32_113 = arith.constant 16 : i32
      %191 = arith.cmpi slt, %184, %c16_i32_113 : i32
      %192 = arith.andi %190, %191 : i1
      %193 = arith.extui %192 : i1 to i32
      %194 = arith.sitofp %193 : i32 to f32
      %195 = vector.broadcast %194 : f32 to vector<1x16x128xf32>
      %196 = arith.mulf %189, %195 : vector<1x16x128xf32>
      %c3_i32_114 = arith.constant 3 : i32
      %197 = arith.addi %1, %c3_i32_114 : i32
      %c4_i32_115 = arith.constant 4 : i32
      %198 = arith.addi %197, %c4_i32_115 : i32
      %c0_i32_116 = arith.constant 0 : i32
      %c15_i32_117 = arith.constant 15 : i32
      %199 = arith.maxsi %c0_i32_116, %198 : i32
      %200 = arith.minsi %c15_i32_117, %199 : i32
      %c0_118 = arith.constant 0 : index
      %201 = arith.index_cast %200 : i32 to index
      %c0_119 = arith.constant 0 : index
      %c0_120 = arith.constant 0 : index
      %202 = vector.load %arg3[%c0_118, %201, %c0_119, %c0_120] : memref<1x16x16x128xf32, #tpu.memory_space<vmem>>, vector<1x1x16x128xf32>
      %203 = vector.shape_cast %202 : vector<1x1x16x128xf32> to vector<1x16x128xf32>
      %c0_i32_121 = arith.constant 0 : i32
      %204 = arith.cmpi sge, %198, %c0_i32_121 : i32
      %c16_i32_122 = arith.constant 16 : i32
      %205 = arith.cmpi slt, %198, %c16_i32_122 : i32
      %206 = arith.andi %204, %205 : i1
      %207 = arith.extui %206 : i1 to i32
      %208 = arith.sitofp %207 : i32 to f32
      %209 = vector.broadcast %208 : f32 to vector<1x16x128xf32>
      %210 = arith.mulf %203, %209 : vector<1x16x128xf32>
      %c4_i32_123 = arith.constant 4 : i32
      %211 = arith.addi %1, %c4_i32_123 : i32
      %c4_i32_124 = arith.constant 4 : i32
      %212 = arith.addi %211, %c4_i32_124 : i32
      %c0_i32_125 = arith.constant 0 : i32
      %c15_i32_126 = arith.constant 15 : i32
      %213 = arith.maxsi %c0_i32_125, %212 : i32
      %214 = arith.minsi %c15_i32_126, %213 : i32
      %c0_127 = arith.constant 0 : index
      %215 = arith.index_cast %214 : i32 to index
      %c0_128 = arith.constant 0 : index
      %c0_129 = arith.constant 0 : index
      %216 = vector.load %arg3[%c0_127, %215, %c0_128, %c0_129] : memref<1x16x16x128xf32, #tpu.memory_space<vmem>>, vector<1x1x16x128xf32>
      %217 = vector.shape_cast %216 : vector<1x1x16x128xf32> to vector<1x16x128xf32>
      %c0_i32_130 = arith.constant 0 : i32
      %218 = arith.cmpi sge, %212, %c0_i32_130 : i32
      %c16_i32_131 = arith.constant 16 : i32
      %219 = arith.cmpi slt, %212, %c16_i32_131 : i32
      %220 = arith.andi %218, %219 : i1
      %221 = arith.extui %220 : i1 to i32
      %222 = arith.sitofp %221 : i32 to f32
      %223 = vector.broadcast %222 : f32 to vector<1x16x128xf32>
      %224 = arith.mulf %217, %223 : vector<1x16x128xf32>
      %c5_i32_132 = arith.constant 5 : i32
      %225 = arith.addi %1, %c5_i32_132 : i32
      %c4_i32_133 = arith.constant 4 : i32
      %226 = arith.addi %225, %c4_i32_133 : i32
      %c0_i32_134 = arith.constant 0 : i32
      %c15_i32_135 = arith.constant 15 : i32
      %227 = arith.maxsi %c0_i32_134, %226 : i32
      %228 = arith.minsi %c15_i32_135, %227 : i32
      %c0_136 = arith.constant 0 : index
      %229 = arith.index_cast %228 : i32 to index
      %c0_137 = arith.constant 0 : index
      %c0_138 = arith.constant 0 : index
      %230 = vector.load %arg3[%c0_136, %229, %c0_137, %c0_138] : memref<1x16x16x128xf32, #tpu.memory_space<vmem>>, vector<1x1x16x128xf32>
      %231 = vector.shape_cast %230 : vector<1x1x16x128xf32> to vector<1x16x128xf32>
      %c0_i32_139 = arith.constant 0 : i32
      %232 = arith.cmpi sge, %226, %c0_i32_139 : i32
      %c16_i32_140 = arith.constant 16 : i32
      %233 = arith.cmpi slt, %226, %c16_i32_140 : i32
      %234 = arith.andi %232, %233 : i1
      %235 = arith.extui %234 : i1 to i32
      %236 = arith.sitofp %235 : i32 to f32
      %237 = vector.broadcast %236 : f32 to vector<1x16x128xf32>
      %238 = arith.mulf %231, %237 : vector<1x16x128xf32>
      %c6_i32_141 = arith.constant 6 : i32
      %239 = arith.addi %1, %c6_i32_141 : i32
      %c4_i32_142 = arith.constant 4 : i32
      %240 = arith.addi %239, %c4_i32_142 : i32
      %c0_i32_143 = arith.constant 0 : i32
      %c15_i32_144 = arith.constant 15 : i32
      %241 = arith.maxsi %c0_i32_143, %240 : i32
      %242 = arith.minsi %c15_i32_144, %241 : i32
      %c0_145 = arith.constant 0 : index
      %243 = arith.index_cast %242 : i32 to index
      %c0_146 = arith.constant 0 : index
      %c0_147 = arith.constant 0 : index
      %244 = vector.load %arg3[%c0_145, %243, %c0_146, %c0_147] : memref<1x16x16x128xf32, #tpu.memory_space<vmem>>, vector<1x1x16x128xf32>
      %245 = vector.shape_cast %244 : vector<1x1x16x128xf32> to vector<1x16x128xf32>
      %c0_i32_148 = arith.constant 0 : i32
      %246 = arith.cmpi sge, %240, %c0_i32_148 : i32
      %c16_i32_149 = arith.constant 16 : i32
      %247 = arith.cmpi slt, %240, %c16_i32_149 : i32
      %248 = arith.andi %246, %247 : i1
      %249 = arith.extui %248 : i1 to i32
      %250 = arith.sitofp %249 : i32 to f32
      %251 = vector.broadcast %250 : f32 to vector<1x16x128xf32>
      %252 = arith.mulf %245, %251 : vector<1x16x128xf32>
      %c7_i32_150 = arith.constant 7 : i32
      %253 = arith.addi %1, %c7_i32_150 : i32
      %c4_i32_151 = arith.constant 4 : i32
      %254 = arith.addi %253, %c4_i32_151 : i32
      %c0_i32_152 = arith.constant 0 : i32
      %c15_i32_153 = arith.constant 15 : i32
      %255 = arith.maxsi %c0_i32_152, %254 : i32
      %256 = arith.minsi %c15_i32_153, %255 : i32
      %c0_154 = arith.constant 0 : index
      %257 = arith.index_cast %256 : i32 to index
      %c0_155 = arith.constant 0 : index
      %c0_156 = arith.constant 0 : index
      %258 = vector.load %arg3[%c0_154, %257, %c0_155, %c0_156] : memref<1x16x16x128xf32, #tpu.memory_space<vmem>>, vector<1x1x16x128xf32>
      %259 = vector.shape_cast %258 : vector<1x1x16x128xf32> to vector<1x16x128xf32>
      %c0_i32_157 = arith.constant 0 : i32
      %260 = arith.cmpi sge, %254, %c0_i32_157 : i32
      %c16_i32_158 = arith.constant 16 : i32
      %261 = arith.cmpi slt, %254, %c16_i32_158 : i32
      %262 = arith.andi %260, %261 : i1
      %263 = arith.extui %262 : i1 to i32
      %264 = arith.sitofp %263 : i32 to f32
      %265 = vector.broadcast %264 : f32 to vector<1x16x128xf32>
      %266 = arith.mulf %259, %265 : vector<1x16x128xf32>
      %267 = tpu.concatenate %168, %182, %196, %210, %224, %238, %252, %266 in 0 : vector<1x16x128xf32>, vector<1x16x128xf32>, vector<1x16x128xf32>, vector<1x16x128xf32>, vector<1x16x128xf32>, vector<1x16x128xf32>, vector<1x16x128xf32>, vector<1x16x128xf32> -> vector<8x16x128xf32>
      %cst_159 = arith.constant 0.000000e+00 : f32
      %268 = vector.broadcast %cst_159 : f32 to vector<8x4x128xf32>
      %269 = vector.extract_strided_slice %267 {offsets = [0, 0, 0], sizes = [8, 12, 128], strides = [1, 1, 1]} : vector<8x16x128xf32> to vector<8x12x128xf32>
      %270 = tpu.concatenate %268, %269 in 1 : vector<8x4x128xf32>, vector<8x12x128xf32> -> vector<8x16x128xf32>
      %271 = vector.shape_cast %270 : vector<8x16x128xf32> to vector<128x128xf32>
      %c0_160 = arith.constant 0 : index
      %c768 = arith.constant 768 : index
      %272 = vector.load %arg7[%c0_160, %c768] : memref<128x1152xf32, #tpu.memory_space<vmem>>, vector<128x128xf32>
      tpu.vector_store %arg7[%c0_160, %c768], %271 {strides = array<i32>} : memref<128x1152xf32, #tpu.memory_space<vmem>>, vector<128x128xf32>,
      %273 = vector.shape_cast %267 : vector<8x16x128xf32> to vector<128x128xf32>
      %c0_161 = arith.constant 0 : index
      %c896 = arith.constant 896 : index
      %274 = vector.load %arg7[%c0_161, %c896] : memref<128x1152xf32, #tpu.memory_space<vmem>>, vector<128x128xf32>
      tpu.vector_store %arg7[%c0_161, %c896], %273 {strides = array<i32>} : memref<128x1152xf32, #tpu.memory_space<vmem>>, vector<128x128xf32>,
      %cst_162 = arith.constant 0.000000e+00 : f32
      %275 = vector.broadcast %cst_162 : f32 to vector<8x4x128xf32>
      %276 = vector.extract_strided_slice %267 {offsets = [0, 4, 0], sizes = [8, 12, 128], strides = [1, 1, 1]} : vector<8x16x128xf32> to vector<8x12x128xf32>
      %277 = tpu.concatenate %276, %275 in 1 : vector<8x12x128xf32>, vector<8x4x128xf32> -> vector<8x16x128xf32>
      %278 = vector.shape_cast %277 : vector<8x16x128xf32> to vector<128x128xf32>
      %c0_163 = arith.constant 0 : index
      %c1024 = arith.constant 1024 : index
      %279 = vector.load %arg7[%c0_163, %c1024] : memref<128x1152xf32, #tpu.memory_space<vmem>>, vector<128x128xf32>
      tpu.vector_store %arg7[%c0_163, %c1024], %278 {strides = array<i32>} : memref<128x1152xf32, #tpu.memory_space<vmem>>, vector<128x128xf32>,
    } else {
    }
    %c0 = arith.constant 0 : index
    %c0_1 = arith.constant 0 : index
    %5 = vector.load %arg7[%c0, %c0_1] : memref<128x1152xf32, #tpu.memory_space<vmem>>, vector<128x1152xf32>
    %c0_2 = arith.constant 0 : index
    %c0_3 = arith.constant 0 : index
    %6 = vector.load %arg4[%c0_2, %c0_3] : memref<1152x128xf32, #tpu.memory_space<vmem>>, vector<1152x128xf32>
    %cst = arith.constant dense<0.000000e+00> : vector<128x128xf32>
    %7 = tpu.matmul %5, %6, %cst {dimension_numbers = #tpu.dot_dimension_numbers<[1], [0], [0], [1], [0, 0, 1, 1], [], []>} : vector<128x1152xf32>, vector<1152x128xf32>, vector<128x128xf32> -> vector<128x128xf32>
    %c0_4 = arith.constant 0 : index
    %c0_5 = arith.constant 0 : index
    %8 = vector.load %arg5[%c0_4, %c0_5] : memref<1x128xf32, #tpu.memory_space<vmem>>, vector<1x128xf32>
    %9 = vector.broadcast %8 : vector<1x128xf32> to vector<128x128xf32>
    %10 = arith.addf %7, %9 : vector<128x128xf32>
    %cst_6 = arith.constant 0.000000e+00 : f32
    %11 = vector.broadcast %cst_6 : f32 to vector<128x128xf32>
    %12 = arith.maximumf %10, %11 : vector<128x128xf32>
    %13 = vector.shape_cast %12 : vector<128x128xf32> to vector<1x8x16x128xf32>
    %c0_7 = arith.constant 0 : index
    %c0_8 = arith.constant 0 : index
    %c0_9 = arith.constant 0 : index
    %c0_10 = arith.constant 0 : index
    %14 = vector.load %arg6[%c0_7, %c0_8, %c0_9, %c0_10] : memref<1x8x16x128xf32, #tpu.memory_space<vmem>>, vector<1x8x16x128xf32>
    tpu.vector_store %arg6[%c0_7, %c0_8, %c0_9, %c0_10], %13 {strides = array<i32>} : memref<1x8x16x128xf32, #tpu.memory_space<vmem>>, vector<1x8x16x128xf32>,
    return
  }
  func.func @transform_0(%arg0: i32, %arg1: i32, %arg2: i32) -> (i32, i32, i32, i32) {
    %c0_i32 = arith.constant 0 : i32
    %c0_i32_0 = arith.constant 0 : i32
    %c0_i32_1 = arith.constant 0 : i32
    %c0_i32_2 = arith.constant 0 : i32
    return %arg0, %c0_i32, %c0_i32_0, %c0_i32_1 : i32, i32, i32, i32
  }
  func.func @transform_1(%arg0: i32, %arg1: i32, %arg2: i32) -> (i32, i32) {
    %c0_i32 = arith.constant 0 : i32
    %c0_i32_0 = arith.constant 0 : i32
    return %c0_i32, %arg2 : i32, i32
  }
  func.func @transform_2(%arg0: i32, %arg1: i32, %arg2: i32) -> (i32, i32) {
    %c0_i32 = arith.constant 0 : i32
    %c0_i32_0 = arith.constant 0 : i32
    return %c0_i32, %arg2 : i32, i32
  }
  func.func @transform_3(%arg0: i32, %arg1: i32, %arg2: i32) -> (i32, i32, i32, i32) {
    %c0_i32 = arith.constant 0 : i32
    %c0_i32_0 = arith.constant 0 : i32
    return %arg0, %arg1, %c0_i32, %arg2 : i32, i32, i32, i32
  }
}

module attributes {stable_mosaic.version = 11 : i64} {
  func.func @_dilated_conv_kernel(%arg0: i32, %arg1: i32, %arg2: i32, %arg3: memref<1x16x16x128xf32, #tpu.memory_space<vmem>>, %arg4: memref<1152x128xf32, #tpu.memory_space<vmem>>, %arg5: memref<1x128xf32, #tpu.memory_space<vmem>>, %arg6: memref<1x8x16x128xf32, #tpu.memory_space<vmem>>, %arg7: memref<128x1152xf32, #tpu.memory_space<vmem>>) attributes {dimension_semantics = [#tpu.dimension_semantics<parallel>, #tpu.dimension_semantics<parallel>, #tpu.dimension_semantics<arbitrary>], iteration_bounds = array<i64: 2, 2, 1>, scalar_prefetch = 0 : i64, scratch_operands = 1 : i64, tpu.core_type = #tpu.core_type<tc>, window_params = [{transform_indices = @transform_0, window_bounds = array<i64: 1, 16, 16, 128>}, {transform_indices = @transform_1, window_bounds = array<i64: 1152, 128>}, {transform_indices = @transform_2, window_bounds = array<i64: 1, 128>}, {transform_indices = @transform_3, window_bounds = array<i64: 1, 8, 16, 128>}]} {
    %c8_i32 = arith.constant 8 : i32
    %0 = arith.muli %arg1, %c8_i32 : i32
    %1 = tpu.assume_multiple %0, 8 : i32
    %c0_i32 = arith.constant 0 : i32
    %2 = arith.cmpi eq, %arg2, %c0_i32 : i32
    %3 = arith.extui %2 : i1 to i32
    %c0_i32_0 = arith.constant 0 : i32
    %4 = arith.cmpi ne, %3, %c0_i32_0 : i32
    scf.if %4 {
      %c0_i32_11 = arith.constant 0 : i32
      %15 = arith.addi %1, %c0_i32_11 : i32
      %c-1_i32 = arith.constant -1 : i32
      %16 = arith.addi %15, %c-1_i32 : i32
      %c0_i32_12 = arith.constant 0 : i32
      %c15_i32 = arith.constant 15 : i32
      %17 = arith.maxsi %c0_i32_12, %16 : i32
      %18 = arith.minsi %c15_i32, %17 : i32
      %c0_13 = arith.constant 0 : index
      %19 = arith.index_cast %18 : i32 to index
      %c0_14 = arith.constant 0 : index
      %c0_15 = arith.constant 0 : index
      %20 = vector.load %arg3[%c0_13, %19, %c0_14, %c0_15] : memref<1x16x16x128xf32, #tpu.memory_space<vmem>>, vector<1x1x16x128xf32>
      %21 = vector.shape_cast %20 : vector<1x1x16x128xf32> to vector<1x16x128xf32>
      %c0_i32_16 = arith.constant 0 : i32
      %22 = arith.cmpi sge, %16, %c0_i32_16 : i32
      %c16_i32 = arith.constant 16 : i32
      %23 = arith.cmpi slt, %16, %c16_i32 : i32
      %24 = arith.andi %22, %23 : i1
      %25 = arith.extui %24 : i1 to i32
      %26 = arith.sitofp %25 : i32 to f32
      %27 = vector.broadcast %26 : f32 to vector<1x16x128xf32>
      %28 = arith.mulf %21, %27 : vector<1x16x128xf32>
      %c1_i32 = arith.constant 1 : i32
      %29 = arith.addi %1, %c1_i32 : i32
      %c-1_i32_17 = arith.constant -1 : i32
      %30 = arith.addi %29, %c-1_i32_17 : i32
      %c0_i32_18 = arith.constant 0 : i32
      %c15_i32_19 = arith.constant 15 : i32
      %31 = arith.maxsi %c0_i32_18, %30 : i32
      %32 = arith.minsi %c15_i32_19, %31 : i32
      %c0_20 = arith.constant 0 : index
      %33 = arith.index_cast %32 : i32 to index
      %c0_21 = arith.constant 0 : index
      %c0_22 = arith.constant 0 : index
      %34 = vector.load %arg3[%c0_20, %33, %c0_21, %c0_22] : memref<1x16x16x128xf32, #tpu.memory_space<vmem>>, vector<1x1x16x128xf32>
      %35 = vector.shape_cast %34 : vector<1x1x16x128xf32> to vector<1x16x128xf32>
      %c0_i32_23 = arith.constant 0 : i32
      %36 = arith.cmpi sge, %30, %c0_i32_23 : i32
      %c16_i32_24 = arith.constant 16 : i32
      %37 = arith.cmpi slt, %30, %c16_i32_24 : i32
      %38 = arith.andi %36, %37 : i1
      %39 = arith.extui %38 : i1 to i32
      %40 = arith.sitofp %39 : i32 to f32
      %41 = vector.broadcast %40 : f32 to vector<1x16x128xf32>
      %42 = arith.mulf %35, %41 : vector<1x16x128xf32>
      %c2_i32 = arith.constant 2 : i32
      %43 = arith.addi %1, %c2_i32 : i32
      %c-1_i32_25 = arith.constant -1 : i32
      %44 = arith.addi %43, %c-1_i32_25 : i32
      %c0_i32_26 = arith.constant 0 : i32
      %c15_i32_27 = arith.constant 15 : i32
      %45 = arith.maxsi %c0_i32_26, %44 : i32
      %46 = arith.minsi %c15_i32_27, %45 : i32
      %c0_28 = arith.constant 0 : index
      %47 = arith.index_cast %46 : i32 to index
      %c0_29 = arith.constant 0 : index
      %c0_30 = arith.constant 0 : index
      %48 = vector.load %arg3[%c0_28, %47, %c0_29, %c0_30] : memref<1x16x16x128xf32, #tpu.memory_space<vmem>>, vector<1x1x16x128xf32>
      %49 = vector.shape_cast %48 : vector<1x1x16x128xf32> to vector<1x16x128xf32>
      %c0_i32_31 = arith.constant 0 : i32
      %50 = arith.cmpi sge, %44, %c0_i32_31 : i32
      %c16_i32_32 = arith.constant 16 : i32
      %51 = arith.cmpi slt, %44, %c16_i32_32 : i32
      %52 = arith.andi %50, %51 : i1
      %53 = arith.extui %52 : i1 to i32
      %54 = arith.sitofp %53 : i32 to f32
      %55 = vector.broadcast %54 : f32 to vector<1x16x128xf32>
      %56 = arith.mulf %49, %55 : vector<1x16x128xf32>
      %c3_i32 = arith.constant 3 : i32
      %57 = arith.addi %1, %c3_i32 : i32
      %c-1_i32_33 = arith.constant -1 : i32
      %58 = arith.addi %57, %c-1_i32_33 : i32
      %c0_i32_34 = arith.constant 0 : i32
      %c15_i32_35 = arith.constant 15 : i32
      %59 = arith.maxsi %c0_i32_34, %58 : i32
      %60 = arith.minsi %c15_i32_35, %59 : i32
      %c0_36 = arith.constant 0 : index
      %61 = arith.index_cast %60 : i32 to index
      %c0_37 = arith.constant 0 : index
      %c0_38 = arith.constant 0 : index
      %62 = vector.load %arg3[%c0_36, %61, %c0_37, %c0_38] : memref<1x16x16x128xf32, #tpu.memory_space<vmem>>, vector<1x1x16x128xf32>
      %63 = vector.shape_cast %62 : vector<1x1x16x128xf32> to vector<1x16x128xf32>
      %c0_i32_39 = arith.constant 0 : i32
      %64 = arith.cmpi sge, %58, %c0_i32_39 : i32
      %c16_i32_40 = arith.constant 16 : i32
      %65 = arith.cmpi slt, %58, %c16_i32_40 : i32
      %66 = arith.andi %64, %65 : i1
      %67 = arith.extui %66 : i1 to i32
      %68 = arith.sitofp %67 : i32 to f32
      %69 = vector.broadcast %68 : f32 to vector<1x16x128xf32>
      %70 = arith.mulf %63, %69 : vector<1x16x128xf32>
      %c4_i32 = arith.constant 4 : i32
      %71 = arith.addi %1, %c4_i32 : i32
      %c-1_i32_41 = arith.constant -1 : i32
      %72 = arith.addi %71, %c-1_i32_41 : i32
      %c0_i32_42 = arith.constant 0 : i32
      %c15_i32_43 = arith.constant 15 : i32
      %73 = arith.maxsi %c0_i32_42, %72 : i32
      %74 = arith.minsi %c15_i32_43, %73 : i32
      %c0_44 = arith.constant 0 : index
      %75 = arith.index_cast %74 : i32 to index
      %c0_45 = arith.constant 0 : index
      %c0_46 = arith.constant 0 : index
      %76 = vector.load %arg3[%c0_44, %75, %c0_45, %c0_46] : memref<1x16x16x128xf32, #tpu.memory_space<vmem>>, vector<1x1x16x128xf32>
      %77 = vector.shape_cast %76 : vector<1x1x16x128xf32> to vector<1x16x128xf32>
      %c0_i32_47 = arith.constant 0 : i32
      %78 = arith.cmpi sge, %72, %c0_i32_47 : i32
      %c16_i32_48 = arith.constant 16 : i32
      %79 = arith.cmpi slt, %72, %c16_i32_48 : i32
      %80 = arith.andi %78, %79 : i1
      %81 = arith.extui %80 : i1 to i32
      %82 = arith.sitofp %81 : i32 to f32
      %83 = vector.broadcast %82 : f32 to vector<1x16x128xf32>
      %84 = arith.mulf %77, %83 : vector<1x16x128xf32>
      %c5_i32 = arith.constant 5 : i32
      %85 = arith.addi %1, %c5_i32 : i32
      %c-1_i32_49 = arith.constant -1 : i32
      %86 = arith.addi %85, %c-1_i32_49 : i32
      %c0_i32_50 = arith.constant 0 : i32
      %c15_i32_51 = arith.constant 15 : i32
      %87 = arith.maxsi %c0_i32_50, %86 : i32
      %88 = arith.minsi %c15_i32_51, %87 : i32
      %c0_52 = arith.constant 0 : index
      %89 = arith.index_cast %88 : i32 to index
      %c0_53 = arith.constant 0 : index
      %c0_54 = arith.constant 0 : index
      %90 = vector.load %arg3[%c0_52, %89, %c0_53, %c0_54] : memref<1x16x16x128xf32, #tpu.memory_space<vmem>>, vector<1x1x16x128xf32>
      %91 = vector.shape_cast %90 : vector<1x1x16x128xf32> to vector<1x16x128xf32>
      %c0_i32_55 = arith.constant 0 : i32
      %92 = arith.cmpi sge, %86, %c0_i32_55 : i32
      %c16_i32_56 = arith.constant 16 : i32
      %93 = arith.cmpi slt, %86, %c16_i32_56 : i32
      %94 = arith.andi %92, %93 : i1
      %95 = arith.extui %94 : i1 to i32
      %96 = arith.sitofp %95 : i32 to f32
      %97 = vector.broadcast %96 : f32 to vector<1x16x128xf32>
      %98 = arith.mulf %91, %97 : vector<1x16x128xf32>
      %c6_i32 = arith.constant 6 : i32
      %99 = arith.addi %1, %c6_i32 : i32
      %c-1_i32_57 = arith.constant -1 : i32
      %100 = arith.addi %99, %c-1_i32_57 : i32
      %c0_i32_58 = arith.constant 0 : i32
      %c15_i32_59 = arith.constant 15 : i32
      %101 = arith.maxsi %c0_i32_58, %100 : i32
      %102 = arith.minsi %c15_i32_59, %101 : i32
      %c0_60 = arith.constant 0 : index
      %103 = arith.index_cast %102 : i32 to index
      %c0_61 = arith.constant 0 : index
      %c0_62 = arith.constant 0 : index
      %104 = vector.load %arg3[%c0_60, %103, %c0_61, %c0_62] : memref<1x16x16x128xf32, #tpu.memory_space<vmem>>, vector<1x1x16x128xf32>
      %105 = vector.shape_cast %104 : vector<1x1x16x128xf32> to vector<1x16x128xf32>
      %c0_i32_63 = arith.constant 0 : i32
      %106 = arith.cmpi sge, %100, %c0_i32_63 : i32
      %c16_i32_64 = arith.constant 16 : i32
      %107 = arith.cmpi slt, %100, %c16_i32_64 : i32
      %108 = arith.andi %106, %107 : i1
      %109 = arith.extui %108 : i1 to i32
      %110 = arith.sitofp %109 : i32 to f32
      %111 = vector.broadcast %110 : f32 to vector<1x16x128xf32>
      %112 = arith.mulf %105, %111 : vector<1x16x128xf32>
      %c7_i32 = arith.constant 7 : i32
      %113 = arith.addi %1, %c7_i32 : i32
      %c-1_i32_65 = arith.constant -1 : i32
      %114 = arith.addi %113, %c-1_i32_65 : i32
      %c0_i32_66 = arith.constant 0 : i32
      %c15_i32_67 = arith.constant 15 : i32
      %115 = arith.maxsi %c0_i32_66, %114 : i32
      %116 = arith.minsi %c15_i32_67, %115 : i32
      %c0_68 = arith.constant 0 : index
      %117 = arith.index_cast %116 : i32 to index
      %c0_69 = arith.constant 0 : index
      %c0_70 = arith.constant 0 : index
      %118 = vector.load %arg3[%c0_68, %117, %c0_69, %c0_70] : memref<1x16x16x128xf32, #tpu.memory_space<vmem>>, vector<1x1x16x128xf32>
      %119 = vector.shape_cast %118 : vector<1x1x16x128xf32> to vector<1x16x128xf32>
      %c0_i32_71 = arith.constant 0 : i32
      %120 = arith.cmpi sge, %114, %c0_i32_71 : i32
      %c16_i32_72 = arith.constant 16 : i32
      %121 = arith.cmpi slt, %114, %c16_i32_72 : i32
      %122 = arith.andi %120, %121 : i1
      %123 = arith.extui %122 : i1 to i32
      %124 = arith.sitofp %123 : i32 to f32
      %125 = vector.broadcast %124 : f32 to vector<1x16x128xf32>
      %126 = arith.mulf %119, %125 : vector<1x16x128xf32>
      %127 = tpu.concatenate %28, %42, %56, %70, %84, %98, %112, %126 in 0 : vector<1x16x128xf32>, vector<1x16x128xf32>, vector<1x16x128xf32>, vector<1x16x128xf32>, vector<1x16x128xf32>, vector<1x16x128xf32>, vector<1x16x128xf32>, vector<1x16x128xf32> -> vector<8x16x128xf32>
      %cst_73 = arith.constant 0.000000e+00 : f32
      %128 = vector.broadcast %cst_73 : f32 to vector<8x1x128xf32>
      %129 = vector.extract_strided_slice %127 {offsets = [0, 0, 0], sizes = [8, 15, 128], strides = [1, 1, 1]} : vector<8x16x128xf32> to vector<8x15x128xf32>
      %130 = tpu.concatenate %128, %129 in 1 : vector<8x1x128xf32>, vector<8x15x128xf32> -> vector<8x16x128xf32>
      %131 = vector.shape_cast %130 : vector<8x16x128xf32> to vector<128x128xf32>
      %c0_74 = arith.constant 0 : index
      %c0_75 = arith.constant 0 : index
      %132 = vector.load %arg7[%c0_74, %c0_75] : memref<128x1152xf32, #tpu.memory_space<vmem>>, vector<128x128xf32>
      tpu.vector_store %arg7[%c0_74, %c0_75], %131 {strides = array<i32>} : memref<128x1152xf32, #tpu.memory_space<vmem>>, vector<128x128xf32>,
      %133 = vector.shape_cast %127 : vector<8x16x128xf32> to vector<128x128xf32>
      %c0_76 = arith.constant 0 : index
      %c128 = arith.constant 128 : index
      %134 = vector.load %arg7[%c0_76, %c128] : memref<128x1152xf32, #tpu.memory_space<vmem>>, vector<128x128xf32>
      tpu.vector_store %arg7[%c0_76, %c128], %133 {strides = array<i32>} : memref<128x1152xf32, #tpu.memory_space<vmem>>, vector<128x128xf32>,
      %cst_77 = arith.constant 0.000000e+00 : f32
      %135 = vector.broadcast %cst_77 : f32 to vector<8x1x128xf32>
      %136 = vector.extract_strided_slice %127 {offsets = [0, 1, 0], sizes = [8, 15, 128], strides = [1, 1, 1]} : vector<8x16x128xf32> to vector<8x15x128xf32>
      %137 = tpu.concatenate %136, %135 in 1 : vector<8x15x128xf32>, vector<8x1x128xf32> -> vector<8x16x128xf32>
      %138 = vector.shape_cast %137 : vector<8x16x128xf32> to vector<128x128xf32>
      %c0_78 = arith.constant 0 : index
      %c256 = arith.constant 256 : index
      %139 = vector.load %arg7[%c0_78, %c256] : memref<128x1152xf32, #tpu.memory_space<vmem>>, vector<128x128xf32>
      tpu.vector_store %arg7[%c0_78, %c256], %138 {strides = array<i32>} : memref<128x1152xf32, #tpu.memory_space<vmem>>, vector<128x128xf32>,
      %c0_79 = arith.constant 0 : index
      %140 = arith.index_cast %1 : i32 to index
      %c0_80 = arith.constant 0 : index
      %c0_81 = arith.constant 0 : index
      %141 = vector.load %arg3[%c0_79, %140, %c0_80, %c0_81] : memref<1x16x16x128xf32, #tpu.memory_space<vmem>>, vector<1x8x16x128xf32>
      %142 = vector.shape_cast %141 : vector<1x8x16x128xf32> to vector<8x16x128xf32>
      %cst_82 = arith.constant 0.000000e+00 : f32
      %143 = vector.broadcast %cst_82 : f32 to vector<8x1x128xf32>
      %144 = vector.extract_strided_slice %142 {offsets = [0, 0, 0], sizes = [8, 15, 128], strides = [1, 1, 1]} : vector<8x16x128xf32> to vector<8x15x128xf32>
      %145 = tpu.concatenate %143, %144 in 1 : vector<8x1x128xf32>, vector<8x15x128xf32> -> vector<8x16x128xf32>
      %146 = vector.shape_cast %145 : vector<8x16x128xf32> to vector<128x128xf32>
      %c0_83 = arith.constant 0 : index
      %c384 = arith.constant 384 : index
      %147 = vector.load %arg7[%c0_83, %c384] : memref<128x1152xf32, #tpu.memory_space<vmem>>, vector<128x128xf32>
      tpu.vector_store %arg7[%c0_83, %c384], %146 {strides = array<i32>} : memref<128x1152xf32, #tpu.memory_space<vmem>>, vector<128x128xf32>,
      %148 = vector.shape_cast %142 : vector<8x16x128xf32> to vector<128x128xf32>
      %c0_84 = arith.constant 0 : index
      %c512 = arith.constant 512 : index
      %149 = vector.load %arg7[%c0_84, %c512] : memref<128x1152xf32, #tpu.memory_space<vmem>>, vector<128x128xf32>
      tpu.vector_store %arg7[%c0_84, %c512], %148 {strides = array<i32>} : memref<128x1152xf32, #tpu.memory_space<vmem>>, vector<128x128xf32>,
      %cst_85 = arith.constant 0.000000e+00 : f32
      %150 = vector.broadcast %cst_85 : f32 to vector<8x1x128xf32>
      %151 = vector.extract_strided_slice %142 {offsets = [0, 1, 0], sizes = [8, 15, 128], strides = [1, 1, 1]} : vector<8x16x128xf32> to vector<8x15x128xf32>
      %152 = tpu.concatenate %151, %150 in 1 : vector<8x15x128xf32>, vector<8x1x128xf32> -> vector<8x16x128xf32>
      %153 = vector.shape_cast %152 : vector<8x16x128xf32> to vector<128x128xf32>
      %c0_86 = arith.constant 0 : index
      %c640 = arith.constant 640 : index
      %154 = vector.load %arg7[%c0_86, %c640] : memref<128x1152xf32, #tpu.memory_space<vmem>>, vector<128x128xf32>
      tpu.vector_store %arg7[%c0_86, %c640], %153 {strides = array<i32>} : memref<128x1152xf32, #tpu.memory_space<vmem>>, vector<128x128xf32>,
      %c0_i32_87 = arith.constant 0 : i32
      %155 = arith.addi %1, %c0_i32_87 : i32
      %c1_i32_88 = arith.constant 1 : i32
      %156 = arith.addi %155, %c1_i32_88 : i32
      %c0_i32_89 = arith.constant 0 : i32
      %c15_i32_90 = arith.constant 15 : i32
      %157 = arith.maxsi %c0_i32_89, %156 : i32
      %158 = arith.minsi %c15_i32_90, %157 : i32
      %c0_91 = arith.constant 0 : index
      %159 = arith.index_cast %158 : i32 to index
      %c0_92 = arith.constant 0 : index
      %c0_93 = arith.constant 0 : index
      %160 = vector.load %arg3[%c0_91, %159, %c0_92, %c0_93] : memref<1x16x16x128xf32, #tpu.memory_space<vmem>>, vector<1x1x16x128xf32>
      %161 = vector.shape_cast %160 : vector<1x1x16x128xf32> to vector<1x16x128xf32>
      %c0_i32_94 = arith.constant 0 : i32
      %162 = arith.cmpi sge, %156, %c0_i32_94 : i32
      %c16_i32_95 = arith.constant 16 : i32
      %163 = arith.cmpi slt, %156, %c16_i32_95 : i32
      %164 = arith.andi %162, %163 : i1
      %165 = arith.extui %164 : i1 to i32
      %166 = arith.sitofp %165 : i32 to f32
      %167 = vector.broadcast %166 : f32 to vector<1x16x128xf32>
      %168 = arith.mulf %161, %167 : vector<1x16x128xf32>
      %c1_i32_96 = arith.constant 1 : i32
      %169 = arith.addi %1, %c1_i32_96 : i32
      %c1_i32_97 = arith.constant 1 : i32
      %170 = arith.addi %169, %c1_i32_97 : i32
      %c0_i32_98 = arith.constant 0 : i32
      %c15_i32_99 = arith.constant 15 : i32
      %171 = arith.maxsi %c0_i32_98, %170 : i32
      %172 = arith.minsi %c15_i32_99, %171 : i32
      %c0_100 = arith.constant 0 : index
      %173 = arith.index_cast %172 : i32 to index
      %c0_101 = arith.constant 0 : index
      %c0_102 = arith.constant 0 : index
      %174 = vector.load %arg3[%c0_100, %173, %c0_101, %c0_102] : memref<1x16x16x128xf32, #tpu.memory_space<vmem>>, vector<1x1x16x128xf32>
      %175 = vector.shape_cast %174 : vector<1x1x16x128xf32> to vector<1x16x128xf32>
      %c0_i32_103 = arith.constant 0 : i32
      %176 = arith.cmpi sge, %170, %c0_i32_103 : i32
      %c16_i32_104 = arith.constant 16 : i32
      %177 = arith.cmpi slt, %170, %c16_i32_104 : i32
      %178 = arith.andi %176, %177 : i1
      %179 = arith.extui %178 : i1 to i32
      %180 = arith.sitofp %179 : i32 to f32
      %181 = vector.broadcast %180 : f32 to vector<1x16x128xf32>
      %182 = arith.mulf %175, %181 : vector<1x16x128xf32>
      %c2_i32_105 = arith.constant 2 : i32
      %183 = arith.addi %1, %c2_i32_105 : i32
      %c1_i32_106 = arith.constant 1 : i32
      %184 = arith.addi %183, %c1_i32_106 : i32
      %c0_i32_107 = arith.constant 0 : i32
      %c15_i32_108 = arith.constant 15 : i32
      %185 = arith.maxsi %c0_i32_107, %184 : i32
      %186 = arith.minsi %c15_i32_108, %185 : i32
      %c0_109 = arith.constant 0 : index
      %187 = arith.index_cast %186 : i32 to index
      %c0_110 = arith.constant 0 : index
      %c0_111 = arith.constant 0 : index
      %188 = vector.load %arg3[%c0_109, %187, %c0_110, %c0_111] : memref<1x16x16x128xf32, #tpu.memory_space<vmem>>, vector<1x1x16x128xf32>
      %189 = vector.shape_cast %188 : vector<1x1x16x128xf32> to vector<1x16x128xf32>
      %c0_i32_112 = arith.constant 0 : i32
      %190 = arith.cmpi sge, %184, %c0_i32_112 : i32
      %c16_i32_113 = arith.constant 16 : i32
      %191 = arith.cmpi slt, %184, %c16_i32_113 : i32
      %192 = arith.andi %190, %191 : i1
      %193 = arith.extui %192 : i1 to i32
      %194 = arith.sitofp %193 : i32 to f32
      %195 = vector.broadcast %194 : f32 to vector<1x16x128xf32>
      %196 = arith.mulf %189, %195 : vector<1x16x128xf32>
      %c3_i32_114 = arith.constant 3 : i32
      %197 = arith.addi %1, %c3_i32_114 : i32
      %c1_i32_115 = arith.constant 1 : i32
      %198 = arith.addi %197, %c1_i32_115 : i32
      %c0_i32_116 = arith.constant 0 : i32
      %c15_i32_117 = arith.constant 15 : i32
      %199 = arith.maxsi %c0_i32_116, %198 : i32
      %200 = arith.minsi %c15_i32_117, %199 : i32
      %c0_118 = arith.constant 0 : index
      %201 = arith.index_cast %200 : i32 to index
      %c0_119 = arith.constant 0 : index
      %c0_120 = arith.constant 0 : index
      %202 = vector.load %arg3[%c0_118, %201, %c0_119, %c0_120] : memref<1x16x16x128xf32, #tpu.memory_space<vmem>>, vector<1x1x16x128xf32>
      %203 = vector.shape_cast %202 : vector<1x1x16x128xf32> to vector<1x16x128xf32>
      %c0_i32_121 = arith.constant 0 : i32
      %204 = arith.cmpi sge, %198, %c0_i32_121 : i32
      %c16_i32_122 = arith.constant 16 : i32
      %205 = arith.cmpi slt, %198, %c16_i32_122 : i32
      %206 = arith.andi %204, %205 : i1
      %207 = arith.extui %206 : i1 to i32
      %208 = arith.sitofp %207 : i32 to f32
      %209 = vector.broadcast %208 : f32 to vector<1x16x128xf32>
      %210 = arith.mulf %203, %209 : vector<1x16x128xf32>
      %c4_i32_123 = arith.constant 4 : i32
      %211 = arith.addi %1, %c4_i32_123 : i32
      %c1_i32_124 = arith.constant 1 : i32
      %212 = arith.addi %211, %c1_i32_124 : i32
      %c0_i32_125 = arith.constant 0 : i32
      %c15_i32_126 = arith.constant 15 : i32
      %213 = arith.maxsi %c0_i32_125, %212 : i32
      %214 = arith.minsi %c15_i32_126, %213 : i32
      %c0_127 = arith.constant 0 : index
      %215 = arith.index_cast %214 : i32 to index
      %c0_128 = arith.constant 0 : index
      %c0_129 = arith.constant 0 : index
      %216 = vector.load %arg3[%c0_127, %215, %c0_128, %c0_129] : memref<1x16x16x128xf32, #tpu.memory_space<vmem>>, vector<1x1x16x128xf32>
      %217 = vector.shape_cast %216 : vector<1x1x16x128xf32> to vector<1x16x128xf32>
      %c0_i32_130 = arith.constant 0 : i32
      %218 = arith.cmpi sge, %212, %c0_i32_130 : i32
      %c16_i32_131 = arith.constant 16 : i32
      %219 = arith.cmpi slt, %212, %c16_i32_131 : i32
      %220 = arith.andi %218, %219 : i1
      %221 = arith.extui %220 : i1 to i32
      %222 = arith.sitofp %221 : i32 to f32
      %223 = vector.broadcast %222 : f32 to vector<1x16x128xf32>
      %224 = arith.mulf %217, %223 : vector<1x16x128xf32>
      %c5_i32_132 = arith.constant 5 : i32
      %225 = arith.addi %1, %c5_i32_132 : i32
      %c1_i32_133 = arith.constant 1 : i32
      %226 = arith.addi %225, %c1_i32_133 : i32
      %c0_i32_134 = arith.constant 0 : i32
      %c15_i32_135 = arith.constant 15 : i32
      %227 = arith.maxsi %c0_i32_134, %226 : i32
      %228 = arith.minsi %c15_i32_135, %227 : i32
      %c0_136 = arith.constant 0 : index
      %229 = arith.index_cast %228 : i32 to index
      %c0_137 = arith.constant 0 : index
      %c0_138 = arith.constant 0 : index
      %230 = vector.load %arg3[%c0_136, %229, %c0_137, %c0_138] : memref<1x16x16x128xf32, #tpu.memory_space<vmem>>, vector<1x1x16x128xf32>
      %231 = vector.shape_cast %230 : vector<1x1x16x128xf32> to vector<1x16x128xf32>
      %c0_i32_139 = arith.constant 0 : i32
      %232 = arith.cmpi sge, %226, %c0_i32_139 : i32
      %c16_i32_140 = arith.constant 16 : i32
      %233 = arith.cmpi slt, %226, %c16_i32_140 : i32
      %234 = arith.andi %232, %233 : i1
      %235 = arith.extui %234 : i1 to i32
      %236 = arith.sitofp %235 : i32 to f32
      %237 = vector.broadcast %236 : f32 to vector<1x16x128xf32>
      %238 = arith.mulf %231, %237 : vector<1x16x128xf32>
      %c6_i32_141 = arith.constant 6 : i32
      %239 = arith.addi %1, %c6_i32_141 : i32
      %c1_i32_142 = arith.constant 1 : i32
      %240 = arith.addi %239, %c1_i32_142 : i32
      %c0_i32_143 = arith.constant 0 : i32
      %c15_i32_144 = arith.constant 15 : i32
      %241 = arith.maxsi %c0_i32_143, %240 : i32
      %242 = arith.minsi %c15_i32_144, %241 : i32
      %c0_145 = arith.constant 0 : index
      %243 = arith.index_cast %242 : i32 to index
      %c0_146 = arith.constant 0 : index
      %c0_147 = arith.constant 0 : index
      %244 = vector.load %arg3[%c0_145, %243, %c0_146, %c0_147] : memref<1x16x16x128xf32, #tpu.memory_space<vmem>>, vector<1x1x16x128xf32>
      %245 = vector.shape_cast %244 : vector<1x1x16x128xf32> to vector<1x16x128xf32>
      %c0_i32_148 = arith.constant 0 : i32
      %246 = arith.cmpi sge, %240, %c0_i32_148 : i32
      %c16_i32_149 = arith.constant 16 : i32
      %247 = arith.cmpi slt, %240, %c16_i32_149 : i32
      %248 = arith.andi %246, %247 : i1
      %249 = arith.extui %248 : i1 to i32
      %250 = arith.sitofp %249 : i32 to f32
      %251 = vector.broadcast %250 : f32 to vector<1x16x128xf32>
      %252 = arith.mulf %245, %251 : vector<1x16x128xf32>
      %c7_i32_150 = arith.constant 7 : i32
      %253 = arith.addi %1, %c7_i32_150 : i32
      %c1_i32_151 = arith.constant 1 : i32
      %254 = arith.addi %253, %c1_i32_151 : i32
      %c0_i32_152 = arith.constant 0 : i32
      %c15_i32_153 = arith.constant 15 : i32
      %255 = arith.maxsi %c0_i32_152, %254 : i32
      %256 = arith.minsi %c15_i32_153, %255 : i32
      %c0_154 = arith.constant 0 : index
      %257 = arith.index_cast %256 : i32 to index
      %c0_155 = arith.constant 0 : index
      %c0_156 = arith.constant 0 : index
      %258 = vector.load %arg3[%c0_154, %257, %c0_155, %c0_156] : memref<1x16x16x128xf32, #tpu.memory_space<vmem>>, vector<1x1x16x128xf32>
      %259 = vector.shape_cast %258 : vector<1x1x16x128xf32> to vector<1x16x128xf32>
      %c0_i32_157 = arith.constant 0 : i32
      %260 = arith.cmpi sge, %254, %c0_i32_157 : i32
      %c16_i32_158 = arith.constant 16 : i32
      %261 = arith.cmpi slt, %254, %c16_i32_158 : i32
      %262 = arith.andi %260, %261 : i1
      %263 = arith.extui %262 : i1 to i32
      %264 = arith.sitofp %263 : i32 to f32
      %265 = vector.broadcast %264 : f32 to vector<1x16x128xf32>
      %266 = arith.mulf %259, %265 : vector<1x16x128xf32>
      %267 = tpu.concatenate %168, %182, %196, %210, %224, %238, %252, %266 in 0 : vector<1x16x128xf32>, vector<1x16x128xf32>, vector<1x16x128xf32>, vector<1x16x128xf32>, vector<1x16x128xf32>, vector<1x16x128xf32>, vector<1x16x128xf32>, vector<1x16x128xf32> -> vector<8x16x128xf32>
      %cst_159 = arith.constant 0.000000e+00 : f32
      %268 = vector.broadcast %cst_159 : f32 to vector<8x1x128xf32>
      %269 = vector.extract_strided_slice %267 {offsets = [0, 0, 0], sizes = [8, 15, 128], strides = [1, 1, 1]} : vector<8x16x128xf32> to vector<8x15x128xf32>
      %270 = tpu.concatenate %268, %269 in 1 : vector<8x1x128xf32>, vector<8x15x128xf32> -> vector<8x16x128xf32>
      %271 = vector.shape_cast %270 : vector<8x16x128xf32> to vector<128x128xf32>
      %c0_160 = arith.constant 0 : index
      %c768 = arith.constant 768 : index
      %272 = vector.load %arg7[%c0_160, %c768] : memref<128x1152xf32, #tpu.memory_space<vmem>>, vector<128x128xf32>
      tpu.vector_store %arg7[%c0_160, %c768], %271 {strides = array<i32>} : memref<128x1152xf32, #tpu.memory_space<vmem>>, vector<128x128xf32>,
      %273 = vector.shape_cast %267 : vector<8x16x128xf32> to vector<128x128xf32>
      %c0_161 = arith.constant 0 : index
      %c896 = arith.constant 896 : index
      %274 = vector.load %arg7[%c0_161, %c896] : memref<128x1152xf32, #tpu.memory_space<vmem>>, vector<128x128xf32>
      tpu.vector_store %arg7[%c0_161, %c896], %273 {strides = array<i32>} : memref<128x1152xf32, #tpu.memory_space<vmem>>, vector<128x128xf32>,
      %cst_162 = arith.constant 0.000000e+00 : f32
      %275 = vector.broadcast %cst_162 : f32 to vector<8x1x128xf32>
      %276 = vector.extract_strided_slice %267 {offsets = [0, 1, 0], sizes = [8, 15, 128], strides = [1, 1, 1]} : vector<8x16x128xf32> to vector<8x15x128xf32>
      %277 = tpu.concatenate %276, %275 in 1 : vector<8x15x128xf32>, vector<8x1x128xf32> -> vector<8x16x128xf32>
      %278 = vector.shape_cast %277 : vector<8x16x128xf32> to vector<128x128xf32>
      %c0_163 = arith.constant 0 : index
      %c1024 = arith.constant 1024 : index
      %279 = vector.load %arg7[%c0_163, %c1024] : memref<128x1152xf32, #tpu.memory_space<vmem>>, vector<128x128xf32>
      tpu.vector_store %arg7[%c0_163, %c1024], %278 {strides = array<i32>} : memref<128x1152xf32, #tpu.memory_space<vmem>>, vector<128x128xf32>,
    } else {
    }
    %c0 = arith.constant 0 : index
    %c0_1 = arith.constant 0 : index
    %5 = vector.load %arg7[%c0, %c0_1] : memref<128x1152xf32, #tpu.memory_space<vmem>>, vector<128x1152xf32>
    %c0_2 = arith.constant 0 : index
    %c0_3 = arith.constant 0 : index
    %6 = vector.load %arg4[%c0_2, %c0_3] : memref<1152x128xf32, #tpu.memory_space<vmem>>, vector<1152x128xf32>
    %cst = arith.constant dense<0.000000e+00> : vector<128x128xf32>
    %7 = tpu.matmul %5, %6, %cst {dimension_numbers = #tpu.dot_dimension_numbers<[1], [0], [0], [1], [0, 0, 1, 1], [], []>} : vector<128x1152xf32>, vector<1152x128xf32>, vector<128x128xf32> -> vector<128x128xf32>
    %c0_4 = arith.constant 0 : index
    %c0_5 = arith.constant 0 : index
    %8 = vector.load %arg5[%c0_4, %c0_5] : memref<1x128xf32, #tpu.memory_space<vmem>>, vector<1x128xf32>
    %9 = vector.broadcast %8 : vector<1x128xf32> to vector<128x128xf32>
    %10 = arith.addf %7, %9 : vector<128x128xf32>
    %cst_6 = arith.constant 0.000000e+00 : f32
    %11 = vector.broadcast %cst_6 : f32 to vector<128x128xf32>
    %12 = arith.maximumf %10, %11 : vector<128x128xf32>
    %13 = vector.shape_cast %12 : vector<128x128xf32> to vector<1x8x16x128xf32>
    %c0_7 = arith.constant 0 : index
    %c0_8 = arith.constant 0 : index
    %c0_9 = arith.constant 0 : index
    %c0_10 = arith.constant 0 : index
    %14 = vector.load %arg6[%c0_7, %c0_8, %c0_9, %c0_10] : memref<1x8x16x128xf32, #tpu.memory_space<vmem>>, vector<1x8x16x128xf32>
    tpu.vector_store %arg6[%c0_7, %c0_8, %c0_9, %c0_10], %13 {strides = array<i32>} : memref<1x8x16x128xf32, #tpu.memory_space<vmem>>, vector<1x8x16x128xf32>,
    return
  }
  func.func @transform_0(%arg0: i32, %arg1: i32, %arg2: i32) -> (i32, i32, i32, i32) {
    %c0_i32 = arith.constant 0 : i32
    %c0_i32_0 = arith.constant 0 : i32
    %c0_i32_1 = arith.constant 0 : i32
    %c0_i32_2 = arith.constant 0 : i32
    return %arg0, %c0_i32, %c0_i32_0, %c0_i32_1 : i32, i32, i32, i32
  }
  func.func @transform_1(%arg0: i32, %arg1: i32, %arg2: i32) -> (i32, i32) {
    %c0_i32 = arith.constant 0 : i32
    %c0_i32_0 = arith.constant 0 : i32
    return %c0_i32, %arg2 : i32, i32
  }
  func.func @transform_2(%arg0: i32, %arg1: i32, %arg2: i32) -> (i32, i32) {
    %c0_i32 = arith.constant 0 : i32
    %c0_i32_0 = arith.constant 0 : i32
    return %c0_i32, %arg2 : i32, i32
  }
  func.func @transform_3(%arg0: i32, %arg1: i32, %arg2: i32) -> (i32, i32, i32, i32) {
    %c0_i32 = arith.constant 0 : i32
    %c0_i32_0 = arith.constant 0 : i32
    return %arg0, %arg1, %c0_i32, %arg2 : i32, i32, i32, i32
  }
}

module attributes {stable_mosaic.version = 11 : i64} {
  func.func @_dilated_conv_kernel(%arg0: i32, %arg1: i32, %arg2: i32, %arg3: memref<1x16x16x128xf32, #tpu.memory_space<vmem>>, %arg4: memref<1152x128xf32, #tpu.memory_space<vmem>>, %arg5: memref<1x128xf32, #tpu.memory_space<vmem>>, %arg6: memref<1x8x16x128xf32, #tpu.memory_space<vmem>>, %arg7: memref<1x8x16x128xf32, #tpu.memory_space<vmem>>, %arg8: memref<1x8x16x128xf32, #tpu.memory_space<vmem>>, %arg9: memref<1x8x16x128xf32, #tpu.memory_space<vmem>>, %arg10: memref<1x8x16x128xf32, #tpu.memory_space<vmem>>, %arg11: memref<128x1152xf32, #tpu.memory_space<vmem>>) attributes {dimension_semantics = [#tpu.dimension_semantics<parallel>, #tpu.dimension_semantics<parallel>, #tpu.dimension_semantics<arbitrary>], iteration_bounds = array<i64: 2, 2, 1>, scalar_prefetch = 0 : i64, scratch_operands = 1 : i64, tpu.core_type = #tpu.core_type<tc>, window_params = [{transform_indices = @transform_0, window_bounds = array<i64: 1, 16, 16, 128>}, {transform_indices = @transform_1, window_bounds = array<i64: 1152, 128>}, {transform_indices = @transform_2, window_bounds = array<i64: 1, 128>}, {transform_indices = @transform_3, window_bounds = array<i64: 1, 8, 16, 128>}, {transform_indices = @transform_4, window_bounds = array<i64: 1, 8, 16, 128>}, {transform_indices = @transform_5, window_bounds = array<i64: 1, 8, 16, 128>}, {transform_indices = @transform_6, window_bounds = array<i64: 1, 8, 16, 128>}, {transform_indices = @transform_7, window_bounds = array<i64: 1, 8, 16, 128>}]} {
    %c8_i32 = arith.constant 8 : i32
    %0 = arith.muli %arg1, %c8_i32 : i32
    %1 = tpu.assume_multiple %0, 8 : i32
    %c0_i32 = arith.constant 0 : i32
    %2 = arith.cmpi eq, %arg2, %c0_i32 : i32
    %3 = arith.extui %2 : i1 to i32
    %c0_i32_0 = arith.constant 0 : i32
    %4 = arith.cmpi ne, %3, %c0_i32_0 : i32
    scf.if %4 {
      %c0_i32_27 = arith.constant 0 : i32
      %23 = arith.addi %1, %c0_i32_27 : i32
      %c-8_i32 = arith.constant -8 : i32
      %24 = arith.addi %23, %c-8_i32 : i32
      %c0_i32_28 = arith.constant 0 : i32
      %c15_i32 = arith.constant 15 : i32
      %25 = arith.maxsi %c0_i32_28, %24 : i32
      %26 = arith.minsi %c15_i32, %25 : i32
      %c0_29 = arith.constant 0 : index
      %27 = arith.index_cast %26 : i32 to index
      %c0_30 = arith.constant 0 : index
      %c0_31 = arith.constant 0 : index
      %28 = vector.load %arg3[%c0_29, %27, %c0_30, %c0_31] : memref<1x16x16x128xf32, #tpu.memory_space<vmem>>, vector<1x1x16x128xf32>
      %29 = vector.shape_cast %28 : vector<1x1x16x128xf32> to vector<1x16x128xf32>
      %c0_i32_32 = arith.constant 0 : i32
      %30 = arith.cmpi sge, %24, %c0_i32_32 : i32
      %c16_i32 = arith.constant 16 : i32
      %31 = arith.cmpi slt, %24, %c16_i32 : i32
      %32 = arith.andi %30, %31 : i1
      %33 = arith.extui %32 : i1 to i32
      %34 = arith.sitofp %33 : i32 to f32
      %35 = vector.broadcast %34 : f32 to vector<1x16x128xf32>
      %36 = arith.mulf %29, %35 : vector<1x16x128xf32>
      %c1_i32 = arith.constant 1 : i32
      %37 = arith.addi %1, %c1_i32 : i32
      %c-8_i32_33 = arith.constant -8 : i32
      %38 = arith.addi %37, %c-8_i32_33 : i32
      %c0_i32_34 = arith.constant 0 : i32
      %c15_i32_35 = arith.constant 15 : i32
      %39 = arith.maxsi %c0_i32_34, %38 : i32
      %40 = arith.minsi %c15_i32_35, %39 : i32
      %c0_36 = arith.constant 0 : index
      %41 = arith.index_cast %40 : i32 to index
      %c0_37 = arith.constant 0 : index
      %c0_38 = arith.constant 0 : index
      %42 = vector.load %arg3[%c0_36, %41, %c0_37, %c0_38] : memref<1x16x16x128xf32, #tpu.memory_space<vmem>>, vector<1x1x16x128xf32>
      %43 = vector.shape_cast %42 : vector<1x1x16x128xf32> to vector<1x16x128xf32>
      %c0_i32_39 = arith.constant 0 : i32
      %44 = arith.cmpi sge, %38, %c0_i32_39 : i32
      %c16_i32_40 = arith.constant 16 : i32
      %45 = arith.cmpi slt, %38, %c16_i32_40 : i32
      %46 = arith.andi %44, %45 : i1
      %47 = arith.extui %46 : i1 to i32
      %48 = arith.sitofp %47 : i32 to f32
      %49 = vector.broadcast %48 : f32 to vector<1x16x128xf32>
      %50 = arith.mulf %43, %49 : vector<1x16x128xf32>
      %c2_i32 = arith.constant 2 : i32
      %51 = arith.addi %1, %c2_i32 : i32
      %c-8_i32_41 = arith.constant -8 : i32
      %52 = arith.addi %51, %c-8_i32_41 : i32
      %c0_i32_42 = arith.constant 0 : i32
      %c15_i32_43 = arith.constant 15 : i32
      %53 = arith.maxsi %c0_i32_42, %52 : i32
      %54 = arith.minsi %c15_i32_43, %53 : i32
      %c0_44 = arith.constant 0 : index
      %55 = arith.index_cast %54 : i32 to index
      %c0_45 = arith.constant 0 : index
      %c0_46 = arith.constant 0 : index
      %56 = vector.load %arg3[%c0_44, %55, %c0_45, %c0_46] : memref<1x16x16x128xf32, #tpu.memory_space<vmem>>, vector<1x1x16x128xf32>
      %57 = vector.shape_cast %56 : vector<1x1x16x128xf32> to vector<1x16x128xf32>
      %c0_i32_47 = arith.constant 0 : i32
      %58 = arith.cmpi sge, %52, %c0_i32_47 : i32
      %c16_i32_48 = arith.constant 16 : i32
      %59 = arith.cmpi slt, %52, %c16_i32_48 : i32
      %60 = arith.andi %58, %59 : i1
      %61 = arith.extui %60 : i1 to i32
      %62 = arith.sitofp %61 : i32 to f32
      %63 = vector.broadcast %62 : f32 to vector<1x16x128xf32>
      %64 = arith.mulf %57, %63 : vector<1x16x128xf32>
      %c3_i32 = arith.constant 3 : i32
      %65 = arith.addi %1, %c3_i32 : i32
      %c-8_i32_49 = arith.constant -8 : i32
      %66 = arith.addi %65, %c-8_i32_49 : i32
      %c0_i32_50 = arith.constant 0 : i32
      %c15_i32_51 = arith.constant 15 : i32
      %67 = arith.maxsi %c0_i32_50, %66 : i32
      %68 = arith.minsi %c15_i32_51, %67 : i32
      %c0_52 = arith.constant 0 : index
      %69 = arith.index_cast %68 : i32 to index
      %c0_53 = arith.constant 0 : index
      %c0_54 = arith.constant 0 : index
      %70 = vector.load %arg3[%c0_52, %69, %c0_53, %c0_54] : memref<1x16x16x128xf32, #tpu.memory_space<vmem>>, vector<1x1x16x128xf32>
      %71 = vector.shape_cast %70 : vector<1x1x16x128xf32> to vector<1x16x128xf32>
      %c0_i32_55 = arith.constant 0 : i32
      %72 = arith.cmpi sge, %66, %c0_i32_55 : i32
      %c16_i32_56 = arith.constant 16 : i32
      %73 = arith.cmpi slt, %66, %c16_i32_56 : i32
      %74 = arith.andi %72, %73 : i1
      %75 = arith.extui %74 : i1 to i32
      %76 = arith.sitofp %75 : i32 to f32
      %77 = vector.broadcast %76 : f32 to vector<1x16x128xf32>
      %78 = arith.mulf %71, %77 : vector<1x16x128xf32>
      %c4_i32 = arith.constant 4 : i32
      %79 = arith.addi %1, %c4_i32 : i32
      %c-8_i32_57 = arith.constant -8 : i32
      %80 = arith.addi %79, %c-8_i32_57 : i32
      %c0_i32_58 = arith.constant 0 : i32
      %c15_i32_59 = arith.constant 15 : i32
      %81 = arith.maxsi %c0_i32_58, %80 : i32
      %82 = arith.minsi %c15_i32_59, %81 : i32
      %c0_60 = arith.constant 0 : index
      %83 = arith.index_cast %82 : i32 to index
      %c0_61 = arith.constant 0 : index
      %c0_62 = arith.constant 0 : index
      %84 = vector.load %arg3[%c0_60, %83, %c0_61, %c0_62] : memref<1x16x16x128xf32, #tpu.memory_space<vmem>>, vector<1x1x16x128xf32>
      %85 = vector.shape_cast %84 : vector<1x1x16x128xf32> to vector<1x16x128xf32>
      %c0_i32_63 = arith.constant 0 : i32
      %86 = arith.cmpi sge, %80, %c0_i32_63 : i32
      %c16_i32_64 = arith.constant 16 : i32
      %87 = arith.cmpi slt, %80, %c16_i32_64 : i32
      %88 = arith.andi %86, %87 : i1
      %89 = arith.extui %88 : i1 to i32
      %90 = arith.sitofp %89 : i32 to f32
      %91 = vector.broadcast %90 : f32 to vector<1x16x128xf32>
      %92 = arith.mulf %85, %91 : vector<1x16x128xf32>
      %c5_i32 = arith.constant 5 : i32
      %93 = arith.addi %1, %c5_i32 : i32
      %c-8_i32_65 = arith.constant -8 : i32
      %94 = arith.addi %93, %c-8_i32_65 : i32
      %c0_i32_66 = arith.constant 0 : i32
      %c15_i32_67 = arith.constant 15 : i32
      %95 = arith.maxsi %c0_i32_66, %94 : i32
      %96 = arith.minsi %c15_i32_67, %95 : i32
      %c0_68 = arith.constant 0 : index
      %97 = arith.index_cast %96 : i32 to index
      %c0_69 = arith.constant 0 : index
      %c0_70 = arith.constant 0 : index
      %98 = vector.load %arg3[%c0_68, %97, %c0_69, %c0_70] : memref<1x16x16x128xf32, #tpu.memory_space<vmem>>, vector<1x1x16x128xf32>
      %99 = vector.shape_cast %98 : vector<1x1x16x128xf32> to vector<1x16x128xf32>
      %c0_i32_71 = arith.constant 0 : i32
      %100 = arith.cmpi sge, %94, %c0_i32_71 : i32
      %c16_i32_72 = arith.constant 16 : i32
      %101 = arith.cmpi slt, %94, %c16_i32_72 : i32
      %102 = arith.andi %100, %101 : i1
      %103 = arith.extui %102 : i1 to i32
      %104 = arith.sitofp %103 : i32 to f32
      %105 = vector.broadcast %104 : f32 to vector<1x16x128xf32>
      %106 = arith.mulf %99, %105 : vector<1x16x128xf32>
      %c6_i32 = arith.constant 6 : i32
      %107 = arith.addi %1, %c6_i32 : i32
      %c-8_i32_73 = arith.constant -8 : i32
      %108 = arith.addi %107, %c-8_i32_73 : i32
      %c0_i32_74 = arith.constant 0 : i32
      %c15_i32_75 = arith.constant 15 : i32
      %109 = arith.maxsi %c0_i32_74, %108 : i32
      %110 = arith.minsi %c15_i32_75, %109 : i32
      %c0_76 = arith.constant 0 : index
      %111 = arith.index_cast %110 : i32 to index
      %c0_77 = arith.constant 0 : index
      %c0_78 = arith.constant 0 : index
      %112 = vector.load %arg3[%c0_76, %111, %c0_77, %c0_78] : memref<1x16x16x128xf32, #tpu.memory_space<vmem>>, vector<1x1x16x128xf32>
      %113 = vector.shape_cast %112 : vector<1x1x16x128xf32> to vector<1x16x128xf32>
      %c0_i32_79 = arith.constant 0 : i32
      %114 = arith.cmpi sge, %108, %c0_i32_79 : i32
      %c16_i32_80 = arith.constant 16 : i32
      %115 = arith.cmpi slt, %108, %c16_i32_80 : i32
      %116 = arith.andi %114, %115 : i1
      %117 = arith.extui %116 : i1 to i32
      %118 = arith.sitofp %117 : i32 to f32
      %119 = vector.broadcast %118 : f32 to vector<1x16x128xf32>
      %120 = arith.mulf %113, %119 : vector<1x16x128xf32>
      %c7_i32 = arith.constant 7 : i32
      %121 = arith.addi %1, %c7_i32 : i32
      %c-8_i32_81 = arith.constant -8 : i32
      %122 = arith.addi %121, %c-8_i32_81 : i32
      %c0_i32_82 = arith.constant 0 : i32
      %c15_i32_83 = arith.constant 15 : i32
      %123 = arith.maxsi %c0_i32_82, %122 : i32
      %124 = arith.minsi %c15_i32_83, %123 : i32
      %c0_84 = arith.constant 0 : index
      %125 = arith.index_cast %124 : i32 to index
      %c0_85 = arith.constant 0 : index
      %c0_86 = arith.constant 0 : index
      %126 = vector.load %arg3[%c0_84, %125, %c0_85, %c0_86] : memref<1x16x16x128xf32, #tpu.memory_space<vmem>>, vector<1x1x16x128xf32>
      %127 = vector.shape_cast %126 : vector<1x1x16x128xf32> to vector<1x16x128xf32>
      %c0_i32_87 = arith.constant 0 : i32
      %128 = arith.cmpi sge, %122, %c0_i32_87 : i32
      %c16_i32_88 = arith.constant 16 : i32
      %129 = arith.cmpi slt, %122, %c16_i32_88 : i32
      %130 = arith.andi %128, %129 : i1
      %131 = arith.extui %130 : i1 to i32
      %132 = arith.sitofp %131 : i32 to f32
      %133 = vector.broadcast %132 : f32 to vector<1x16x128xf32>
      %134 = arith.mulf %127, %133 : vector<1x16x128xf32>
      %135 = tpu.concatenate %36, %50, %64, %78, %92, %106, %120, %134 in 0 : vector<1x16x128xf32>, vector<1x16x128xf32>, vector<1x16x128xf32>, vector<1x16x128xf32>, vector<1x16x128xf32>, vector<1x16x128xf32>, vector<1x16x128xf32>, vector<1x16x128xf32> -> vector<8x16x128xf32>
      %cst_89 = arith.constant 0.000000e+00 : f32
      %136 = vector.broadcast %cst_89 : f32 to vector<8x8x128xf32>
      %137 = vector.extract_strided_slice %135 {offsets = [0, 0, 0], sizes = [8, 8, 128], strides = [1, 1, 1]} : vector<8x16x128xf32> to vector<8x8x128xf32>
      %138 = tpu.concatenate %136, %137 in 1 : vector<8x8x128xf32>, vector<8x8x128xf32> -> vector<8x16x128xf32>
      %139 = vector.shape_cast %138 : vector<8x16x128xf32> to vector<128x128xf32>
      %c0_90 = arith.constant 0 : index
      %c0_91 = arith.constant 0 : index
      %140 = vector.load %arg11[%c0_90, %c0_91] : memref<128x1152xf32, #tpu.memory_space<vmem>>, vector<128x128xf32>
      tpu.vector_store %arg11[%c0_90, %c0_91], %139 {strides = array<i32>} : memref<128x1152xf32, #tpu.memory_space<vmem>>, vector<128x128xf32>,
      %141 = vector.shape_cast %135 : vector<8x16x128xf32> to vector<128x128xf32>
      %c0_92 = arith.constant 0 : index
      %c128 = arith.constant 128 : index
      %142 = vector.load %arg11[%c0_92, %c128] : memref<128x1152xf32, #tpu.memory_space<vmem>>, vector<128x128xf32>
      tpu.vector_store %arg11[%c0_92, %c128], %141 {strides = array<i32>} : memref<128x1152xf32, #tpu.memory_space<vmem>>, vector<128x128xf32>,
      %cst_93 = arith.constant 0.000000e+00 : f32
      %143 = vector.broadcast %cst_93 : f32 to vector<8x8x128xf32>
      %144 = vector.extract_strided_slice %135 {offsets = [0, 8, 0], sizes = [8, 8, 128], strides = [1, 1, 1]} : vector<8x16x128xf32> to vector<8x8x128xf32>
      %145 = tpu.concatenate %144, %143 in 1 : vector<8x8x128xf32>, vector<8x8x128xf32> -> vector<8x16x128xf32>
      %146 = vector.shape_cast %145 : vector<8x16x128xf32> to vector<128x128xf32>
      %c0_94 = arith.constant 0 : index
      %c256 = arith.constant 256 : index
      %147 = vector.load %arg11[%c0_94, %c256] : memref<128x1152xf32, #tpu.memory_space<vmem>>, vector<128x128xf32>
      tpu.vector_store %arg11[%c0_94, %c256], %146 {strides = array<i32>} : memref<128x1152xf32, #tpu.memory_space<vmem>>, vector<128x128xf32>,
      %c0_95 = arith.constant 0 : index
      %148 = arith.index_cast %1 : i32 to index
      %c0_96 = arith.constant 0 : index
      %c0_97 = arith.constant 0 : index
      %149 = vector.load %arg3[%c0_95, %148, %c0_96, %c0_97] : memref<1x16x16x128xf32, #tpu.memory_space<vmem>>, vector<1x8x16x128xf32>
      %150 = vector.shape_cast %149 : vector<1x8x16x128xf32> to vector<8x16x128xf32>
      %cst_98 = arith.constant 0.000000e+00 : f32
      %151 = vector.broadcast %cst_98 : f32 to vector<8x8x128xf32>
      %152 = vector.extract_strided_slice %150 {offsets = [0, 0, 0], sizes = [8, 8, 128], strides = [1, 1, 1]} : vector<8x16x128xf32> to vector<8x8x128xf32>
      %153 = tpu.concatenate %151, %152 in 1 : vector<8x8x128xf32>, vector<8x8x128xf32> -> vector<8x16x128xf32>
      %154 = vector.shape_cast %153 : vector<8x16x128xf32> to vector<128x128xf32>
      %c0_99 = arith.constant 0 : index
      %c384 = arith.constant 384 : index
      %155 = vector.load %arg11[%c0_99, %c384] : memref<128x1152xf32, #tpu.memory_space<vmem>>, vector<128x128xf32>
      tpu.vector_store %arg11[%c0_99, %c384], %154 {strides = array<i32>} : memref<128x1152xf32, #tpu.memory_space<vmem>>, vector<128x128xf32>,
      %156 = vector.shape_cast %150 : vector<8x16x128xf32> to vector<128x128xf32>
      %c0_100 = arith.constant 0 : index
      %c512 = arith.constant 512 : index
      %157 = vector.load %arg11[%c0_100, %c512] : memref<128x1152xf32, #tpu.memory_space<vmem>>, vector<128x128xf32>
      tpu.vector_store %arg11[%c0_100, %c512], %156 {strides = array<i32>} : memref<128x1152xf32, #tpu.memory_space<vmem>>, vector<128x128xf32>,
      %cst_101 = arith.constant 0.000000e+00 : f32
      %158 = vector.broadcast %cst_101 : f32 to vector<8x8x128xf32>
      %159 = vector.extract_strided_slice %150 {offsets = [0, 8, 0], sizes = [8, 8, 128], strides = [1, 1, 1]} : vector<8x16x128xf32> to vector<8x8x128xf32>
      %160 = tpu.concatenate %159, %158 in 1 : vector<8x8x128xf32>, vector<8x8x128xf32> -> vector<8x16x128xf32>
      %161 = vector.shape_cast %160 : vector<8x16x128xf32> to vector<128x128xf32>
      %c0_102 = arith.constant 0 : index
      %c640 = arith.constant 640 : index
      %162 = vector.load %arg11[%c0_102, %c640] : memref<128x1152xf32, #tpu.memory_space<vmem>>, vector<128x128xf32>
      tpu.vector_store %arg11[%c0_102, %c640], %161 {strides = array<i32>} : memref<128x1152xf32, #tpu.memory_space<vmem>>, vector<128x128xf32>,
      %c0_i32_103 = arith.constant 0 : i32
      %163 = arith.addi %1, %c0_i32_103 : i32
      %c8_i32_104 = arith.constant 8 : i32
      %164 = arith.addi %163, %c8_i32_104 : i32
      %c0_i32_105 = arith.constant 0 : i32
      %c15_i32_106 = arith.constant 15 : i32
      %165 = arith.maxsi %c0_i32_105, %164 : i32
      %166 = arith.minsi %c15_i32_106, %165 : i32
      %c0_107 = arith.constant 0 : index
      %167 = arith.index_cast %166 : i32 to index
      %c0_108 = arith.constant 0 : index
      %c0_109 = arith.constant 0 : index
      %168 = vector.load %arg3[%c0_107, %167, %c0_108, %c0_109] : memref<1x16x16x128xf32, #tpu.memory_space<vmem>>, vector<1x1x16x128xf32>
      %169 = vector.shape_cast %168 : vector<1x1x16x128xf32> to vector<1x16x128xf32>
      %c0_i32_110 = arith.constant 0 : i32
      %170 = arith.cmpi sge, %164, %c0_i32_110 : i32
      %c16_i32_111 = arith.constant 16 : i32
      %171 = arith.cmpi slt, %164, %c16_i32_111 : i32
      %172 = arith.andi %170, %171 : i1
      %173 = arith.extui %172 : i1 to i32
      %174 = arith.sitofp %173 : i32 to f32
      %175 = vector.broadcast %174 : f32 to vector<1x16x128xf32>
      %176 = arith.mulf %169, %175 : vector<1x16x128xf32>
      %c1_i32_112 = arith.constant 1 : i32
      %177 = arith.addi %1, %c1_i32_112 : i32
      %c8_i32_113 = arith.constant 8 : i32
      %178 = arith.addi %177, %c8_i32_113 : i32
      %c0_i32_114 = arith.constant 0 : i32
      %c15_i32_115 = arith.constant 15 : i32
      %179 = arith.maxsi %c0_i32_114, %178 : i32
      %180 = arith.minsi %c15_i32_115, %179 : i32
      %c0_116 = arith.constant 0 : index
      %181 = arith.index_cast %180 : i32 to index
      %c0_117 = arith.constant 0 : index
      %c0_118 = arith.constant 0 : index
      %182 = vector.load %arg3[%c0_116, %181, %c0_117, %c0_118] : memref<1x16x16x128xf32, #tpu.memory_space<vmem>>, vector<1x1x16x128xf32>
      %183 = vector.shape_cast %182 : vector<1x1x16x128xf32> to vector<1x16x128xf32>
      %c0_i32_119 = arith.constant 0 : i32
      %184 = arith.cmpi sge, %178, %c0_i32_119 : i32
      %c16_i32_120 = arith.constant 16 : i32
      %185 = arith.cmpi slt, %178, %c16_i32_120 : i32
      %186 = arith.andi %184, %185 : i1
      %187 = arith.extui %186 : i1 to i32
      %188 = arith.sitofp %187 : i32 to f32
      %189 = vector.broadcast %188 : f32 to vector<1x16x128xf32>
      %190 = arith.mulf %183, %189 : vector<1x16x128xf32>
      %c2_i32_121 = arith.constant 2 : i32
      %191 = arith.addi %1, %c2_i32_121 : i32
      %c8_i32_122 = arith.constant 8 : i32
      %192 = arith.addi %191, %c8_i32_122 : i32
      %c0_i32_123 = arith.constant 0 : i32
      %c15_i32_124 = arith.constant 15 : i32
      %193 = arith.maxsi %c0_i32_123, %192 : i32
      %194 = arith.minsi %c15_i32_124, %193 : i32
      %c0_125 = arith.constant 0 : index
      %195 = arith.index_cast %194 : i32 to index
      %c0_126 = arith.constant 0 : index
      %c0_127 = arith.constant 0 : index
      %196 = vector.load %arg3[%c0_125, %195, %c0_126, %c0_127] : memref<1x16x16x128xf32, #tpu.memory_space<vmem>>, vector<1x1x16x128xf32>
      %197 = vector.shape_cast %196 : vector<1x1x16x128xf32> to vector<1x16x128xf32>
      %c0_i32_128 = arith.constant 0 : i32
      %198 = arith.cmpi sge, %192, %c0_i32_128 : i32
      %c16_i32_129 = arith.constant 16 : i32
      %199 = arith.cmpi slt, %192, %c16_i32_129 : i32
      %200 = arith.andi %198, %199 : i1
      %201 = arith.extui %200 : i1 to i32
      %202 = arith.sitofp %201 : i32 to f32
      %203 = vector.broadcast %202 : f32 to vector<1x16x128xf32>
      %204 = arith.mulf %197, %203 : vector<1x16x128xf32>
      %c3_i32_130 = arith.constant 3 : i32
      %205 = arith.addi %1, %c3_i32_130 : i32
      %c8_i32_131 = arith.constant 8 : i32
      %206 = arith.addi %205, %c8_i32_131 : i32
      %c0_i32_132 = arith.constant 0 : i32
      %c15_i32_133 = arith.constant 15 : i32
      %207 = arith.maxsi %c0_i32_132, %206 : i32
      %208 = arith.minsi %c15_i32_133, %207 : i32
      %c0_134 = arith.constant 0 : index
      %209 = arith.index_cast %208 : i32 to index
      %c0_135 = arith.constant 0 : index
      %c0_136 = arith.constant 0 : index
      %210 = vector.load %arg3[%c0_134, %209, %c0_135, %c0_136] : memref<1x16x16x128xf32, #tpu.memory_space<vmem>>, vector<1x1x16x128xf32>
      %211 = vector.shape_cast %210 : vector<1x1x16x128xf32> to vector<1x16x128xf32>
      %c0_i32_137 = arith.constant 0 : i32
      %212 = arith.cmpi sge, %206, %c0_i32_137 : i32
      %c16_i32_138 = arith.constant 16 : i32
      %213 = arith.cmpi slt, %206, %c16_i32_138 : i32
      %214 = arith.andi %212, %213 : i1
      %215 = arith.extui %214 : i1 to i32
      %216 = arith.sitofp %215 : i32 to f32
      %217 = vector.broadcast %216 : f32 to vector<1x16x128xf32>
      %218 = arith.mulf %211, %217 : vector<1x16x128xf32>
      %c4_i32_139 = arith.constant 4 : i32
      %219 = arith.addi %1, %c4_i32_139 : i32
      %c8_i32_140 = arith.constant 8 : i32
      %220 = arith.addi %219, %c8_i32_140 : i32
      %c0_i32_141 = arith.constant 0 : i32
      %c15_i32_142 = arith.constant 15 : i32
      %221 = arith.maxsi %c0_i32_141, %220 : i32
      %222 = arith.minsi %c15_i32_142, %221 : i32
      %c0_143 = arith.constant 0 : index
      %223 = arith.index_cast %222 : i32 to index
      %c0_144 = arith.constant 0 : index
      %c0_145 = arith.constant 0 : index
      %224 = vector.load %arg3[%c0_143, %223, %c0_144, %c0_145] : memref<1x16x16x128xf32, #tpu.memory_space<vmem>>, vector<1x1x16x128xf32>
      %225 = vector.shape_cast %224 : vector<1x1x16x128xf32> to vector<1x16x128xf32>
      %c0_i32_146 = arith.constant 0 : i32
      %226 = arith.cmpi sge, %220, %c0_i32_146 : i32
      %c16_i32_147 = arith.constant 16 : i32
      %227 = arith.cmpi slt, %220, %c16_i32_147 : i32
      %228 = arith.andi %226, %227 : i1
      %229 = arith.extui %228 : i1 to i32
      %230 = arith.sitofp %229 : i32 to f32
      %231 = vector.broadcast %230 : f32 to vector<1x16x128xf32>
      %232 = arith.mulf %225, %231 : vector<1x16x128xf32>
      %c5_i32_148 = arith.constant 5 : i32
      %233 = arith.addi %1, %c5_i32_148 : i32
      %c8_i32_149 = arith.constant 8 : i32
      %234 = arith.addi %233, %c8_i32_149 : i32
      %c0_i32_150 = arith.constant 0 : i32
      %c15_i32_151 = arith.constant 15 : i32
      %235 = arith.maxsi %c0_i32_150, %234 : i32
      %236 = arith.minsi %c15_i32_151, %235 : i32
      %c0_152 = arith.constant 0 : index
      %237 = arith.index_cast %236 : i32 to index
      %c0_153 = arith.constant 0 : index
      %c0_154 = arith.constant 0 : index
      %238 = vector.load %arg3[%c0_152, %237, %c0_153, %c0_154] : memref<1x16x16x128xf32, #tpu.memory_space<vmem>>, vector<1x1x16x128xf32>
      %239 = vector.shape_cast %238 : vector<1x1x16x128xf32> to vector<1x16x128xf32>
      %c0_i32_155 = arith.constant 0 : i32
      %240 = arith.cmpi sge, %234, %c0_i32_155 : i32
      %c16_i32_156 = arith.constant 16 : i32
      %241 = arith.cmpi slt, %234, %c16_i32_156 : i32
      %242 = arith.andi %240, %241 : i1
      %243 = arith.extui %242 : i1 to i32
      %244 = arith.sitofp %243 : i32 to f32
      %245 = vector.broadcast %244 : f32 to vector<1x16x128xf32>
      %246 = arith.mulf %239, %245 : vector<1x16x128xf32>
      %c6_i32_157 = arith.constant 6 : i32
      %247 = arith.addi %1, %c6_i32_157 : i32
      %c8_i32_158 = arith.constant 8 : i32
      %248 = arith.addi %247, %c8_i32_158 : i32
      %c0_i32_159 = arith.constant 0 : i32
      %c15_i32_160 = arith.constant 15 : i32
      %249 = arith.maxsi %c0_i32_159, %248 : i32
      %250 = arith.minsi %c15_i32_160, %249 : i32
      %c0_161 = arith.constant 0 : index
      %251 = arith.index_cast %250 : i32 to index
      %c0_162 = arith.constant 0 : index
      %c0_163 = arith.constant 0 : index
      %252 = vector.load %arg3[%c0_161, %251, %c0_162, %c0_163] : memref<1x16x16x128xf32, #tpu.memory_space<vmem>>, vector<1x1x16x128xf32>
      %253 = vector.shape_cast %252 : vector<1x1x16x128xf32> to vector<1x16x128xf32>
      %c0_i32_164 = arith.constant 0 : i32
      %254 = arith.cmpi sge, %248, %c0_i32_164 : i32
      %c16_i32_165 = arith.constant 16 : i32
      %255 = arith.cmpi slt, %248, %c16_i32_165 : i32
      %256 = arith.andi %254, %255 : i1
      %257 = arith.extui %256 : i1 to i32
      %258 = arith.sitofp %257 : i32 to f32
      %259 = vector.broadcast %258 : f32 to vector<1x16x128xf32>
      %260 = arith.mulf %253, %259 : vector<1x16x128xf32>
      %c7_i32_166 = arith.constant 7 : i32
      %261 = arith.addi %1, %c7_i32_166 : i32
      %c8_i32_167 = arith.constant 8 : i32
      %262 = arith.addi %261, %c8_i32_167 : i32
      %c0_i32_168 = arith.constant 0 : i32
      %c15_i32_169 = arith.constant 15 : i32
      %263 = arith.maxsi %c0_i32_168, %262 : i32
      %264 = arith.minsi %c15_i32_169, %263 : i32
      %c0_170 = arith.constant 0 : index
      %265 = arith.index_cast %264 : i32 to index
      %c0_171 = arith.constant 0 : index
      %c0_172 = arith.constant 0 : index
      %266 = vector.load %arg3[%c0_170, %265, %c0_171, %c0_172] : memref<1x16x16x128xf32, #tpu.memory_space<vmem>>, vector<1x1x16x128xf32>
      %267 = vector.shape_cast %266 : vector<1x1x16x128xf32> to vector<1x16x128xf32>
      %c0_i32_173 = arith.constant 0 : i32
      %268 = arith.cmpi sge, %262, %c0_i32_173 : i32
      %c16_i32_174 = arith.constant 16 : i32
      %269 = arith.cmpi slt, %262, %c16_i32_174 : i32
      %270 = arith.andi %268, %269 : i1
      %271 = arith.extui %270 : i1 to i32
      %272 = arith.sitofp %271 : i32 to f32
      %273 = vector.broadcast %272 : f32 to vector<1x16x128xf32>
      %274 = arith.mulf %267, %273 : vector<1x16x128xf32>
      %275 = tpu.concatenate %176, %190, %204, %218, %232, %246, %260, %274 in 0 : vector<1x16x128xf32>, vector<1x16x128xf32>, vector<1x16x128xf32>, vector<1x16x128xf32>, vector<1x16x128xf32>, vector<1x16x128xf32>, vector<1x16x128xf32>, vector<1x16x128xf32> -> vector<8x16x128xf32>
      %cst_175 = arith.constant 0.000000e+00 : f32
      %276 = vector.broadcast %cst_175 : f32 to vector<8x8x128xf32>
      %277 = vector.extract_strided_slice %275 {offsets = [0, 0, 0], sizes = [8, 8, 128], strides = [1, 1, 1]} : vector<8x16x128xf32> to vector<8x8x128xf32>
      %278 = tpu.concatenate %276, %277 in 1 : vector<8x8x128xf32>, vector<8x8x128xf32> -> vector<8x16x128xf32>
      %279 = vector.shape_cast %278 : vector<8x16x128xf32> to vector<128x128xf32>
      %c0_176 = arith.constant 0 : index
      %c768 = arith.constant 768 : index
      %280 = vector.load %arg11[%c0_176, %c768] : memref<128x1152xf32, #tpu.memory_space<vmem>>, vector<128x128xf32>
      tpu.vector_store %arg11[%c0_176, %c768], %279 {strides = array<i32>} : memref<128x1152xf32, #tpu.memory_space<vmem>>, vector<128x128xf32>,
      %281 = vector.shape_cast %275 : vector<8x16x128xf32> to vector<128x128xf32>
      %c0_177 = arith.constant 0 : index
      %c896 = arith.constant 896 : index
      %282 = vector.load %arg11[%c0_177, %c896] : memref<128x1152xf32, #tpu.memory_space<vmem>>, vector<128x128xf32>
      tpu.vector_store %arg11[%c0_177, %c896], %281 {strides = array<i32>} : memref<128x1152xf32, #tpu.memory_space<vmem>>, vector<128x128xf32>,
      %cst_178 = arith.constant 0.000000e+00 : f32
      %283 = vector.broadcast %cst_178 : f32 to vector<8x8x128xf32>
      %284 = vector.extract_strided_slice %275 {offsets = [0, 8, 0], sizes = [8, 8, 128], strides = [1, 1, 1]} : vector<8x16x128xf32> to vector<8x8x128xf32>
      %285 = tpu.concatenate %284, %283 in 1 : vector<8x8x128xf32>, vector<8x8x128xf32> -> vector<8x16x128xf32>
      %286 = vector.shape_cast %285 : vector<8x16x128xf32> to vector<128x128xf32>
      %c0_179 = arith.constant 0 : index
      %c1024 = arith.constant 1024 : index
      %287 = vector.load %arg11[%c0_179, %c1024] : memref<128x1152xf32, #tpu.memory_space<vmem>>, vector<128x128xf32>
      tpu.vector_store %arg11[%c0_179, %c1024], %286 {strides = array<i32>} : memref<128x1152xf32, #tpu.memory_space<vmem>>, vector<128x128xf32>,
    } else {
    }
    %c0 = arith.constant 0 : index
    %c0_1 = arith.constant 0 : index
    %5 = vector.load %arg11[%c0, %c0_1] : memref<128x1152xf32, #tpu.memory_space<vmem>>, vector<128x1152xf32>
    %c0_2 = arith.constant 0 : index
    %c0_3 = arith.constant 0 : index
    %6 = vector.load %arg4[%c0_2, %c0_3] : memref<1152x128xf32, #tpu.memory_space<vmem>>, vector<1152x128xf32>
    %cst = arith.constant dense<0.000000e+00> : vector<128x128xf32>
    %7 = tpu.matmul %5, %6, %cst {dimension_numbers = #tpu.dot_dimension_numbers<[1], [0], [0], [1], [0, 0, 1, 1], [], []>} : vector<128x1152xf32>, vector<1152x128xf32>, vector<128x128xf32> -> vector<128x128xf32>
    %c0_4 = arith.constant 0 : index
    %c0_5 = arith.constant 0 : index
    %8 = vector.load %arg5[%c0_4, %c0_5] : memref<1x128xf32, #tpu.memory_space<vmem>>, vector<1x128xf32>
    %9 = vector.broadcast %8 : vector<1x128xf32> to vector<128x128xf32>
    %10 = arith.addf %7, %9 : vector<128x128xf32>
    %cst_6 = arith.constant 0.000000e+00 : f32
    %11 = vector.broadcast %cst_6 : f32 to vector<128x128xf32>
    %12 = arith.maximumf %10, %11 : vector<128x128xf32>
    %13 = vector.shape_cast %12 : vector<128x128xf32> to vector<1x8x16x128xf32>
    %c0_7 = arith.constant 0 : index
    %c0_8 = arith.constant 0 : index
    %c0_9 = arith.constant 0 : index
    %c0_10 = arith.constant 0 : index
    %14 = vector.load %arg6[%c0_7, %c0_8, %c0_9, %c0_10] : memref<1x8x16x128xf32, #tpu.memory_space<vmem>>, vector<1x8x16x128xf32>
    %15 = arith.addf %13, %14 : vector<1x8x16x128xf32>
    %c0_11 = arith.constant 0 : index
    %c0_12 = arith.constant 0 : index
    %c0_13 = arith.constant 0 : index
    %c0_14 = arith.constant 0 : index
    %16 = vector.load %arg7[%c0_11, %c0_12, %c0_13, %c0_14] : memref<1x8x16x128xf32, #tpu.memory_space<vmem>>, vector<1x8x16x128xf32>
    %17 = arith.addf %15, %16 : vector<1x8x16x128xf32>
    %c0_15 = arith.constant 0 : index
    %c0_16 = arith.constant 0 : index
    %c0_17 = arith.constant 0 : index
    %c0_18 = arith.constant 0 : index
    %18 = vector.load %arg8[%c0_15, %c0_16, %c0_17, %c0_18] : memref<1x8x16x128xf32, #tpu.memory_space<vmem>>, vector<1x8x16x128xf32>
    %19 = arith.addf %17, %18 : vector<1x8x16x128xf32>
    %c0_19 = arith.constant 0 : index
    %c0_20 = arith.constant 0 : index
    %c0_21 = arith.constant 0 : index
    %c0_22 = arith.constant 0 : index
    %20 = vector.load %arg9[%c0_19, %c0_20, %c0_21, %c0_22] : memref<1x8x16x128xf32, #tpu.memory_space<vmem>>, vector<1x8x16x128xf32>
    %21 = arith.addf %19, %20 : vector<1x8x16x128xf32>
    %c0_23 = arith.constant 0 : index
    %c0_24 = arith.constant 0 : index
    %c0_25 = arith.constant 0 : index
    %c0_26 = arith.constant 0 : index
    %22 = vector.load %arg10[%c0_23, %c0_24, %c0_25, %c0_26] : memref<1x8x16x128xf32, #tpu.memory_space<vmem>>, vector<1x8x16x128xf32>
    tpu.vector_store %arg10[%c0_23, %c0_24, %c0_25, %c0_26], %21 {strides = array<i32>} : memref<1x8x16x128xf32, #tpu.memory_space<vmem>>, vector<1x8x16x128xf32>,
    return
  }
  func.func @transform_0(%arg0: i32, %arg1: i32, %arg2: i32) -> (i32, i32, i32, i32) {
    %c0_i32 = arith.constant 0 : i32
    %c0_i32_0 = arith.constant 0 : i32
    %c0_i32_1 = arith.constant 0 : i32
    %c0_i32_2 = arith.constant 0 : i32
    return %arg0, %c0_i32, %c0_i32_0, %c0_i32_1 : i32, i32, i32, i32
  }
  func.func @transform_1(%arg0: i32, %arg1: i32, %arg2: i32) -> (i32, i32) {
    %c0_i32 = arith.constant 0 : i32
    %c0_i32_0 = arith.constant 0 : i32
    return %c0_i32, %arg2 : i32, i32
  }
  func.func @transform_2(%arg0: i32, %arg1: i32, %arg2: i32) -> (i32, i32) {
    %c0_i32 = arith.constant 0 : i32
    %c0_i32_0 = arith.constant 0 : i32
    return %c0_i32, %arg2 : i32, i32
  }
  func.func @transform_3(%arg0: i32, %arg1: i32, %arg2: i32) -> (i32, i32, i32, i32) {
    %c0_i32 = arith.constant 0 : i32
    %c0_i32_0 = arith.constant 0 : i32
    return %arg0, %arg1, %c0_i32, %arg2 : i32, i32, i32, i32
  }
  func.func @transform_4(%arg0: i32, %arg1: i32, %arg2: i32) -> (i32, i32, i32, i32) {
    %c0_i32 = arith.constant 0 : i32
    %c0_i32_0 = arith.constant 0 : i32
    return %arg0, %arg1, %c0_i32, %arg2 : i32, i32, i32, i32
  }
  func.func @transform_5(%arg0: i32, %arg1: i32, %arg2: i32) -> (i32, i32, i32, i32) {
    %c0_i32 = arith.constant 0 : i32
    %c0_i32_0 = arith.constant 0 : i32
    return %arg0, %arg1, %c0_i32, %arg2 : i32, i32, i32, i32
  }
  func.func @transform_6(%arg0: i32, %arg1: i32, %arg2: i32) -> (i32, i32, i32, i32) {
    %c0_i32 = arith.constant 0 : i32
    %c0_i32_0 = arith.constant 0 : i32
    return %arg0, %arg1, %c0_i32, %arg2 : i32, i32, i32, i32
  }
  func.func @transform_7(%arg0: i32, %arg1: i32, %arg2: i32) -> (i32, i32, i32, i32) {
    %c0_i32 = arith.constant 0 : i32
    %c0_i32_0 = arith.constant 0 : i32
    return %arg0, %arg1, %c0_i32, %arg2 : i32, i32, i32, i32
  }
}

</mosaic_0001>

<bundles_post_ra>
// kernel: dilated_block_forward.7
= control target key start
LH: loop header
LB: loop body
LE: loop exit
PB: predicated region body
PF: predicated region fallthrough
CT: control target
= control target key end

     0   :  { %s3331_s24 = smov 0   ;;  %s3333_s25 = smov 0   ;;  %s4708_s0 = inlined_call_operand.vmem [shape: f32[2,16,16,128], index: 0, kind: input, shape index: {}, may-alias: {0,6}]   ;;  %s4709_s1 = inlined_call_operand.vmem [shape: f32[1152,128], index: 1, kind: input, shape index: {}]   ;;  %s4710_s2 = inlined_call_operand.vmem [shape: f32[1,128], index: 2, kind: input, shape index: {}]   ;;  %s4711_s3 = inlined_call_operand.vmem [shape: f32[2,16,16,128], index: 3, kind: input, shape index: {}]   ;;  %s4712_s4 = inlined_call_operand.vmem [shape: f32[2,16,16,128], index: 4, kind: input, shape index: {}]   ;;  %s4713_s5 = inlined_call_operand.vmem [shape: f32[2,16,16,128], index: 5, kind: input, shape index: {}]   ;;  %s4714_s6 = inlined_call_operand.vmem [shape: f32[2,16,16,128], index: 6, kind: input, shape index: {}, may-alias: {0,6}]   ;;  %s4715_s7 = inlined_call_operand.vmem [shape: f32[2,16,16,128], index: 7, kind: output, shape index: {}]  }
   0x1   :  { %4716 = sst [smem:[#allocation5_spill]] %s4708_s0  ;;  %s3335_s26 = smov 0  }
   0x2   :  { %s3337_s27 = smov 0   ;;  %s3339_s28 = smov 0  }
   0x3 LB: > { %s32_s29 = sadd.s32 1, %s3280_s26  ;;  %s36_s30 = sadd.s32 1, %s3284_s27  ;;  %s3288_s28 = sphi %s3339_s28, %s17_s28   ;;  %s3284_s27 = sphi %s3337_s27, %s4744_s27   ;;  %s3280_s26 = sphi %s3335_s26, %s4743_s26   ;;  %s3276_s25 = sphi %s3333_s25, %s4742_s25   ;;  %s3272_s24 = sphi %s3331_s24, %s4741_s24  }
   0x4   : > { %p34_p0 = scmp.ge.s32.totalorder %s32_s29, 2  ;;  %p2451_p1 = scmp.ge.s32.totalorder %s3288_s28, 1 }
   0x5   : > { %p369_p2 = scmp.lt.s32.totalorder %s3288_s28, 5 }
   0x6   : > { %s4746_s29 = smov (%p34_p0, %s32_s29), 0  ;;  %s4748_s30 = smov (!%p34_p0, %s36_s30), %s3284_s27 }
   0x7   : > { %4717 = sst [smem:[#allocation3_spill]] %s4746_s29  ;;  %p370_p3 = pnand %p2451_p1, %p369_p2 }
   0x8   : > { %p38_p4 = scmp.ge.s32.totalorder %s4748_s30, 2  ;;  %v1165_v0 = vld [vmem:[%s4709_s1 + $0x80] sm:$0xff] (!%p370_p3)  ;;  %v1166_v1 = vld [vmem:[%s4709_s1 + $0x88] sm:$0xff] (!%p370_p3)  ;;  %p468_p5 = scmp.lt.s32.totalorder (!%p370_p3), %s3276_s25, 1  ;;  %v3290_v7 = vmov (!%p370_p3), 0.0   ;;  %v1167_v12 = vld [vmem:[%s4709_s1 + $0x90] sm:$0xff] (!%p370_p3) }
   0x9   : > { %373 = sbr.rel (%p370_p3) target bundleno = 415 (0x19f), region = 48  ;;  %v1197_v2 = vld [vmem:[%s4709_s1 + $0x180] sm:$0xff] (!%p370_p3)  ;;  %s3376_s14 = sshll.u32 (!%p370_p3), %s3272_s24, 3  ;;  %v3033_v3 = vpack.c.bf16 (!%p370_p3), %v1166_v1, %v1165_v0  ;;  %v1198_v4 = vld [vmem:[%s4709_s1 + $0x188] sm:$0xff] (!%p370_p3)  ;;  %1509 = vmatprep.mubr.f32.mxu1 (!%p370_p3), %v3290_v7  ;;  %v1168_v14 = vld [vmem:[%s4709_s1 + $0x98] sm:$0xff] (!%p370_p3) }
   0xa   : > { %s4750_s30 = smov (%p38_p4, %s4748_s30), 0  ;;  %v1149_v5 = vld [vmem:[%s4709_s1] sm:$0xff] (!%p370_p3)  ;;  %v1150_v6 = vld [vmem:[%s4709_s1 + $0x8] sm:$0xff] (!%p370_p3)  ;;  %s3388_s21 = sadd.s32 (!%p370_p3), 4294967288, %s3376_s14  ;;  %v3065_v8 = vpack.c.bf16 (!%p370_p3), %v1198_v4, %v1197_v2  ;;  %v1199_v15 = vld [vmem:[%s4709_s1 + $0x190] sm:$0xff] (!%p370_p3)  ;;  %v3037_v17 = vpack.c.bf16 (!%p370_p3), %v1168_v14, %v1167_v12 }
   0xb   : > { %4718 = sst [smem:[#allocation4_spill]] %s4750_s30  ;;  %v3035_v9 = vpack.c.bf16 (!%p370_p3), %v1150_v6, %v1149_v5  ;;  %v1181_v10 = vld [vmem:[%s4709_s1 + $0x100] sm:$0xff] (!%p370_p3)  ;;  %v1182_v11 = vld [vmem:[%s4709_s1 + $0x108] sm:$0xff] (!%p370_p3)  ;;  %3034 = vmatprep.subr.bf16.mxu0 (!%p370_p3), %v3033_v3  ;;  %v1200_v16 = vld [vmem:[%s4709_s1 + $0x198] sm:$0xff] (!%p370_p3)  ;;  %p556_p6 = scmp.gt.s32.totalorder (!%p370_p3), %s3388_s21, 0 }
   0xc   : > { %v3067_v13 = vpack.c.bf16 (!%p370_p3), %v1182_v11, %v1181_v10  ;;  %3066 = vmatprep.subr.bf16.mxu1 (!%p370_p3), %v3065_v8  ;;  %v3069_v18 = vpack.c.bf16 (!%p370_p3), %v1200_v16, %v1199_v15  ;;  %v1151_v19 = vld [vmem:[%s4709_s1 + $0x10] sm:$0xff] (!%p370_p3)  ;;  %v1152_v20 = vld [vmem:[%s4709_s1 + $0x18] sm:$0xff] (!%p370_p3)  ;;  %p2475_p7 = scmp.lt.s32.totalorder (!%p370_p3), %s3388_s21, 15  ;;  %p564_p8 = scmp.ge.s32.totalorder (!%p370_p3), %s3388_s21, 0  ;;  %v1169_v24 = vld [vmem:[%s4709_s1 + $0xa0] sm:$0xff] (!%p370_p3) }
   0xd   : > { %3036 = vmatpush3.bf16.msra.mxu0 (!%p370_p3), %v3035_v9  ;;  %v1183_v21 = vld [vmem:[%s4709_s1 + $0x110] sm:$0xff] (!%p370_p3)  ;;  %v3039_v22 = vpack.c.bf16 (!%p370_p3), %v1152_v20, %v1151_v19  ;;  %v1184_v23 = vld [vmem:[%s4709_s1 + $0x118] sm:$0xff] (!%p370_p3)  ;;  %v1170_v25 = vld [vmem:[%s4709_s1 + $0xa8] sm:$0xff] (!%p370_p3)  ;;  %p565_p9 = scmp.lt.s32.totalorder (!%p370_p3), %s3388_s21, 16  ;;  %s4720_s0 = sld [smem:[#allocation5_spill]] (!%p370_p3) }
   0xe   : > { %3068 = vmatpush3.bf16.msra.mxu1 (!%p370_p3), %v3067_v13  ;;  %3038 = vmatprep.subr.bf16.mxu0 (!%p370_p3), %v3037_v17  ;;  %v3071_v26 = vpack.c.bf16 (!%p370_p3), %v1184_v23, %v1183_v21  ;;  %v3041_v27 = vpack.c.bf16 (!%p370_p3), %v1170_v25, %v1169_v24  ;;  %v1201_v28 = vld [vmem:[%s4709_s1 + $0x1a0] sm:$0xff] (!%p370_p3)  ;;  %v1202_v29 = vld [vmem:[%s4709_s1 + $0x1a8] sm:$0xff] (!%p370_p3)  ;;  %v1171_v36 = vld [vmem:[%s4709_s1 + $0xb0] sm:$0xff] (!%p370_p3)  ;;  %s3505_s17 = sadd.s32 (!%p370_p3), 4294967289, %s3376_s14  ;;  %s3555_s20 = sadd.s32 (!%p370_p3), 4294967290, %s3376_s14 }
   0xf   : > { %3070 = vmatprep.subr.bf16.mxu1 (!%p370_p3), %v3069_v18  ;;  %v1153_v30 = vld [vmem:[%s4709_s1 + $0x20] sm:$0xff] (!%p370_p3)  ;;  %v3073_v31 = vpack.c.bf16 (!%p370_p3), %v1202_v29, %v1201_v28  ;;  %v1154_v32 = vld [vmem:[%s4709_s1 + $0x28] sm:$0xff] (!%p370_p3)  ;;  %p3462_p10 = pnand (!%p370_p3), %p565_p9, %p564_p8  ;;  %v1172_v37 = vld [vmem:[%s4709_s1 + $0xb8] sm:$0xff] (!%p370_p3)  ;;  %p574_p11 = scmp.gt.s32.totalorder (!%p370_p3), %s3505_s17, 0 }
  0x10   : > { %s4752_s25 = smov (!%p468_p5, %s3276_s25), 1  ;;  %v1185_v33 = vld [vmem:[%s4709_s1 + $0x120] sm:$0xff]  ;;  %v1186_v34 = vld [vmem:[%s4709_s1 + $0x128] sm:$0xff]  ;;  %v3043_v35 = vpack.c.bf16 %v1154_v32, %v1153_v30  ;;  %v1203_v38 = vld [vmem:[%s4709_s1 + $0x1b0] sm:$0xff]  ;;  %v3045_v40 = vpack.c.bf16 %v1172_v37, %v1171_v36  ;;  %p2482_p12 = scmp.lt.s32.totalorder %s3505_s17, 15 }
  0x11   : > { %s557_s8 = scalar_select %p556_p6, %s3388_s21, 0  ;;  %3040 = vmatpush3.bf16.msra.mxu0 %v3039_v22  ;;  %v3075_v39 = vpack.c.bf16 %v1186_v34, %v1185_v33  ;;  %v1204_v41 = vld [vmem:[%s4709_s1 + $0x1b8] sm:$0xff]  ;;  %v1155_v42 = vld [vmem:[%s4709_s1 + $0x30] sm:$0xff]  ;;  %v1173_v47 = vld [vmem:[%s4709_s1 + $0xc0] sm:$0xff] }
  0x12   : > { %s2591_s16 = sshll.u32 %s4752_s25, 8  ;;  %3072 = vmatpush3.bf16.msra.mxu1 %v3071_v26  ;;  %3042 = vmatprep.subr.bf16.mxu0 %v3041_v27  ;;  %v1156_v43 = vld [vmem:[%s4709_s1 + $0x38] sm:$0xff]  ;;  %v3077_v44 = vpack.c.bf16 %v1204_v41, %v1203_v38  ;;  %v1187_v45 = vld [vmem:[%s4709_s1 + $0x130] sm:$0xff]  ;;  %v1174_v48 = vld [vmem:[%s4709_s1 + $0xc8] sm:$0xff]  ;;  %p582_p13 = scmp.ge.s32.totalorder %s3505_s17, 0 }
  0x13   : > { %s4754_s8 = smov (!%p2475_p7, %s557_s8), 15  ;;  %3074 = vmatprep.subr.bf16.mxu1 %v3073_v31  ;;  %v1188_v46 = vld [vmem:[%s4709_s1 + $0x138] sm:$0xff]  ;;  %s3502_s13 = scalar_lea.vmem %s4720_s0, %s2591_s16  ;;  %v1205_v49 = vld [vmem:[%s4709_s1 + $0x1c0] sm:$0xff]  ;;  %v1206_v50 = vld [vmem:[%s4709_s1 + $0x1c8] sm:$0xff]  ;;  %v3047_v51 = vpack.c.bf16 %v1156_v43, %v1155_v42  ;;  %v3049_v53 = vpack.c.bf16 %v1174_v48, %v1173_v47 }
  0x14   : > { %s2481_s21 = scalar_select %p3462_p10, 0, 1  ;;  %v3079_v52 = vpack.c.bf16 %v1188_v46, %v1187_v45  ;;  %v1157_v54 = vld [vmem:[%s4709_s1 + $0x40] sm:$0xff]  ;;  %v1158_v55 = vld [vmem:[%s4709_s1 + $0x48] sm:$0xff]  ;;  %v3081_v57 = vpack.c.bf16 %v1206_v50, %v1205_v49  ;;  %v1175_v59 = vld [vmem:[%s4709_s1 + $0xd0] sm:$0xff] }
  0x15   : > { %3044 = vmatpush3.bf16.msra.mxu0 %v3043_v35  ;;  %v1189_v56 = vld [vmem:[%s4709_s1 + $0x140] sm:$0xff]  ;;  %p583_p0 = scmp.lt.s32.totalorder %s3505_s17, 16  ;;  %v1190_v58 = vld [vmem:[%s4709_s1 + $0x148] sm:$0xff]  ;;  %v1176_v60 = vld [vmem:[%s4709_s1 + $0xd8] sm:$0xff]  ;;  %v3051_v63 = vpack.c.bf16 %v1158_v55, %v1157_v54  ;;  %s4722_s10 = sshll.u32 %s4754_s8, 4 }
  0x16   : > { %s3517_s9 = scvt.s32.f32 %s2481_s21  ;;  %3076 = vmatpush3.bf16.msra.mxu1 %v3075_v39  ;;  %3046 = vmatprep.subr.bf16.mxu0 %v3045_v40  ;;  %v1207_v61 = vld [vmem:[%s4709_s1 + $0x1d0] sm:$0xff]  ;;  %v1208_v62 = vld [vmem:[%s4709_s1 + $0x1d8] sm:$0xff]  ;;  %v3083_v0 = vpack.c.bf16 %v1190_v58, %v1189_v56  ;;  %v3053_v1 = vpack.c.bf16 %v1176_v60, %v1175_v59  ;;  %v1177_v8 = vld [vmem:[%s4709_s1 + $0xe0] sm:$0xff]  ;;  %s3584_s11 = scalar_lea.vmem %s3502_s13, %s4722_s10 }
  0x17   : > { %3078 = vmatprep.subr.bf16.mxu1 %v3077_v44  ;;  %s575_s12 = scalar_select %p574_p11, %s3505_s17, 0  ;;  %v1159_v2 = vld [vmem:[%s4709_s1 + $0x50] sm:$0xff]  ;;  %v1160_v3 = vld [vmem:[%s4709_s1 + $0x58] sm:$0xff]  ;;  %v3085_v5 = vpack.c.bf16 %v1208_v62, %v1207_v61  ;;  %v1178_v9 = vld [vmem:[%s4709_s1 + $0xe8] sm:$0xff] }
  0x18   : > { %p3550_p1 = pnand %p583_p0, %p582_p13  ;;  %v1191_v4 = vld [vmem:[%s4709_s1 + $0x150] sm:$0xff]  ;;  %v1192_v6 = vld [vmem:[%s4709_s1 + $0x158] sm:$0xff]  ;;  %p592_p2 = scmp.gt.s32.totalorder %s3555_s20, 0  ;;  %v1209_v10 = vld [vmem:[%s4709_s1 + $0x1e0] sm:$0xff]  ;;  %v570_v12 = vstv %s3517_s9  ;;  %v3055_v13 = vpack.c.bf16 %v1160_v3, %v1159_v2  ;;  %v3057_v16 = vpack.c.bf16 %v1178_v9, %v1177_v8 }
  0x19   : > { %3048 = vmatpush3.bf16.msra.mxu0 %v3047_v51  ;;  %s4756_s12 = smov (!%p2482_p12, %s575_s12), 15  ;;  %v1210_v11 = vld [vmem:[%s4709_s1 + $0x1e8] sm:$0xff]  ;;  %s2608_s18 = sshll.u32 %s3272_s24, 7  ;;  %v1161_v14 = vld [vmem:[%s4709_s1 + $0x60] sm:$0xff]  ;;  %v3087_v15 = vpack.c.bf16 %v1192_v6, %v1191_v4  ;;  %v1179_v22 = vld [vmem:[%s4709_s1 + $0xf0] sm:$0xff] }
  0x1a   : > { %3080 = vmatpush3.bf16.msra.mxu1 %v3079_v52  ;;  %3050 = vmatprep.subr.bf16.mxu0 %v3049_v53  ;;  %s593_s22 = scalar_select %p592_p2, %s3555_s20, 0  ;;  %v1162_v17 = vld [vmem:[%s4709_s1 + $0x68] sm:$0xff]  ;;  %v1193_v18 = vld [vmem:[%s4709_s1 + $0x160] sm:$0xff]  ;;  %v3089_v20 = vpack.c.bf16 %v1210_v11, %v1209_v10  ;;  %v1180_v23 = vld [vmem:[%s4709_s1 + $0xf8] sm:$0xff] }
  0x1b   : > { %3082 = vmatprep.subr.bf16.mxu1 %v3081_v57  ;;  %v562_v19 = vld [vmem:[%s3584_s11] sm:$0xff]  ;;  %p2489_p3 = scmp.lt.s32.totalorder %s3555_s20, 15  ;;  %p600_p4 = scmp.ge.s32.totalorder %s3555_s20, 0  ;;  %v1194_v21 = vld [vmem:[%s4709_s1 + $0x168] sm:$0xff]  ;;  %v1211_v25 = vld [vmem:[%s4709_s1 + $0x1f0] sm:$0xff]  ;;  %v3059_v27 = vpack.c.bf16 %v1162_v17, %v1161_v14  ;;  %v3061_v29 = vpack.c.bf16 %v1180_v23, %v1179_v22 }
  0x1c   : > { %v3620_v24 = vmul.f32 %v570_v12, %v562_v19  ;;  %p601_p5 = scmp.lt.s32.totalorder %s3555_s20, 16  ;;  %s3624_s23 = sadd.s32 4294967291, %s3376_s14  ;;  %v1212_v26 = vld [vmem:[%s4709_s1 + $0x1f8] sm:$0xff]  ;;  %v3091_v28 = vpack.c.bf16 %v1194_v21, %v1193_v18  ;;  %v1163_v30 = vld [vmem:[%s4709_s1 + $0x70] sm:$0xff]  ;;  %v1229_v35 = vld [vmem:[%s4709_s1 + $0x280] sm:$0xff] }
  0x1d   : > { %3052 = vmatpush3.bf16.msra.mxu0 %v3051_v63  ;;  %s4758_s22 = smov (!%p2489_p3, %s593_s22), 15  ;;  %v1164_v31 = vld [vmem:[%s4709_s1 + $0x78] sm:$0xff]  ;;  %v1195_v32 = vld [vmem:[%s4709_s1 + $0x170] sm:$0xff]  ;;  %s3653_s17 = scalar_lea.vmem %s3502_s13, %s2608_s18  ;;  %v3093_v33 = vpack.c.bf16 %v1212_v26, %v1211_v25  ;;  %v1230_v36 = vld [vmem:[%s4709_s1 + $0x288] sm:$0xff] }
  0x1e   : > { %3084 = vmatpush3.bf16.msra.mxu1 %v3083_v0  ;;  %3054 = vmatprep.subr.bf16.mxu0 %v3053_v1  ;;  %p3637_p6 = pnand %p601_p5, %p600_p4  ;;  %s4724_s21 = sshll.u32 %s4756_s12, 4  ;;  %v1196_v34 = vld [vmem:[%s4709_s1 + $0x178] sm:$0xff]  ;;  %v1261_v37 = vld [vmem:[%s4709_s1 + $0x380] sm:$0xff]  ;;  %v1262_v38 = vld [vmem:[%s4709_s1 + $0x388] sm:$0xff]  ;;  %v3063_v39 = vpack.c.bf16 %v1164_v31, %v1163_v30  ;;  %v3097_v42 = vpack.c.bf16 %v1230_v36, %v1229_v35 }
  0x1f   : > { %3086 = vmatprep.subr.bf16.mxu1 %v3085_v5  ;;  %1364 = vmatprep.mubr.f32.mxu0 %v3620_v24  ;;  %s3658_s29 = scalar_lea.vmem %s3502_s13, %s4724_s21  ;;  %p610_p7 = scmp.gt.s32.totalorder %s3624_s23, 0  ;;  %v3095_v40 = vpack.c.bf16 %v1196_v34, %v1195_v32  ;;  %v563_v41 = vld [vmem:[%s3584_s11 + $0x8] sm:$0xff]  ;;  %v1213_v43 = vld [vmem:[%s4709_s1 + $0x200] sm:$0xff]  ;;  %v3129_v45 = vpack.c.bf16 %v1262_v38, %v1261_v37  ;;  %v1231_v48 = vld [vmem:[%s4709_s1 + $0x290] sm:$0xff] }
  0x20   : > { %s4725_s24 = scalar_select %p3550_p1, 0, 1  ;;  %v1214_v44 = vld [vmem:[%s4709_s1 + $0x208] sm:$0xff]  ;;  %v1245_v46 = vld [vmem:[%s4709_s1 + $0x300] sm:$0xff]  ;;  %v1232_v49 = vld [vmem:[%s4709_s1 + $0x298] sm:$0xff]  ;;  %v572_v50 = vmul.f32 %v570_v12, %v563_v41 }
  0x21   : > { %3056 = vmatpush3.bf16.msra.mxu0 %v3055_v13  ;;  %s2494_s30 = sshll.u32 %s4758_s22, 4  ;;  %p618_p8 = scmp.ge.s32.totalorder %s3624_s23, 0  ;;  %v1246_v47 = vld [vmem:[%s4709_s1 + $0x308] sm:$0xff]  ;;  %v3099_v51 = vpack.c.bf16 %v1214_v44, %v1213_v43  ;;  %v1263_v52 = vld [vmem:[%s4709_s1 + $0x390] sm:$0xff]  ;;  %v1264_v53 = vld [vmem:[%s4709_s1 + $0x398] sm:$0xff]  ;;  %v3101_v58 = vpack.c.bf16 %v1232_v49, %v1231_v48 }
  0x22   : > { %3088 = vmatpush3.bf16.msra.mxu1 %v3087_v15  ;;  %3058 = vmatprep.subr.bf16.mxu0 %v3057_v16  ;;  %s3672_s12 = scvt.s32.f32 %s4725_s24  ;;  %p2496_p9 = scmp.lt.s32.totalorder %s3624_s23, 15  ;;  %v3131_v54 = vpack.c.bf16 %v1246_v47, %v1245_v46  ;;  %v3733_v55 = vld [vmem:[%s3653_s17] sm:$0xff]  ;;  %v1215_v59 = vld [vmem:[%s4709_s1 + $0x210] sm:$0xff]  ;;  %v1216_v60 = vld [vmem:[%s4709_s1 + $0x218] sm:$0xff]  ;;  %v3133_v62 = vpack.c.bf16 %v1264_v53, %v1263_v52 }
  0x23   : > { %3090 = vmatprep.subr.bf16.mxu1 %v3089_v20  ;;  %s2495_s19 = scalar_select %p3637_p6, 0, 1  ;;  %v580_v56 = vld [vmem:[%s3658_s29] sm:$0xff]  ;;  %v1247_v61 = vld [vmem:[%s4709_s1 + $0x310] sm:$0xff]  ;;  %v1248_v63 = vld [vmem:[%s4709_s1 + $0x318] sm:$0xff]  ;;  %v3103_v6 = vpack.c.bf16 %v1216_v60, %v1215_v59 }
  0x24   : > { %p619_p10 = scmp.lt.s32.totalorder %s3624_s23, 16  ;;  %s3710_s10 = scalar_lea.vmem %s3502_s13, %s2494_s30  ;;  %v588_v57 = vstv %s3672_s12  ;;  %v1233_v0 = vld [vmem:[%s4709_s1 + $0x2a0] sm:$0xff]  ;;  %v1234_v1 = vld [vmem:[%s4709_s1 + $0x2a8] sm:$0xff]  ;;  %v3135_v8 = vpack.c.bf16 %v1248_v63, %v1247_v61  ;;  %v1235_v15 = vld [vmem:[%s4709_s1 + $0x2b0] sm:$0xff] }
  0x25   : > { %3060 = vmatpush3.bf16.msra.mxu0 %v3059_v27  ;;  %s611_s16 = scalar_select %p610_p7, %s3624_s23, 0  ;;  %v3769_v2 = vmul.f32 %v588_v57, %v580_v56  ;;  %v1265_v3 = vld [vmem:[%s4709_s1 + $0x3a0] sm:$0xff]  ;;  %v1266_v4 = vld [vmem:[%s4709_s1 + $0x3a8] sm:$0xff]  ;;  %v3105_v9 = vpack.c.bf16 %v1234_v1, %v1233_v0  ;;  %v1236_v16 = vld [vmem:[%s4709_s1 + $0x2b8] sm:$0xff] }
  0x26   : > { %3092 = vmatpush3.bf16.msra.mxu1 %v3091_v28  ;;  %3062 = vmatprep.subr.bf16.mxu0 %v3061_v29  ;;  %s3713_s24 = sadd.s32 4294967292, %s3376_s14  ;;  %p3727_p11 = pnand %p619_p10, %p618_p8  ;;  %v581_v5 = vld [vmem:[%s3658_s29 + $0x8] sm:$0xff]  ;;  %v1217_v10 = vld [vmem:[%s4709_s1 + $0x220] sm:$0xff]  ;;  %v3137_v13 = vpack.c.bf16 %v1266_v4, %v1265_v3  ;;  %v1267_v18 = vld [vmem:[%s4709_s1 + $0x3b0] sm:$0xff]  ;;  %v3109_v25 = vpack.c.bf16 %v1236_v16, %v1235_v15 }
  0x27   : > { %3094 = vmatprep.subr.bf16.mxu1 %v3093_v33  ;;  %p628_p12 = scmp.gt.s32.totalorder %s3713_s24, 0  ;;  %s3740_s9 = scvt.s32.f32 %s2495_s19  ;;  %v1218_v11 = vld [vmem:[%s4709_s1 + $0x228] sm:$0xff]  ;;  %v1249_v12 = vld [vmem:[%s4709_s1 + $0x320] sm:$0xff]  ;;  %v590_v17 = vmul.f32 %v588_v57, %v581_v5  ;;  %v1268_v19 = vld [vmem:[%s4709_s1 + $0x3b8] sm:$0xff] }
  0x28   : > { %p2503_p13 = scmp.lt.s32.totalorder %s3713_s24, 15  ;;  %s4760_s16 = smov (!%p2496_p9, %s611_s16), 15  ;;  %v1250_v14 = vld [vmem:[%s4709_s1 + $0x328] sm:$0xff]  ;;  %v3821_v20 = vld [vmem:[%s3653_s17 + $0x10] sm:$0xff]  ;;  %v598_v21 = vld [vmem:[%s3710_s10] sm:$0xff]  ;;  %v3107_v23 = vpack.c.bf16 %v1218_v11, %v1217_v10  ;;  %v3141_v29 = vpack.c.bf16 %v1268_v19, %v1267_v18 }
  0x29   : > { %3064 = vmatpush3.bf16.msra.mxu0 %v3063_v39  ;;  %s629_s23 = scalar_select %p628_p12, %s3713_s24, 0  ;;  %v606_v22 = vstv %s3740_s9  ;;  %v1219_v26 = vld [vmem:[%s4709_s1 + $0x230] sm:$0xff]  ;;  %v1220_v27 = vld [vmem:[%s4709_s1 + $0x238] sm:$0xff]  ;;  %v1237_v31 = vld [vmem:[%s4709_s1 + $0x2c0] sm:$0xff] }
  0x2a   : > { %3096 = vmatpush3.bf16.msra.mxu1 %v3095_v40  ;;  %3098 = vmatprep.subr.bf16.mxu0 %v3097_v42  ;;  %s2502_s0 = scalar_select %p3727_p11, 0, 1  ;;  %v1251_v28 = vld [vmem:[%s4709_s1 + $0x330] sm:$0xff]  ;;  %v1252_v30 = vld [vmem:[%s4709_s1 + $0x338] sm:$0xff]  ;;  %v1238_v32 = vld [vmem:[%s4709_s1 + $0x2c8] sm:$0xff]  ;;  %v3861_v33 = vmul.f32 %v606_v22, %v598_v21  ;;  %v3111_v37 = vpack.c.bf16 %v1220_v27, %v1219_v26 }
  0x2b   : > { %3130 = vmatprep.subr.bf16.mxu1 %v3129_v45  ;;  %s4762_s23 = smov (!%p2503_p13, %s629_s23), 15  ;;  %s2501_s22 = sshll.u32 %s4760_s16, 4  ;;  %v1269_v34 = vld [vmem:[%s4709_s1 + $0x3c0] sm:$0xff]  ;;  %v1270_v35 = vld [vmem:[%s4709_s1 + $0x3c8] sm:$0xff]  ;;  %v3143_v38 = vpack.c.bf16 %v1252_v30, %v1251_v28  ;;  %v3113_v39 = vpack.c.bf16 %v1238_v32, %v1237_v31  ;;  %v1239_v45 = vld [vmem:[%s4709_s1 + $0x2d0] sm:$0xff] }
  0x2c   : > { %1365 = vmatmul.mubr.f32.vlgmr.msra.gmra.mrb[0].mxu0 %v3290_v7  ;;  %s3796_s18 = sadd.s32 4294967293, %s3376_s14  ;;  %p636_p0 = scmp.ge.s32.totalorder %s3713_s24, 0  ;;  %v599_v36 = vld [vmem:[%s3710_s10 + $0x8] sm:$0xff]  ;;  %v1221_v40 = vld [vmem:[%s4709_s1 + $0x240] sm:$0xff]  ;;  %v3145_v43 = vpack.c.bf16 %v1270_v35, %v1269_v34  ;;  %v1240_v46 = vld [vmem:[%s4709_s1 + $0x2d8] sm:$0xff] }
  0x2d   : > { %1510 = vmatmul.mubr.f32.vlgmr.msra.gmra.mrb[0].mxu1 %v572_v50  ;;  %3100 = vmatpush3.bf16.msra.mxu0 %v3099_v51  ;;  %p637_p1 = scmp.lt.s32.totalorder %s3713_s24, 16  ;;  %p646_p2 = scmp.gt.s32.totalorder %s3796_s18, 0  ;;  %v1222_v41 = vld [vmem:[%s4709_s1 + $0x248] sm:$0xff]  ;;  %v1253_v42 = vld [vmem:[%s4709_s1 + $0x340] sm:$0xff]  ;;  %v608_v47 = vmul.f32 %v606_v22, %v599_v36  ;;  %v1271_v48 = vld [vmem:[%s4709_s1 + $0x3d0] sm:$0xff]  ;;  %v3117_v56 = vpack.c.bf16 %v1240_v46, %v1239_v45 }
  0x2e   : > { %3132 = vmatpush3.bf16.msra.mxu1 %v3131_v54  ;;  %1369 = vmatprep.mubr.f32.mxu0 %v572_v50  ;;  %s3826_s21 = scalar_lea.vmem %s3502_s13, %s2501_s22  ;;  %s3831_s12 = scvt.s32.f32 %s2502_s0  ;;  %v1254_v44 = vld [vmem:[%s4709_s1 + $0x348] sm:$0xff]  ;;  %v1272_v49 = vld [vmem:[%s4709_s1 + $0x3d8] sm:$0xff]  ;;  %v3914_v50 = vld [vmem:[%s3653_s17 + $0x20] sm:$0xff]  ;;  %v3115_v53 = vpack.c.bf16 %v1222_v41, %v1221_v40 }
  0x2f   : > { %1514 = vmatprep.mubr.f32.mxu1 %v3733_v55  ;;  %3102 = vmatprep.subr.bf16.mxu0 %v3101_v58  ;;  %s2508_s22 = sshll.u32 %s4762_s23, 4  ;;  %p3851_p3 = pnand %p637_p1, %p636_p0  ;;  %v616_v51 = vld [vmem:[%s3826_s21] sm:$0xff]  ;;  %v3147_v54 = vpack.c.bf16 %v1254_v44, %v1253_v42  ;;  %v1223_v57 = vld [vmem:[%s4709_s1 + $0x250] sm:$0xff]  ;;  %v1224_v58 = vld [vmem:[%s4709_s1 + $0x258] sm:$0xff]  ;;  %v3149_v60 = vpack.c.bf16 %v1272_v49, %v1271_v48 }
  0x30   : > { %1370 = vmatmul.mubr.f32.gmra.mrb[2].mxu0 %v3620_v24  ;;  %3134 = vmatprep.subr.bf16.mxu1 %v3133_v62  ;;  %v3139_v24 = vpack.c.bf16 %v1250_v14, %v1249_v12  ;;  %s3872_s30 = scalar_select %p646_p2, %s3796_s18, 0  ;;  %v624_v52 = vstv %s3831_s12  ;;  %v1255_v59 = vld [vmem:[%s4709_s1 + $0x350] sm:$0xff]  ;;  %v1256_v61 = vld [vmem:[%s4709_s1 + $0x358] sm:$0xff]  ;;  %v1241_v62 = vld [vmem:[%s4709_s1 + $0x2e0] sm:$0xff]  ;;  %v3119_v4 = vpack.c.bf16 %v1224_v58, %v1223_v57 }
  0x31   : > { %1515 = vmatmul.mubr.f32.gmra.mrb[2].mxu1 %v3290_v7  ;;  %1374 = vmatprep.mubr.f32.mxu0 %v3769_v2  ;;  %p654_p4 = scmp.ge.s32.totalorder %s3796_s18, 0  ;;  %p655_p5 = scmp.lt.s32.totalorder %s3796_s18, 16  ;;  %v1242_v63 = vld [vmem:[%s4709_s1 + $0x2e8] sm:$0xff]  ;;  %v3958_v0 = vmul.f32 %v624_v52, %v616_v51  ;;  %v1273_v1 = vld [vmem:[%s4709_s1 + $0x3e0] sm:$0xff]  ;;  %v3151_v5 = vpack.c.bf16 %v1256_v61, %v1255_v59  ;;  %v1244_v14 = vld [vmem:[%s4709_s1 + $0x2f8] sm:$0xff] }
  0x32   : > { %1519 = vmatprep.mubr.f32.mxu1 %v3290_v7  ;;  %3104 = vmatpush3.bf16.msra.mxu0 %v3103_v6  ;;  %p2510_p6 = scmp.lt.s32.totalorder %s3796_s18, 15  ;;  %s3889_s10 = sadd.s32 4294967294, %s3376_s14  ;;  %v617_v3 = vld [vmem:[%s3826_s21 + $0x8] sm:$0xff]  ;;  %v3121_v6 = vpack.c.bf16 %v1242_v63, %v1241_v62  ;;  %v1257_v10 = vld [vmem:[%s4709_s1 + $0x360] sm:$0xff]  ;;  %v1275_v16 = vld [vmem:[%s4709_s1 + $0x3f0] sm:$0xff] }
  0x33   : > { %3136 = vmatpush3.bf16.msra.mxu1 %v3135_v8  ;;  %3106 = vmatprep.subr.bf16.mxu0 %v3105_v9  ;;  %s2509_s9 = scalar_select %p3851_p3, 0, 1  ;;  %v1225_v8 = vld [vmem:[%s4709_s1 + $0x260] sm:$0xff]  ;;  %v1226_v9 = vld [vmem:[%s4709_s1 + $0x268] sm:$0xff]  ;;  %v626_v15 = vmul.f32 %v624_v52, %v617_v3  ;;  %v4012_v18 = vld [vmem:[%s3653_s17 + $0x30] sm:$0xff] }
  0x34   : > { %1375 = vmatmul.mubr.f32.gmra.mrb[4].mxu0 %v3290_v7  ;;  %3138 = vmatprep.subr.bf16.mxu1 %v3137_v13  ;;  %p664_p7 = scmp.gt.s32.totalorder %s3889_s10, 0  ;;  %s3921_s29 = scalar_lea.vmem %s3502_s13, %s2508_s22  ;;  %v1258_v12 = vld [vmem:[%s4709_s1 + $0x368] sm:$0xff]  ;;  %v1243_v13 = vld [vmem:[%s4709_s1 + $0x2f0] sm:$0xff]  ;;  %v3123_v22 = vpack.c.bf16 %v1226_v9, %v1225_v8  ;;  %v1228_v26 = vld [vmem:[%s4709_s1 + $0x278] sm:$0xff] }
  0x35   : > { %1520 = vmatmul.mubr.f32.gmra.mrb[4].mxu1 %v590_v17  ;;  %1379 = vmatprep.mubr.f32.mxu0 %v590_v17  ;;  %p3927_p8 = pnand %p655_p5, %p654_p4  ;;  %s4764_s30 = smov (!%p2510_p6, %s3872_s30), 15  ;;  %v1276_v17 = vld [vmem:[%s4709_s1 + $0x3f8] sm:$0xff]  ;;  %v634_v19 = vld [vmem:[%s3921_s29] sm:$0xff]  ;;  %v1259_v27 = vld [vmem:[%s4709_s1 + $0x370] sm:$0xff] }
  0x36   : > { %1524 = vmatprep.mubr.f32.mxu1 %v3821_v20  ;;  %3108 = vmatpush3.bf16.msra.mxu0 %v3107_v23  ;;  %s3946_s18 = scvt.s32.f32 %s2509_s9  ;;  %p2517_p9 = scmp.lt.s32.totalorder %s3889_s10, 15  ;;  %v3155_v23 = vpack.c.bf16 %v1258_v12, %v1257_v10  ;;  %v3157_v28 = vpack.c.bf16 %v1276_v17, %v1275_v16  ;;  %v1277_v30 = vld [vmem:[%s4709_s1 + $0x400] sm:$0xff]  ;;  %v1278_v31 = vld [vmem:[%s4709_s1 + $0x408] sm:$0xff]  ;;  %v4116_v46 = vld [vmem:[%s3653_s17 + $0x50] sm:$0xff] }
  0x37   : > { %3140 = vmatpush3.bf16.msra.mxu1 %v3139_v24  ;;  %3110 = vmatprep.subr.bf16.mxu0 %v3109_v25  ;;  %s665_s9 = scalar_select %p664_p7, %s3889_s10, 0  ;;  %v3125_v24 = vpack.c.bf16 %v1244_v14, %v1243_v13  ;;  %v1227_v25 = vld [vmem:[%s4709_s1 + $0x270] sm:$0xff]  ;;  %v4062_v36 = vpack.c.bf16 %v1278_v31, %v1277_v30  ;;  %v4084_v40 = vld [vmem:[%s3653_s17 + $0x40] sm:$0xff]  ;;  %v750_v61 = vld [vmem:[%s3653_s17 + $0x8] sm:$0xff] }
  0x38   : > { %1380 = vmatmul.mubr.f32.gmra.mrb[6].mxu0 %v3769_v2  ;;  %3142 = vmatprep.subr.bf16.mxu1 %v3141_v29  ;;  %v1274_v2 = vld [vmem:[%s4709_s1 + $0x3e8] sm:$0xff]  ;;  %s2516_s20 = scalar_select %p3927_p8, 0, 1  ;;  %v642_v21 = vstv %s3946_s18  ;;  %v1260_v29 = vld [vmem:[%s4709_s1 + $0x378] sm:$0xff]  ;;  %v3127_v34 = vpack.c.bf16 %v1228_v26, %v1227_v25  ;;  %v4179_v58 = vld [vmem:[%s3653_s17 + $0x70] sm:$0xff] }
  0x39   : > { %1525 = vmatmul.mubr.f32.gmra.mrb[6].mxu1 %v3290_v7  ;;  %1384 = vmatprep.mubr.f32.mxu0 %v3861_v33  ;;  %s2515_s16 = sshll.u32 %s4764_s30, 4  ;;  %p672_p10 = scmp.ge.s32.totalorder %s3889_s10, 0  ;;  %v3153_v11 = vpack.c.bf16 %v1274_v2, %v1273_v1  ;;  %v643_v32 = vmul.f32 %v642_v21, %v634_v19  ;;  %v3159_v35 = vpack.c.bf16 %v1260_v29, %v1259_v27  ;;  %v1280_v1 = vld [vmem:[%s4709_s1 + $0x418] sm:$0xff]  ;;  %v1282_v8 = vld [vmem:[%s4709_s1 + $0x428] sm:$0xff]  ;;  %v1283_v12 = vld [vmem:[%s4709_s1 + $0x430] sm:$0xff] }
  0x3a   : > { %1529 = vmatprep.mubr.f32.mxu1 %v3290_v7  ;;  %3112 = vmatpush3.bf16.msra.mxu0 %v3111_v37  ;;  %p673_p11 = scmp.lt.s32.totalorder %s3889_s10, 16  ;;  %s3990_s8 = sadd.s32 4294967295, %s3376_s14  ;;  %v1284_v13 = vld [vmem:[%s4709_s1 + $0x438] sm:$0xff]  ;;  %v1285_v19 = vld [vmem:[%s4709_s1 + $0x440] sm:$0xff]  ;;  %v1287_v25 = vld [vmem:[%s4709_s1 + $0x450] sm:$0xff] }
  0x3b   : > { %3144 = vmatpush3.bf16.msra.mxu1 %v3143_v38  ;;  %3114 = vmatprep.subr.bf16.mxu0 %v3113_v39  ;;  %s4766_s9 = smov (!%p2517_p9, %s665_s9), 15  ;;  %p682_p12 = scmp.gt.s32.totalorder %s3990_s8, 0  ;;  %v3173_v17 = vpack.c.bf16 %v1284_v13, %v1283_v12  ;;  %v1288_v26 = vld [vmem:[%s4709_s1 + $0x458] sm:$0xff]  ;;  %v1289_v31 = vld [vmem:[%s4709_s1 + $0x460] sm:$0xff] }
  0x3c   : > { %1385 = vmatmul.mubr.f32.gmra.mrb[8].mxu0 %v3290_v7  ;;  %3146 = vmatprep.subr.bf16.mxu1 %v3145_v43  ;;  %s4030_s18 = scalar_lea.vmem %s3502_s13, %s2515_s16  ;;  %p4036_p13 = pnand %p673_p11, %p672_p10  ;;  %v3181_v30 = vpack.c.bf16 %v1288_v26, %v1287_v25 }
  0x3d   : > { %1530 = vmatmul.mubr.f32.gmra.mrb[8].mxu1 %v608_v47  ;;  %1389 = vmatprep.mubr.f32.mxu0 %v608_v47  ;;  %s4052_s10 = scvt.s32.f32 %s2516_s20  ;;  %s2522_s12 = sshll.u32 %s4766_s9, 4  ;;  %v652_v38 = vld [vmem:[%s4030_s18] sm:$0xff]  ;;  %v653_v42 = vld [vmem:[%s4030_s18 + $0x8] sm:$0xff] }
  0x3e   : > { %1534 = vmatprep.mubr.f32.mxu1 %v3914_v50  ;;  %3116 = vmatpush3.bf16.msra.mxu0 %v3115_v53  ;;  %p690_p0 = scmp.ge.s32.totalorder %s3990_s8, 0  ;;  %p691_p1 = scmp.lt.s32.totalorder %s3990_s8, 16  ;;  %v4148_v53 = vld [vmem:[%s3653_s17 + $0x60] sm:$0xff] }
  0x3f   : > { %3148 = vmatpush3.bf16.msra.mxu1 %v3147_v54  ;;  %3118 = vmatprep.subr.bf16.mxu0 %v3117_v56  ;;  %s683_s0 = scalar_select %p682_p12, %s3990_s8, 0  ;;  %v660_v39 = vstv %s4052_s10 }
  0x40   : > { %1390 = vmatmul.mubr.f32.gmra.mrb[10].mxu0 %v3861_v33  ;;  %3150 = vmatprep.subr.bf16.mxu1 %v3149_v60  ;;  %v635_v33 = vld [vmem:[%s3921_s29 + $0x8] sm:$0xff]  ;;  %s2523_s29 = scalar_select %p4036_p13, 0, 1  ;;  %v661_v41 = vmul.f32 %v660_v39, %v652_v38  ;;  %v662_v43 = vmul.f32 %v660_v39, %v653_v42 }
  0x41   : > { %1535 = vmatmul.mubr.f32.gmra.mrb[10].mxu1 %v3290_v7  ;;  %1394 = vmatprep.mubr.f32.mxu0 %v3958_v0  ;;  %v644_v37 = vmul.f32 %v642_v21, %v635_v33  ;;  %p2524_p2 = scmp.lt.s32.totalorder %s3990_s8, 15  ;;  %s4070_s9 = sadd.s32 8, %s3376_s14  ;;  %v1286_v21 = vld [vmem:[%s4709_s1 + $0x448] sm:$0xff] }
  0x42   : > { %1539 = vmatprep.mubr.f32.mxu1 %v3290_v7  ;;  %3120 = vmatpush3.bf16.msra.mxu0 %v3119_v4  ;;  %p4079_p3 = pnand %p691_p1, %p690_p0  ;;  %s4087_s21 = scalar_lea.vmem %s3502_s13, %s2522_s12 }
  0x43   : > { %3152 = vmatpush3.bf16.msra.mxu1 %v3151_v5  ;;  %3122 = vmatprep.subr.bf16.mxu0 %v3121_v6  ;;  %s4091_s22 = scvt.s32.f32 %s2523_s29  ;;  %p814_p4 = scmp.gt.s32.totalorder %s4070_s9, 0  ;;  %v670_v44 = vld [vmem:[%s4087_s21] sm:$0xff]  ;;  %v671_v48 = vld [vmem:[%s4087_s21 + $0x8] sm:$0xff] }
  0x44   : > { %1395 = vmatmul.mubr.f32.gmra.mrb[12].mxu0 %v3290_v7  ;;  %3154 = vmatprep.subr.bf16.mxu1 %v3153_v11  ;;  %s4768_s0 = smov (!%p2524_p2, %s683_s0), 15  ;;  %p2532_p5 = scmp.lt.s32.totalorder %s4070_s9, 15  ;;  %v1281_v6 = vld [vmem:[%s4709_s1 + $0x420] sm:$0xff] }
  0x45   : > { %1540 = vmatmul.mubr.f32.gmra.mrb[12].mxu1 %v626_v15  ;;  %1399 = vmatprep.mubr.f32.mxu0 %v626_v15  ;;  %s2530_s11 = scalar_select %p4079_p3, 0, 1  ;;  %v678_v45 = vstv %s4091_s22  ;;  %v3169_v11 = vpack.c.bf16 %v1282_v8, %v1281_v6 }
  0x46   : > { %1544 = vmatprep.mubr.f32.mxu1 %v4012_v18  ;;  %3124 = vmatpush3.bf16.msra.mxu0 %v3123_v22  ;;  %s4105_s19 = sadd.s32 9, %s3376_s14  ;;  %p822_p6 = scmp.ge.s32.totalorder %s4070_s9, 0  ;;  %v679_v47 = vmul.f32 %v678_v45, %v670_v44  ;;  %v680_v49 = vmul.f32 %v678_v45, %v671_v48 }
  0x47   : > { %3156 = vmatpush3.bf16.msra.mxu1 %v3155_v23  ;;  %3126 = vmatprep.subr.bf16.mxu0 %v3125_v24  ;;  %s815_s15 = scalar_select %p814_p4, %s4070_s9, 0  ;;  %v3177_v24 = vpack.c.bf16 %v1286_v21, %v1285_v19 }
  0x48   : > { %1400 = vmatmul.mubr.f32.gmra.mrb[14].mxu0 %v3958_v0  ;;  %3158 = vmatprep.subr.bf16.mxu1 %v3157_v28  ;;  %p823_p7 = scmp.lt.s32.totalorder %s4070_s9, 16  ;;  %p832_p8 = scmp.gt.s32.totalorder %s4105_s19, 0  ;;  %v1279_v0 = vld [vmem:[%s4709_s1 + $0x410] sm:$0xff] }
  0x49   : > { %1545 = vmatmul.mubr.f32.gmra.mrb[14].mxu1 %v3290_v7  ;;  %1404 = vmatprep.mubr.f32.mxu0 %v643_v32  ;;  %s2529_s8 = sshll.u32 %s4768_s0, 4  ;;  %s4770_s15 = smov (!%p2532_p5, %s815_s15), 15  ;;  %v3165_v5 = vpack.c.bf16 %v1280_v1, %v1279_v0 }
  0x4a   : > { %1549 = vmatprep.mubr.f32.mxu1 %v3290_v7  ;;  %3128 = vmatpush3.bf16.msra.mxu0 %v3127_v34  ;;  %s4124_s18 = scvt.s32.f32 %s2530_s11  ;;  %p4130_p9 = pnand %p823_p7, %p822_p6 }
  0x4b   : > { %3160 = vmatpush3.bf16.msra.mxu1 %v3159_v35  ;;  %3162 = vmatprep.subr.bf16.mxu0 %v4062_v36  ;;  %s833_s30 = scalar_select %p832_p8, %s4105_s19, 0 }
  0x4c   : > { %1405 = vmatmul.mubr.f32.gmra.mrb[16].mxu0 %v3290_v7  ;;  %3193 = vmatprep.subr.bf16.mxu1 %v4062_v36  ;;  %s687_s16 = scalar_lea.vmem %s3502_s13, %s2529_s8  ;;  %p2539_p10 = scmp.lt.s32.totalorder %s4105_s19, 15  ;;  %v696_v52 = vstv %s4124_s18 }
  0x4d   : > { %1550 = vmatmul.mubr.f32.gmra.mrb[16].mxu1 %v644_v37  ;;  %1409 = vmatprep.mubr.f32.mxu0 %v644_v37  ;;  %p840_p11 = scmp.ge.s32.totalorder %s4105_s19, 0  ;;  %p841_p12 = scmp.lt.s32.totalorder %s4105_s19, 16  ;;  %v688_v51 = vld [vmem:[%s687_s16] sm:$0xff]  ;;  %v689_v56 = vld [vmem:[%s687_s16 + $0x8] sm:$0xff]  ;;  %v1292_v37 = vld [vmem:[%s4709_s1 + $0x478] sm:$0xff] }
  0x4e   : > { %1554 = vmatprep.mubr.f32.mxu1 %v4084_v40  ;;  %s2537_s23 = sshll.u32 %s4770_s15, 4  ;;  %s4772_s30 = smov (!%p2539_p10, %s833_s30), 15  ;;  %v697_v54 = vmul.f32 %v696_v52, %v688_v51  ;;  %v698_v57 = vmul.f32 %v696_v52, %v689_v56 }
  0x4f   : > { %s2538_s10 = scalar_select %p4130_p9, 0, 1 }
  0x50   : > { %1410 = vmatmul.mubr.f32.gmra.mrb[18].mxu0 %v643_v32  ;;  %p4155_p13 = pnand %p841_p12, %p840_p11  ;;  %s4160_s0 = sadd.s32 10, %s3376_s14  ;;  %v1290_v32 = vld [vmem:[%s4709_s1 + $0x468] sm:$0xff] }
  0x51   : > { %1555 = vmatmul.mubr.f32.gmra.mrb[18].mxu1 %v3290_v7  ;;  %1414 = vmatprep.mubr.f32.mxu0 %v661_v41  ;;  %s819_s29 = scalar_lea.vmem %s3502_s13, %s2537_s23  ;;  %s4164_s9 = scvt.s32.f32 %s2538_s10  ;;  %v3185_v35 = vpack.c.bf16 %v1290_v32, %v1289_v31 }
  0x52   : > { %1559 = vmatprep.mubr.f32.mxu1 %v3290_v7  ;;  %s2544_s20 = sshll.u32 %s4772_s30, 4  ;;  %p850_p0 = scmp.gt.s32.totalorder %s4160_s0, 0  ;;  %v820_v59 = vld [vmem:[%s819_s29] sm:$0xff]  ;;  %v821_v63 = vld [vmem:[%s819_s29 + $0x8] sm:$0xff] }
  0x53   : > { %s2545_s21 = scalar_select %p4155_p13, 0, 1  ;;  %v828_v60 = vstv %s4164_s9 }
  0x54   : > { %1415 = vmatmul.mubr.f32.gmra.mrb[20].mxu0 %v3290_v7  ;;  %p2546_p1 = scmp.lt.s32.totalorder %s4160_s0, 15  ;;  %s4173_s22 = sadd.s32 11, %s3376_s14  ;;  %v829_v62 = vmul.f32 %v828_v60, %v820_v59  ;;  %v4222_v2 = vmul.f32 %v828_v60, %v821_v63 }
  0x55   : > { %1560 = vmatmul.mubr.f32.gmra.mrb[20].mxu1 %v662_v43  ;;  %1419 = vmatprep.mubr.f32.mxu0 %v662_v43  ;;  %p858_p2 = scmp.ge.s32.totalorder %s4160_s0, 0  ;;  %p859_p3 = scmp.lt.s32.totalorder %s4160_s0, 16  ;;  %v758_v43 = vld [vmem:[%s3653_s17 + $0x48] sm:$0xff] }
  0x56   : > { %1564 = vmatprep.mubr.f32.mxu1 %v4116_v46  ;;  %s851_s11 = scalar_select %p850_p0, %s4160_s0, 0 }
  0x57   : > { %p868_p4 = scmp.gt.s32.totalorder %s4173_s22, 0  ;;  %s4188_s19 = scalar_lea.vmem %s3502_s13, %s2544_s20 }
  0x58   : > { %1420 = vmatmul.mubr.f32.gmra.mrb[22].mxu0 %v661_v41  ;;  %s4192_s15 = scvt.s32.f32 %s2545_s21  ;;  %p4198_p5 = pnand %p859_p3, %p858_p2  ;;  %v838_v3 = vld [vmem:[%s4188_s19] sm:$0xff]  ;;  %v839_v10 = vld [vmem:[%s4188_s19 + $0x8] sm:$0xff] }
  0x59   : > { %1565 = vmatmul.mubr.f32.gmra.mrb[22].mxu1 %v3290_v7  ;;  %1424 = vmatprep.mubr.f32.mxu0 %v679_v47  ;;  %s4774_s11 = smov (!%p2546_p1, %s851_s11), 15  ;;  %p876_p6 = scmp.ge.s32.totalorder %s4173_s22, 0 }
  0x5a   : > { %1569 = vmatprep.mubr.f32.mxu1 %v3290_v7  ;;  %s4215_s23 = scalar_select %p868_p4, %s4173_s22, 0  ;;  %v846_v4 = vstv %s4192_s15 }
  0x5b   : > { %p877_p7 = scmp.lt.s32.totalorder %s4173_s22, 16  ;;  %s2551_s12 = sshll.u32 %s4774_s11, 4  ;;  %v847_v9 = vmul.f32 %v846_v4, %v838_v3  ;;  %v4275_v14 = vmul.f32 %v846_v4, %v839_v10 }
  0x5c   : > { %1425 = vmatmul.mubr.f32.gmra.mrb[24].mxu0 %v3290_v7  ;;  %s2552_s10 = scalar_select %p4198_p5, 0, 1 }
  0x5d   : > { %1570 = vmatmul.mubr.f32.gmra.mrb[24].mxu1 %v680_v49  ;;  %1429 = vmatprep.mubr.f32.mxu0 %v680_v49  ;;  %p2553_p8 = scmp.lt.s32.totalorder %s4173_s22, 15  ;;  %p4241_p9 = pnand %p877_p7, %p876_p6  ;;  %v760_v49 = vld [vmem:[%s3653_s17 + $0x58] sm:$0xff] }
  0x5e   : > { %1574 = vmatprep.mubr.f32.mxu1 %v4148_v53  ;;  %s4246_s11 = sadd.s32 12, %s3376_s14  ;;  %s4252_s15 = scalar_lea.vmem %s3502_s13, %s2551_s12 }
  0x5f   : > { %s4254_s8 = scvt.s32.f32 %s2552_s10  ;;  %s4776_s23 = smov (!%p2553_p8, %s4215_s23), 15  ;;  %v856_v15 = vld [vmem:[%s4252_s15] sm:$0xff]  ;;  %v857_v23 = vld [vmem:[%s4252_s15 + $0x8] sm:$0xff] }
  0x60   : > { %1430 = vmatmul.mubr.f32.gmra.mrb[26].mxu0 %v679_v47  ;;  %p886_p10 = scmp.gt.s32.totalorder %s4246_s11, 0  ;;  %s4271_s10 = sadd.s32 13, %s3376_s14 }
  0x61   : > { %1575 = vmatmul.mubr.f32.gmra.mrb[26].mxu1 %v3290_v7  ;;  %1434 = vmatprep.mubr.f32.mxu0 %v697_v54  ;;  %s2559_s22 = scalar_select %p4241_p9, 0, 1  ;;  %v864_v16 = vstv %s4254_s8 }
  0x62   : > { %1579 = vmatprep.mubr.f32.mxu1 %v3290_v7  ;;  %p894_p11 = scmp.ge.s32.totalorder %s4246_s11, 0  ;;  %p895_p12 = scmp.lt.s32.totalorder %s4246_s11, 16  ;;  %v865_v22 = vmul.f32 %v864_v16, %v856_v15  ;;  %v4326_v27 = vmul.f32 %v864_v16, %v857_v23 }
  0x63   : > { %p904_p13 = scmp.gt.s32.totalorder %s4271_s10, 0  ;;  %s2558_s19 = sshll.u32 %s4776_s23, 4 }
  0x64   : > { %1435 = vmatmul.mubr.f32.gmra.mrb[28].mxu0 %v3290_v7  ;;  %p2560_p0 = scmp.lt.s32.totalorder %s4246_s11, 15  ;;  %s4298_s23 = scvt.s32.f32 %s2559_s22 }
  0x65   : > { %1580 = vmatmul.mubr.f32.gmra.mrb[28].mxu1 %v698_v57  ;;  %1439 = vmatprep.mubr.f32.mxu0 %v698_v57  ;;  %s887_s20 = scalar_select %p886_p10, %s4246_s11, 0  ;;  %v762_v57 = vld [vmem:[%s3653_s17 + $0x68] sm:$0xff] }
  0x66   : > { %1584 = vmatprep.mubr.f32.mxu1 %v4179_v58  ;;  %p4304_p1 = pnand %p895_p12, %p894_p11  ;;  %s4313_s18 = scalar_lea.vmem %s3502_s13, %s2558_s19  ;;  %v882_v29 = vstv %s4298_s23 }
  0x67   : > { %s905_s8 = scalar_select %p904_p13, %s4271_s10, 0  ;;  %v874_v28 = vld [vmem:[%s4313_s18] sm:$0xff]  ;;  %v875_v34 = vld [vmem:[%s4313_s18 + $0x8] sm:$0xff] }
  0x68   : > { %1440 = vmatmul.mubr.f32.gmra.mrb[30].mxu0 %v697_v54  ;;  %p2567_p2 = scmp.lt.s32.totalorder %s4271_s10, 15  ;;  %s4778_s20 = smov (!%p2560_p0, %s887_s20), 15  ;;  %v883_v33 = vmul.f32 %v882_v29, %v874_v28  ;;  %v4375_v38 = vmul.f32 %v882_v29, %v875_v34 }
  0x69   : > { %1585 = vmatmul.mubr.f32.gmra.mrb[30].mxu1 %v3290_v7  ;;  %1654 = vmatprep.mubr.f32.mxu0 %v750_v61  ;;  %s2566_s22 = scalar_select %p4304_p1, 0, 1 }
  0x6a   : > { %1799 = vmatprep.mubr.f32.mxu1 %v829_v62  ;;  %p912_p3 = scmp.ge.s32.totalorder %s4271_s10, 0  ;;  %p913_p4 = scmp.lt.s32.totalorder %s4271_s10, 16 }
  0x6b   : > { %s4780_s8 = smov (!%p2567_p2, %s905_s8), 15  ;;  %s2565_s29 = sshll.u32 %s4778_s20, 4 }
  0x6c   : > { %1655 = vmatmul.mubr.f32.vlgmr.msra.gmra.mrb[32].mxu0 %v3733_v55  ;;  %v752_v55 = vld [vmem:[%s3653_s17 + $0x18] sm:$0xff]  ;;  %s4349_s9 = sadd.s32 14, %s3376_s14  ;;  %s4354_s23 = scvt.s32.f32 %s2566_s22 }
  0x6d   : > { %1800 = vmatmul.mubr.f32.vlgmr.msra.gmra.mrb[32].mxu1 %v3290_v7  ;;  %3164 = vmatpush3.bf16.msra.mxu0 %v4062_v36  ;;  %p4360_p5 = pnand %p913_p4, %p912_p3  ;;  %s4365_s20 = scalar_lea.vmem %s3502_s13, %s2565_s29 }
  0x6e   : > { %3201 = vmatpush3.bf16.msra.mxu1 %v4062_v36  ;;  %1659 = vmatprep.mubr.f32.mxu0 %v3290_v7  ;;  %p922_p6 = scmp.gt.s32.totalorder %s4349_s9, 0  ;;  %v1291_v36 = vld [vmem:[%s4709_s1 + $0x470] sm:$0xff]  ;;  %s2572_s16 = sshll.u32 %s4780_s8, 4  ;;  %v892_v39 = vld [vmem:[%s4365_s20] sm:$0xff]  ;;  %v900_v41 = vstv %s4354_s23 }
  0x6f   : > { %1804 = vmatprep.mubr.f32.mxu1 %v4222_v2  ;;  %3166 = vmatprep.subr.bf16.mxu0 %v3165_v5  ;;  %p930_p7 = scmp.ge.s32.totalorder %s4349_s9, 0  ;;  %p931_p8 = scmp.lt.s32.totalorder %s4349_s9, 16  ;;  %v3189_v42 = vpack.c.bf16 %v1292_v37, %v1291_v36  ;;  %v901_v44 = vmul.f32 %v900_v41, %v892_v39 }
  0x70   : > { %1660 = vmatmul.mubr.f32.gmra.mrb[34].mxu0 %v750_v61  ;;  %3194 = vmatprep.subr.bf16.mxu1 %v3165_v5  ;;  %s2573_s15 = scalar_select %p4360_p5, 0, 1 }
  0x71   : > { %1805 = vmatmul.mubr.f32.gmra.mrb[34].mxu1 %v829_v62  ;;  %1664 = vmatprep.mubr.f32.mxu0 %v752_v55  ;;  %s923_s22 = scalar_select %p922_p6, %s4349_s9, 0 }
  0x72   : > { %1809 = vmatprep.mubr.f32.mxu1 %v847_v9  ;;  %3168 = vmatpush3.bf16.msra.mxu0 %v3165_v5  ;;  %p2574_p9 = scmp.lt.s32.totalorder %s4349_s9, 15  ;;  %s4391_s11 = sadd.s32 15, %s3376_s14 }
  0x73   : > { %3202 = vmatpush3.bf16.msra.mxu1 %v3165_v5  ;;  %3170 = vmatprep.subr.bf16.mxu0 %v3169_v11  ;;  %p4399_p10 = pnand %p931_p8, %p930_p7  ;;  %s4404_s12 = scvt.s32.f32 %s2573_s15 }
  0x74   : > { %1665 = vmatmul.mubr.f32.gmra.mrb[36].mxu0 %v3821_v20  ;;  %3195 = vmatprep.subr.bf16.mxu1 %v3169_v11  ;;  %v754_v20 = vld [vmem:[%s3653_s17 + $0x28] sm:$0xff]  ;;  %s909_s0 = scalar_lea.vmem %s3502_s13, %s2572_s16  ;;  %p940_p11 = scmp.gt.s32.totalorder %s4391_s11, 0 }
  0x75   : > { %1810 = vmatmul.mubr.f32.gmra.mrb[36].mxu1 %v3290_v7  ;;  %1669 = vmatprep.mubr.f32.mxu0 %v3290_v7  ;;  %s4782_s22 = smov (!%p2574_p9, %s923_s22), 15  ;;  %v910_v47 = vld [vmem:[%s909_s0] sm:$0xff]  ;;  %v918_v48 = vstv %s4404_s12  ;;  %p948_p12 = scmp.ge.s32.totalorder %s4391_s11, 0  ;;  %v911_v52 = vld [vmem:[%s909_s0 + $0x8] sm:$0xff] }
  0x76   : > { %1814 = vmatprep.mubr.f32.mxu1 %v4275_v14  ;;  %3172 = vmatpush3.bf16.msra.mxu0 %v3169_v11  ;;  %s2580_s29 = scalar_select %p4399_p10, 0, 1  ;;  %v919_v51 = vmul.f32 %v918_v48, %v910_v47 }
  0x77   : > { %3203 = vmatpush3.bf16.msra.mxu1 %v3169_v11  ;;  %3174 = vmatprep.subr.bf16.mxu0 %v3173_v17  ;;  %p949_p13 = scmp.lt.s32.totalorder %s4391_s11, 16  ;;  %s2579_s9 = sshll.u32 %s4782_s22, 4 }
  0x78   : > { %1670 = vmatmul.mubr.f32.gmra.mrb[38].mxu0 %v752_v55  ;;  %3196 = vmatprep.subr.bf16.mxu1 %v3173_v17  ;;  %s941_s8 = scalar_select %p940_p11, %s4391_s11, 0 }
  0x79   : > { %1815 = vmatmul.mubr.f32.gmra.mrb[38].mxu1 %v847_v9  ;;  %1674 = vmatprep.mubr.f32.mxu0 %v754_v20  ;;  %p2581_p0 = scmp.lt.s32.totalorder %s4391_s11, 15  ;;  %s935_s23 = scvt.s32.f32 %s2580_s29 }
  0x7a   : > { %1819 = vmatprep.mubr.f32.mxu1 %v865_v22  ;;  %3176 = vmatpush3.bf16.msra.mxu0 %v3173_v17  ;;  %p4432_p1 = pnand %p949_p13, %p948_p12  ;;  %p483_p2 = scmp.lt.s32.totalorder %s3376_s14, 15 }
  0x7b   : > { %3204 = vmatpush3.bf16.msra.mxu1 %v3173_v17  ;;  %3178 = vmatprep.subr.bf16.mxu0 %v3177_v24  ;;  %s4784_s8 = smov (!%p2581_p0, %s941_s8), 15  ;;  %v936_v56 = vstv %s935_s23  ;;  %s2456_s15 = sshll.u32 %s4752_s25, 5 }
  0x7c   : > { %1675 = vmatmul.mubr.f32.gmra.mrb[40].mxu0 %v3914_v50  ;;  %3197 = vmatprep.subr.bf16.mxu1 %v3177_v24  ;;  %v756_v50 = vld [vmem:[%s3653_s17 + $0x38] sm:$0xff]  ;;  %s2587_s18 = scalar_select %p4432_p1, 0, 1 }
  0x7d   : > { %1820 = vmatmul.mubr.f32.gmra.mrb[40].mxu1 %v3290_v7  ;;  %1679 = vmatprep.mubr.f32.mxu0 %v3290_v7  ;;  %s2586_s24 = sshll.u32 %s4784_s8, 4  ;;  %s4786_s14 = smov (!%p483_p2, %s3376_s14), 15 }
  0x7e   : > { %1824 = vmatprep.mubr.f32.mxu1 %v4326_v27  ;;  %3180 = vmatpush3.bf16.msra.mxu0 %v3177_v24  ;;  %s953_s10 = scvt.s32.f32 %s2587_s18  ;;  %s945_s30 = scalar_lea.vmem %s3502_s13, %s2586_s24 }
  0x7f   : > { %3205 = vmatpush3.bf16.msra.mxu1 %v3177_v24  ;;  %3182 = vmatprep.subr.bf16.mxu0 %v3181_v30  ;;  %v946_v62 = vld [vmem:[%s945_s30] sm:$0xff]  ;;  %v947_v1 = vld [vmem:[%s945_s30 + $0x8] sm:$0xff]  ;;  %s2455_s16 = sshll.u32 %s4786_s14, 1 }
  0x80   : > { %1680 = vmatmul.mubr.f32.gmra.mrb[42].mxu0 %v754_v20  ;;  %3198 = vmatprep.subr.bf16.mxu1 %v3181_v30  ;;  %v954_v63 = vstv %s953_s10  ;;  %s490_s22 = sadd.s32 %s2456_s15, %s2455_s16 }
  0x81   : > { %1825 = vmatmul.mubr.f32.gmra.mrb[42].mxu1 %v865_v22  ;;  %1684 = vmatprep.mubr.f32.mxu0 %v756_v50  ;;  %v955_v0 = vmul.f32 %v954_v63, %v946_v62  ;;  %v956_v3 = vmul.f32 %v954_v63, %v947_v1  ;;  %s4561_s11 = sshll.u32 %s490_s22, 3 }
  0x82   : > { %1829 = vmatprep.mubr.f32.mxu1 %v883_v33  ;;  %3184 = vmatpush3.bf16.msra.mxu0 %v3181_v30  ;;  %s4569_s19 = scalar_lea.vmem %s4711_s3, %s4561_s11  ;;  %s4576_s29 = scalar_lea.vmem %s4712_s4, %s4561_s11 }
  0x83   : > { %3206 = vmatpush3.bf16.msra.mxu1 %v3181_v30  ;;  %3186 = vmatprep.subr.bf16.mxu0 %v3185_v35  ;;  %s4582_s23 = scalar_lea.vmem %s4713_s5, %s4561_s11  ;;  %s4593_s18 = scalar_lea.vmem %s4714_s6, %s4561_s11 }
  0x84   : > { %1685 = vmatmul.mubr.f32.gmra.mrb[44].mxu0 %v4012_v18  ;;  %3199 = vmatprep.subr.bf16.mxu1 %v3185_v35  ;;  %v893_v18 = vld [vmem:[%s4365_s20 + $0x8] sm:$0xff]  ;;  %s927_s20 = scalar_lea.vmem %s3502_s13, %s2579_s9  ;;  %s4625_s30 = scalar_lea.vmem %s4715_s7, %s4561_s11 }
  0x85   : > { %1830 = vmatmul.mubr.f32.gmra.mrb[44].mxu1 %v3290_v7  ;;  %1689 = vmatprep.mubr.f32.mxu0 %v3290_v7  ;;  %v4412_v45 = vmul.f32 %v900_v41, %v893_v18  ;;  %v928_v54 = vld [vmem:[%s927_s20] sm:$0xff]  ;;  %v929_v60 = vld [vmem:[%s927_s20 + $0x8] sm:$0xff] }
  0x86   : > { %1834 = vmatprep.mubr.f32.mxu1 %v4375_v38  ;;  %3188 = vmatpush3.bf16.msra.mxu0 %v3185_v35  ;;  %v937_v59 = vmul.f32 %v936_v56, %v928_v54  ;;  %v938_v61 = vmul.f32 %v936_v56, %v929_v60 }
  0x87   : > { %3207 = vmatpush3.bf16.msra.mxu1 %v3185_v35  ;;  %3190 = vmatprep.subr.bf16.mxu0 %v3189_v42 }
  0x88   : > { %1690 = vmatmul.mubr.f32.gmra.mrb[46].mxu0 %v756_v50  ;;  %3200 = vmatprep.subr.bf16.mxu1 %v3189_v42 }
  0x89   : > { %1835 = vmatmul.mubr.f32.gmra.mrb[46].mxu1 %v883_v33  ;;  %1694 = vmatprep.mubr.f32.mxu0 %v758_v43 }
  0x8a   : > { %1839 = vmatprep.mubr.f32.mxu1 %v901_v44  ;;  %3192 = vmatpush3.bf16.msra.mxu0 %v3189_v42 }
  0x8b   : > { %3208 = vmatpush3.bf16.msra.mxu1 %v3189_v42 }
  0x8c   : > { %1695 = vmatmul.mubr.f32.gmra.mrb[48].mxu0 %v4084_v40  ;;  %v920_v40 = vmul.f32 %v918_v48, %v911_v52 }
  0x8d   : > { %1840 = vmatmul.mubr.f32.gmra.mrb[48].mxu1 %v3290_v7  ;;  %1699 = vmatprep.mubr.f32.mxu0 %v3290_v7 }
  0x8e   : > { %1844 = vmatprep.mubr.f32.mxu1 %v4412_v45 }
  0x90   : > { %1700 = vmatmul.mubr.f32.gmra.mrb[50].mxu0 %v758_v43 }
  0x91   : > { %1845 = vmatmul.mubr.f32.gmra.mrb[50].mxu1 %v901_v44  ;;  %1704 = vmatprep.mubr.f32.mxu0 %v760_v49 }
  0x92   : > { %1849 = vmatprep.mubr.f32.mxu1 %v919_v51 }
  0x94   : > { %1705 = vmatmul.mubr.f32.gmra.mrb[52].mxu0 %v4116_v46  ;;  %v764_v46 = vld [vmem:[%s3653_s17 + $0x78] sm:$0xff] }
  0x95   : > { %1850 = vmatmul.mubr.f32.gmra.mrb[52].mxu1 %v3290_v7  ;;  %1709 = vmatprep.mubr.f32.mxu0 %v3290_v7 }
  0x96   : > { %1854 = vmatprep.mubr.f32.mxu1 %v920_v40 }
  0x98   : > { %1710 = vmatmul.mubr.f32.gmra.mrb[54].mxu0 %v760_v49 }
  0x99   : > { %1855 = vmatmul.mubr.f32.gmra.mrb[54].mxu1 %v919_v51  ;;  %1714 = vmatprep.mubr.f32.mxu0 %v762_v57 }
  0x9a   : > { %1859 = vmatprep.mubr.f32.mxu1 %v937_v59 }
  0x9c   : > { %1715 = vmatmul.mubr.f32.gmra.mrb[56].mxu0 %v4148_v53 }
  0x9d   : > { %1860 = vmatmul.mubr.f32.gmra.mrb[56].mxu1 %v3290_v7  ;;  %1719 = vmatprep.mubr.f32.mxu0 %v3290_v7 }
  0x9e   : > { %1864 = vmatprep.mubr.f32.mxu1 %v938_v61 }
  0xa0   : > { %1720 = vmatmul.mubr.f32.gmra.mrb[58].mxu0 %v762_v57 }
  0xa1   : > { %1865 = vmatmul.mubr.f32.gmra.mrb[58].mxu1 %v937_v59  ;;  %1724 = vmatprep.mubr.f32.mxu0 %v764_v46 }
  0xa2   : > { %1869 = vmatprep.mubr.f32.mxu1 %v955_v0 }
  0xa4   : > { %1725 = vmatmul.mubr.f32.gmra.mrb[60].mxu0 %v4179_v58 }
  0xa5   : > { %1870 = vmatmul.mubr.f32.gmra.mrb[60].mxu1 %v3290_v7  ;;  %1729 = vmatprep.mubr.f32.mxu0 %v3290_v7 }
  0xa6   : > { %1874 = vmatprep.mubr.f32.mxu1 %v956_v3 }
  0xa8   : > { %1730 = vmatmul.mubr.f32.gmra.mrb[62].mxu0 %v764_v46 }
  0xa9   : > { %1875 = vmatmul.mubr.f32.gmra.mrb[62].mxu1 %v955_v0  ;;  %3009 = vmatprep.mubr.f32.mxu0 %v4222_v2  ;;  %v4467_v2 = vld [vmem:[%s4710_s2] ss:$0 sm:$0xff] }
  0xaa   : > { %3021 = vmatprep.mubr.f32.mxu1 %v4412_v45 }
  0xac   : > { %3010 = vmatmul.mubr.f32.vlgmr.msra.gmra.mrb[64].mxu0 %v3290_v7 }
  0xad   : > { %3022 = vmatmul.mubr.f32.vlgmr.msra.gmra.mrb[64].mxu1 %v3290_v7  ;;  %3012 = vmatprep.mubr.f32.mxu0 %v4275_v14 }
  0xae   : > { %3024 = vmatprep.mubr.f32.mxu1 %v920_v40 }
  0xb0   : > { %3013 = vmatmul.mubr.f32.gmra.mrb[66].mxu0 %v3290_v7 }
  0xb1   : > { %3025 = vmatmul.mubr.f32.gmra.mrb[66].mxu1 %v3290_v7  ;;  %3015 = vmatprep.mubr.f32.mxu0 %v4326_v27 }
  0xb2   : > { %3027 = vmatprep.mubr.f32.mxu1 %v938_v61 }
  0xb4   : > { %3016 = vmatmul.mubr.f32.gmra.mrb[68].mxu0 %v3290_v7 }
  0xb5   : > { %3028 = vmatmul.mubr.f32.gmra.mrb[68].mxu1 %v3290_v7  ;;  %3018 = vmatprep.mubr.f32.mxu0 %v4375_v38 }
  0xb6   : > { %3030 = vmatprep.mubr.f32.mxu1 %v956_v3 }
  0xb8   : > { %3019 = vmatmul.mubr.f32.gmra.mrb[70].mxu0 %v3290_v7 }
  0xb9   : > { %3031 = vmatmul.mubr.f32.gmra.mrb[70].mxu1 %v3290_v7 }
  0xff   : > { %v2657_v53 = vpop.f32.mrb[0].mxu0 }
 0x100   : > { %v2737_v58 = vpop.f32.mrb[0].mxu1  ;;  %v2658_v4 = vpop.f32.mrb[1].mxu0 }
 0x101   : > { %v2659_v5 = vadd.f32 %v2658_v4, %v2657_v53  ;;  %v2738_v6 = vpop.f32.mrb[1].mxu1 }
 0x102   : > { %v2739_v8 = vadd.f32 %v2738_v6, %v2737_v58 }
 0x103   : > { %v1367_v55 = vadd.f32 %v2659_v5, %v4467_v2  ;;  %v2660_v9 = vpop.f32.mrb[2].mxu0 }
 0x104   : > { %v2740_v10 = vpop.f32.mrb[2].mxu1  ;;  %v2661_v11 = vpop.f32.mrb[3].mxu0 }
 0x105   : > { %v4470_v12 = vadd.f32 %v2739_v8, %v1367_v55  ;;  %v2662_v13 = vadd.f32 %v2661_v11, %v2660_v9  ;;  %v2741_v7 = vpop.f32.mrb[3].mxu1 }
 0x106   : > { %v2742_v14 = vadd.f32 %v2741_v7, %v2740_v10 }
 0x107   : > { %v1372_v15 = vadd.f32 %v2662_v13, %v4467_v2  ;;  %v2663_v16 = vpop.f32.mrb[4].mxu0 }
 0x108   : > { %v2743_v17 = vpop.f32.mrb[4].mxu1  ;;  %v2664_v19 = vpop.f32.mrb[5].mxu0 }
 0x109   : > { %v4473_v21 = vadd.f32 %v2742_v14, %v1372_v15  ;;  %v2665_v20 = vadd.f32 %v2664_v19, %v2663_v16  ;;  %v2744_v22 = vpop.f32.mrb[5].mxu1 }
 0x10a   : > { %v2745_v23 = vadd.f32 %v2744_v22, %v2743_v17 }
 0x10b   : > { %v1377_v24 = vadd.f32 %v2665_v20, %v4467_v2  ;;  %v2666_v25 = vpop.f32.mrb[6].mxu0 }
 0x10c   : > { %v2746_v26 = vpop.f32.mrb[6].mxu1  ;;  %v2667_v27 = vpop.f32.mrb[7].mxu0 }
 0x10d   : > { %v4476_v28 = vadd.f32 %v2745_v23, %v1377_v24  ;;  %v2668_v29 = vadd.f32 %v2667_v27, %v2666_v25  ;;  %v2747_v30 = vpop.f32.mrb[7].mxu1 }
 0x10e   : > { %v2748_v31 = vadd.f32 %v2747_v30, %v2746_v26 }
 0x10f   : > { %v1382_v32 = vadd.f32 %v2668_v29, %v4467_v2  ;;  %v2669_v50 = vpop.f32.mrb[8].mxu0 }
 0x110   : > { %v2749_v33 = vpop.f32.mrb[8].mxu1  ;;  %v2670_v34 = vpop.f32.mrb[9].mxu0 }
 0x111   : > { %v4479_v35 = vadd.f32 %v2748_v31, %v1382_v32  ;;  %v2671_v36 = vadd.f32 %v2670_v34, %v2669_v50  ;;  %v2750_v37 = vpop.f32.mrb[9].mxu1 }
 0x112   : > { %v2751_v38 = vadd.f32 %v2750_v37, %v2749_v33 }
 0x113   : > { %v1387_v39 = vadd.f32 %v2671_v36, %v4467_v2  ;;  %v2672_v41 = vpop.f32.mrb[10].mxu0 }
 0x114   : > { %v2752_v42 = vpop.f32.mrb[10].mxu1  ;;  %v2673_v43 = vpop.f32.mrb[11].mxu0 }
 0x115   : > { %v4482_v44 = vadd.f32 %v2751_v38, %v1387_v39  ;;  %v2674_v18 = vadd.f32 %v2673_v43, %v2672_v41  ;;  %v2753_v45 = vpop.f32.mrb[11].mxu1 }
 0x116   : > { %v2754_v47 = vadd.f32 %v2753_v45, %v2752_v42 }
 0x117   : > { %v1392_v48 = vadd.f32 %v2674_v18, %v4467_v2  ;;  %v2675_v49 = vpop.f32.mrb[12].mxu0 }
 0x118   : > { %v2755_v51 = vpop.f32.mrb[12].mxu1  ;;  %v2676_v52 = vpop.f32.mrb[13].mxu0 }
 0x119   : > { %v4485_v40 = vadd.f32 %v2754_v47, %v1392_v48  ;;  %v2677_v54 = vadd.f32 %v2676_v52, %v2675_v49  ;;  %v2756_v56 = vpop.f32.mrb[13].mxu1 }
 0x11a   : > { %v2757_v57 = vadd.f32 %v2756_v56, %v2755_v51 }
 0x11b   : > { %v1397_v59 = vadd.f32 %v2677_v54, %v4467_v2  ;;  %v2678_v60 = vpop.f32.mrb[14].mxu0 }
 0x11c   : > { %v2758_v61 = vpop.f32.mrb[14].mxu1  ;;  %v2679_v62 = vpop.f32.mrb[15].mxu0 }
 0x11d   : > { %v4488_v63 = vadd.f32 %v2757_v57, %v1397_v59  ;;  %v2680_v46 = vadd.f32 %v2679_v62, %v2678_v60  ;;  %v2759_v0 = vpop.f32.mrb[15].mxu1 }
 0x11e   : > { %v2760_v1 = vadd.f32 %v2759_v0, %v2758_v61 }
 0x11f   : > { %v1402_v3 = vadd.f32 %v2680_v46, %v4467_v2  ;;  %v2681_v53 = vpop.f32.mrb[16].mxu0 }
 0x120   : > { %v2761_v58 = vpop.f32.mrb[16].mxu1  ;;  %v2682_v4 = vpop.f32.mrb[17].mxu0 }
 0x121   : > { %v4491_v5 = vadd.f32 %v2760_v1, %v1402_v3  ;;  %v2683_v6 = vadd.f32 %v2682_v4, %v2681_v53  ;;  %v2762_v8 = vpop.f32.mrb[17].mxu1 }
 0x122   : > { %v2763_v55 = vadd.f32 %v2762_v8, %v2761_v58 }
 0x123   : > { %v1407_v9 = vadd.f32 %v2683_v6, %v4467_v2  ;;  %v2684_v10 = vpop.f32.mrb[18].mxu0 }
 0x124   : > { %v2764_v11 = vpop.f32.mrb[18].mxu1  ;;  %v2685_v13 = vpop.f32.mrb[19].mxu0 }
 0x125   : > { %v4494_v7 = vadd.f32 %v2763_v55, %v1407_v9  ;;  %v2686_v14 = vadd.f32 %v2685_v13, %v2684_v10  ;;  %v2765_v15 = vpop.f32.mrb[19].mxu1 }
 0x126   : > { %v2766_v16 = vadd.f32 %v2765_v15, %v2764_v11 }
 0x127   : > { %v1412_v17 = vadd.f32 %v2686_v14, %v4467_v2  ;;  %v2687_v19 = vpop.f32.mrb[20].mxu0 }
 0x128   : > { %v2767_v20 = vpop.f32.mrb[20].mxu1  ;;  %v2688_v22 = vpop.f32.mrb[21].mxu0 }
 0x129   : > { %v4497_v23 = vadd.f32 %v2766_v16, %v1412_v17  ;;  %v2689_v24 = vadd.f32 %v2688_v22, %v2687_v19  ;;  %v2768_v25 = vpop.f32.mrb[21].mxu1 }
 0x12a   : > { %v2769_v26 = vadd.f32 %v2768_v25, %v2767_v20 }
 0x12b   : > { %v1417_v27 = vadd.f32 %v2689_v24, %v4467_v2  ;;  %v2690_v29 = vpop.f32.mrb[22].mxu0 }
 0x12c   : > { %v2770_v30 = vpop.f32.mrb[22].mxu1  ;;  %v2691_v31 = vpop.f32.mrb[23].mxu0 }
 0x12d   : > { %v4500_v32 = vadd.f32 %v2769_v26, %v1417_v27  ;;  %v2692_v50 = vadd.f32 %v2691_v31, %v2690_v29  ;;  %v2771_v33 = vpop.f32.mrb[23].mxu1 }
 0x12e   : > { %v2772_v34 = vadd.f32 %v2771_v33, %v2770_v30 }
 0x12f   : > { %v1422_v36 = vadd.f32 %v2692_v50, %v4467_v2  ;;  %v2693_v37 = vpop.f32.mrb[24].mxu0 }
 0x130   : > { %v2773_v38 = vpop.f32.mrb[24].mxu1  ;;  %v2694_v39 = vpop.f32.mrb[25].mxu0 }
 0x131   : > { %v4503_v41 = vadd.f32 %v2772_v34, %v1422_v36  ;;  %v2695_v42 = vadd.f32 %v2694_v39, %v2693_v37  ;;  %v2774_v43 = vpop.f32.mrb[25].mxu1 }
 0x132   : > { %v2775_v18 = vadd.f32 %v2774_v43, %v2773_v38 }
 0x133   : > { %v1427_v45 = vadd.f32 %v2695_v42, %v4467_v2  ;;  %v2696_v47 = vpop.f32.mrb[26].mxu0 }
 0x134   : > { %v2776_v48 = vpop.f32.mrb[26].mxu1  ;;  %v2697_v49 = vpop.f32.mrb[27].mxu0 }
 0x135   : > { %v4506_v51 = vadd.f32 %v2775_v18, %v1427_v45  ;;  %v2698_v52 = vadd.f32 %v2697_v49, %v2696_v47  ;;  %v2777_v54 = vpop.f32.mrb[27].mxu1 }
 0x136   : > { %v2778_v56 = vadd.f32 %v2777_v54, %v2776_v48 }
 0x137   : > { %v1432_v57 = vadd.f32 %v2698_v52, %v4467_v2  ;;  %v2699_v59 = vpop.f32.mrb[28].mxu0 }
 0x138   : > { %v2779_v60 = vpop.f32.mrb[28].mxu1  ;;  %v2700_v61 = vpop.f32.mrb[29].mxu0 }
 0x139   : > { %v4509_v62 = vadd.f32 %v2778_v56, %v1432_v57  ;;  %v2701_v46 = vadd.f32 %v2700_v61, %v2699_v59  ;;  %v2780_v0 = vpop.f32.mrb[29].mxu1 }
 0x13a   : > { %v2781_v1 = vadd.f32 %v2780_v0, %v2779_v60 }
 0x13b   : > { %v1437_v3 = vadd.f32 %v2701_v46, %v4467_v2  ;;  %v2702_v53 = vpop.f32.mrb[30].mxu0 }
 0x13c   : > { %v2782_v58 = vpop.f32.mrb[30].mxu1  ;;  %v2703_v4 = vpop.f32.mrb[31].mxu0 }
 0x13d   : > { %v4512_v6 = vadd.f32 %v2781_v1, %v1437_v3  ;;  %v2704_v8 = vadd.f32 %v2703_v4, %v2702_v53  ;;  %v2783_v55 = vpop.f32.mrb[31].mxu1 }
 0x13e   : > { %v2784_v9 = vadd.f32 %v2783_v55, %v2782_v58 }
 0x13f   : > { %v1442_v10 = vadd.f32 %v2704_v8, %v4467_v2  ;;  %v2817_v11 = vpop.f32.mrb[32].mxu0 }
 0x140   : > { %v2897_v13 = vpop.f32.mrb[32].mxu1  ;;  %v2818_v14 = vpop.f32.mrb[33].mxu0 }
 0x141   : > { %v4515_v15 = vadd.f32 %v2784_v9, %v1442_v10  ;;  %v2819_v16 = vadd.f32 %v2818_v14, %v2817_v11  ;;  %v2898_v17 = vpop.f32.mrb[33].mxu1 }
 0x142   : > { %v2899_v19 = vadd.f32 %v2898_v17, %v2897_v13 }
 0x143   : > { %v1657_v20 = vadd.f32 %v2819_v16, %v4470_v12  ;;  %v2820_v22 = vpop.f32.mrb[34].mxu0 }
 0x144   : > { %v2900_v24 = vpop.f32.mrb[34].mxu1  ;;  %v2821_v25 = vpop.f32.mrb[35].mxu0 }
 0x145   : > { %v2822_v26 = vadd.f32 %v2821_v25, %v2820_v22  ;;  %v2901_v27 = vpop.f32.mrb[35].mxu1  ;;  %v4518_v29 = vadd.f32 %v2899_v19, %v1657_v20 }
 0x146   : > { %v2902_v30 = vadd.f32 %v2901_v27, %v2900_v24 }
 0x147   : > { %v1662_v2 = vadd.f32 %v2822_v26, %v4473_v21  ;;  %v2823_v31 = vpop.f32.mrb[36].mxu0 }
 0x148   : > { %v2903_v50 = vpop.f32.mrb[36].mxu1  ;;  %v2824_v33 = vpop.f32.mrb[37].mxu0 }
 0x149   : > { %v2825_v34 = vadd.f32 %v2824_v33, %v2823_v31  ;;  %v2904_v36 = vpop.f32.mrb[37].mxu1  ;;  %v4521_v37 = vadd.f32 %v2902_v30, %v1662_v2 }
 0x14a   : > { %v2905_v38 = vadd.f32 %v2904_v36, %v2903_v50 }
 0x14b   : > { %v1667_v12 = vadd.f32 %v2825_v34, %v4476_v28  ;;  %v2826_v39 = vpop.f32.mrb[38].mxu0 }
 0x14c   : > { %v2906_v42 = vpop.f32.mrb[38].mxu1  ;;  %v2827_v43 = vpop.f32.mrb[39].mxu0 }
 0x14d   : > { %v2828_v18 = vadd.f32 %v2827_v43, %v2826_v39  ;;  %v2907_v45 = vpop.f32.mrb[39].mxu1  ;;  %v4524_v47 = vadd.f32 %v2905_v38, %v1667_v12 }
 0x14e   : > { %v2908_v48 = vadd.f32 %v2907_v45, %v2906_v42 }
 0x14f   : > { %v1672_v21 = vadd.f32 %v2828_v18, %v4479_v35  ;;  %v2829_v49 = vpop.f32.mrb[40].mxu0 }
 0x150   : > { %v2909_v52 = vpop.f32.mrb[40].mxu1  ;;  %v2830_v54 = vpop.f32.mrb[41].mxu0 }
 0x151   : > { %v2831_v56 = vadd.f32 %v2830_v54, %v2829_v49  ;;  %v2910_v57 = vpop.f32.mrb[41].mxu1  ;;  %v4527_v59 = vadd.f32 %v2908_v48, %v1672_v21 }
 0x152   : > { %v2911_v60 = vadd.f32 %v2910_v57, %v2909_v52 }
 0x153   : > { %v1677_v28 = vadd.f32 %v2831_v56, %v4482_v44  ;;  %v2832_v61 = vpop.f32.mrb[42].mxu0 }
 0x154   : > { %v2912_v46 = vpop.f32.mrb[42].mxu1  ;;  %v2833_v0 = vpop.f32.mrb[43].mxu0 }
 0x155   : > { %v2834_v1 = vadd.f32 %v2833_v0, %v2832_v61  ;;  %v2913_v3 = vpop.f32.mrb[43].mxu1  ;;  %v4530_v53 = vadd.f32 %v2911_v60, %v1677_v28 }
 0x156   : > { %v2914_v58 = vadd.f32 %v2913_v3, %v2912_v46 }
 0x157   : > { %v1682_v35 = vadd.f32 %v2834_v1, %v4485_v40  ;;  %v2835_v4 = vpop.f32.mrb[44].mxu0 }
 0x158   : > { %v2915_v8 = vpop.f32.mrb[44].mxu1  ;;  %v2836_v55 = vpop.f32.mrb[45].mxu0 }
 0x159   : > { %v2837_v9 = vadd.f32 %v2836_v55, %v2835_v4  ;;  %v2916_v10 = vpop.f32.mrb[45].mxu1  ;;  %v4533_v11 = vadd.f32 %v2914_v58, %v1682_v35 }
 0x15a   : > { %v2917_v13 = vadd.f32 %v2916_v10, %v2915_v8 }
 0x15b   : > { %v1687_v44 = vadd.f32 %v2837_v9, %v4488_v63  ;;  %v2838_v14 = vpop.f32.mrb[46].mxu0 }
 0x15c   : > { %v2918_v16 = vpop.f32.mrb[46].mxu1  ;;  %v2839_v17 = vpop.f32.mrb[47].mxu0 }
 0x15d   : > { %v2840_v19 = vadd.f32 %v2839_v17, %v2838_v14  ;;  %v2919_v20 = vpop.f32.mrb[47].mxu1  ;;  %v4536_v22 = vadd.f32 %v2917_v13, %v1687_v44 }
 0x15e   : > { %v2920_v24 = vadd.f32 %v2919_v20, %v2918_v16 }
 0x15f   : > { %v1692_v40 = vadd.f32 %v2840_v19, %v4491_v5  ;;  %v2841_v25 = vpop.f32.mrb[48].mxu0 }
 0x160   : > { %v2921_v26 = vpop.f32.mrb[48].mxu1  ;;  %v2842_v27 = vpop.f32.mrb[49].mxu0 }
 0x161   : > { %v2843_v30 = vadd.f32 %v2842_v27, %v2841_v25  ;;  %v2922_v2 = vpop.f32.mrb[49].mxu1  ;;  %v4539_v31 = vadd.f32 %v2920_v24, %v1692_v40 }
 0x162   : > { %v2923_v50 = vadd.f32 %v2922_v2, %v2921_v26 }
 0x163   : > { %v1697_v63 = vadd.f32 %v2843_v30, %v4494_v7  ;;  %v2844_v33 = vpop.f32.mrb[50].mxu0 }
 0x164   : > { %v2924_v34 = vpop.f32.mrb[50].mxu1  ;;  %v2845_v36 = vpop.f32.mrb[51].mxu0 }
 0x165   : > { %v2846_v38 = vadd.f32 %v2845_v36, %v2844_v33  ;;  %v2925_v12 = vpop.f32.mrb[51].mxu1  ;;  %v4542_v39 = vadd.f32 %v2923_v50, %v1697_v63 }
 0x166   : > { %v2926_v42 = vadd.f32 %v2925_v12, %v2924_v34 }
 0x167   : > { %v1702_v5 = vadd.f32 %v2846_v38, %v4497_v23  ;;  %v2847_v43 = vpop.f32.mrb[52].mxu0 }
 0x168   : > { %v2927_v18 = vpop.f32.mrb[52].mxu1  ;;  %v2848_v45 = vpop.f32.mrb[53].mxu0 }
 0x169   : > { %v2849_v48 = vadd.f32 %v2848_v45, %v2847_v43  ;;  %v2928_v21 = vpop.f32.mrb[53].mxu1  ;;  %v1847_v49 = vadd.f32 %v2926_v42, %v1702_v5  ;;  %v2042_v42 = vld [vmem:[%s4569_s19 + $0x8] sm:$0xff] }
 0x16a   : > { %v2929_v52 = vadd.f32 %v2928_v21, %v2927_v18 }
 0x16b   : > { %v1707_v7 = vadd.f32 %v2849_v48, %v4500_v32  ;;  %v2850_v54 = vpop.f32.mrb[54].mxu0  ;;  %v2041_v48 = vld [vmem:[%s4569_s19] sm:$0xff] }
 0x16c   : > { %v2930_v56 = vpop.f32.mrb[54].mxu1  ;;  %v2851_v57 = vpop.f32.mrb[55].mxu0 }
 0x16d   : > { %v2852_v60 = vadd.f32 %v2851_v57, %v2850_v54  ;;  %v2931_v28 = vpop.f32.mrb[55].mxu1  ;;  %v4547_v61 = vadd.f32 %v2929_v52, %v1707_v7  ;;  %v2106_v52 = vld [vmem:[%s4582_s23 + $0x8] sm:$0xff]  ;;  %v2049_v54 = vld [vmem:[%s4569_s19 + $0x40] sm:$0xff] }
 0x16e   : > { %v2932_v46 = vadd.f32 %v2931_v28, %v2930_v56  ;;  %v2073_v28 = vld [vmem:[%s4576_s29] sm:$0xff] }
 0x16f   : > { %v1712_v23 = vadd.f32 %v2852_v60, %v4503_v41  ;;  %v2853_v0 = vpop.f32.mrb[56].mxu0  ;;  %v2082_v60 = vld [vmem:[%s4576_s29 + $0x48] sm:$0xff] }
 0x170   : > { %v2933_v1 = vpop.f32.mrb[56].mxu1  ;;  %v2854_v3 = vpop.f32.mrb[57].mxu0 }
 0x171   : > { %v2855_v58 = vadd.f32 %v2854_v3, %v2853_v0  ;;  %v2934_v35 = vpop.f32.mrb[57].mxu1  ;;  %v4551_v4 = vadd.f32 %v2932_v46, %v1712_v23  ;;  %v2081_v23 = vld [vmem:[%s4576_s29 + $0x40] sm:$0xff]  ;;  %v2138_v3 = vld [vmem:[%s4593_s18 + $0x8] sm:$0xff] }
 0x172   : > { %v2935_v32 = vadd.f32 %v2934_v35, %v2933_v1  ;;  %v2114_v35 = vld [vmem:[%s4582_s23 + $0x48] sm:$0xff] }
 0x173   : > { %v1717_v8 = vadd.f32 %v2855_v58, %v4506_v51  ;;  %v2856_v55 = vpop.f32.mrb[58].mxu0 }
 0x174   : > { %v2936_v9 = vpop.f32.mrb[58].mxu1  ;;  %v2857_v10 = vpop.f32.mrb[59].mxu0 }
 0x175   : > { %v2858_v13 = vadd.f32 %v2857_v10, %v2856_v55  ;;  %v2937_v44 = vpop.f32.mrb[59].mxu1  ;;  %v4555_v41 = vadd.f32 %v2935_v32, %v1717_v8  ;;  %v2105_v8 = vld [vmem:[%s4582_s23] sm:$0xff]  ;;  %v2044_v55 = vld [vmem:[%s4569_s19 + $0x18] sm:$0xff] }
 0x176   : > { %v2938_v14 = vadd.f32 %v2937_v44, %v2936_v9 }
 0x177   : > { %v1722_v16 = vadd.f32 %v2858_v13, %v4509_v62  ;;  %v2859_v17 = vpop.f32.mrb[60].mxu0 }
 0x178   : > { %v2939_v19 = vpop.f32.mrb[60].mxu1  ;;  %v2860_v20 = vpop.f32.mrb[61].mxu0 }
 0x179   : > { %v2861_v24 = vadd.f32 %v2860_v20, %v2859_v17  ;;  %v2940_v40 = vpop.f32.mrb[61].mxu1  ;;  %v4558_v25 = vadd.f32 %v2938_v14, %v1722_v16  ;;  %v2113_v14 = vld [vmem:[%s4582_s23 + $0x40] sm:$0xff]  ;;  %v2052_v17 = vld [vmem:[%s4569_s19 + $0x58] sm:$0xff] }
 0x17a   : > { %v2941_v51 = vadd.f32 %v2940_v40, %v2939_v19  ;;  %v2043_v19 = vld [vmem:[%s4569_s19 + $0x10] sm:$0xff]  ;;  %v2146_v40 = vld [vmem:[%s4593_s18 + $0x48] sm:$0xff] }
 0x17b   : > { %v1727_v26 = vadd.f32 %v2861_v24, %v4512_v6  ;;  %v2862_v27 = vpop.f32.mrb[62].mxu0 }
 0x17c   : > { %v2942_v30 = vpop.f32.mrb[62].mxu1  ;;  %v2863_v2 = vpop.f32.mrb[63].mxu0 }
 0x17d   : > { %v2864_v62 = vadd.f32 %v2863_v2, %v2862_v27  ;;  %v2943_v50 = vpop.f32.mrb[63].mxu1  ;;  %v4563_v63 = vadd.f32 %v2941_v51, %v1727_v26  ;;  %v2051_v27 = vld [vmem:[%s4569_s19 + $0x50] sm:$0xff] }
 0x17e   : > { %v2944_v33 = vadd.f32 %v2943_v50, %v2942_v30 }
 0x17f   : > { %v1732_v6 = vadd.f32 %v2864_v62, %v4515_v15  ;;  %v3011_v34 = vpop.f32.mrb[64].mxu0  ;;  %v2137_v62 = vld [vmem:[%s4593_s18] sm:$0xff] }
 0x180   : > { %v1952_v36 = vadd.f32 %v3011_v34, %v4521_v37  ;;  %v3023_v38 = vpop.f32.mrb[64].mxu1  ;;  %v1946_v12 = vpop.f32.mrb[65].mxu0  ;;  %v2050_v37 = vld [vmem:[%s4569_s19 + $0x48] sm:$0xff]  ;;  %v2075_v34 = vld [vmem:[%s4576_s29 + $0x10] sm:$0xff] }
 0x181   : > { %v1992_v15 = vadd.f32 %v3023_v38, %v1847_v49  ;;  %v1947_v5 = vadd.f32 %v1946_v12, %v4518_v29  ;;  %v1986_v43 = vpop.f32.mrb[65].mxu1  ;;  %v4587_v18 = vadd.f32 %v2944_v33, %v1732_v6  ;;  %v2074_v49 = vld [vmem:[%s4576_s29 + $0x8] sm:$0xff]  ;;  %v2084_v6 = vld [vmem:[%s4576_s29 + $0x58] sm:$0xff] }
 0x182   : > { %v2026_v45 = vmax.f32 %v1952_v36, 0.0  ;;  %v1987_v21 = vadd.f32 %v1986_v43, %v4542_v39 }
 0x183   : > { %v2034_v29 = vmax.f32 %v1992_v15, 0.0  ;;  %v2025_v7 = vmax.f32 %v1947_v5, 0.0  ;;  %v3014_v56 = vpop.f32.mrb[66].mxu0  ;;  %v2145_v15 = vld [vmem:[%s4593_s18 + $0x40] sm:$0xff]  ;;  %v2108_v5 = vld [vmem:[%s4582_s23 + $0x18] sm:$0xff] }
 0x184   : > { %v2058_v57 = vadd.f32 %v2042_v42, %v2026_v45  ;;  %v2033_v46 = vmax.f32 %v1987_v21, 0.0  ;;  %v1962_v0 = vadd.f32 %v3014_v56, %v4527_v59  ;;  %v3026_v1 = vpop.f32.mrb[66].mxu1  ;;  %v1956_v39 = vpop.f32.mrb[67].mxu0 }
 0x185   : > { %v2066_v58 = vadd.f32 %v2050_v37, %v2034_v29  ;;  %v2057_v32 = vadd.f32 %v2041_v48, %v2025_v7  ;;  %v2002_v9 = vadd.f32 %v3026_v1, %v4551_v4  ;;  %v1957_v10 = vadd.f32 %v1956_v39, %v4524_v47  ;;  %v1996_v13 = vpop.f32.mrb[67].mxu1  ;;  %v2076_v4 = vld [vmem:[%s4576_s29 + $0x18] sm:$0xff]  ;;  %v2083_v37 = vld [vmem:[%s4576_s29 + $0x50] sm:$0xff] }
 0x186   : > { %v2090_v44 = vadd.f32 %v2074_v49, %v2058_v57  ;;  %v2065_v59 = vadd.f32 %v2049_v54, %v2033_v46  ;;  %v2028_v16 = vmax.f32 %v1962_v0, 0.0  ;;  %v1997_v20 = vadd.f32 %v1996_v13, %v4547_v61  ;;  %v2116_v29 = vld [vmem:[%s4582_s23 + $0x58] sm:$0xff]  ;;  %v2107_v7 = vld [vmem:[%s4582_s23 + $0x10] sm:$0xff] }
 0x187   : > { %v2098_v24 = vadd.f32 %v2082_v60, %v2066_v58  ;;  %v2089_v51 = vadd.f32 %v2073_v28, %v2057_v32  ;;  %v2036_v26 = vmax.f32 %v2002_v9, 0.0  ;;  %v2027_v47 = vmax.f32 %v1957_v10, 0.0  ;;  %v3017_v30 = vpop.f32.mrb[68].mxu0  ;;  %v2140_v60 = vld [vmem:[%s4593_s18 + $0x18] sm:$0xff]  ;;  %v2139_v58 = vld [vmem:[%s4593_s18 + $0x10] sm:$0xff] }
 0x188   : > { %v2122_v2 = vadd.f32 %v2106_v52, %v2090_v44  ;;  %v2097_v50 = vadd.f32 %v2081_v23, %v2065_v59  ;;  %v2060_v33 = vadd.f32 %v2044_v55, %v2028_v16  ;;  %v2035_v61 = vmax.f32 %v1997_v20, 0.0  ;;  %v3029_v36 = vpop.f32.mrb[68].mxu1  ;;  %v1966_v38 = vpop.f32.mrb[69].mxu0  ;;  %v2115_v23 = vld [vmem:[%s4582_s23 + $0x50] sm:$0xff]  ;;  %v2046_v44 = vld [vmem:[%s4569_s19 + $0x28] sm:$0xff] }
 0x189   : > { %v2130_v12 = vadd.f32 %v2114_v35, %v2098_v24  ;;  %v2121_v42 = vadd.f32 %v2105_v8, %v2089_v51  ;;  %v2068_v43 = vadd.f32 %v2052_v17, %v2036_v26  ;;  %v2059_v45 = vadd.f32 %v2043_v19, %v2027_v47  ;;  %v2006_v48 = vpop.f32.mrb[69].mxu1  ;;  %v2147_v13 = vld [vmem:[%s4593_s18 + $0x50] sm:$0xff]  ;;  %v2054_v20 = vld [vmem:[%s4569_s19 + $0x68] sm:$0xff]  ;;  %v2045_v24 = vld [vmem:[%s4569_s19 + $0x20] sm:$0xff] }
 0x18a   : > { %v2154_v21 = vadd.f32 %v2138_v3, %v2122_v2  ;;  %v2129_v49 = vadd.f32 %v2113_v14, %v2097_v50  ;;  %v2092_v52 = vadd.f32 %v2076_v4, %v2060_v33  ;;  %v2067_v54 = vadd.f32 %v2051_v27, %v2035_v61  ;;  %v2148_v3 = vld [vmem:[%s4593_s18 + $0x58] sm:$0xff]  ;;  %v2078_v4 = vld [vmem:[%s4576_s29 + $0x28] sm:$0xff]  ;;  %v2053_v27 = vld [vmem:[%s4569_s19 + $0x60] sm:$0xff] }
 0x18b   : > { %v2162_v56 = vadd.f32 %v2146_v40, %v2130_v12  ;;  %v2153_v57 = vadd.f32 %v2137_v62, %v2121_v42  ;;  %v2100_v28 = vadd.f32 %v2084_v6, %v2068_v43  ;;  %v2091_v46 = vadd.f32 %v2075_v34, %v2059_v45  ;;  %v3020_v0 = vpop.f32.mrb[70].mxu0  ;;  %v2086_v62 = vld [vmem:[%s4576_s29 + $0x68] sm:$0xff]  ;;  %v2077_v50 = vld [vmem:[%s4576_s29 + $0x20] sm:$0xff]  ;;  %v2048_v42 = vld [vmem:[%s4569_s19 + $0x38] sm:$0xff] }
 0x18c   : > { %2170 = vst [vmem:[%s4625_s30 + $0x8] sm:$0xff] %v2154_v21  ;;  %v2161_v1 = vadd.f32 %v2145_v15, %v2129_v49  ;;  %v2124_v39 = vadd.f32 %v2108_v5, %v2092_v52  ;;  %v2099_v35 = vadd.f32 %v2083_v37, %v2067_v54  ;;  %v1972_v32 = vadd.f32 %v3017_v30, %v4533_v11  ;;  %v3032_v8 = vpop.f32.mrb[70].mxu1  ;;  %v1976_v55 = vpop.f32.mrb[71].mxu0  ;;  %v2085_v33 = vld [vmem:[%s4576_s29 + $0x60] sm:$0xff]  ;;  %v2142_v34 = vld [vmem:[%s4593_s18 + $0x28] sm:$0xff]  ;;  %v2047_v21 = vld [vmem:[%s4569_s19 + $0x30] sm:$0xff] }
 0x18d   : > { %2178 = vst [vmem:[%s4625_s30 + $0x48] sm:$0xff] %v2162_v56  ;;  %2169 = vst [vmem:[%s4625_s30] sm:$0xff] %v2153_v57  ;;  %v2132_v9 = vadd.f32 %v2116_v29, %v2100_v28  ;;  %v2123_v10 = vadd.f32 %v2107_v7, %v2091_v46  ;;  %v2012_v59 = vadd.f32 %v3029_v36, %v4558_v25  ;;  %v2016_v16 = vpop.f32.mrb[71].mxu1  ;;  %v2118_v36 = vld [vmem:[%s4582_s23 + $0x68] sm:$0xff]  ;;  %v2109_v12 = vld [vmem:[%s4582_s23 + $0x20] sm:$0xff] }
 0x18e   : > { %v1967_v14 = vadd.f32 %v1966_v38, %v4530_v53  ;;  %2177 = vst [vmem:[%s4625_s30 + $0x40] sm:$0xff] %v2161_v1  ;;  %v2156_v11 = vadd.f32 %v2140_v60, %v2124_v39  ;;  %v2131_v17 = vadd.f32 %v2115_v23, %v2099_v35  ;;  %v2030_v19 = vmax.f32 %v1972_v32, 0.0  ;;  %v2110_v53 = vld [vmem:[%s4582_s23 + $0x28] sm:$0xff]  ;;  %v2117_v45 = vld [vmem:[%s4582_s23 + $0x60] sm:$0xff]  ;;  %v2080_v7 = vld [vmem:[%s4576_s29 + $0x38] sm:$0xff] }
 0x18f   : > { %v2007_v40 = vadd.f32 %v2006_v48, %v4555_v41  ;;  %v2164_v51 = vadd.f32 %v2148_v3, %v2132_v9  ;;  %v2155_v25 = vadd.f32 %v2139_v58, %v2123_v10  ;;  %v2038_v26 = vmax.f32 %v2012_v59, 0.0  ;;  %v2056_v48 = vld [vmem:[%s4569_s19 + $0x78] sm:$0xff]  ;;  %v2150_v29 = vld [vmem:[%s4593_s18 + $0x68] sm:$0xff]  ;;  %v2055_v56 = vld [vmem:[%s4569_s19 + $0x70] sm:$0xff] }
 0x190   : > { %v2029_v47 = vmax.f32 %v1967_v14, 0.0  ;;  %2172 = vst [vmem:[%s4625_s30 + $0x18] sm:$0xff] %v2156_v11  ;;  %v2163_v30 = vadd.f32 %v2147_v13, %v2131_v17  ;;  %v2062_v2 = vadd.f32 %v2046_v44, %v2030_v19  ;;  %v1982_v6 = vadd.f32 %v3020_v0, %v4539_v31  ;;  %v2141_v60 = vld [vmem:[%s4593_s18 + $0x20] sm:$0xff]  ;;  %v2088_v23 = vld [vmem:[%s4576_s29 + $0x78] sm:$0xff]  ;;  %v2079_v0 = vld [vmem:[%s4576_s29 + $0x30] sm:$0xff] }
 0x191   : > { %v2037_v41 = vmax.f32 %v2007_v40, 0.0  ;;  %2180 = vst [vmem:[%s4625_s30 + $0x58] sm:$0xff] %v2164_v51  ;;  %2171 = vst [vmem:[%s4625_s30 + $0x10] sm:$0xff] %v2155_v25  ;;  %v2070_v61 = vadd.f32 %v2054_v20, %v2038_v26  ;;  %v2022_v15 = vadd.f32 %v3032_v8, %v4587_v18  ;;  %v1977_v5 = vadd.f32 %v1976_v55, %v4536_v22  ;;  %v2149_v3 = vld [vmem:[%s4593_s18 + $0x60] sm:$0xff]  ;;  %v2112_v58 = vld [vmem:[%s4582_s23 + $0x38] sm:$0xff] }
 0x192   : > { %v2061_v38 = vadd.f32 %v2045_v24, %v2029_v47  ;;  %2179 = vst [vmem:[%s4625_s30 + $0x50] sm:$0xff] %v2163_v30  ;;  %v2094_v31 = vadd.f32 %v2078_v4, %v2062_v2  ;;  %v2032_v37 = vmax.f32 %v1982_v6, 0.0  ;;  %v2017_v49 = vadd.f32 %v2016_v16, %v4563_v63  ;;  %v2087_v8 = vld [vmem:[%s4576_s29 + $0x70] sm:$0xff]  ;;  %v2120_v13 = vld [vmem:[%s4582_s23 + $0x78] sm:$0xff] }
 0x193   : > { %v2069_v43 = vadd.f32 %v2053_v27, %v2037_v41  ;;  %v2102_v52 = vadd.f32 %v2086_v62, %v2070_v61  ;;  %v2040_v54 = vmax.f32 %v2022_v15, 0.0  ;;  %v2031_v22 = vmax.f32 %v1977_v5, 0.0  ;;  %v2111_v44 = vld [vmem:[%s4582_s23 + $0x30] sm:$0xff]  ;;  %v2144_v11 = vld [vmem:[%s4593_s18 + $0x38] sm:$0xff] }
 0x194   : > { %v2093_v18 = vadd.f32 %v2077_v50, %v2061_v38  ;;  %v2126_v57 = vadd.f32 %v2110_v53, %v2094_v31  ;;  %v2064_v46 = vadd.f32 %v2048_v42, %v2032_v37  ;;  %v2039_v1 = vmax.f32 %v2017_v49, 0.0  ;;  %v2119_v20 = vld [vmem:[%s4582_s23 + $0x70] sm:$0xff]  ;;  %v2152_v51 = vld [vmem:[%s4593_s18 + $0x78] sm:$0xff] }
 0x195   : > { %v2101_v28 = vadd.f32 %v2085_v33, %v2069_v43  ;;  %v2134_v63 = vadd.f32 %v2118_v36, %v2102_v52  ;;  %v2072_v35 = vadd.f32 %v2056_v48, %v2040_v54  ;;  %v2063_v32 = vadd.f32 %v2047_v21, %v2031_v22  ;;  %v2143_v25 = vld [vmem:[%s4593_s18 + $0x30] sm:$0xff] }
 0x196   : > { %v2125_v39 = vadd.f32 %v2109_v12, %v2093_v18  ;;  %v2158_v55 = vadd.f32 %v2142_v34, %v2126_v57  ;;  %v2096_v10 = vadd.f32 %v2080_v7, %v2064_v46  ;;  %v2071_v59 = vadd.f32 %v2055_v56, %v2039_v1  ;;  %v2151_v47 = vld [vmem:[%s4593_s18 + $0x70] sm:$0xff] }
 0x197   : > { %v2133_v9 = vadd.f32 %v2117_v45, %v2101_v28  ;;  %v2166_v14 = vadd.f32 %v2150_v29, %v2134_v63  ;;  %v2104_v17 = vadd.f32 %v2088_v23, %v2072_v35  ;;  %v2095_v19 = vadd.f32 %v2079_v0, %v2063_v32 }
 0x198   : > { %v2157_v16 = vadd.f32 %v2141_v60, %v2125_v39  ;;  %2174 = vst [vmem:[%s4625_s30 + $0x28] sm:$0xff] %v2158_v55  ;;  %v2128_v40 = vadd.f32 %v2112_v58, %v2096_v10  ;;  %v2103_v4 = vadd.f32 %v2087_v8, %v2071_v59 }
 0x199   : > { %v2165_v24 = vadd.f32 %v2149_v3, %v2133_v9  ;;  %2182 = vst [vmem:[%s4625_s30 + $0x68] sm:$0xff] %v2166_v14  ;;  %v2136_v53 = vadd.f32 %v2120_v13, %v2104_v17  ;;  %v2127_v26 = vadd.f32 %v2111_v44, %v2095_v19 }
 0x19a   : > { %2173 = vst [vmem:[%s4625_s30 + $0x20] sm:$0xff] %v2157_v16  ;;  %v2160_v27 = vadd.f32 %v2144_v11, %v2128_v40  ;;  %v2135_v30 = vadd.f32 %v2119_v20, %v2103_v4 }
 0x19b   : > { %2181 = vst [vmem:[%s4625_s30 + $0x60] sm:$0xff] %v2165_v24  ;;  %v2168_v2 = vadd.f32 %v2152_v51, %v2136_v53  ;;  %v2159_v62 = vadd.f32 %v2143_v25, %v2127_v26 }
 0x19c   : > { %2176 = vst [vmem:[%s4625_s30 + $0x38] sm:$0xff] %v2160_v27  ;;  %v2167_v50 = vadd.f32 %v2151_v47, %v2135_v30 }
 0x19d   : > { %2184 = vst [vmem:[%s4625_s30 + $0x78] sm:$0xff] %v2168_v2  ;;  %2175 = vst [vmem:[%s4625_s30 + $0x30] sm:$0xff] %v2159_v62 }
 0x19e   : > { %2183 = vst [vmem:[%s4625_s30 + $0x70] sm:$0xff] %v2167_v50 }
 0x19f PF: > { %s17_s28 = sadd.s32 1, %s3288_s28   ;;  %s4739_s13 = sld [smem:[#allocation3_spill]] }
 0x1a0   : > { %p14_p3 = scmp.ge.s32.totalorder %s17_s28, 6   ;;  %s4740_s17 = sld [smem:[#allocation4_spill]] }
 0x1a1   : > { %s4741_s24 = smov %s3280_s26  ;;  %s4742_s25 = smov %s3284_s27 }
 0x1a2   :  { %16 = sbr.rel (!%p14_p3) target bundleno = 3 (0x3), region = 117 }
 0x1a5   : > { %s4743_s26 = smov %s4739_s13 }
 0x1a6   : > { %s4744_s27 = smov %s4740_s17 }

// kernel: dilated_block_forward.4
= control target key start
LH: loop header
LB: loop body
LE: loop exit
PB: predicated region body
PF: predicated region fallthrough
CT: control target
= control target key end

     0   :  { %s3020_s12 = smov 0   ;;  %s3022_s13 = smov 0   ;;  %s4339_s0 = inlined_call_operand.vmem [shape: f32[2,16,16,128], index: 0, kind: input, shape index: {}]   ;;  %s4340_s1 = inlined_call_operand.vmem [shape: f32[1152,128], index: 1, kind: input, shape index: {}]   ;;  %s4341_s2 = inlined_call_operand.vmem [shape: f32[1,128], index: 2, kind: input, shape index: {}]   ;;  %s4342_s3 = inlined_call_operand.vmem [shape: f32[2,16,16,128], index: 3, kind: output, shape index: {}]  }
   0x1   :  { %s3024_s14 = smov 0   ;;  %s3026_s15 = smov 0  }
   0x2   :  { %s3028_s16 = smov 0  }
   0x3 LB: > { %s28_s17 = sadd.s32 1, %s2990_s14  ;;  %s32_s18 = sadd.s32 1, %s2994_s15  ;;  %s2998_s16 = sphi %s3028_s16, %s13_s16   ;;  %s2994_s15 = sphi %s3026_s15, %s4358_s15   ;;  %s2990_s14 = sphi %s3024_s14, %s4357_s14   ;;  %s2986_s13 = sphi %s3022_s13, %s4356_s13   ;;  %s2982_s12 = sphi %s3020_s12, %s4355_s12  }
   0x4   : > { %p30_p0 = scmp.ge.s32.totalorder %s28_s17, 2  ;;  %p2160_p1 = scmp.ge.s32.totalorder %s2998_s16, 1 }
   0x5   : > { %p177_p2 = scmp.lt.s32.totalorder %s2998_s16, 5 }
   0x6   : > { %s4360_s17 = smov (%p30_p0, %s28_s17), 0  ;;  %s4362_s18 = smov (!%p30_p0, %s32_s18), %s2994_s15 }
   0x7   : > { %p178_p3 = pnand %p2160_p1, %p177_p2  ;;  %p34_p4 = scmp.ge.s32.totalorder %s4362_s18, 2 }
   0x8   : > { %v1110_v0 = vld [vmem:[%s4340_s1 + $0x80] sm:$0xff] (!%p178_p3)  ;;  %v1111_v1 = vld [vmem:[%s4340_s1 + $0x88] sm:$0xff] (!%p178_p3)  ;;  %p216_p5 = scmp.lt.s32.totalorder (!%p178_p3), %s2986_s13, 1  ;;  %s3065_s25 = sshll.u32 (!%p178_p3), %s2982_s12, 3  ;;  %v1112_v11 = vld [vmem:[%s4340_s1 + $0x90] sm:$0xff] (!%p178_p3)  ;;  %vm406_vm0 = vcmask (!%p178_p3), 1040384  }
   0x9   : > { %s4364_s18 = smov (%p34_p4, %s4362_s18), 0  ;;  %181 = sbr.rel (%p178_p3) target bundleno = 404 (0x194), region = 32 }
   0xa   : > { %v1142_v2 = vld [vmem:[%s4340_s1 + $0x180] sm:$0xff] (!%p178_p3)  ;;  %v2744_v3 = vpack.c.bf16 (!%p178_p3), %v1111_v1, %v1110_v0  ;;  %v1143_v4 = vld [vmem:[%s4340_s1 + $0x188] sm:$0xff] (!%p178_p3)  ;;  %s3077_s5 = sadd.s32 (!%p178_p3), 4294967295, %s3065_s25  ;;  %v1113_v13 = vld [vmem:[%s4340_s1 + $0x98] sm:$0xff] (!%p178_p3)  ;;  %s2259_s19 = sshll.u32 (!%p178_p3), %s2982_s12, 7  ;;  %vm487_vm2 = vcmask (!%p178_p3), 1046528  }
   0xb   : > { %v1094_v5 = vld [vmem:[%s4340_s1] sm:$0xff] (!%p178_p3)  ;;  %v1095_v6 = vld [vmem:[%s4340_s1 + $0x8] sm:$0xff] (!%p178_p3)  ;;  %v2776_v7 = vpack.c.bf16 (!%p178_p3), %v1143_v4, %v1142_v2  ;;  %v1144_v14 = vld [vmem:[%s4340_s1 + $0x190] sm:$0xff] (!%p178_p3)  ;;  %p248_p6 = scmp.gt.s32.totalorder (!%p178_p3), %s3077_s5, 0  ;;  %v2748_v16 = vpack.c.bf16 (!%p178_p3), %v1113_v13, %v1112_v11  ;;  %p2168_p7 = scmp.lt.s32.totalorder (!%p178_p3), %s3077_s5, 15 }
   0xc   : > { %v2746_v8 = vpack.c.bf16 (!%p178_p3), %v1095_v6, %v1094_v5  ;;  %v1126_v9 = vld [vmem:[%s4340_s1 + $0x100] sm:$0xff] (!%p178_p3)  ;;  %v1127_v10 = vld [vmem:[%s4340_s1 + $0x108] sm:$0xff] (!%p178_p3)  ;;  %2745 = vmatprep.subr.bf16.mxu0 (!%p178_p3), %v2744_v3  ;;  %v1145_v15 = vld [vmem:[%s4340_s1 + $0x198] sm:$0xff] (!%p178_p3)  ;;  %p256_p8 = scmp.ge.s32.totalorder (!%p178_p3), %s3077_s5, 0  ;;  %p257_p9 = scmp.lt.s32.totalorder (!%p178_p3), %s3077_s5, 16 }
   0xd   : > { %v2778_v12 = vpack.c.bf16 (!%p178_p3), %v1127_v10, %v1126_v9  ;;  %2777 = vmatprep.subr.bf16.mxu1 (!%p178_p3), %v2776_v7  ;;  %v2780_v17 = vpack.c.bf16 (!%p178_p3), %v1145_v15, %v1144_v14  ;;  %v1096_v18 = vld [vmem:[%s4340_s1 + $0x10] sm:$0xff] (!%p178_p3)  ;;  %v1097_v19 = vld [vmem:[%s4340_s1 + $0x18] sm:$0xff] (!%p178_p3)  ;;  %v1114_v23 = vld [vmem:[%s4340_s1 + $0xa0] sm:$0xff] (!%p178_p3)  ;;  %p231_p11 = scmp.lt.s32.totalorder (!%p178_p3), %s3065_s25, 15  ;;  %p265_p12 = scmp.gt.s32.totalorder (!%p178_p3), %s3065_s25, 0 }
   0xe   : > { %2747 = vmatpush3.bf16.msra.mxu0 (!%p178_p3), %v2746_v8  ;;  %v1128_v20 = vld [vmem:[%s4340_s1 + $0x110] sm:$0xff] (!%p178_p3)  ;;  %v2750_v21 = vpack.c.bf16 (!%p178_p3), %v1097_v19, %v1096_v18  ;;  %v1129_v22 = vld [vmem:[%s4340_s1 + $0x118] sm:$0xff] (!%p178_p3)  ;;  %v1115_v24 = vld [vmem:[%s4340_s1 + $0xa8] sm:$0xff] (!%p178_p3)  ;;  %p3149_p10 = pnand (!%p178_p3), %p257_p9, %p256_p8  ;;  %p273_p13 = scmp.ge.s32.totalorder (!%p178_p3), %s3065_s25, 0 }
   0xf   : > { %2779 = vmatpush3.bf16.msra.mxu1 (!%p178_p3), %v2778_v12  ;;  %2749 = vmatprep.subr.bf16.mxu0 (!%p178_p3), %v2748_v16  ;;  %v2782_v25 = vpack.c.bf16 (!%p178_p3), %v1129_v22, %v1128_v20  ;;  %v2752_v26 = vpack.c.bf16 (!%p178_p3), %v1115_v24, %v1114_v23  ;;  %v1146_v27 = vld [vmem:[%s4340_s1 + $0x1a0] sm:$0xff] (!%p178_p3)  ;;  %v1147_v28 = vld [vmem:[%s4340_s1 + $0x1a8] sm:$0xff] (!%p178_p3)  ;;  %v1116_v35 = vld [vmem:[%s4340_s1 + $0xb0] sm:$0xff] (!%p178_p3)  ;;  %p274_p0 = scmp.lt.s32.totalorder (!%p178_p3), %s3065_s25, 16  ;;  %s3361_s26 = sadd.s32 (!%p178_p3), 2, %s3065_s25 }
  0x10   : > { %s4366_s13 = smov (!%p216_p5, %s2986_s13), 1  ;;  %2781 = vmatprep.subr.bf16.mxu1 %v2780_v17  ;;  %v1098_v29 = vld [vmem:[%s4340_s1 + $0x20] sm:$0xff]  ;;  %v2784_v30 = vpack.c.bf16 %v1147_v28, %v1146_v27  ;;  %v1099_v31 = vld [vmem:[%s4340_s1 + $0x28] sm:$0xff]  ;;  %v1117_v36 = vld [vmem:[%s4340_s1 + $0xb8] sm:$0xff]  ;;  %p2189_p8 = scmp.lt.s32.totalorder %s3361_s26, 15 }
  0x11   : > { %s249_s27 = scalar_select %p248_p6, %s3077_s5, 0  ;;  %v1130_v32 = vld [vmem:[%s4340_s1 + $0x120] sm:$0xff]  ;;  %v1131_v33 = vld [vmem:[%s4340_s1 + $0x128] sm:$0xff]  ;;  %v2754_v34 = vpack.c.bf16 %v1099_v31, %v1098_v29  ;;  %v1148_v37 = vld [vmem:[%s4340_s1 + $0x1b0] sm:$0xff]  ;;  %v2756_v39 = vpack.c.bf16 %v1117_v36, %v1116_v35 }
  0x12   : > { %s2242_s8 = sshll.u32 %s4366_s13, 8  ;;  %2751 = vmatpush3.bf16.msra.mxu0 %v2750_v21  ;;  %v2786_v38 = vpack.c.bf16 %v1131_v33, %v1130_v32  ;;  %v1149_v40 = vld [vmem:[%s4340_s1 + $0x1b8] sm:$0xff]  ;;  %v1100_v41 = vld [vmem:[%s4340_s1 + $0x30] sm:$0xff]  ;;  %v1118_v46 = vld [vmem:[%s4340_s1 + $0xc0] sm:$0xff]  ;;  %s2165_s22 = sshll.u32 %s4366_s13, 5 }
  0x13   : > { %s4368_s27 = smov (!%p2168_p7, %s249_s27), 15  ;;  %2783 = vmatpush3.bf16.msra.mxu1 %v2782_v25  ;;  %2753 = vmatprep.subr.bf16.mxu0 %v2752_v26  ;;  %v1101_v42 = vld [vmem:[%s4340_s1 + $0x38] sm:$0xff]  ;;  %v2788_v43 = vpack.c.bf16 %v1149_v40, %v1148_v37  ;;  %v1132_v44 = vld [vmem:[%s4340_s1 + $0x130] sm:$0xff]  ;;  %s3189_s9 = scalar_lea.vmem %s4339_s0, %s2242_s8  ;;  %v1119_v47 = vld [vmem:[%s4340_s1 + $0xc8] sm:$0xff] }
  0x14   : > { %s2174_s5 = scalar_select %p3149_p10, 0, 1  ;;  %2785 = vmatprep.subr.bf16.mxu1 %v2784_v30  ;;  %v1133_v45 = vld [vmem:[%s4340_s1 + $0x138] sm:$0xff]  ;;  %v1150_v48 = vld [vmem:[%s4340_s1 + $0x1c0] sm:$0xff]  ;;  %v1151_v49 = vld [vmem:[%s4340_s1 + $0x1c8] sm:$0xff]  ;;  %v2758_v50 = vpack.c.bf16 %v1101_v42, %v1100_v41  ;;  %v2760_v52 = vpack.c.bf16 %v1119_v47, %v1118_v46 }
  0x15   : > { %s2173_s6 = sshll.u32 %s4368_s27, 4  ;;  %v2790_v51 = vpack.c.bf16 %v1133_v45, %v1132_v44  ;;  %v1102_v53 = vld [vmem:[%s4340_s1 + $0x40] sm:$0xff]  ;;  %v1103_v54 = vld [vmem:[%s4340_s1 + $0x48] sm:$0xff]  ;;  %v2792_v56 = vpack.c.bf16 %v1151_v49, %v1150_v48  ;;  %v1120_v58 = vld [vmem:[%s4340_s1 + $0xd0] sm:$0xff]  ;;  %p3256_p1 = pnand %p274_p0, %p273_p13 }
  0x16   : > { %s3202_s7 = scvt.s32.f32 %s2174_s5  ;;  %2755 = vmatpush3.bf16.msra.mxu0 %v2754_v34  ;;  %v1134_v55 = vld [vmem:[%s4340_s1 + $0x140] sm:$0xff]  ;;  %v1135_v57 = vld [vmem:[%s4340_s1 + $0x148] sm:$0xff]  ;;  %v1121_v59 = vld [vmem:[%s4340_s1 + $0xd8] sm:$0xff]  ;;  %v2762_v62 = vpack.c.bf16 %v1103_v54, %v1102_v53  ;;  %s3238_s27 = scalar_lea.vmem %s3189_s9, %s2173_s6 }
  0x17   : > { %s232_s8 = scalar_select %p231_p11, %s3065_s25, 15  ;;  %2787 = vmatpush3.bf16.msra.mxu1 %v2786_v38  ;;  %2757 = vmatprep.subr.bf16.mxu0 %v2756_v39  ;;  %v1152_v60 = vld [vmem:[%s4340_s1 + $0x1d0] sm:$0xff]  ;;  %v1153_v61 = vld [vmem:[%s4340_s1 + $0x1d8] sm:$0xff]  ;;  %v2794_v63 = vpack.c.bf16 %v1135_v57, %v1134_v55  ;;  %v2764_v0 = vpack.c.bf16 %v1121_v59, %v1120_v58  ;;  %v1122_v6 = vld [vmem:[%s4340_s1 + $0xe0] sm:$0xff] }
  0x18   : > { %2789 = vmatprep.subr.bf16.mxu1 %v2788_v43  ;;  %v1104_v1 = vld [vmem:[%s4340_s1 + $0x50] sm:$0xff]  ;;  %v1105_v2 = vld [vmem:[%s4340_s1 + $0x58] sm:$0xff]  ;;  %v2796_v4 = vpack.c.bf16 %v1153_v61, %v1152_v60  ;;  %v1123_v7 = vld [vmem:[%s4340_s1 + $0xe8] sm:$0xff]  ;;  %s266_s11 = scalar_select %p265_p12, %s3065_s25, 0  ;;  %v262_v10 = vstv %s3202_s7 }
  0x19   : > { %s2164_s4 = sshll.u32 %s232_s8, 1  ;;  %s3243_s8 = scalar_lea.vmem %s3189_s9, %s2259_s19  ;;  %v1136_v3 = vld [vmem:[%s4340_s1 + $0x150] sm:$0xff]  ;;  %v1137_v5 = vld [vmem:[%s4340_s1 + $0x158] sm:$0xff]  ;;  %v1154_v8 = vld [vmem:[%s4340_s1 + $0x1e0] sm:$0xff]  ;;  %v2766_v11 = vpack.c.bf16 %v1105_v2, %v1104_v1  ;;  %v2768_v16 = vpack.c.bf16 %v1123_v7, %v1122_v6 }
  0x1a   : > { %s3234_s21 = sadd.s32 %s2165_s22, %s2164_s4  ;;  %2759 = vmatpush3.bf16.msra.mxu0 %v2758_v50  ;;  %s3261_s19 = sadd.s32 1, %s3065_s25  ;;  %v1155_v9 = vld [vmem:[%s4340_s1 + $0x1e8] sm:$0xff]  ;;  %v1106_v12 = vld [vmem:[%s4340_s1 + $0x60] sm:$0xff]  ;;  %v2798_v15 = vpack.c.bf16 %v1137_v5, %v1136_v3  ;;  %v1124_v18 = vld [vmem:[%s4340_s1 + $0xf0] sm:$0xff] }
  0x1b   : > { %2791 = vmatpush3.bf16.msra.mxu1 %v2790_v51  ;;  %2761 = vmatprep.subr.bf16.mxu0 %v2760_v52  ;;  %s2181_s24 = scalar_select %p3256_p1, 0, 1  ;;  %v1107_v13 = vld [vmem:[%s4340_s1 + $0x68] sm:$0xff]  ;;  %v1138_v14 = vld [vmem:[%s4340_s1 + $0x160] sm:$0xff]  ;;  %v2800_v20 = vpack.c.bf16 %v1155_v9, %v1154_v8  ;;  %v1125_v21 = vld [vmem:[%s4340_s1 + $0xf8] sm:$0xff] }
  0x1c   : > { %2793 = vmatprep.subr.bf16.mxu1 %v2792_v56  ;;  %s4370_s11 = smov (!%p231_p11, %s266_s11), 15  ;;  %v1139_v17 = vld [vmem:[%s4340_s1 + $0x168] sm:$0xff]  ;;  %v254_v19 = vld [vmem:[%s3238_s27] sm:$0xff]  ;;  %p283_p2 = scmp.gt.s32.totalorder %s3261_s19, 0  ;;  %v1156_v25 = vld [vmem:[%s4340_s1 + $0x1f0] sm:$0xff]  ;;  %v2770_v29 = vpack.c.bf16 %v1107_v13, %v1106_v12  ;;  %v2772_v32 = vpack.c.bf16 %v1125_v21, %v1124_v18 }
  0x1d   : > { %v255_v22 = vld [vmem:[%s3238_s27 + $0x8] sm:$0xff]  ;;  %v3307_v23 = vmul.f32 %v262_v10, %v254_v19  ;;  %v3310_v24 = vld [vmem:[%s3243_s8] sm:$0xff]  ;;  %s2180_s23 = sshll.u32 %s4370_s11, 4  ;;  %v1157_v26 = vld [vmem:[%s4340_s1 + $0x1f8] sm:$0xff]  ;;  %s3324_s27 = scvt.s32.f32 %s2181_s24  ;;  %v2802_v31 = vpack.c.bf16 %v1139_v17, %v1138_v14 }
  0x1e   : > { %2763 = vmatpush3.bf16.msra.mxu0 %v2762_v62  ;;  %v586_v27 = vrot.slane %v3310_v24, 7  ;;  %vm3320_vm1 = vmneg %vm406_vm0  ;;  %p2182_p3 = scmp.lt.s32.totalorder %s3261_s19, 15  ;;  %v1108_v30 = vld [vmem:[%s4340_s1 + $0x70] sm:$0xff]  ;;  %s3332_s30 = scalar_lea.vmem %s3189_s9, %s2180_s23  ;;  %v1109_v33 = vld [vmem:[%s4340_s1 + $0x78] sm:$0xff]  ;;  %v3344_v36 = vmul.f32 %v262_v10, %v255_v22  ;;  %v2804_v37 = vpack.c.bf16 %v1157_v26, %v1156_v25 }
  0x1f   : > { %2795 = vmatpush3.bf16.msra.mxu1 %v2794_v63  ;;  %2765 = vmatprep.subr.bf16.mxu0 %v2764_v0  ;;  %p291_p4 = scmp.ge.s32.totalorder %s3261_s19, 0  ;;  %v1140_v34 = vld [vmem:[%s4340_s1 + $0x170] sm:$0xff]  ;;  %v1141_v35 = vld [vmem:[%s4340_s1 + $0x178] sm:$0xff]  ;;  %v1174_v38 = vld [vmem:[%s4340_s1 + $0x280] sm:$0xff]  ;;  %p292_p5 = scmp.lt.s32.totalorder %s3261_s19, 16  ;;  %v2774_v42 = vpack.c.bf16 %v1109_v33, %v1108_v30  ;;  %v488_v46 = vrot.slane %v3307_v23, 1  ;;  %v279_v52 = vstv %s3324_s27 }
  0x20   : > { %2797 = vmatprep.subr.bf16.mxu1 %v2796_v4  ;;  %1309 = vmatprep.mubr.f32.mxu0 %v3307_v23  ;;  %s284_s20 = scalar_select %p283_p2, %s3261_s19, 0  ;;  %v1175_v39 = vld [vmem:[%s4340_s1 + $0x288] sm:$0xff]  ;;  %v1206_v40 = vld [vmem:[%s4340_s1 + $0x380] sm:$0xff]  ;;  %v2806_v43 = vpack.c.bf16 %v1141_v35, %v1140_v34  ;;  %v489_v47 = vrot.slane %v3344_v36, 1  ;;  %v407_v56 = vrot.slane %v3307_v23, 7  ;;  %v1176_v58 = vld [vmem:[%s4340_s1 + $0x290] sm:$0xff] }
  0x21   : > { %2281 = vmatprep.mubr.msk.f32.mxu1 %vm3320_vm1, %v586_v27  ;;  %v1207_v41 = vld [vmem:[%s4340_s1 + $0x388] sm:$0xff]  ;;  %v1158_v44 = vld [vmem:[%s4340_s1 + $0x200] sm:$0xff]  ;;  %p3379_p6 = pnand %p292_p5, %p291_p4  ;;  %p301_p7 = scmp.gt.s32.totalorder %s3361_s26, 0  ;;  %v2808_v48 = vpack.c.bf16 %v1175_v39, %v1174_v38  ;;  %v1177_v59 = vld [vmem:[%s4340_s1 + $0x298] sm:$0xff]  ;;  %v408_v61 = vrot.slane %v3344_v36, 7 }
  0x22   : > { %2767 = vmatpush3.bf16.msra.mxu0 %v2766_v11  ;;  %s4372_s20 = smov (!%p2182_p3, %s284_s20), 15  ;;  %v3375_v45 = vld [vmem:[%s3243_s8 + $0x8] sm:$0xff]  ;;  %v271_v50 = vld [vmem:[%s3332_s30] sm:$0xff]  ;;  %v2840_v53 = vpack.c.bf16 %v1207_v41, %v1206_v40  ;;  %v1208_v0 = vld [vmem:[%s4340_s1 + $0x390] sm:$0xff]  ;;  %v490_v2 = vsel %vm487_vm2, %v488_v46, %v489_v47  ;;  %p309_p9 = scmp.ge.s32.totalorder %s3361_s26, 0  ;;  %v2812_v6 = vpack.c.bf16 %v1177_v59, %v1176_v58 }
  0x23   : > { %2799 = vmatpush3.bf16.msra.mxu1 %v2798_v15  ;;  %2769 = vmatprep.subr.bf16.mxu0 %v2768_v16  ;;  %v1159_v49 = vld [vmem:[%s4340_s1 + $0x208] sm:$0xff]  ;;  %s2187_s19 = sshll.u32 %s4372_s20, 4  ;;  %v1190_v54 = vld [vmem:[%s4340_s1 + $0x300] sm:$0xff]  ;;  %v587_v57 = vrot.slane %v3375_v45, 7  ;;  %v3413_v62 = vmul.f32 %v279_v52, %v271_v50  ;;  %v1209_v1 = vld [vmem:[%s4340_s1 + $0x398] sm:$0xff]  ;;  %p310_p10 = scmp.lt.s32.totalorder %s3361_s26, 16  ;;  %v409_v15 = vsel %vm406_vm0, %v407_v56, %v408_v61 }
  0x24   : > { %2801 = vmatprep.subr.bf16.mxu1 %v2800_v20  ;;  %v272_v51 = vld [vmem:[%s3332_s30 + $0x8] sm:$0xff]  ;;  %s3399_s28 = scalar_lea.vmem %s3189_s9, %s2187_s19  ;;  %v2810_v60 = vpack.c.bf16 %v1159_v49, %v1158_v44  ;;  %v3430_v4 = vld [vmem:[%s3243_s8 + $0x10] sm:$0xff]  ;;  %v1161_v7 = vld [vmem:[%s4340_s1 + $0x218] sm:$0xff]  ;;  %v2844_v11 = vpack.c.bf16 %v1209_v1, %v1208_v0  ;;  %s3467_s7 = sadd.s32 3, %s3065_s25 }
  0x25   : > { %v1191_v55 = vld [vmem:[%s4340_s1 + $0x308] sm:$0xff]  ;;  %s2188_s29 = scalar_select %p3379_p6, 0, 1  ;;  %v3415_v63 = vmul.f32 %v279_v52, %v272_v51  ;;  %v1160_v5 = vld [vmem:[%s4340_s1 + $0x210] sm:$0xff]  ;;  %v1193_v9 = vld [vmem:[%s4340_s1 + $0x318] sm:$0xff]  ;;  %v588_v10 = vsel %vm406_vm0, %v586_v27, %v587_v57  ;;  %v491_v16 = vrot.slane %v3413_v62, 1 }
  0x26   : > { %2771 = vmatpush3.bf16.msra.mxu0 %v2770_v29  ;;  %s302_s12 = scalar_select %p301_p7, %s3361_s26, 0  ;;  %v2842_v3 = vpack.c.bf16 %v1191_v55, %v1190_v54  ;;  %v1192_v8 = vld [vmem:[%s4340_s1 + $0x310] sm:$0xff]  ;;  %v3457_v12 = vld [vmem:[%s3243_s8 + $0x18] sm:$0xff]  ;;  %v1178_v13 = vld [vmem:[%s4340_s1 + $0x2a0] sm:$0xff]  ;;  %v589_v20 = vrot.slane %v3430_v4, 7  ;;  %v2814_v21 = vpack.c.bf16 %v1161_v7, %v1160_v5  ;;  %v410_v33 = vrot.slane %v3413_v62, 7 }
  0x27   : > { %2803 = vmatpush3.bf16.msra.mxu1 %v2802_v31  ;;  %2773 = vmatprep.subr.bf16.mxu0 %v2772_v32  ;;  %s3435_s5 = scvt.s32.f32 %s2188_s29  ;;  %v1179_v14 = vld [vmem:[%s4340_s1 + $0x2a8] sm:$0xff]  ;;  %v492_v17 = vrot.slane %v3415_v63, 1  ;;  %v1210_v18 = vld [vmem:[%s4340_s1 + $0x3a0] sm:$0xff]  ;;  %p319_p11 = scmp.gt.s32.totalorder %s3467_s7, 0  ;;  %v2846_v25 = vpack.c.bf16 %v1193_v9, %v1192_v8  ;;  %v590_v26 = vrot.slane %v3457_v12, 7  ;;  %v1181_v38 = vld [vmem:[%s4340_s1 + $0x2b8] sm:$0xff] }
  0x28   : > { %2805 = vmatprep.subr.bf16.mxu1 %v2804_v37  ;;  %s4374_s12 = smov (!%p2189_p8, %s302_s12), 15  ;;  %v1211_v19 = vld [vmem:[%s4340_s1 + $0x3a8] sm:$0xff]  ;;  %v289_v22 = vld [vmem:[%s3399_s28] sm:$0xff]  ;;  %p3488_p12 = pnand %p310_p10, %p309_p9  ;;  %v2816_v29 = vpack.c.bf16 %v1179_v14, %v1178_v13  ;;  %v1180_v37 = vld [vmem:[%s4340_s1 + $0x2b0] sm:$0xff]  ;;  %v411_v40 = vrot.slane %v3415_v63, 7 }
  0x29   : > { %s2194_s22 = sshll.u32 %s4374_s12, 4  ;;  %v290_v23 = vld [vmem:[%s3399_s28 + $0x8] sm:$0xff]  ;;  %v297_v27 = vstv %s3435_s5  ;;  %v1162_v30 = vld [vmem:[%s4340_s1 + $0x220] sm:$0xff]  ;;  %v2848_v34 = vpack.c.bf16 %v1211_v19, %v1210_v18  ;;  %v493_v39 = vsel %vm487_vm2, %v491_v16, %v492_v17  ;;  %v1212_v41 = vld [vmem:[%s4340_s1 + $0x3b0] sm:$0xff]  ;;  %p2196_p13 = scmp.lt.s32.totalorder %s3467_s7, 15  ;;  %v2820_v50 = vpack.c.bf16 %v1181_v38, %v1180_v37 }
  0x2a   : > { %2775 = vmatpush3.bf16.msra.mxu0 %v2774_v42  ;;  %v1163_v31 = vld [vmem:[%s4340_s1 + $0x228] sm:$0xff]  ;;  %v1194_v32 = vld [vmem:[%s4340_s1 + $0x320] sm:$0xff]  ;;  %s3504_s11 = scalar_lea.vmem %s3189_s9, %s2194_s22  ;;  %v1213_v42 = vld [vmem:[%s4340_s1 + $0x3b8] sm:$0xff]  ;;  %v3542_v44 = vmul.f32 %v297_v27, %v290_v23  ;;  %p327_p0 = scmp.ge.s32.totalorder %s3467_s7, 0  ;;  %v412_v58 = vsel %vm406_vm0, %v410_v33, %v411_v40 }
  0x2b   : > { %2807 = vmatpush3.bf16.msra.mxu1 %v2806_v43  ;;  %2809 = vmatprep.subr.bf16.mxu0 %v2808_v48  ;;  %v1195_v35 = vld [vmem:[%s4340_s1 + $0x328] sm:$0xff]  ;;  %s2195_s24 = scalar_select %p3488_p12, 0, 1  ;;  %v3540_v43 = vld [vmem:[%s3243_s8 + $0x20] sm:$0xff]  ;;  %v2818_v46 = vpack.c.bf16 %v1163_v31, %v1162_v30  ;;  %v591_v48 = vsel %vm406_vm0, %v589_v20, %v590_v26  ;;  %v1164_v51 = vld [vmem:[%s4340_s1 + $0x230] sm:$0xff]  ;;  %v2852_v54 = vpack.c.bf16 %v1213_v42, %v1212_v41 }
  0x2c   : > { %2841 = vmatprep.subr.bf16.mxu1 %v2840_v53  ;;  %s320_s27 = scalar_select %p319_p11, %s3467_s7, 0  ;;  %v2850_v49 = vpack.c.bf16 %v1195_v35, %v1194_v32  ;;  %v1165_v52 = vld [vmem:[%s4340_s1 + $0x238] sm:$0xff]  ;;  %v3560_v53 = vld [vmem:[%s4340_s1 + $0x330] sm:$0xff]  ;;  %v1183_v57 = vld [vmem:[%s4340_s1 + $0x2c8] sm:$0xff]  ;;  %v592_v59 = vrot.slane %v3540_v43, 7  ;;  %v3597_v0 = vrot.slane %v3542_v44, 1 }
  0x2d   : > { %2265 = vmatmul.mubr.msk.f32.vlgmr.msra.gmra.mrb[0].mxu0 %vm3320_vm1, %v407_v56  ;;  %s3547_s30 = scvt.s32.f32 %s2195_s24  ;;  %p328_p1 = scmp.lt.s32.totalorder %s3467_s7, 16  ;;  %v1197_v55 = vld [vmem:[%s4340_s1 + $0x338] sm:$0xff]  ;;  %v1182_v56 = vld [vmem:[%s4340_s1 + $0x2c0] sm:$0xff]  ;;  %v1215_v61 = vld [vmem:[%s4340_s1 + $0x3c8] sm:$0xff]  ;;  %v2822_v5 = vpack.c.bf16 %v1165_v52, %v1164_v51  ;;  %v414_v19 = vrot.slane %v3542_v44, 7 }
  0x2e   : > { %1455 = vmatmul.mubr.f32.vlgmr.msra.gmra.mrb[0].mxu1 %v490_v2  ;;  %2811 = vmatpush3.bf16.msra.mxu0 %v2810_v60  ;;  %s4376_s27 = smov (!%p2196_p13, %s320_s27), 15  ;;  %v1214_v60 = vld [vmem:[%s4340_s1 + $0x3c0] sm:$0xff]  ;;  %s3593_s5 = sadd.s32 4, %s3065_s25  ;;  %v2854_v7 = vpack.c.bf16 %v1197_v55, %v3560_v53  ;;  %v2824_v8 = vpack.c.bf16 %v1183_v57, %v1182_v56  ;;  %v1184_v16 = vld [vmem:[%s4340_s1 + $0x2d0] sm:$0xff]  ;;  %v1185_v18 = vld [vmem:[%s4340_s1 + $0x2d8] sm:$0xff] }
  0x2f   : > { %2843 = vmatpush3.bf16.msra.mxu1 %v2842_v3  ;;  %1314 = vmatprep.mubr.f32.mxu0 %v3344_v36  ;;  %v3537_v36 = vmul.f32 %v297_v27, %v289_v22  ;;  %p3582_p2 = pnand %p328_p1, %p327_p0  ;;  %v307_v1 = vld [vmem:[%s3504_s11] sm:$0xff]  ;;  %v315_v2 = vstv %s3547_s30  ;;  %v308_v3 = vld [vmem:[%s3504_s11 + $0x8] sm:$0xff]  ;;  %s2201_s7 = sshll.u32 %s4376_s27, 4  ;;  %v2856_v14 = vpack.c.bf16 %v1215_v61, %v1214_v60  ;;  %v1216_v22 = vld [vmem:[%s4340_s1 + $0x3d0] sm:$0xff]  ;;  %v2828_v30 = vpack.c.bf16 %v1185_v18, %v1184_v16 }
  0x30   : > { %1459 = vmatprep.mubr.f32.mxu1 %v588_v10  ;;  %2813 = vmatprep.subr.bf16.mxu0 %v2812_v6  ;;  %p337_p3 = scmp.gt.s32.totalorder %s3593_s5, 0  ;;  %s3606_s29 = scalar_lea.vmem %s3189_s9, %s2201_s7  ;;  %v1166_v9 = vld [vmem:[%s4340_s1 + $0x240] sm:$0xff]  ;;  %v1167_v10 = vld [vmem:[%s4340_s1 + $0x248] sm:$0xff]  ;;  %v3657_v23 = vld [vmem:[%s3243_s8 + $0x30] sm:$0xff] }
  0x31   : > { %1315 = vmatmul.mubr.f32.gmra.mrb[2].mxu0 %v409_v15  ;;  %2845 = vmatprep.subr.bf16.mxu1 %v2844_v11  ;;  %v1198_v11 = vld [vmem:[%s4340_s1 + $0x340] sm:$0xff]  ;;  %p2203_p4 = scmp.lt.s32.totalorder %s3593_s5, 15  ;;  %v3619_v13 = vrot.slane %v3537_v36, 7  ;;  %v1199_v15 = vld [vmem:[%s4340_s1 + $0x348] sm:$0xff]  ;;  %v2826_v26 = vpack.c.bf16 %v1167_v10, %v1166_v9  ;;  %p345_p5 = scmp.ge.s32.totalorder %s3593_s5, 0  ;;  %v1168_v31 = vld [vmem:[%s4340_s1 + $0x250] sm:$0xff] }
  0x32   : > { %2282 = vmatmul.mubr.msk.f32.gmra.mrb[2].mxu1 %vm487_vm2, %v489_v47  ;;  %1319 = vmatprep.mubr.f32.mxu0 %v3413_v62  ;;  %v3545_v47 = vld [vmem:[%s3243_s8 + $0x28] sm:$0xff]  ;;  %v494_v62 = vrot.slane %v3537_v36, 1  ;;  %s2202_s10 = scalar_select %p3582_p2, 0, 1  ;;  %v1169_v32 = vld [vmem:[%s4340_s1 + $0x258] sm:$0xff]  ;;  %v1186_v37 = vld [vmem:[%s4340_s1 + $0x2e0] sm:$0xff] }
  0x33   : > { %2284 = vmatprep.mubr.msk.f32.mxu1 %vm3320_vm1, %v589_v20  ;;  %2815 = vmatpush3.bf16.msra.mxu0 %v2814_v21  ;;  %v593_v6 = vrot.slane %v3545_v47, 7  ;;  %v3637_v20 = vmul.f32 %v315_v2, %v307_v1  ;;  %v3639_v21 = vmul.f32 %v315_v2, %v308_v3  ;;  %s338_s6 = scalar_select %p337_p3, %s3593_s5, 0  ;;  %v1201_v35 = vld [vmem:[%s4340_s1 + $0x358] sm:$0xff]  ;;  %v1187_v38 = vld [vmem:[%s4340_s1 + $0x2e8] sm:$0xff]  ;;  %v1218_v42 = vld [vmem:[%s4340_s1 + $0x3e0] sm:$0xff]  ;;  %v2830_v51 = vpack.c.bf16 %v1169_v32, %v1168_v31 }
  0x34   : > { %2847 = vmatpush3.bf16.msra.mxu1 %v2846_v25  ;;  %2817 = vmatprep.subr.bf16.mxu0 %v2816_v29  ;;  %v3660_v25 = vld [vmem:[%s3243_s8 + $0x38] sm:$0xff]  ;;  %s3662_s13 = scvt.s32.f32 %s2202_s10  ;;  %v2858_v29 = vpack.c.bf16 %v1199_v15, %v1198_v11  ;;  %p346_p6 = scmp.lt.s32.totalorder %s3593_s5, 16  ;;  %v2832_v55 = vpack.c.bf16 %v1187_v38, %v1186_v37  ;;  %v1170_v56 = vld [vmem:[%s4340_s1 + $0x260] sm:$0xff]  ;;  %v1171_v57 = vld [vmem:[%s4340_s1 + $0x268] sm:$0xff] }
  0x35   : > { %2267 = vmatmul.mubr.msk.f32.gmra.mrb[4].mxu0 %vm3320_vm1, %v410_v33  ;;  %2849 = vmatprep.subr.bf16.mxu1 %v2848_v34  ;;  %v594_v27 = vsel %vm406_vm0, %v592_v59, %v593_v6  ;;  %s4378_s6 = smov (!%p2203_p4, %s338_s6), 15  ;;  %v1200_v33 = vld [vmem:[%s4340_s1 + $0x350] sm:$0xff]  ;;  %s3687_s28 = sadd.s32 5, %s3065_s25  ;;  %v497_v40 = vrot.slane %v3637_v20, 1  ;;  %v3703_v41 = vrot.slane %v3639_v21, 1  ;;  %v596_v52 = vrot.slane %v3660_v25, 7 }
  0x36   : > { %1465 = vmatmul.mubr.f32.gmra.mrb[4].mxu1 %v493_v39  ;;  %1324 = vmatprep.mubr.f32.mxu0 %v3415_v63  ;;  %v1217_v63 = vld [vmem:[%s4340_s1 + $0x3d8] sm:$0xff]  ;;  %v3699_v39 = vsel %vm406_vm0, %v3619_v13, %v414_v19  ;;  %s2208_s4 = sshll.u32 %s4378_s6, 4  ;;  %p355_p7 = scmp.gt.s32.totalorder %s3687_s28, 0  ;;  %v333_v53 = vstv %s3662_s13  ;;  %v1203_v61 = vld [vmem:[%s4340_s1 + $0x368] sm:$0xff]  ;;  %v417_v3 = vrot.slane %v3639_v21, 7  ;;  %v2834_v11 = vpack.c.bf16 %v1171_v57, %v1170_v56  ;;  %v1172_v18 = vld [vmem:[%s4340_s1 + $0x270] sm:$0xff] }
  0x37   : > { %1469 = vmatprep.mubr.f32.mxu1 %v591_v48  ;;  %2819 = vmatpush3.bf16.msra.mxu0 %v2818_v46  ;;  %v2860_v34 = vpack.c.bf16 %v1217_v63, %v1216_v22  ;;  %v1219_v46 = vld [vmem:[%s4340_s1 + $0x3e8] sm:$0xff]  ;;  %v595_v48 = vrot.slane %v3657_v23, 7  ;;  %p3720_p8 = pnand %p346_p6, %p345_p5  ;;  %s3727_s6 = scalar_lea.vmem %s3189_s9, %s2208_s4  ;;  %v1189_v1 = vld [vmem:[%s4340_s1 + $0x2f8] sm:$0xff]  ;;  %v3758_v2 = vsel %vm487_vm2, %v497_v40, %v3703_v41  ;;  %v1204_v22 = vld [vmem:[%s4340_s1 + $0x370] sm:$0xff] }
  0x38   : > { %2851 = vmatpush3.bf16.msra.mxu1 %v2850_v49  ;;  %2821 = vmatprep.subr.bf16.mxu0 %v2820_v50  ;;  %v325_v49 = vld [vmem:[%s3606_s29] sm:$0xff]  ;;  %v326_v50 = vld [vmem:[%s3606_s29 + $0x8] sm:$0xff]  ;;  %v2864_v60 = vpack.c.bf16 %v1219_v46, %v1218_v42  ;;  %s356_s27 = scalar_select %p355_p7, %s3687_s28, 0  ;;  %v1221_v6 = vld [vmem:[%s4340_s1 + $0x3f8] sm:$0xff] }
  0x39   : > { %1325 = vmatmul.mubr.f32.gmra.mrb[6].mxu0 %v412_v58  ;;  %2853 = vmatprep.subr.bf16.mxu1 %v2852_v54  ;;  %v2862_v54 = vpack.c.bf16 %v1201_v35, %v1200_v33  ;;  %v1202_v58 = vld [vmem:[%s4340_s1 + $0x360] sm:$0xff]  ;;  %s2209_s13 = scalar_select %p3720_p8, 0, 1  ;;  %v3777_v9 = vmul.f32 %v333_v53, %v326_v50  ;;  %v3780_v10 = vld [vmem:[%s3243_s8 + $0x48] sm:$0xff]  ;;  %v1173_v19 = vld [vmem:[%s4340_s1 + $0x278] sm:$0xff] }
  0x3a   : > { %2285 = vmatmul.mubr.msk.f32.gmra.mrb[6].mxu1 %vm487_vm2, %v492_v17  ;;  %1329 = vmatprep.mubr.f32.mxu0 %v3537_v36  ;;  %v3654_v17 = vsel %vm487_vm2, %v494_v62, %v3597_v0  ;;  %v1188_v62 = vld [vmem:[%s4340_s1 + $0x2f0] sm:$0xff]  ;;  %p2210_p9 = scmp.lt.s32.totalorder %s3687_s28, 15  ;;  %p363_p10 = scmp.ge.s32.totalorder %s3687_s28, 0  ;;  %v2866_v15 = vpack.c.bf16 %v1203_v61, %v1202_v58  ;;  %v599_v35 = vrot.slane %v3780_v10, 7  ;;  %v343_v37 = vld [vmem:[%s3727_s6] sm:$0xff]  ;;  %v344_v40 = vld [vmem:[%s3727_s6 + $0x8] sm:$0xff] }
  0x3b   : > { %2287 = vmatprep.mubr.msk.f32.mxu1 %vm3320_vm1, %v592_v59  ;;  %2823 = vmatpush3.bf16.msra.mxu0 %v2822_v5  ;;  %v3740_v59 = vrot.slane %v3637_v20, 7  ;;  %v1220_v5 = vld [vmem:[%s4340_s1 + $0x3f0] sm:$0xff]  ;;  %s3782_s5 = scvt.s32.f32 %s2209_s13  ;;  %p364_p11 = scmp.lt.s32.totalorder %s3687_s28, 16  ;;  %v2836_v16 = vpack.c.bf16 %v1189_v1, %v1188_v62  ;;  %v3831_v33 = vrot.slane %v3777_v9, 1 }
  0x3c   : > { %2855 = vmatpush3.bf16.msra.mxu1 %v2854_v7  ;;  %2825 = vmatprep.subr.bf16.mxu0 %v2824_v8  ;;  %v3772_v7 = vmul.f32 %v333_v53, %v325_v49  ;;  %v3775_v8 = vld [vmem:[%s3243_s8 + $0x40] sm:$0xff]  ;;  %s4380_s27 = smov (!%p2210_p9, %s356_s27), 15  ;;  %v2868_v63 = vpack.c.bf16 %v1221_v6, %v1220_v5  ;;  %s3826_s29 = sadd.s32 6, %s3065_s25  ;;  %v420_v49 = vrot.slane %v3777_v9, 7 }
  0x3d   : > { %2269 = vmatmul.mubr.msk.f32.gmra.mrb[8].mxu0 %vm3320_vm1, %v3619_v13  ;;  %2857 = vmatprep.subr.bf16.mxu1 %v2856_v14  ;;  %v597_v14 = vsel %vm406_vm0, %v595_v48, %v596_v52  ;;  %p3821_p12 = pnand %p364_p11, %p363_p10  ;;  %v598_v31 = vrot.slane %v3775_v8, 7  ;;  %p373_p13 = scmp.gt.s32.totalorder %s3826_s29, 0  ;;  %v351_v38 = vstv %s3782_s5 }
  0x3e   : > { %1475 = vmatmul.mubr.f32.gmra.mrb[8].mxu1 %v3654_v17  ;;  %1334 = vmatprep.mubr.f32.mxu0 %v3542_v44  ;;  %v500_v32 = vrot.slane %v3772_v7, 1  ;;  %s2215_s28 = sshll.u32 %s4380_s27, 4  ;;  %p2217_p0 = scmp.lt.s32.totalorder %s3826_s29, 15  ;;  %v3863_v52 = vmul.f32 %v351_v38, %v344_v40 }
  0x3f   : > { %1479 = vmatprep.mubr.f32.mxu1 %v594_v27  ;;  %2827 = vmatpush3.bf16.msra.mxu0 %v2826_v26  ;;  %v1205_v26 = vld [vmem:[%s4340_s1 + $0x378] sm:$0xff]  ;;  %v1222_v27 = vld [vmem:[%s4340_s1 + $0x400] sm:$0xff]  ;;  %s2216_s22 = scalar_select %p3821_p12, 0, 1  ;;  %v600_v53 = vsel %vm406_vm0, %v598_v31, %v599_v35 }
  0x40   : > { %2859 = vmatpush3.bf16.msra.mxu1 %v2858_v29  ;;  %2829 = vmatprep.subr.bf16.mxu0 %v2828_v30  ;;  %v1223_v29 = vld [vmem:[%s4340_s1 + $0x408] sm:$0xff]  ;;  %v3815_v30 = vsel %vm406_vm0, %v3740_v59, %v417_v3  ;;  %v2870_v42 = vpack.c.bf16 %v1205_v26, %v1204_v22  ;;  %s374_s6 = scalar_select %p373_p13, %s3826_s29, 0  ;;  %v3859_v50 = vsel %vm487_vm2, %v500_v32, %v3831_v33  ;;  %v423_v6 = vrot.slane %v3863_v52, 7 }
  0x41   : > { %1335 = vmatmul.mubr.f32.gmra.mrb[10].mxu0 %v3699_v39  ;;  %2861 = vmatprep.subr.bf16.mxu1 %v2860_v34  ;;  %v2838_v34 = vpack.c.bf16 %v1173_v19, %v1172_v18  ;;  %v3840_v46 = vpack.c.bf16 %v1223_v29, %v1222_v27  ;;  %p381_p1 = scmp.ge.s32.totalorder %s3826_s29, 0  ;;  %s3870_s27 = scvt.s32.f32 %s2216_s22  ;;  %v3925_v18 = vld [vmem:[%s3243_s8 + $0x60] sm:$0xff]  ;;  %v3931_v19 = vld [vmem:[%s3243_s8 + $0x68] sm:$0xff] }
  0x42   : > { %2288 = vmatmul.mubr.msk.f32.gmra.mrb[10].mxu1 %vm487_vm2, %v3597_v0  ;;  %1339 = vmatprep.mubr.f32.mxu0 %v3637_v20  ;;  %s360_s5 = scalar_lea.vmem %s3189_s9, %s2215_s28  ;;  %p382_p2 = scmp.lt.s32.totalorder %s3826_s29, 16  ;;  %v605_v29 = vrot.slane %v3931_v19, 7 }
  0x43   : > { %2290 = vmatprep.mubr.msk.f32.mxu1 %vm3320_vm1, %v595_v48  ;;  %2831 = vmatpush3.bf16.msra.mxu0 %v2830_v51  ;;  %v3844_v48 = vrot.slane %v3772_v7, 7  ;;  %v3861_v51 = vmul.f32 %v351_v38, %v343_v37  ;;  %s4382_s6 = smov (!%p2217_p0, %s374_s6), 15  ;;  %v361_v62 = vld [vmem:[%s360_s5] sm:$0xff]  ;;  %v369_v1 = vstv %s3870_s27  ;;  %v362_v3 = vld [vmem:[%s360_s5 + $0x8] sm:$0xff]  ;;  %s4076_s24 = sadd.s32 7, %s3065_s25 }
  0x44   : > { %2863 = vmatpush3.bf16.msra.mxu1 %v2862_v54  ;;  %2833 = vmatprep.subr.bf16.mxu0 %v2832_v55  ;;  %v3868_v54 = vld [vmem:[%s3243_s8 + $0x50] sm:$0xff]  ;;  %v3877_v55 = vld [vmem:[%s3243_s8 + $0x58] sm:$0xff]  ;;  %p3897_p3 = pnand %p382_p2, %p381_p1  ;;  %s2222_s13 = sshll.u32 %s4382_s6, 4 }
  0x45   : > { %2271 = vmatmul.mubr.msk.f32.gmra.mrb[12].mxu0 %vm3320_vm1, %v3740_v59  ;;  %2865 = vmatprep.subr.bf16.mxu1 %v2864_v60  ;;  %v3886_v56 = vsel %vm406_vm0, %v3844_v48, %v420_v49  ;;  %v601_v57 = vrot.slane %v3868_v54, 7  ;;  %v503_v58 = vrot.slane %v3861_v51, 1  ;;  %v3893_v60 = vrot.slane %v3863_v52, 1  ;;  %s378_s7 = scalar_lea.vmem %s3189_s9, %s2222_s13  ;;  %p755_p4 = scmp.gt.s32.totalorder %s4076_s24, 0 }
  0x46   : > { %1485 = vmatmul.mubr.f32.gmra.mrb[12].mxu1 %v3758_v2  ;;  %1344 = vmatprep.mubr.f32.mxu0 %v3639_v21  ;;  %v602_v61 = vrot.slane %v3877_v55, 7  ;;  %v3905_v5 = vrot.slane %v3861_v51, 7  ;;  %s2223_s26 = scalar_select %p3897_p3, 0, 1 }
  0x47   : > { %1489 = vmatprep.mubr.f32.mxu1 %v597_v14  ;;  %2835 = vmatpush3.bf16.msra.mxu0 %v2834_v11  ;;  %v3917_v11 = vsel %vm487_vm2, %v503_v58, %v3893_v60  ;;  %v3919_v14 = vmul.f32 %v369_v1, %v361_v62  ;;  %p763_p5 = scmp.ge.s32.totalorder %s4076_s24, 0  ;;  %p764_p6 = scmp.lt.s32.totalorder %s4076_s24, 16 }
  0x48   : > { %2867 = vmatpush3.bf16.msra.mxu1 %v2866_v15  ;;  %2837 = vmatprep.subr.bf16.mxu0 %v2836_v16  ;;  %v3921_v15 = vmul.f32 %v369_v1, %v362_v3  ;;  %v603_v16 = vsel %vm406_vm0, %v601_v57, %v602_v61  ;;  %s386_s20 = scvt.s32.f32 %s2223_s26  ;;  %v3938_v22 = vsel %vm406_vm0, %v3905_v5, %v423_v6  ;;  %p2225_p7 = scmp.lt.s32.totalorder %s4076_s24, 15 }
  0x49   : > { %1345 = vmatmul.mubr.f32.gmra.mrb[14].mxu0 %v3815_v30  ;;  %2869 = vmatprep.subr.bf16.mxu1 %v2868_v63  ;;  %v604_v63 = vrot.slane %v3925_v18, 7  ;;  %v506_v26 = vrot.slane %v3919_v14, 1  ;;  %v3948_v35 = vrot.slane %v3919_v14, 7  ;;  %s756_s22 = scalar_select %p755_p4, %s4076_s24, 0 }
  0x4a   : > { %2291 = vmatmul.mubr.msk.f32.gmra.mrb[14].mxu1 %vm487_vm2, %v3703_v41  ;;  %1349 = vmatprep.mubr.f32.mxu0 %v3772_v7  ;;  %v3943_v27 = vrot.slane %v3921_v15, 1  ;;  %v387_v32 = vstv %s386_s20  ;;  %v426_v37 = vrot.slane %v3921_v15, 7  ;;  %p4118_p8 = pnand %p764_p6, %p763_p5  ;;  %s4123_s27 = sadd.s32 8, %s3065_s25 }
  0x4b   : > { %2293 = vmatprep.mubr.msk.f32.mxu1 %vm3320_vm1, %v598_v31  ;;  %2839 = vmatpush3.bf16.msra.mxu0 %v2838_v34  ;;  %v379_v31 = vld [vmem:[%s378_s7] sm:$0xff]  ;;  %v380_v34 = vld [vmem:[%s378_s7 + $0x8] sm:$0xff]  ;;  %v606_v49 = vsel %vm406_vm0, %v604_v63, %v605_v29  ;;  %v667_v29 = vrot.slane %v3375_v45, 1  ;;  %s4384_s22 = smov (!%p2225_p7, %s756_s22), 15  ;;  %p773_p9 = scmp.gt.s32.totalorder %s4123_s27, 0 }
  0x4c   : > { %2871 = vmatpush3.bf16.msra.mxu1 %v2870_v42  ;;  %2873 = vmatprep.subr.bf16.mxu0 %v3840_v46  ;;  %v3958_v38 = vsel %vm487_vm2, %v506_v26, %v3943_v27  ;;  %v3960_v40 = vmul.f32 %v387_v32, %v379_v31  ;;  %v3962_v42 = vmul.f32 %v387_v32, %v380_v34  ;;  %s2231_s25 = scalar_select %p4118_p8, 0, 1 }
  0x4d   : > { %2273 = vmatmul.mubr.msk.f32.gmra.mrb[16].mxu0 %vm3320_vm1, %v3844_v48  ;;  %2904 = vmatprep.subr.bf16.mxu1 %v3840_v46  ;;  %v3978_v58 = vsel %vm406_vm0, %v3948_v35, %v426_v37  ;;  %v1224_v37 = vld [vmem:[%s4340_s1 + $0x410] sm:$0xff]  ;;  %p781_p10 = scmp.ge.s32.totalorder %s4123_s27, 0  ;;  %p782_p11 = scmp.lt.s32.totalorder %s4123_s27, 16 }
  0x4e   : > { %1495 = vmatmul.mubr.f32.gmra.mrb[16].mxu1 %v3859_v50  ;;  %1354 = vmatprep.mubr.f32.mxu0 %v3777_v9  ;;  %v509_v62 = vrot.slane %v3960_v40, 1  ;;  %v3983_v1 = vrot.slane %v3962_v42, 1  ;;  %v3988_v6 = vrot.slane %v3960_v40, 7  ;;  %s2230_s5 = sshll.u32 %s4384_s22, 4  ;;  %p2232_p12 = scmp.lt.s32.totalorder %s4123_s27, 15 }
  0x4f   : > { %1499 = vmatprep.mubr.f32.mxu1 %v600_v53  ;;  %v3966_v53 = vld [vmem:[%s3243_s8 + $0x70] sm:$0xff]  ;;  %s774_s12 = scalar_select %p773_p9, %s4123_s27, 0 }
  0x50   : > { %v607_v61 = vrot.slane %v3966_v53, 7  ;;  %v3999_v26 = vsel %vm487_vm2, %v509_v62, %v3983_v1  ;;  %v670_v62 = vrot.slane %v3457_v12, 1  ;;  %s768_s26 = scvt.s32.f32 %s2231_s25  ;;  %p4150_p13 = pnand %p782_p11, %p781_p10 }
  0x51   : > { %1355 = vmatmul.mubr.f32.gmra.mrb[18].mxu0 %v3886_v56  ;;  %s760_s20 = scalar_lea.vmem %s3189_s9, %s2230_s5  ;;  %s4386_s12 = smov (!%p2232_p12, %s774_s12), 15 }
  0x52   : > { %2294 = vmatmul.mubr.msk.f32.gmra.mrb[18].mxu1 %vm487_vm2, %v3831_v33  ;;  %1359 = vmatprep.mubr.f32.mxu0 %v3861_v51  ;;  %s2238_s7 = scalar_select %p4150_p13, 0, 1 }
  0x53   : > { %2296 = vmatprep.mubr.msk.f32.mxu1 %vm3320_vm1, %v601_v57  ;;  %v3972_v57 = vld [vmem:[%s3243_s8 + $0x78] sm:$0xff]  ;;  %s2237_s8 = sshll.u32 %s4386_s12, 4  ;;  %s2166_s11 = sshll.u32 %s3234_s21, 3 }
  0x54   : > { %v608_v3 = vrot.slane %v3972_v57, 7  ;;  %s786_s24 = scvt.s32.f32 %s2238_s7  ;;  %s778_s4 = scalar_lea.vmem %s3189_s9, %s2237_s8 }
  0x55   : > { %2275 = vmatmul.mubr.msk.f32.gmra.mrb[20].mxu0 %vm3320_vm1, %v3905_v5  ;;  %s4299_s23 = scalar_lea.vmem %s4342_s3, %s2166_s11 }
  0x56   : > { %1505 = vmatmul.mubr.f32.gmra.mrb[20].mxu1 %v3917_v11  ;;  %1364 = vmatprep.mubr.f32.mxu0 %v3863_v52  ;;  %v609_v31 = vsel %vm406_vm0, %v607_v61, %v608_v3 }
  0x57   : > { %1509 = vmatprep.mubr.f32.mxu1 %v603_v16  ;;  %v429_v16 = vrot.slane %v3962_v42, 7 }
  0x59   : > { %1365 = vmatmul.mubr.f32.gmra.mrb[22].mxu0 %v3938_v22  ;;  %v4010_v32 = vsel %vm406_vm0, %v3988_v6, %v429_v16  ;;  %v1226_v16 = vld [vmem:[%s4340_s1 + $0x420] sm:$0xff] }
  0x5a   : > { %2297 = vmatmul.mubr.msk.f32.gmra.mrb[22].mxu1 %vm487_vm2, %v3893_v60  ;;  %1369 = vmatprep.mubr.f32.mxu0 %v3919_v14 }
  0x5b   : > { %2299 = vmatprep.mubr.msk.f32.mxu1 %vm3320_vm1, %v604_v63  ;;  %v666_v63 = vrot.slane %v3310_v24, 1 }
  0x5d   : > { %2277 = vmatmul.mubr.msk.f32.gmra.mrb[24].mxu0 %vm3320_vm1, %v3948_v35  ;;  %v668_v34 = vsel %vm487_vm2, %v666_v63, %v667_v29  ;;  %v1227_v63 = vld [vmem:[%s4340_s1 + $0x428] sm:$0xff] }
  0x5e   : > { %1515 = vmatmul.mubr.f32.gmra.mrb[24].mxu1 %v3958_v38  ;;  %1374 = vmatprep.mubr.f32.mxu0 %v3921_v15 }
  0x5f   : > { %1519 = vmatprep.mubr.f32.mxu1 %v606_v49  ;;  %v1225_v49 = vld [vmem:[%s4340_s1 + $0x418] sm:$0xff] }
  0x60   : > { %v2876_v3 = vpack.c.bf16 %v1225_v49, %v1224_v37  ;;  %v676_v37 = vrot.slane %v3660_v25, 1 }
  0x61   : > { %1375 = vmatmul.mubr.f32.gmra.mrb[26].mxu0 %v3978_v58 }
  0x62   : > { %2300 = vmatmul.mubr.msk.f32.gmra.mrb[26].mxu1 %vm487_vm2, %v3943_v27  ;;  %1379 = vmatprep.mubr.f32.mxu0 %v3960_v40 }
  0x63   : > { %2302 = vmatprep.mubr.msk.f32.mxu1 %vm3320_vm1, %v607_v61  ;;  %v669_v61 = vrot.slane %v3430_v4, 1 }
  0x65   : > { %2279 = vmatmul.mubr.msk.f32.gmra.mrb[28].mxu0 %vm3320_vm1, %v3988_v6 }
  0x66   : > { %1525 = vmatmul.mubr.f32.gmra.mrb[28].mxu1 %v3999_v26  ;;  %1384 = vmatprep.mubr.f32.mxu0 %v3962_v42 }
  0x67   : > { %1529 = vmatprep.mubr.f32.mxu1 %v609_v31  ;;  %v1228_v31 = vld [vmem:[%s4340_s1 + $0x430] sm:$0xff] }
  0x69   : > { %1385 = vmatmul.mubr.f32.gmra.mrb[30].mxu0 %v4010_v32 }
  0x6a   : > { %2303 = vmatmul.mubr.msk.f32.gmra.mrb[30].mxu1 %vm487_vm2, %v3983_v1  ;;  %1599 = vmatprep.mubr.f32.mxu0 %v668_v34  ;;  %v1232_v34 = vld [vmem:[%s4340_s1 + $0x450] sm:$0xff] }
  0x6b   : > { %1744 = vmatprep.mubr.f32.mxu1 %v3537_v36  ;;  %v2880_v36 = vpack.c.bf16 %v1227_v63, %v1226_v16  ;;  %v787_v16 = vstv %s786_s24 }
  0x6d   : > { %1600 = vmatmul.mubr.f32.vlgmr.msra.gmra.mrb[32].mxu0 %v3310_v24  ;;  %v671_v24 = vsel %vm487_vm2, %v669_v61, %v670_v62  ;;  %v679_v61 = vrot.slane %v3780_v10, 1 }
  0x6e   : > { %2313 = vmatmul.mubr.msk.f32.vlgmr.msra.gmra.mrb[32].mxu1 %vm3320_vm1, %v3619_v13  ;;  %2875 = vmatpush3.bf16.msra.mxu0 %v3840_v46  ;;  %v1229_v13 = vld [vmem:[%s4340_s1 + $0x438] sm:$0xff] }
  0x6f   : > { %2912 = vmatpush3.bf16.msra.mxu1 %v3840_v46  ;;  %2304 = vmatprep.mubr.msk.f32.mxu0 %vm487_vm2, %v667_v29  ;;  %v673_v46 = vrot.slane %v3545_v47, 1  ;;  %v1230_v29 = vld [vmem:[%s4340_s1 + $0x440] sm:$0xff] }
  0x70   : > { %1749 = vmatprep.mubr.f32.mxu1 %v3542_v44  ;;  %2877 = vmatprep.subr.bf16.mxu0 %v2876_v3  ;;  %v672_v44 = vrot.slane %v3540_v43, 1 }
  0x71   : > { %1605 = vmatmul.mubr.f32.gmra.mrb[34].mxu0 %v3375_v45  ;;  %2905 = vmatprep.subr.bf16.mxu1 %v2876_v3  ;;  %v2884_v45 = vpack.c.bf16 %v1229_v13, %v1228_v31 }
  0x72   : > { %1750 = vmatmul.mubr.f32.gmra.mrb[34].mxu1 %v3699_v39  ;;  %1609 = vmatprep.mubr.f32.mxu0 %v671_v24  ;;  %v1231_v39 = vld [vmem:[%s4340_s1 + $0x448] sm:$0xff] }
  0x73   : > { %1754 = vmatprep.mubr.f32.mxu1 %v3637_v20  ;;  %2879 = vmatpush3.bf16.msra.mxu0 %v2876_v3  ;;  %v674_v20 = vsel %vm487_vm2, %v672_v44, %v673_v46 }
  0x74   : > { %2913 = vmatpush3.bf16.msra.mxu1 %v2876_v3  ;;  %2881 = vmatprep.subr.bf16.mxu0 %v2880_v36  ;;  %v779_v3 = vld [vmem:[%s778_s4] sm:$0xff] }
  0x75   : > { %1610 = vmatmul.mubr.f32.gmra.mrb[36].mxu0 %v3430_v4  ;;  %2906 = vmatprep.subr.bf16.mxu1 %v2880_v36  ;;  %v2888_v4 = vpack.c.bf16 %v1231_v39, %v1230_v29 }
  0x76   : > { %2315 = vmatmul.mubr.msk.f32.gmra.mrb[36].mxu1 %vm3320_vm1, %v3740_v59  ;;  %2305 = vmatprep.mubr.msk.f32.mxu0 %vm487_vm2, %v670_v62  ;;  %v1233_v59 = vld [vmem:[%s4340_s1 + $0x458] sm:$0xff] }
  0x77   : > { %1759 = vmatprep.mubr.f32.mxu1 %v3639_v21  ;;  %2883 = vmatpush3.bf16.msra.mxu0 %v2880_v36  ;;  %v675_v21 = vrot.slane %v3657_v23, 1 }
  0x78   : > { %2914 = vmatpush3.bf16.msra.mxu1 %v2880_v36  ;;  %2885 = vmatprep.subr.bf16.mxu0 %v2884_v45 }
  0x79   : > { %1615 = vmatmul.mubr.f32.gmra.mrb[38].mxu0 %v3457_v12  ;;  %2907 = vmatprep.subr.bf16.mxu1 %v2884_v45  ;;  %v2892_v12 = vpack.c.bf16 %v1233_v59, %v1232_v34 }
  0x7a   : > { %1760 = vmatmul.mubr.f32.gmra.mrb[38].mxu1 %v3815_v30  ;;  %1619 = vmatprep.mubr.f32.mxu0 %v674_v20  ;;  %v1234_v30 = vld [vmem:[%s4340_s1 + $0x460] sm:$0xff] }
  0x7b   : > { %1764 = vmatprep.mubr.f32.mxu1 %v3772_v7  ;;  %2887 = vmatpush3.bf16.msra.mxu0 %v2884_v45  ;;  %v1235_v7 = vld [vmem:[%s4340_s1 + $0x468] sm:$0xff] }
  0x7c   : > { %2915 = vmatpush3.bf16.msra.mxu1 %v2884_v45  ;;  %2889 = vmatprep.subr.bf16.mxu0 %v2888_v4  ;;  %v2896_v49 = vpack.c.bf16 %v1235_v7, %v1234_v30 }
  0x7d   : > { %1620 = vmatmul.mubr.f32.gmra.mrb[40].mxu0 %v3540_v43  ;;  %2908 = vmatprep.subr.bf16.mxu1 %v2888_v4  ;;  %v677_v43 = vsel %vm487_vm2, %v675_v21, %v676_v37 }
  0x7e   : > { %2317 = vmatmul.mubr.msk.f32.gmra.mrb[40].mxu1 %vm3320_vm1, %v3844_v48  ;;  %2306 = vmatprep.mubr.msk.f32.mxu0 %vm487_vm2, %v673_v46  ;;  %v1236_v48 = vld [vmem:[%s4340_s1 + $0x470] sm:$0xff] }
  0x7f   : > { %1769 = vmatprep.mubr.f32.mxu1 %v3777_v9  ;;  %2891 = vmatpush3.bf16.msra.mxu0 %v2888_v4  ;;  %v1237_v9 = vld [vmem:[%s4340_s1 + $0x478] sm:$0xff] }
  0x80   : > { %2916 = vmatpush3.bf16.msra.mxu1 %v2888_v4  ;;  %2893 = vmatprep.subr.bf16.mxu0 %v2892_v12  ;;  %v2900_v62 = vpack.c.bf16 %v1237_v9, %v1236_v48 }
  0x81   : > { %1625 = vmatmul.mubr.f32.gmra.mrb[42].mxu0 %v3545_v47  ;;  %2909 = vmatprep.subr.bf16.mxu1 %v2892_v12  ;;  %v678_v47 = vrot.slane %v3775_v8, 1 }
  0x82   : > { %1770 = vmatmul.mubr.f32.gmra.mrb[42].mxu1 %v3886_v56  ;;  %1629 = vmatprep.mubr.f32.mxu0 %v677_v43  ;;  %v685_v56 = vrot.slane %v3931_v19, 1 }
  0x83   : > { %1774 = vmatprep.mubr.f32.mxu1 %v3861_v51  ;;  %2895 = vmatpush3.bf16.msra.mxu0 %v2892_v12  ;;  %v681_v51 = vrot.slane %v3868_v54, 1 }
  0x84   : > { %2917 = vmatpush3.bf16.msra.mxu1 %v2892_v12  ;;  %2897 = vmatprep.subr.bf16.mxu0 %v2896_v49 }
  0x85   : > { %1630 = vmatmul.mubr.f32.gmra.mrb[44].mxu0 %v3657_v23  ;;  %2910 = vmatprep.subr.bf16.mxu1 %v2896_v49  ;;  %v680_v23 = vsel %vm487_vm2, %v678_v47, %v679_v61 }
  0x86   : > { %2319 = vmatmul.mubr.msk.f32.gmra.mrb[44].mxu1 %vm3320_vm1, %v3905_v5  ;;  %2307 = vmatprep.mubr.msk.f32.mxu0 %vm487_vm2, %v676_v37  ;;  %v761_v5 = vld [vmem:[%s760_s20] sm:$0xff] }
  0x87   : > { %1779 = vmatprep.mubr.f32.mxu1 %v3863_v52  ;;  %2899 = vmatpush3.bf16.msra.mxu0 %v2896_v49  ;;  %v682_v52 = vrot.slane %v3877_v55, 1 }
  0x88   : > { %2918 = vmatpush3.bf16.msra.mxu1 %v2896_v49  ;;  %2901 = vmatprep.subr.bf16.mxu0 %v2900_v62 }
  0x89   : > { %1635 = vmatmul.mubr.f32.gmra.mrb[46].mxu0 %v3660_v25  ;;  %2911 = vmatprep.subr.bf16.mxu1 %v2900_v62  ;;  %v683_v25 = vsel %vm487_vm2, %v681_v51, %v682_v52 }
  0x8a   : > { %1780 = vmatmul.mubr.f32.gmra.mrb[46].mxu1 %v3938_v22  ;;  %1639 = vmatprep.mubr.f32.mxu0 %v680_v23 }
  0x8b   : > { %1784 = vmatprep.mubr.f32.mxu1 %v3919_v14  ;;  %2903 = vmatpush3.bf16.msra.mxu0 %v2900_v62  ;;  %v769_v14 = vstv %s768_s26 }
  0x8c   : > { %2919 = vmatpush3.bf16.msra.mxu1 %v2900_v62 }
  0x8d   : > { %1640 = vmatmul.mubr.f32.gmra.mrb[48].mxu0 %v3775_v8  ;;  %v684_v8 = vrot.slane %v3925_v18, 1 }
  0x8e   : > { %2321 = vmatmul.mubr.msk.f32.gmra.mrb[48].mxu1 %vm3320_vm1, %v3948_v35  ;;  %2308 = vmatprep.mubr.msk.f32.mxu0 %vm487_vm2, %v679_v61 }
  0x8f   : > { %1789 = vmatprep.mubr.f32.mxu1 %v3921_v15  ;;  %v762_v15 = vld [vmem:[%s760_s20 + $0x8] sm:$0xff]  ;;  %v686_v22 = vsel %vm487_vm2, %v684_v8, %v685_v56 }
  0x90   : > { %v771_v35 = vmul.f32 %v769_v14, %v762_v15 }
  0x91   : > { %1645 = vmatmul.mubr.f32.gmra.mrb[50].mxu0 %v3780_v10  ;;  %v770_v10 = vmul.f32 %v769_v14, %v761_v5 }
  0x92   : > { %1790 = vmatmul.mubr.f32.gmra.mrb[50].mxu1 %v3978_v58  ;;  %1649 = vmatprep.mubr.f32.mxu0 %v683_v25  ;;  %v687_v58 = vrot.slane %v3966_v53, 1  ;;  %v905_v13 = vrot.slane %v771_v35, 1 }
  0x93   : > { %1794 = vmatprep.mubr.f32.mxu1 %v3960_v40  ;;  %v825_v40 = vrot.slane %v771_v35, 7 }
  0x95   : > { %1650 = vmatmul.mubr.f32.gmra.mrb[52].mxu0 %v3868_v54  ;;  %v824_v54 = vrot.slane %v770_v10, 7 }
  0x96   : > { %2323 = vmatmul.mubr.msk.f32.gmra.mrb[52].mxu1 %vm3320_vm1, %v3988_v6  ;;  %2309 = vmatprep.mubr.msk.f32.mxu0 %vm487_vm2, %v682_v52  ;;  %v688_v6 = vrot.slane %v3972_v57, 1 }
  0x97   : > { %1799 = vmatprep.mubr.f32.mxu1 %v3962_v42  ;;  %v780_v42 = vld [vmem:[%s778_s4 + $0x8] sm:$0xff] }
  0x98   : > { %v689_v63 = vsel %vm487_vm2, %v687_v58, %v688_v6  ;;  %v789_v24 = vmul.f32 %v787_v16, %v780_v42 }
  0x99   : > { %1655 = vmatmul.mubr.f32.gmra.mrb[54].mxu0 %v3877_v55  ;;  %v788_v55 = vmul.f32 %v787_v16, %v779_v3 }
  0x9a   : > { %1800 = vmatmul.mubr.f32.gmra.mrb[54].mxu1 %v4010_v32  ;;  %1659 = vmatprep.mubr.f32.mxu0 %v686_v22  ;;  %v826_v32 = vsel %vm406_vm0, %v824_v54, %v825_v40  ;;  %v828_v31 = vrot.slane %v789_v24, 7 }
  0x9b   : > { %1804 = vmatprep.mubr.f32.mxu1 %v770_v10  ;;  %v827_v36 = vrot.slane %v788_v55, 7 }
  0x9d   : > { %1660 = vmatmul.mubr.f32.gmra.mrb[56].mxu0 %v3925_v18  ;;  %v829_v18 = vsel %vm406_vm0, %v827_v36, %v828_v31 }
  0x9e   : > { %2325 = vmatmul.mubr.msk.f32.gmra.mrb[56].mxu1 %vm3320_vm1, %v824_v54  ;;  %2310 = vmatprep.mubr.msk.f32.mxu0 %vm487_vm2, %v685_v56 }
  0x9f   : > { %1809 = vmatprep.mubr.f32.mxu1 %v771_v35 }
  0xa1   : > { %1665 = vmatmul.mubr.f32.gmra.mrb[58].mxu0 %v3931_v19  ;;  %v904_v19 = vrot.slane %v770_v10, 1 }
  0xa2   : > { %1810 = vmatmul.mubr.f32.gmra.mrb[58].mxu1 %v826_v32  ;;  %1669 = vmatprep.mubr.f32.mxu0 %v689_v63 }
  0xa3   : > { %1814 = vmatprep.mubr.f32.mxu1 %v788_v55  ;;  %v906_v28 = vsel %vm487_vm2, %v904_v19, %v905_v13 }
  0xa5   : > { %1670 = vmatmul.mubr.f32.gmra.mrb[60].mxu0 %v3966_v53  ;;  %v907_v53 = vrot.slane %v788_v55, 1 }
  0xa6   : > { %2327 = vmatmul.mubr.msk.f32.gmra.mrb[60].mxu1 %vm3320_vm1, %v827_v36  ;;  %2311 = vmatprep.mubr.msk.f32.mxu0 %vm487_vm2, %v688_v6 }
  0xa7   : > { %1819 = vmatprep.mubr.f32.mxu1 %v789_v24 }
  0xa9   : > { %1675 = vmatmul.mubr.f32.gmra.mrb[62].mxu0 %v3972_v57  ;;  %v908_v57 = vrot.slane %v789_v24, 1 }
  0xaa   : > { %1820 = vmatmul.mubr.f32.gmra.mrb[62].mxu1 %v829_v18  ;;  %2720 = vmatprep.mubr.f32.mxu0 %v3654_v17 }
  0xab   : > { %2732 = vmatprep.mubr.f32.mxu1 %v3958_v38 }
  0xad   : > { %2721 = vmatmul.mubr.msk.f32.vlgmr.msra.gmra.mrb[64].mxu0 %vm487_vm2, %v3597_v0  ;;  %v909_v0 = vsel %vm487_vm2, %v907_v53, %v908_v57 }
  0xae   : > { %2733 = vmatmul.mubr.msk.f32.vlgmr.msra.gmra.mrb[64].mxu1 %vm487_vm2, %v3943_v27  ;;  %2723 = vmatprep.mubr.f32.mxu0 %v3758_v2  ;;  %v4212_v2 = vld [vmem:[%s4341_s2] ss:$0 sm:$0xff] }
  0xaf   : > { %2735 = vmatprep.mubr.f32.mxu1 %v3999_v26 }
  0xb1   : > { %2724 = vmatmul.mubr.msk.f32.gmra.mrb[66].mxu0 %vm487_vm2, %v3703_v41 }
  0xb2   : > { %2736 = vmatmul.mubr.msk.f32.gmra.mrb[66].mxu1 %vm487_vm2, %v3983_v1  ;;  %2726 = vmatprep.mubr.f32.mxu0 %v3859_v50 }
  0xb3   : > { %2738 = vmatprep.mubr.f32.mxu1 %v906_v28 }
  0xb5   : > { %2727 = vmatmul.mubr.msk.f32.gmra.mrb[68].mxu0 %vm487_vm2, %v3831_v33 }
  0xb6   : > { %2739 = vmatmul.mubr.msk.f32.gmra.mrb[68].mxu1 %vm487_vm2, %v905_v13  ;;  %2729 = vmatprep.mubr.f32.mxu0 %v3917_v11 }
  0xb7   : > { %2741 = vmatprep.mubr.f32.mxu1 %v909_v0 }
  0xb9   : > { %2730 = vmatmul.mubr.msk.f32.gmra.mrb[70].mxu0 %vm487_vm2, %v3893_v60 }
  0xba   : > { %2742 = vmatmul.mubr.msk.f32.gmra.mrb[70].mxu1 %vm487_vm2, %v908_v57 }
 0x100   : > { %v2368_v17 = vpop.f32.mrb[0].mxu0 }
 0x101   : > { %v2448_v41 = vpop.f32.mrb[0].mxu1  ;;  %v2369_v50 = vpop.f32.mrb[1].mxu0 }
 0x102   : > { %v2370_v27 = vadd.f32 %v2369_v50, %v2368_v17  ;;  %v2449_v33 = vpop.f32.mrb[1].mxu1 }
 0x103   : > { %v2450_v38 = vadd.f32 %v2449_v33, %v2448_v41 }
 0x104   : > { %v1312_v1 = vadd.f32 %v2370_v27, %v4212_v2  ;;  %v2371_v11 = vpop.f32.mrb[2].mxu0 }
 0x105   : > { %v2451_v26 = vpop.f32.mrb[2].mxu1  ;;  %v2372_v44 = vpop.f32.mrb[3].mxu0 }
 0x106   : > { %v4215_v46 = vadd.f32 %v2450_v38, %v1312_v1  ;;  %v2373_v60 = vadd.f32 %v2372_v44, %v2371_v11  ;;  %v2452_v45 = vpop.f32.mrb[3].mxu1 }
 0x107   : > { %v2453_v29 = vadd.f32 %v2452_v45, %v2451_v26 }
 0x108   : > { %v1317_v39 = vadd.f32 %v2373_v60, %v4212_v2  ;;  %v2374_v20 = vpop.f32.mrb[4].mxu0 }
 0x109   : > { %v2454_v4 = vpop.f32.mrb[4].mxu1  ;;  %v2375_v34 = vpop.f32.mrb[5].mxu0 }
 0x10a   : > { %v4218_v59 = vadd.f32 %v2453_v29, %v1317_v39  ;;  %v2376_v21 = vadd.f32 %v2375_v34, %v2374_v20  ;;  %v2455_v37 = vpop.f32.mrb[5].mxu1 }
 0x10b   : > { %v2456_v12 = vadd.f32 %v2455_v37, %v2454_v4 }
 0x10c   : > { %v1322_v30 = vadd.f32 %v2376_v21, %v4212_v2  ;;  %v2377_v7 = vpop.f32.mrb[6].mxu0 }
 0x10d   : > { %v2457_v43 = vpop.f32.mrb[6].mxu1  ;;  %v2378_v49 = vpop.f32.mrb[7].mxu0 }
 0x10e   : > { %v4221_v48 = vadd.f32 %v2456_v12, %v1322_v30  ;;  %v2379_v9 = vadd.f32 %v2378_v49, %v2377_v7  ;;  %v2458_v47 = vpop.f32.mrb[7].mxu1 }
 0x10f   : > { %v2459_v61 = vadd.f32 %v2458_v47, %v2457_v43 }
 0x110   : > { %v1327_v62 = vadd.f32 %v2379_v9, %v4212_v2  ;;  %v2380_v23 = vpop.f32.mrb[8].mxu0 }
 0x111   : > { %v2460_v51 = vpop.f32.mrb[8].mxu1  ;;  %v2381_v52 = vpop.f32.mrb[9].mxu0 }
 0x112   : > { %v4224_v25 = vadd.f32 %v2459_v61, %v1327_v62  ;;  %v2382_v8 = vadd.f32 %v2381_v52, %v2380_v23  ;;  %v2461_v56 = vpop.f32.mrb[9].mxu1 }
 0x113   : > { %v2462_v5 = vadd.f32 %v2461_v56, %v2460_v51 }
 0x114   : > { %v1332_v14 = vadd.f32 %v2382_v8, %v4212_v2  ;;  %v2383_v15 = vpop.f32.mrb[10].mxu0 }
 0x115   : > { %v2463_v10 = vpop.f32.mrb[10].mxu1  ;;  %v2384_v22 = vpop.f32.mrb[11].mxu0 }
 0x116   : > { %v4227_v35 = vadd.f32 %v2462_v5, %v1332_v14  ;;  %v2385_v54 = vadd.f32 %v2384_v22, %v2383_v15  ;;  %v2464_v40 = vpop.f32.mrb[11].mxu1 }
 0x117   : > { %v2465_v58 = vadd.f32 %v2464_v40, %v2463_v10 }
 0x118   : > { %v1337_v6 = vadd.f32 %v2385_v54, %v4212_v2  ;;  %v2386_v3 = vpop.f32.mrb[12].mxu0 }
 0x119   : > { %v2466_v16 = vpop.f32.mrb[12].mxu1  ;;  %v2387_v42 = vpop.f32.mrb[13].mxu0 }
 0x11a   : > { %v4230_v55 = vadd.f32 %v2465_v58, %v1337_v6  ;;  %v2388_v32 = vadd.f32 %v2387_v42, %v2386_v3  ;;  %v2467_v63 = vpop.f32.mrb[13].mxu1 }
 0x11b   : > { %v2468_v24 = vadd.f32 %v2467_v63, %v2466_v16 }
 0x11c   : > { %v1342_v36 = vadd.f32 %v2388_v32, %v4212_v2  ;;  %v2389_v31 = vpop.f32.mrb[14].mxu0 }
 0x11d   : > { %v2469_v18 = vpop.f32.mrb[14].mxu1  ;;  %v2390_v19 = vpop.f32.mrb[15].mxu0 }
 0x11e   : > { %v4233_v13 = vadd.f32 %v2468_v24, %v1342_v36  ;;  %v2391_v28 = vadd.f32 %v2390_v19, %v2389_v31  ;;  %v2470_v53 = vpop.f32.mrb[15].mxu1 }
 0x11f   : > { %v2471_v57 = vadd.f32 %v2470_v53, %v2469_v18 }
 0x120   : > { %v1347_v0 = vadd.f32 %v2391_v28, %v4212_v2  ;;  %v2392_v17 = vpop.f32.mrb[16].mxu0 }
 0x121   : > { %v2472_v41 = vpop.f32.mrb[16].mxu1  ;;  %v2393_v50 = vpop.f32.mrb[17].mxu0 }
 0x122   : > { %v4236_v27 = vadd.f32 %v2471_v57, %v1347_v0  ;;  %v2394_v33 = vadd.f32 %v2393_v50, %v2392_v17  ;;  %v2473_v38 = vpop.f32.mrb[17].mxu1 }
 0x123   : > { %v2474_v1 = vadd.f32 %v2473_v38, %v2472_v41 }
 0x124   : > { %v1352_v11 = vadd.f32 %v2394_v33, %v4212_v2  ;;  %v2395_v26 = vpop.f32.mrb[18].mxu0 }
 0x125   : > { %v2475_v44 = vpop.f32.mrb[18].mxu1  ;;  %v2396_v60 = vpop.f32.mrb[19].mxu0 }
 0x126   : > { %v4239_v45 = vadd.f32 %v2474_v1, %v1352_v11  ;;  %v2397_v29 = vadd.f32 %v2396_v60, %v2395_v26  ;;  %v2476_v39 = vpop.f32.mrb[19].mxu1 }
 0x127   : > { %v2477_v20 = vadd.f32 %v2476_v39, %v2475_v44 }
 0x128   : > { %v1357_v4 = vadd.f32 %v2397_v29, %v4212_v2  ;;  %v2398_v34 = vpop.f32.mrb[20].mxu0 }
 0x129   : > { %v2478_v21 = vpop.f32.mrb[20].mxu1  ;;  %v2399_v37 = vpop.f32.mrb[21].mxu0 }
 0x12a   : > { %v4242_v12 = vadd.f32 %v2477_v20, %v1357_v4  ;;  %v2400_v30 = vadd.f32 %v2399_v37, %v2398_v34  ;;  %v2479_v7 = vpop.f32.mrb[21].mxu1 }
 0x12b   : > { %v2480_v43 = vadd.f32 %v2479_v7, %v2478_v21 }
 0x12c   : > { %v1362_v49 = vadd.f32 %v2400_v30, %v4212_v2  ;;  %v2401_v9 = vpop.f32.mrb[22].mxu0 }
 0x12d   : > { %v2481_v47 = vpop.f32.mrb[22].mxu1  ;;  %v2402_v61 = vpop.f32.mrb[23].mxu0 }
 0x12e   : > { %v4245_v62 = vadd.f32 %v2480_v43, %v1362_v49  ;;  %v2403_v23 = vadd.f32 %v2402_v61, %v2401_v9  ;;  %v2482_v51 = vpop.f32.mrb[23].mxu1 }
 0x12f   : > { %v2483_v52 = vadd.f32 %v2482_v51, %v2481_v47 }
 0x130   : > { %v1367_v8 = vadd.f32 %v2403_v23, %v4212_v2  ;;  %v2404_v56 = vpop.f32.mrb[24].mxu0 }
 0x131   : > { %v2484_v5 = vpop.f32.mrb[24].mxu1  ;;  %v2405_v14 = vpop.f32.mrb[25].mxu0 }
 0x132   : > { %v4248_v15 = vadd.f32 %v2483_v52, %v1367_v8  ;;  %v2406_v10 = vadd.f32 %v2405_v14, %v2404_v56  ;;  %v2485_v22 = vpop.f32.mrb[25].mxu1 }
 0x133   : > { %v2486_v54 = vadd.f32 %v2485_v22, %v2484_v5 }
 0x134   : > { %v1372_v40 = vadd.f32 %v2406_v10, %v4212_v2  ;;  %v2407_v58 = vpop.f32.mrb[26].mxu0 }
 0x135   : > { %v2487_v6 = vpop.f32.mrb[26].mxu1  ;;  %v2408_v3 = vpop.f32.mrb[27].mxu0 }
 0x136   : > { %v4251_v16 = vadd.f32 %v2486_v54, %v1372_v40  ;;  %v2409_v42 = vadd.f32 %v2408_v3, %v2407_v58  ;;  %v2488_v32 = vpop.f32.mrb[27].mxu1 }
 0x137   : > { %v2489_v63 = vadd.f32 %v2488_v32, %v2487_v6 }
 0x138   : > { %v1377_v24 = vadd.f32 %v2409_v42, %v4212_v2  ;;  %v2410_v36 = vpop.f32.mrb[28].mxu0 }
 0x139   : > { %v2490_v31 = vpop.f32.mrb[28].mxu1  ;;  %v2411_v18 = vpop.f32.mrb[29].mxu0 }
 0x13a   : > { %v4254_v19 = vadd.f32 %v2489_v63, %v1377_v24  ;;  %v2412_v28 = vadd.f32 %v2411_v18, %v2410_v36  ;;  %v2491_v53 = vpop.f32.mrb[29].mxu1 }
 0x13b   : > { %v2492_v57 = vadd.f32 %v2491_v53, %v2490_v31 }
 0x13c   : > { %v1382_v0 = vadd.f32 %v2412_v28, %v4212_v2  ;;  %v2413_v17 = vpop.f32.mrb[30].mxu0 }
 0x13d   : > { %v2493_v41 = vpop.f32.mrb[30].mxu1  ;;  %v2414_v50 = vpop.f32.mrb[31].mxu0 }
 0x13e   : > { %v4257_v33 = vadd.f32 %v2492_v57, %v1382_v0  ;;  %v2415_v38 = vadd.f32 %v2414_v50, %v2413_v17  ;;  %v2494_v1 = vpop.f32.mrb[31].mxu1 }
 0x13f   : > { %v2495_v11 = vadd.f32 %v2494_v1, %v2493_v41 }
 0x140   : > { %v1387_v26 = vadd.f32 %v2415_v38, %v4212_v2  ;;  %v2528_v44 = vpop.f32.mrb[32].mxu0 }
 0x141   : > { %v2608_v60 = vpop.f32.mrb[32].mxu1  ;;  %v2529_v29 = vpop.f32.mrb[33].mxu0 }
 0x142   : > { %v4260_v39 = vadd.f32 %v2495_v11, %v1387_v26  ;;  %v2530_v20 = vadd.f32 %v2529_v29, %v2528_v44  ;;  %v2609_v4 = vpop.f32.mrb[33].mxu1 }
 0x143   : > { %v2610_v34 = vadd.f32 %v2609_v4, %v2608_v60 }
 0x144   : > { %v1602_v21 = vadd.f32 %v2530_v20, %v4215_v46  ;;  %v2531_v37 = vpop.f32.mrb[34].mxu0 }
 0x145   : > { %v2611_v30 = vpop.f32.mrb[34].mxu1  ;;  %v2532_v7 = vpop.f32.mrb[35].mxu0 }
 0x146   : > { %v2533_v43 = vadd.f32 %v2532_v7, %v2531_v37  ;;  %v2612_v49 = vpop.f32.mrb[35].mxu1  ;;  %v4263_v9 = vadd.f32 %v2610_v34, %v1602_v21 }
 0x147   : > { %v2613_v47 = vadd.f32 %v2612_v49, %v2611_v30 }
 0x148   : > { %v1607_v2 = vadd.f32 %v2533_v43, %v4218_v59  ;;  %v2534_v61 = vpop.f32.mrb[36].mxu0 }
 0x149   : > { %v2614_v23 = vpop.f32.mrb[36].mxu1  ;;  %v2535_v51 = vpop.f32.mrb[37].mxu0 }
 0x14a   : > { %v2536_v52 = vadd.f32 %v2535_v51, %v2534_v61  ;;  %v2615_v8 = vpop.f32.mrb[37].mxu1  ;;  %v4266_v56 = vadd.f32 %v2613_v47, %v1607_v2 }
 0x14b   : > { %v2616_v5 = vadd.f32 %v2615_v8, %v2614_v23 }
 0x14c   : > { %v1612_v46 = vadd.f32 %v2536_v52, %v4221_v48  ;;  %v2537_v14 = vpop.f32.mrb[38].mxu0 }
 0x14d   : > { %v2617_v10 = vpop.f32.mrb[38].mxu1  ;;  %v2538_v22 = vpop.f32.mrb[39].mxu0 }
 0x14e   : > { %v2539_v54 = vadd.f32 %v2538_v22, %v2537_v14  ;;  %v2618_v40 = vpop.f32.mrb[39].mxu1  ;;  %v4269_v58 = vadd.f32 %v2616_v5, %v1612_v46 }
 0x14f   : > { %v2619_v6 = vadd.f32 %v2618_v40, %v2617_v10 }
 0x150   : > { %v1617_v59 = vadd.f32 %v2539_v54, %v4224_v25  ;;  %v2540_v3 = vpop.f32.mrb[40].mxu0 }
 0x151   : > { %v2620_v42 = vpop.f32.mrb[40].mxu1  ;;  %v2541_v32 = vpop.f32.mrb[41].mxu0 }
 0x152   : > { %v2542_v63 = vadd.f32 %v2541_v32, %v2540_v3  ;;  %v2621_v24 = vpop.f32.mrb[41].mxu1  ;;  %v4272_v36 = vadd.f32 %v2619_v6, %v1617_v59 }
 0x153   : > { %v2622_v31 = vadd.f32 %v2621_v24, %v2620_v42 }
 0x154   : > { %v1622_v48 = vadd.f32 %v2542_v63, %v4227_v35  ;;  %v2543_v18 = vpop.f32.mrb[42].mxu0 }
 0x155   : > { %v2623_v28 = vpop.f32.mrb[42].mxu1  ;;  %v2544_v53 = vpop.f32.mrb[43].mxu0 }
 0x156   : > { %v2545_v57 = vadd.f32 %v2544_v53, %v2543_v18  ;;  %v2624_v0 = vpop.f32.mrb[43].mxu1  ;;  %v4275_v17 = vadd.f32 %v2622_v31, %v1622_v48 }
 0x157   : > { %v2625_v41 = vadd.f32 %v2624_v0, %v2623_v28 }
 0x158   : > { %v1627_v25 = vadd.f32 %v2545_v57, %v4230_v55  ;;  %v2546_v50 = vpop.f32.mrb[44].mxu0 }
 0x159   : > { %v2626_v38 = vpop.f32.mrb[44].mxu1  ;;  %v2547_v1 = vpop.f32.mrb[45].mxu0 }
 0x15a   : > { %v2548_v11 = vadd.f32 %v2547_v1, %v2546_v50  ;;  %v2627_v26 = vpop.f32.mrb[45].mxu1  ;;  %v4278_v44 = vadd.f32 %v2625_v41, %v1627_v25 }
 0x15b   : > { %v2628_v60 = vadd.f32 %v2627_v26, %v2626_v38 }
 0x15c   : > { %v1632_v35 = vadd.f32 %v2548_v11, %v4233_v13  ;;  %v2549_v29 = vpop.f32.mrb[46].mxu0 }
 0x15d   : > { %v2629_v20 = vpop.f32.mrb[46].mxu1  ;;  %v2550_v4 = vpop.f32.mrb[47].mxu0 }
 0x15e   : > { %v2551_v34 = vadd.f32 %v2550_v4, %v2549_v29  ;;  %v2630_v21 = vpop.f32.mrb[47].mxu1  ;;  %v4281_v37 = vadd.f32 %v2628_v60, %v1632_v35 }
 0x15f   : > { %v2631_v30 = vadd.f32 %v2630_v21, %v2629_v20 }
 0x160   : > { %v1637_v55 = vadd.f32 %v2551_v34, %v4236_v27  ;;  %v2552_v7 = vpop.f32.mrb[48].mxu0 }
 0x161   : > { %v2632_v43 = vpop.f32.mrb[48].mxu1  ;;  %v2553_v49 = vpop.f32.mrb[49].mxu0 }
 0x162   : > { %v2554_v47 = vadd.f32 %v2553_v49, %v2552_v7  ;;  %v2633_v2 = vpop.f32.mrb[49].mxu1  ;;  %v4284_v61 = vadd.f32 %v2631_v30, %v1637_v55 }
 0x163   : > { %v2634_v23 = vadd.f32 %v2633_v2, %v2632_v43 }
 0x164   : > { %v1642_v13 = vadd.f32 %v2554_v47, %v4239_v45  ;;  %v2555_v51 = vpop.f32.mrb[50].mxu0 }
 0x165   : > { %v2635_v52 = vpop.f32.mrb[50].mxu1  ;;  %v2556_v8 = vpop.f32.mrb[51].mxu0 }
 0x166   : > { %v2557_v5 = vadd.f32 %v2556_v8, %v2555_v51  ;;  %v2636_v46 = vpop.f32.mrb[51].mxu1  ;;  %v1787_v14 = vadd.f32 %v2634_v23, %v1642_v13 }
 0x167   : > { %v2637_v10 = vadd.f32 %v2636_v46, %v2635_v52 }
 0x168   : > { %v1647_v22 = vadd.f32 %v2557_v5, %v4242_v12  ;;  %v2558_v27 = vpop.f32.mrb[52].mxu0 }
 0x169   : > { %v2638_v54 = vpop.f32.mrb[52].mxu1  ;;  %v2559_v40 = vpop.f32.mrb[53].mxu0 }
 0x16a   : > { %v2560_v6 = vadd.f32 %v2559_v40, %v2558_v27  ;;  %v2639_v59 = vpop.f32.mrb[53].mxu1  ;;  %v1792_v3 = vadd.f32 %v2637_v10, %v1647_v22 }
 0x16b   : > { %v2640_v42 = vadd.f32 %v2639_v59, %v2638_v54 }
 0x16c   : > { %v1652_v32 = vadd.f32 %v2560_v6, %v4245_v62  ;;  %v2561_v63 = vpop.f32.mrb[54].mxu0 }
 0x16d   : > { %v2641_v45 = vpop.f32.mrb[54].mxu1  ;;  %v2562_v24 = vpop.f32.mrb[55].mxu0 }
 0x16e   : > { %v2563_v31 = vadd.f32 %v2562_v24, %v2561_v63  ;;  %v2642_v48 = vpop.f32.mrb[55].mxu1  ;;  %v1797_v18 = vadd.f32 %v2640_v42, %v1652_v32 }
 0x16f   : > { %v2643_v28 = vadd.f32 %v2642_v48, %v2641_v45 }
 0x170   : > { %v1657_v53 = vadd.f32 %v2563_v31, %v4248_v15  ;;  %v2564_v57 = vpop.f32.mrb[56].mxu0 }
 0x171   : > { %v2644_v12 = vpop.f32.mrb[56].mxu1  ;;  %v2565_v0 = vpop.f32.mrb[57].mxu0 }
 0x172   : > { %v2566_v41 = vadd.f32 %v2565_v0, %v2564_v57  ;;  %v2645_v25 = vpop.f32.mrb[57].mxu1  ;;  %v1802_v50 = vadd.f32 %v2643_v28, %v1657_v53 }
 0x173   : > { %v2646_v38 = vadd.f32 %v2645_v25, %v2644_v12 }
 0x174   : > { %v1662_v1 = vadd.f32 %v2566_v41, %v4251_v16  ;;  %v2567_v11 = vpop.f32.mrb[58].mxu0 }
 0x175   : > { %v2647_v62 = vpop.f32.mrb[58].mxu1  ;;  %v2568_v26 = vpop.f32.mrb[59].mxu0 }
 0x176   : > { %v2569_v60 = vadd.f32 %v2568_v26, %v2567_v11  ;;  %v2648_v35 = vpop.f32.mrb[59].mxu1  ;;  %v1807_v29 = vadd.f32 %v2646_v38, %v1662_v1 }
 0x177   : > { %v2649_v20 = vadd.f32 %v2648_v35, %v2647_v62 }
 0x178   : > { %v1667_v4 = vadd.f32 %v2569_v60, %v4254_v19  ;;  %v2570_v15 = vpop.f32.mrb[60].mxu0 }
 0x179   : > { %v2650_v34 = vpop.f32.mrb[60].mxu1  ;;  %v2571_v21 = vpop.f32.mrb[61].mxu0 }
 0x17a   : > { %v2572_v30 = vadd.f32 %v2571_v21, %v2570_v15  ;;  %v2651_v55 = vpop.f32.mrb[61].mxu1  ;;  %v1812_v7 = vadd.f32 %v2649_v20, %v1667_v4 }
 0x17b   : > { %v2652_v43 = vadd.f32 %v2651_v55, %v2650_v34 }
 0x17c   : > { %v1672_v49 = vadd.f32 %v2572_v30, %v4257_v33  ;;  %v2573_v16 = vpop.f32.mrb[62].mxu0 }
 0x17d   : > { %v2653_v47 = vpop.f32.mrb[62].mxu1  ;;  %v2574_v2 = vpop.f32.mrb[63].mxu0 }
 0x17e   : > { %v2575_v23 = vadd.f32 %v2574_v2, %v2573_v16  ;;  %v2654_v13 = vpop.f32.mrb[63].mxu1  ;;  %v1817_v51 = vadd.f32 %v2652_v43, %v1672_v49 }
 0x17f   : > { %v2655_v52 = vadd.f32 %v2654_v13, %v2653_v47 }
 0x180   : > { %v1677_v8 = vadd.f32 %v2575_v23, %v4260_v39  ;;  %v2722_v19 = vpop.f32.mrb[64].mxu0 }
 0x181   : > { %v1897_v5 = vadd.f32 %v2722_v19, %v4266_v56  ;;  %v2734_v46 = vpop.f32.mrb[64].mxu1  ;;  %v1891_v10 = vpop.f32.mrb[65].mxu0 }
 0x182   : > { %v1937_v33 = vadd.f32 %v2734_v46, %v1792_v3  ;;  %v1892_v22 = vadd.f32 %v1891_v10, %v4263_v9  ;;  %v1931_v27 = vpop.f32.mrb[65].mxu1  ;;  %v1822_v54 = vadd.f32 %v2655_v52, %v1677_v8 }
 0x183   : > { %v1971_v39 = vmax.f32 %v1897_v5, 0.0  ;;  %v1932_v40 = vadd.f32 %v1931_v27, %v1787_v14 }
 0x184   : > { %v1979_v6 = vmax.f32 %v1937_v33, 0.0  ;;  %v1970_v56 = vmax.f32 %v1892_v22, 0.0  ;;  %v2725_v59 = vpop.f32.mrb[66].mxu0 }
 0x185   : > { %1987 = vst [vmem:[%s4299_s23 + $0x8] sm:$0xff] %v1971_v39  ;;  %v1978_v42 = vmax.f32 %v1932_v40, 0.0  ;;  %v1907_v32 = vadd.f32 %v2725_v59, %v4272_v36  ;;  %v2737_v63 = vpop.f32.mrb[66].mxu1  ;;  %v1901_v45 = vpop.f32.mrb[67].mxu0 }
 0x186   : > { %1995 = vst [vmem:[%s4299_s23 + $0x48] sm:$0xff] %v1979_v6  ;;  %1986 = vst [vmem:[%s4299_s23] sm:$0xff] %v1970_v56  ;;  %v1947_v9 = vadd.f32 %v2737_v63, %v1802_v50  ;;  %v1902_v3 = vadd.f32 %v1901_v45, %v4269_v58  ;;  %v1941_v24 = vpop.f32.mrb[67].mxu1 }
 0x187   : > { %1994 = vst [vmem:[%s4299_s23 + $0x40] sm:$0xff] %v1978_v42  ;;  %v1973_v14 = vmax.f32 %v1907_v32, 0.0  ;;  %v1942_v31 = vadd.f32 %v1941_v24, %v1797_v18 }
 0x188   : > { %v1981_v48 = vmax.f32 %v1947_v9, 0.0  ;;  %v1972_v28 = vmax.f32 %v1902_v3, 0.0  ;;  %v2728_v53 = vpop.f32.mrb[68].mxu0 }
 0x189   : > { %1989 = vst [vmem:[%s4299_s23 + $0x18] sm:$0xff] %v1973_v14  ;;  %v1980_v36 = vmax.f32 %v1942_v31, 0.0  ;;  %v1917_v57 = vadd.f32 %v2728_v53, %v4278_v44  ;;  %v2740_v12 = vpop.f32.mrb[68].mxu1  ;;  %v1911_v0 = vpop.f32.mrb[69].mxu0 }
 0x18a   : > { %1997 = vst [vmem:[%s4299_s23 + $0x58] sm:$0xff] %v1981_v48  ;;  %1988 = vst [vmem:[%s4299_s23 + $0x10] sm:$0xff] %v1972_v28  ;;  %v1957_v58 = vadd.f32 %v2740_v12, %v1812_v7  ;;  %v1912_v41 = vadd.f32 %v1911_v0, %v4275_v17  ;;  %v1951_v25 = vpop.f32.mrb[69].mxu1 }
 0x18b   : > { %1996 = vst [vmem:[%s4299_s23 + $0x50] sm:$0xff] %v1980_v36  ;;  %v1975_v18 = vmax.f32 %v1917_v57, 0.0  ;;  %v1952_v50 = vadd.f32 %v1951_v25, %v1807_v29 }
 0x18c   : > { %v1983_v38 = vmax.f32 %v1957_v58, 0.0  ;;  %v1974_v1 = vmax.f32 %v1912_v41, 0.0  ;;  %v2731_v11 = vpop.f32.mrb[70].mxu0 }
 0x18d   : > { %1991 = vst [vmem:[%s4299_s23 + $0x28] sm:$0xff] %v1975_v18  ;;  %v1982_v44 = vmax.f32 %v1952_v50, 0.0  ;;  %v1927_v62 = vadd.f32 %v2731_v11, %v4284_v61  ;;  %v2743_v26 = vpop.f32.mrb[70].mxu1  ;;  %v1921_v60 = vpop.f32.mrb[71].mxu0 }
 0x18e   : > { %1999 = vst [vmem:[%s4299_s23 + $0x68] sm:$0xff] %v1983_v38  ;;  %1990 = vst [vmem:[%s4299_s23 + $0x20] sm:$0xff] %v1974_v1  ;;  %v1967_v17 = vadd.f32 %v2743_v26, %v1822_v54  ;;  %v1922_v35 = vadd.f32 %v1921_v60, %v4281_v37  ;;  %v1961_v20 = vpop.f32.mrb[71].mxu1 }
 0x18f   : > { %1998 = vst [vmem:[%s4299_s23 + $0x60] sm:$0xff] %v1982_v44  ;;  %v1977_v29 = vmax.f32 %v1927_v62, 0.0  ;;  %v1962_v4 = vadd.f32 %v1961_v20, %v1817_v51 }
 0x190   : > { %v1985_v15 = vmax.f32 %v1967_v17, 0.0  ;;  %v1976_v34 = vmax.f32 %v1922_v35, 0.0 }
 0x191   : > { %1993 = vst [vmem:[%s4299_s23 + $0x38] sm:$0xff] %v1977_v29  ;;  %v1984_v21 = vmax.f32 %v1962_v4, 0.0 }
 0x192   : > { %2001 = vst [vmem:[%s4299_s23 + $0x78] sm:$0xff] %v1985_v15  ;;  %1992 = vst [vmem:[%s4299_s23 + $0x30] sm:$0xff] %v1976_v34 }
 0x193   : > { %2000 = vst [vmem:[%s4299_s23 + $0x70] sm:$0xff] %v1984_v21 }
 0x194 PF: > { %s13_s16 = sadd.s32 1, %s2998_s16   ;;  %s4355_s12 = smov %s2990_s14 }
 0x195   : > { %p10_p0 = scmp.ge.s32.totalorder %s13_s16, 6   ;;  %s4356_s13 = smov %s2994_s15 }
 0x196   : > { %s4357_s14 = smov %s4360_s17  ;;  %s4358_s15 = smov %s4364_s18 }
 0x197   :  { %12 = sbr.rel (!%p10_p0) target bundleno = 3 (0x3), region = 83 }

// kernel: dilated_block_forward.6
= control target key start
LH: loop header
LB: loop body
LE: loop exit
PB: predicated region body
PF: predicated region fallthrough
CT: control target
= control target key end

     0   :  { %s3073_s12 = smov 0   ;;  %s3075_s13 = smov 0   ;;  %s4533_s0 = inlined_call_operand.vmem [shape: f32[2,16,16,128], index: 0, kind: input, shape index: {}]   ;;  %s4534_s1 = inlined_call_operand.vmem [shape: f32[1152,128], index: 1, kind: input, shape index: {}]   ;;  %s4535_s2 = inlined_call_operand.vmem [shape: f32[1,128], index: 2, kind: input, shape index: {}]   ;;  %s4536_s3 = inlined_call_operand.vmem [shape: f32[2,16,16,128], index: 3, kind: output, shape index: {}]  }
   0x1   :  { %s3077_s14 = smov 0   ;;  %s3079_s15 = smov 0  }
   0x2   :  { %s3081_s16 = smov 0  }
   0x3 LB: > { %s28_s17 = sadd.s32 1, %s3043_s14  ;;  %s32_s18 = sadd.s32 1, %s3047_s15  ;;  %s3051_s16 = sphi %s3081_s16, %s13_s16   ;;  %s3047_s15 = sphi %s3079_s15, %s4559_s15   ;;  %s3043_s14 = sphi %s3077_s14, %s4558_s14   ;;  %s3039_s13 = sphi %s3075_s13, %s4557_s13   ;;  %s3035_s12 = sphi %s3073_s12, %s4556_s12  }
   0x4   : > { %p30_p0 = scmp.ge.s32.totalorder %s28_s17, 2  ;;  %p2159_p1 = scmp.ge.s32.totalorder %s3051_s16, 1 }
   0x5   : > { %p177_p2 = scmp.lt.s32.totalorder %s3051_s16, 5 }
   0x6   : > { %s4561_s17 = smov (%p30_p0, %s28_s17), 0  ;;  %s4563_s18 = smov (!%p30_p0, %s32_s18), %s3047_s15 }
   0x7   : > { %p178_p3 = pnand %p2159_p1, %p177_p2  ;;  %p34_p4 = scmp.ge.s32.totalorder %s4563_s18, 2 }
   0x8   : > { %v1097_v0 = vld [vmem:[%s4534_s1 + $0x80] sm:$0xff] (!%p178_p3)  ;;  %v1098_v1 = vld [vmem:[%s4534_s1 + $0x88] sm:$0xff] (!%p178_p3)  ;;  %p216_p5 = scmp.lt.s32.totalorder (!%p178_p3), %s3039_s13, 1  ;;  %s3118_s25 = sshll.u32 (!%p178_p3), %s3035_s12, 3  ;;  %v1099_v11 = vld [vmem:[%s4534_s1 + $0x90] sm:$0xff] (!%p178_p3)  ;;  %vm406_vm0 = vcmask (!%p178_p3), 1043456  }
   0x9   : > { %s4565_s18 = smov (%p34_p4, %s4563_s18), 0  ;;  %181 = sbr.rel (%p178_p3) target bundleno = 404 (0x194), region = 32 }
   0xa   : > { %v1129_v2 = vld [vmem:[%s4534_s1 + $0x180] sm:$0xff] (!%p178_p3)  ;;  %v2797_v3 = vpack.c.bf16 (!%p178_p3), %v1098_v1, %v1097_v0  ;;  %v1130_v4 = vld [vmem:[%s4534_s1 + $0x188] sm:$0xff] (!%p178_p3)  ;;  %s3130_s5 = sadd.s32 (!%p178_p3), 4294967292, %s3118_s25  ;;  %v1100_v13 = vld [vmem:[%s4534_s1 + $0x98] sm:$0xff] (!%p178_p3)  ;;  %s2300_s19 = sshll.u32 (!%p178_p3), %s3035_s12, 7 }
   0xb   : > { %v1081_v5 = vld [vmem:[%s4534_s1] sm:$0xff] (!%p178_p3)  ;;  %v1082_v6 = vld [vmem:[%s4534_s1 + $0x8] sm:$0xff] (!%p178_p3)  ;;  %v2829_v7 = vpack.c.bf16 (!%p178_p3), %v1130_v4, %v1129_v2  ;;  %v1131_v14 = vld [vmem:[%s4534_s1 + $0x190] sm:$0xff] (!%p178_p3)  ;;  %p248_p6 = scmp.gt.s32.totalorder (!%p178_p3), %s3130_s5, 0  ;;  %v2801_v16 = vpack.c.bf16 (!%p178_p3), %v1100_v13, %v1099_v11  ;;  %p2167_p7 = scmp.lt.s32.totalorder (!%p178_p3), %s3130_s5, 15 }
   0xc   : > { %v2799_v8 = vpack.c.bf16 (!%p178_p3), %v1082_v6, %v1081_v5  ;;  %v1113_v9 = vld [vmem:[%s4534_s1 + $0x100] sm:$0xff] (!%p178_p3)  ;;  %v1114_v10 = vld [vmem:[%s4534_s1 + $0x108] sm:$0xff] (!%p178_p3)  ;;  %2798 = vmatprep.subr.bf16.mxu0 (!%p178_p3), %v2797_v3  ;;  %v1132_v15 = vld [vmem:[%s4534_s1 + $0x198] sm:$0xff] (!%p178_p3)  ;;  %p256_p8 = scmp.ge.s32.totalorder (!%p178_p3), %s3130_s5, 0  ;;  %p257_p9 = scmp.lt.s32.totalorder (!%p178_p3), %s3130_s5, 16 }
   0xd   : > { %v2831_v12 = vpack.c.bf16 (!%p178_p3), %v1114_v10, %v1113_v9  ;;  %2830 = vmatprep.subr.bf16.mxu1 (!%p178_p3), %v2829_v7  ;;  %v2833_v17 = vpack.c.bf16 (!%p178_p3), %v1132_v15, %v1131_v14  ;;  %v1083_v18 = vld [vmem:[%s4534_s1 + $0x10] sm:$0xff] (!%p178_p3)  ;;  %v1084_v19 = vld [vmem:[%s4534_s1 + $0x18] sm:$0xff] (!%p178_p3)  ;;  %v1101_v23 = vld [vmem:[%s4534_s1 + $0xa0] sm:$0xff] (!%p178_p3)  ;;  %s3245_s9 = sadd.s32 (!%p178_p3), 4294967293, %s3118_s25  ;;  %s3295_s22 = sadd.s32 (!%p178_p3), 4294967294, %s3118_s25 }
   0xe   : > { %2800 = vmatpush3.bf16.msra.mxu0 (!%p178_p3), %v2799_v8  ;;  %v1115_v20 = vld [vmem:[%s4534_s1 + $0x110] sm:$0xff] (!%p178_p3)  ;;  %v2803_v21 = vpack.c.bf16 (!%p178_p3), %v1084_v19, %v1083_v18  ;;  %v1116_v22 = vld [vmem:[%s4534_s1 + $0x118] sm:$0xff] (!%p178_p3)  ;;  %v1102_v24 = vld [vmem:[%s4534_s1 + $0xa8] sm:$0xff] (!%p178_p3)  ;;  %p3202_p10 = pnand (!%p178_p3), %p257_p9, %p256_p8  ;;  %p266_p11 = scmp.gt.s32.totalorder (!%p178_p3), %s3245_s9, 0 }
   0xf   : > { %2832 = vmatpush3.bf16.msra.mxu1 (!%p178_p3), %v2831_v12  ;;  %2802 = vmatprep.subr.bf16.mxu0 (!%p178_p3), %v2801_v16  ;;  %v2835_v25 = vpack.c.bf16 (!%p178_p3), %v1116_v22, %v1115_v20  ;;  %v2805_v26 = vpack.c.bf16 (!%p178_p3), %v1102_v24, %v1101_v23  ;;  %v1133_v27 = vld [vmem:[%s4534_s1 + $0x1a0] sm:$0xff] (!%p178_p3)  ;;  %v1134_v28 = vld [vmem:[%s4534_s1 + $0x1a8] sm:$0xff] (!%p178_p3)  ;;  %v1103_v35 = vld [vmem:[%s4534_s1 + $0xb0] sm:$0xff] (!%p178_p3)  ;;  %p2174_p12 = scmp.lt.s32.totalorder (!%p178_p3), %s3245_s9, 15  ;;  %p274_p13 = scmp.ge.s32.totalorder (!%p178_p3), %s3245_s9, 0 }
  0x10   : > { %s4567_s13 = smov (!%p216_p5, %s3039_s13), 1  ;;  %2834 = vmatprep.subr.bf16.mxu1 %v2833_v17  ;;  %v1085_v29 = vld [vmem:[%s4534_s1 + $0x20] sm:$0xff]  ;;  %v2837_v30 = vpack.c.bf16 %v1134_v28, %v1133_v27  ;;  %v1086_v31 = vld [vmem:[%s4534_s1 + $0x28] sm:$0xff]  ;;  %v1104_v36 = vld [vmem:[%s4534_s1 + $0xb8] sm:$0xff]  ;;  %p275_p0 = scmp.lt.s32.totalorder %s3245_s9, 16 }
  0x11   : > { %s249_s27 = scalar_select %p248_p6, %s3130_s5, 0  ;;  %v1117_v32 = vld [vmem:[%s4534_s1 + $0x120] sm:$0xff]  ;;  %v1118_v33 = vld [vmem:[%s4534_s1 + $0x128] sm:$0xff]  ;;  %v2807_v34 = vpack.c.bf16 %v1086_v31, %v1085_v29  ;;  %v1135_v37 = vld [vmem:[%s4534_s1 + $0x1b0] sm:$0xff]  ;;  %v2809_v39 = vpack.c.bf16 %v1104_v36, %v1103_v35 }
  0x12   : > { %s2283_s8 = sshll.u32 %s4567_s13, 8  ;;  %2804 = vmatpush3.bf16.msra.mxu0 %v2803_v21  ;;  %v2839_v38 = vpack.c.bf16 %v1118_v33, %v1117_v32  ;;  %v1136_v40 = vld [vmem:[%s4534_s1 + $0x1b8] sm:$0xff]  ;;  %v1087_v41 = vld [vmem:[%s4534_s1 + $0x30] sm:$0xff]  ;;  %v1105_v46 = vld [vmem:[%s4534_s1 + $0xc0] sm:$0xff]  ;;  %p3290_p1 = pnand %p275_p0, %p274_p13 }
  0x13   : > { %s4569_s27 = smov (!%p2167_p7, %s249_s27), 15  ;;  %2836 = vmatpush3.bf16.msra.mxu1 %v2835_v25  ;;  %2806 = vmatprep.subr.bf16.mxu0 %v2805_v26  ;;  %v1088_v42 = vld [vmem:[%s4534_s1 + $0x38] sm:$0xff]  ;;  %v2841_v43 = vpack.c.bf16 %v1136_v40, %v1135_v37  ;;  %v1119_v44 = vld [vmem:[%s4534_s1 + $0x130] sm:$0xff]  ;;  %s3242_s24 = scalar_lea.vmem %s4533_s0, %s2283_s8  ;;  %v1106_v47 = vld [vmem:[%s4534_s1 + $0xc8] sm:$0xff] }
  0x14   : > { %s2173_s5 = scalar_select %p3202_p10, 0, 1  ;;  %2838 = vmatprep.subr.bf16.mxu1 %v2837_v30  ;;  %v1120_v45 = vld [vmem:[%s4534_s1 + $0x138] sm:$0xff]  ;;  %v1137_v48 = vld [vmem:[%s4534_s1 + $0x1c0] sm:$0xff]  ;;  %v1138_v49 = vld [vmem:[%s4534_s1 + $0x1c8] sm:$0xff]  ;;  %v2811_v50 = vpack.c.bf16 %v1088_v42, %v1087_v41  ;;  %v2813_v52 = vpack.c.bf16 %v1106_v47, %v1105_v46 }
  0x15   : > { %s2172_s8 = sshll.u32 %s4569_s27, 4  ;;  %v2843_v51 = vpack.c.bf16 %v1120_v45, %v1119_v44  ;;  %v1089_v53 = vld [vmem:[%s4534_s1 + $0x40] sm:$0xff]  ;;  %v1090_v54 = vld [vmem:[%s4534_s1 + $0x48] sm:$0xff]  ;;  %v2845_v56 = vpack.c.bf16 %v1138_v49, %v1137_v48  ;;  %v1107_v58 = vld [vmem:[%s4534_s1 + $0xd0] sm:$0xff]  ;;  %p284_p2 = scmp.gt.s32.totalorder %s3295_s22, 0 }
  0x16   : > { %s3257_s7 = scvt.s32.f32 %s2173_s5  ;;  %2808 = vmatpush3.bf16.msra.mxu0 %v2807_v34  ;;  %v1121_v55 = vld [vmem:[%s4534_s1 + $0x140] sm:$0xff]  ;;  %v1122_v57 = vld [vmem:[%s4534_s1 + $0x148] sm:$0xff]  ;;  %v1108_v59 = vld [vmem:[%s4534_s1 + $0xd8] sm:$0xff]  ;;  %v2815_v62 = vpack.c.bf16 %v1090_v54, %v1089_v53  ;;  %s253_s28 = scalar_lea.vmem %s3242_s24, %s2172_s8 }
  0x17   : > { %2840 = vmatpush3.bf16.msra.mxu1 %v2839_v38  ;;  %2810 = vmatprep.subr.bf16.mxu0 %v2809_v39  ;;  %s267_s6 = scalar_select %p266_p11, %s3245_s9, 0  ;;  %v1139_v60 = vld [vmem:[%s4534_s1 + $0x1d0] sm:$0xff]  ;;  %v1140_v61 = vld [vmem:[%s4534_s1 + $0x1d8] sm:$0xff]  ;;  %v2847_v63 = vpack.c.bf16 %v1122_v57, %v1121_v55  ;;  %v2817_v0 = vpack.c.bf16 %v1108_v59, %v1107_v58  ;;  %v1109_v6 = vld [vmem:[%s4534_s1 + $0xe0] sm:$0xff] }
  0x18   : > { %2842 = vmatprep.subr.bf16.mxu1 %v2841_v43  ;;  %v1091_v1 = vld [vmem:[%s4534_s1 + $0x50] sm:$0xff]  ;;  %v1092_v2 = vld [vmem:[%s4534_s1 + $0x58] sm:$0xff]  ;;  %v2849_v4 = vpack.c.bf16 %v1140_v61, %v1139_v60  ;;  %v1110_v7 = vld [vmem:[%s4534_s1 + $0xe8] sm:$0xff]  ;;  %v262_v10 = vstv %s3257_s7  ;;  %s3335_s10 = scalar_lea.vmem %s3242_s24, %s2300_s19  ;;  %p2181_p3 = scmp.lt.s32.totalorder %s3295_s22, 15 }
  0x19   : > { %s4571_s6 = smov (!%p2174_p12, %s267_s6), 15  ;;  %v1123_v3 = vld [vmem:[%s4534_s1 + $0x150] sm:$0xff]  ;;  %v1124_v5 = vld [vmem:[%s4534_s1 + $0x158] sm:$0xff]  ;;  %v1141_v8 = vld [vmem:[%s4534_s1 + $0x1e0] sm:$0xff]  ;;  %v2819_v11 = vpack.c.bf16 %v1092_v2, %v1091_v1  ;;  %v2821_v16 = vpack.c.bf16 %v1110_v7, %v1109_v6  ;;  %p292_p4 = scmp.ge.s32.totalorder %s3295_s22, 0 }
  0x1a   : > { %2812 = vmatpush3.bf16.msra.mxu0 %v2811_v50  ;;  %v1142_v9 = vld [vmem:[%s4534_s1 + $0x1e8] sm:$0xff]  ;;  %s2179_s11 = sshll.u32 %s4571_s6, 4  ;;  %v1093_v12 = vld [vmem:[%s4534_s1 + $0x60] sm:$0xff]  ;;  %v2851_v15 = vpack.c.bf16 %v1124_v5, %v1123_v3  ;;  %v1111_v18 = vld [vmem:[%s4534_s1 + $0xf0] sm:$0xff]  ;;  %p293_p5 = scmp.lt.s32.totalorder %s3295_s22, 16 }
  0x1b   : > { %2844 = vmatpush3.bf16.msra.mxu1 %v2843_v51  ;;  %2814 = vmatprep.subr.bf16.mxu0 %v2813_v52  ;;  %v1094_v13 = vld [vmem:[%s4534_s1 + $0x68] sm:$0xff]  ;;  %v1125_v14 = vld [vmem:[%s4534_s1 + $0x160] sm:$0xff]  ;;  %s3348_s12 = scalar_select %p284_p2, %s3295_s22, 0  ;;  %v2853_v20 = vpack.c.bf16 %v1142_v9, %v1141_v8  ;;  %v1112_v21 = vld [vmem:[%s4534_s1 + $0xf8] sm:$0xff] }
  0x1c   : > { %2846 = vmatprep.subr.bf16.mxu1 %v2845_v56  ;;  %v1126_v17 = vld [vmem:[%s4534_s1 + $0x168] sm:$0xff]  ;;  %v254_v19 = vld [vmem:[%s253_s28] sm:$0xff]  ;;  %s3368_s27 = sadd.s32 4294967295, %s3118_s25  ;;  %v1143_v25 = vld [vmem:[%s4534_s1 + $0x1f0] sm:$0xff]  ;;  %v2823_v29 = vpack.c.bf16 %v1094_v13, %v1093_v12  ;;  %p3395_p6 = pnand %p293_p5, %p292_p4  ;;  %v2825_v31 = vpack.c.bf16 %v1112_v21, %v1111_v18 }
  0x1d   : > { %v255_v22 = vld [vmem:[%s253_s28 + $0x8] sm:$0xff]  ;;  %v3361_v23 = vmul.f32 %v262_v10, %v254_v19  ;;  %v3364_v24 = vld [vmem:[%s3335_s10] sm:$0xff]  ;;  %v1144_v26 = vld [vmem:[%s4534_s1 + $0x1f8] sm:$0xff]  ;;  %s3385_s28 = scalar_lea.vmem %s3242_s24, %s2179_s11  ;;  %p302_p7 = scmp.gt.s32.totalorder %s3368_s27, 0  ;;  %v2855_v30 = vpack.c.bf16 %v1126_v17, %v1125_v14 }
  0x1e   : > { %2816 = vmatpush3.bf16.msra.mxu0 %v2815_v62  ;;  %v553_v27 = vrot.slane %v3364_v24, 4  ;;  %vm3378_vm1 = vmneg %vm406_vm0  ;;  %s4541_s4 = scalar_select %p3290_p1, 0, 1  ;;  %v1095_v32 = vld [vmem:[%s4534_s1 + $0x70] sm:$0xff]  ;;  %v1096_v33 = vld [vmem:[%s4534_s1 + $0x78] sm:$0xff]  ;;  %v3409_v35 = vmul.f32 %v262_v10, %v255_v22  ;;  %v2857_v36 = vpack.c.bf16 %v1144_v26, %v1143_v25 }
  0x1f   : > { %2848 = vmatpush3.bf16.msra.mxu1 %v2847_v63  ;;  %2818 = vmatprep.subr.bf16.mxu0 %v2817_v0  ;;  %v1127_v34 = vld [vmem:[%s4534_s1 + $0x170] sm:$0xff]  ;;  %s4573_s12 = smov (!%p2181_p3, %s3348_s12), 15  ;;  %v1128_v37 = vld [vmem:[%s4534_s1 + $0x178] sm:$0xff]  ;;  %v1161_v38 = vld [vmem:[%s4534_s1 + $0x280] sm:$0xff]  ;;  %p2188_p8 = scmp.lt.s32.totalorder %s3368_s27, 15  ;;  %v2827_v42 = vpack.c.bf16 %v1096_v33, %v1095_v32  ;;  %v407_v43 = vrot.slane %v3361_v23, 4 }
  0x20   : > { %2850 = vmatprep.subr.bf16.mxu1 %v2849_v4  ;;  %s3390_s19 = scvt.s32.f32 %s4541_s4  ;;  %1296 = vmatprep.mubr.f32.mxu0 %v3361_v23  ;;  %v1162_v39 = vld [vmem:[%s4534_s1 + $0x288] sm:$0xff]  ;;  %p310_p9 = scmp.ge.s32.totalorder %s3368_s27, 0  ;;  %v1193_v40 = vld [vmem:[%s4534_s1 + $0x380] sm:$0xff]  ;;  %v2859_v46 = vpack.c.bf16 %v1128_v37, %v1127_v34  ;;  %v408_v47 = vrot.slane %v3409_v35, 4  ;;  %v1163_v57 = vld [vmem:[%s4534_s1 + $0x290] sm:$0xff] }
  0x21   : > { %2334 = vmatprep.mubr.msk.f32.mxu1 %vm3378_vm1, %v553_v27  ;;  %v1194_v41 = vld [vmem:[%s4534_s1 + $0x388] sm:$0xff]  ;;  %s2187_s26 = scalar_select %p3395_p6, 0, 1  ;;  %v1145_v44 = vld [vmem:[%s4534_s1 + $0x200] sm:$0xff]  ;;  %v2861_v48 = vpack.c.bf16 %v1162_v39, %v1161_v38  ;;  %v1164_v58 = vld [vmem:[%s4534_s1 + $0x298] sm:$0xff] }
  0x22   : > { %2820 = vmatpush3.bf16.msra.mxu0 %v2819_v11  ;;  %v3444_v45 = vld [vmem:[%s3335_s10 + $0x8] sm:$0xff]  ;;  %s303_s30 = scalar_select %p302_p7, %s3368_s27, 0  ;;  %v272_v50 = vld [vmem:[%s3385_s28] sm:$0xff]  ;;  %v280_v52 = vstv %s3390_s19  ;;  %v2893_v53 = vpack.c.bf16 %v1194_v41, %v1193_v40  ;;  %v1195_v62 = vld [vmem:[%s4534_s1 + $0x390] sm:$0xff]  ;;  %v409_v0 = vsel %vm406_vm0, %v407_v43, %v408_v47  ;;  %v2865_v4 = vpack.c.bf16 %v1164_v58, %v1163_v57 }
  0x23   : > { %2852 = vmatpush3.bf16.msra.mxu1 %v2851_v15  ;;  %2822 = vmatprep.subr.bf16.mxu0 %v2821_v16  ;;  %v1146_v49 = vld [vmem:[%s4534_s1 + $0x208] sm:$0xff]  ;;  %s2186_s21 = sshll.u32 %s4573_s12, 4  ;;  %p311_p10 = scmp.lt.s32.totalorder %s3368_s27, 16  ;;  %v1177_v54 = vld [vmem:[%s4534_s1 + $0x300] sm:$0xff]  ;;  %v554_v56 = vrot.slane %v3444_v45, 4  ;;  %v3481_v60 = vmul.f32 %v280_v52, %v272_v50  ;;  %v1196_v63 = vld [vmem:[%s4534_s1 + $0x398] sm:$0xff] }
  0x24   : > { %2854 = vmatprep.subr.bf16.mxu1 %v2853_v20  ;;  %v273_v51 = vld [vmem:[%s3385_s28 + $0x8] sm:$0xff]  ;;  %s4575_s30 = smov (!%p2188_p8, %s303_s30), 15  ;;  %v2863_v59 = vpack.c.bf16 %v1146_v49, %v1145_v44  ;;  %s3492_s27 = scalar_lea.vmem %s3242_s24, %s2186_s21  ;;  %v3498_v2 = vld [vmem:[%s3335_s10 + $0x10] sm:$0xff]  ;;  %v1148_v5 = vld [vmem:[%s4534_s1 + $0x218] sm:$0xff]  ;;  %v2897_v9 = vpack.c.bf16 %v1196_v63, %v1195_v62 }
  0x25   : > { %v1178_v55 = vld [vmem:[%s4534_s1 + $0x308] sm:$0xff]  ;;  %p3477_p11 = pnand %p311_p10, %p310_p9  ;;  %v3483_v61 = vmul.f32 %v280_v52, %v273_v51  ;;  %v1147_v3 = vld [vmem:[%s4534_s1 + $0x210] sm:$0xff]  ;;  %s3506_s4 = scvt.s32.f32 %s2187_s26  ;;  %v1180_v7 = vld [vmem:[%s4534_s1 + $0x318] sm:$0xff]  ;;  %v3527_v8 = vsel %vm406_vm0, %v553_v27, %v554_v56  ;;  %v410_v13 = vrot.slane %v3481_v60, 4  ;;  %v556_v17 = vrot.slane %v3498_v2, 4 }
  0x26   : > { %2824 = vmatpush3.bf16.msra.mxu0 %v2823_v29  ;;  %v2895_v1 = vpack.c.bf16 %v1178_v55, %v1177_v54  ;;  %p231_p12 = scmp.lt.s32.totalorder %s3118_s25, 15  ;;  %v1179_v6 = vld [vmem:[%s4534_s1 + $0x310] sm:$0xff]  ;;  %s2193_s7 = sshll.u32 %s4575_s30, 4  ;;  %v3530_v10 = vld [vmem:[%s3335_s10 + $0x18] sm:$0xff]  ;;  %v1165_v11 = vld [vmem:[%s4534_s1 + $0x2a0] sm:$0xff]  ;;  %v2867_v18 = vpack.c.bf16 %v1148_v5, %v1147_v3 }
  0x27   : > { %2856 = vmatpush3.bf16.msra.mxu1 %v2855_v30  ;;  %2826 = vmatprep.subr.bf16.mxu0 %v2825_v31  ;;  %s2164_s26 = sshll.u32 %s4567_s13, 5  ;;  %v1166_v12 = vld [vmem:[%s4534_s1 + $0x2a8] sm:$0xff]  ;;  %v411_v14 = vrot.slane %v3483_v61, 4  ;;  %v1197_v15 = vld [vmem:[%s4534_s1 + $0x3a0] sm:$0xff]  ;;  %p319_p13 = scmp.gt.s32.totalorder %s3118_s25, 0  ;;  %v2899_v21 = vpack.c.bf16 %v1180_v7, %v1179_v6  ;;  %v557_v22 = vrot.slane %v3530_v10, 4  ;;  %v298_v23 = vstv %s3506_s4 }
  0x28   : > { %2858 = vmatprep.subr.bf16.mxu1 %v2857_v36  ;;  %s2194_s22 = scalar_select %p3477_p11, 0, 1  ;;  %v1198_v16 = vld [vmem:[%s4534_s1 + $0x3a8] sm:$0xff]  ;;  %v290_v19 = vld [vmem:[%s3492_s27] sm:$0xff]  ;;  %v2869_v25 = vpack.c.bf16 %v1166_v12, %v1165_v11  ;;  %v1167_v32 = vld [vmem:[%s4534_s1 + $0x2b0] sm:$0xff] }
  0x29   : > { %s232_s12 = scalar_select %p231_p12, %s3118_s25, 15  ;;  %v291_v20 = vld [vmem:[%s3492_s27 + $0x8] sm:$0xff]  ;;  %v1149_v26 = vld [vmem:[%s4534_s1 + $0x220] sm:$0xff]  ;;  %v2901_v30 = vpack.c.bf16 %v1198_v16, %v1197_v15  ;;  %v1168_v33 = vld [vmem:[%s4534_s1 + $0x2b8] sm:$0xff]  ;;  %v412_v34 = vsel %vm406_vm0, %v410_v13, %v411_v14  ;;  %v3614_v37 = vmul.f32 %v298_v23, %v290_v19 }
  0x2a   : > { %2828 = vmatpush3.bf16.msra.mxu0 %v2827_v42  ;;  %p327_p0 = scmp.ge.s32.totalorder %s3118_s25, 0  ;;  %v1150_v27 = vld [vmem:[%s4534_s1 + $0x228] sm:$0xff]  ;;  %v1181_v29 = vld [vmem:[%s4534_s1 + $0x320] sm:$0xff]  ;;  %p328_p1 = scmp.lt.s32.totalorder %s3118_s25, 16  ;;  %v1199_v36 = vld [vmem:[%s4534_s1 + $0x3b0] sm:$0xff]  ;;  %v3616_v38 = vmul.f32 %v298_v23, %v291_v20  ;;  %v3633_v42 = vsel %vm406_vm0, %v556_v17, %v557_v22  ;;  %v2873_v44 = vpack.c.bf16 %v1168_v33, %v1167_v32 }
  0x2b   : > { %2860 = vmatpush3.bf16.msra.mxu1 %v2859_v46  ;;  %2862 = vmatprep.subr.bf16.mxu0 %v2861_v48  ;;  %s2163_s20 = sshll.u32 %s232_s12, 1  ;;  %v1182_v31 = vld [vmem:[%s4534_s1 + $0x328] sm:$0xff]  ;;  %s3584_s5 = sadd.s32 1, %s3118_s25  ;;  %v3619_v39 = vld [vmem:[%s3335_s10 + $0x20] sm:$0xff]  ;;  %v2871_v40 = vpack.c.bf16 %v1150_v27, %v1149_v26  ;;  %v1151_v46 = vld [vmem:[%s4534_s1 + $0x230] sm:$0xff]  ;;  %v413_v57 = vrot.slane %v3614_v37, 4 }
  0x2c   : > { %2894 = vmatprep.subr.bf16.mxu1 %v2893_v53  ;;  %s3581_s12 = sadd.s32 %s2164_s26, %s2163_s20  ;;  %s3596_s29 = scalar_lea.vmem %s3242_s24, %s2193_s7  ;;  %v3622_v41 = vld [vmem:[%s3335_s10 + $0x28] sm:$0xff]  ;;  %v1183_v48 = vld [vmem:[%s4534_s1 + $0x330] sm:$0xff]  ;;  %v1184_v50 = vld [vmem:[%s4534_s1 + $0x338] sm:$0xff]  ;;  %v559_v53 = vrot.slane %v3619_v39, 4  ;;  %v414_v58 = vrot.slane %v3616_v38, 4 }
  0x2d   : > { %2318 = vmatmul.mubr.msk.f32.vlgmr.msra.gmra.mrb[0].mxu0 %vm3378_vm1, %v407_v43  ;;  %p3608_p2 = pnand %p328_p1, %p327_p0  ;;  %s3627_s30 = scvt.s32.f32 %s2194_s22  ;;  %v2903_v43 = vpack.c.bf16 %v1182_v31, %v1181_v29  ;;  %v1169_v51 = vld [vmem:[%s4534_s1 + $0x2c0] sm:$0xff]  ;;  %v1170_v52 = vld [vmem:[%s4534_s1 + $0x2c8] sm:$0xff]  ;;  %v1171_v11 = vld [vmem:[%s4534_s1 + $0x2d0] sm:$0xff] }
  0x2e   : > { %1442 = vmatmul.mubr.f32.vlgmr.msra.gmra.mrb[0].mxu1 %v409_v0  ;;  %2864 = vmatpush3.bf16.msra.mxu0 %v2863_v59  ;;  %p337_p3 = scmp.gt.s32.totalorder %s3584_s5, 0  ;;  %v1201_v54 = vld [vmem:[%s4534_s1 + $0x3c0] sm:$0xff]  ;;  %v1202_v55 = vld [vmem:[%s4534_s1 + $0x3c8] sm:$0xff]  ;;  %p2202_p4 = scmp.lt.s32.totalorder %s3584_s5, 15  ;;  %v2877_v3 = vpack.c.bf16 %v1170_v52, %v1169_v51  ;;  %v1172_v12 = vld [vmem:[%s4534_s1 + $0x2d8] sm:$0xff] }
  0x2f   : > { %2896 = vmatpush3.bf16.msra.mxu1 %v2895_v1  ;;  %1301 = vmatprep.mubr.f32.mxu0 %v3409_v35  ;;  %v1200_v35 = vld [vmem:[%s4534_s1 + $0x3b8] sm:$0xff]  ;;  %s320_s21 = scalar_select %p319_p13, %s3118_s25, 0  ;;  %v308_v59 = vld [vmem:[%s3596_s29] sm:$0xff]  ;;  %v316_v62 = vstv %s3627_s30  ;;  %v2907_v1 = vpack.c.bf16 %v1184_v50, %v1183_v48  ;;  %v1154_v5 = vld [vmem:[%s4534_s1 + $0x248] sm:$0xff]  ;;  %v2909_v7 = vpack.c.bf16 %v1202_v55, %v1201_v54  ;;  %v2881_v23 = vpack.c.bf16 %v1172_v12, %v1171_v11 }
  0x30   : > { %1446 = vmatprep.mubr.f32.mxu1 %v3527_v8  ;;  %2866 = vmatprep.subr.bf16.mxu0 %v2865_v4  ;;  %v2905_v49 = vpack.c.bf16 %v1200_v35, %v1199_v36  ;;  %s2201_s19 = scalar_select %p3608_p2, 0, 1  ;;  %v1153_v4 = vld [vmem:[%s4534_s1 + $0x240] sm:$0xff]  ;;  %v1203_v16 = vld [vmem:[%s4534_s1 + $0x3d0] sm:$0xff]  ;;  %v1156_v26 = vld [vmem:[%s4534_s1 + $0x258] sm:$0xff] }
  0x31   : > { %1302 = vmatmul.mubr.f32.gmra.mrb[2].mxu0 %v409_v0  ;;  %2898 = vmatprep.subr.bf16.mxu1 %v2897_v9  ;;  %s4577_s21 = smov (!%p231_p12, %s320_s21), 15  ;;  %v560_v0 = vrot.slane %v3622_v41, 4  ;;  %v1185_v6 = vld [vmem:[%s4534_s1 + $0x340] sm:$0xff]  ;;  %p345_p5 = scmp.ge.s32.totalorder %s3584_s5, 0  ;;  %v1186_v9 = vld [vmem:[%s4534_s1 + $0x348] sm:$0xff]  ;;  %v2879_v19 = vpack.c.bf16 %v1154_v5, %v1153_v4  ;;  %v1187_v27 = vld [vmem:[%s4534_s1 + $0x350] sm:$0xff] }
  0x32   : > { %2335 = vmatmul.mubr.msk.f32.gmra.mrb[2].mxu1 %vm406_vm0, %v408_v47  ;;  %1306 = vmatprep.mubr.f32.mxu0 %v3481_v60  ;;  %v1152_v47 = vld [vmem:[%s4534_s1 + $0x238] sm:$0xff]  ;;  %v309_v60 = vld [vmem:[%s3596_s29 + $0x8] sm:$0xff]  ;;  %s3676_s4 = scvt.s32.f32 %s2201_s19  ;;  %s2200_s22 = sshll.u32 %s4577_s21, 4  ;;  %v1173_v31 = vld [vmem:[%s4534_s1 + $0x2e0] sm:$0xff] }
  0x33   : > { %2337 = vmatprep.mubr.msk.f32.mxu1 %vm3378_vm1, %v556_v17  ;;  %2868 = vmatpush3.bf16.msra.mxu0 %v2867_v18  ;;  %v2875_v63 = vpack.c.bf16 %v1152_v47, %v1151_v46  ;;  %s3691_s21 = scalar_lea.vmem %s3242_s24, %s2200_s22  ;;  %p346_p6 = scmp.lt.s32.totalorder %s3584_s5, 16  ;;  %v3709_v15 = vmul.f32 %v316_v62, %v309_v60  ;;  %v1204_v17 = vld [vmem:[%s4534_s1 + $0x3d8] sm:$0xff]  ;;  %v3745_v20 = vsel %vm406_vm0, %v559_v53, %v560_v0  ;;  %v1174_v32 = vld [vmem:[%s4534_s1 + $0x2e8] sm:$0xff]  ;;  %v1205_v36 = vld [vmem:[%s4534_s1 + $0x3e0] sm:$0xff] }
  0x34   : > { %2900 = vmatpush3.bf16.msra.mxu1 %v2899_v21  ;;  %2870 = vmatprep.subr.bf16.mxu0 %v2869_v25  ;;  %s338_s20 = scalar_select %p337_p3, %s3584_s5, 0  ;;  %v3729_v18 = vld [vmem:[%s3335_s10 + $0x38] sm:$0xff]  ;;  %v2911_v21 = vpack.c.bf16 %v1186_v9, %v1185_v6  ;;  %v1155_v25 = vld [vmem:[%s4534_s1 + $0x250] sm:$0xff]  ;;  %v2913_v29 = vpack.c.bf16 %v1204_v17, %v1203_v16  ;;  %v1206_v35 = vld [vmem:[%s4534_s1 + $0x3e8] sm:$0xff]  ;;  %v2885_v51 = vpack.c.bf16 %v1174_v32, %v1173_v31 }
  0x35   : > { %2320 = vmatmul.mubr.msk.f32.gmra.mrb[4].mxu0 %vm3378_vm1, %v410_v13  ;;  %2902 = vmatprep.subr.bf16.mxu1 %v2901_v30  ;;  %v3707_v13 = vmul.f32 %v316_v62, %v308_v59  ;;  %p3735_p7 = pnand %p346_p6, %p345_p5  ;;  %s3740_s29 = sadd.s32 2, %s3118_s25  ;;  %v1188_v30 = vld [vmem:[%s4534_s1 + $0x358] sm:$0xff]  ;;  %v563_v46 = vrot.slane %v3729_v18, 4  ;;  %v325_v47 = vld [vmem:[%s3691_s21] sm:$0xff]  ;;  %v326_v48 = vld [vmem:[%s3691_s21 + $0x8] sm:$0xff] }
  0x36   : > { %1452 = vmatmul.mubr.f32.gmra.mrb[4].mxu1 %v412_v34  ;;  %1311 = vmatprep.mubr.f32.mxu0 %v3483_v61  ;;  %v415_v61 = vsel %vm406_vm0, %v413_v57, %v414_v58  ;;  %s4579_s20 = smov (!%p2202_p4, %s338_s20), 15  ;;  %p355_p8 = scmp.gt.s32.totalorder %s3740_s29, 0  ;;  %v2915_v50 = vpack.c.bf16 %v1188_v30, %v1187_v27  ;;  %v1189_v52 = vld [vmem:[%s4534_s1 + $0x360] sm:$0xff]  ;;  %v1190_v54 = vld [vmem:[%s4534_s1 + $0x368] sm:$0xff]  ;;  %v1175_v55 = vld [vmem:[%s4534_s1 + $0x2f0] sm:$0xff] }
  0x37   : > { %1456 = vmatprep.mubr.f32.mxu1 %v3633_v42  ;;  %2872 = vmatpush3.bf16.msra.mxu0 %v2871_v40  ;;  %s2208_s5 = scalar_select %p3735_p7, 0, 1  ;;  %v416_v33 = vrot.slane %v3707_v13, 4  ;;  %v2883_v40 = vpack.c.bf16 %v1156_v26, %v1155_v25  ;;  %v1207_v60 = vld [vmem:[%s4534_s1 + $0x3f0] sm:$0xff]  ;;  %v2919_v5 = vpack.c.bf16 %v1190_v54, %v1189_v52  ;;  %v1160_v9 = vld [vmem:[%s4534_s1 + $0x278] sm:$0xff]  ;;  %v1209_v16 = vld [vmem:[%s4534_s1 + $0x400] sm:$0xff] }
  0x38   : > { %2904 = vmatpush3.bf16.msra.mxu1 %v2903_v43  ;;  %2874 = vmatprep.subr.bf16.mxu0 %v2873_v44  ;;  %s2207_s26 = sshll.u32 %s4579_s20, 4  ;;  %v1157_v43 = vld [vmem:[%s4534_s1 + $0x260] sm:$0xff]  ;;  %v1158_v44 = vld [vmem:[%s4534_s1 + $0x268] sm:$0xff]  ;;  %p2209_p9 = scmp.lt.s32.totalorder %s3740_s29, 15  ;;  %v1191_v11 = vld [vmem:[%s4534_s1 + $0x370] sm:$0xff] }
  0x39   : > { %1312 = vmatmul.mubr.f32.gmra.mrb[6].mxu0 %v412_v34  ;;  %2906 = vmatprep.subr.bf16.mxu1 %v2905_v49  ;;  %v417_v34 = vrot.slane %v3709_v15, 4  ;;  %s3786_s9 = scvt.s32.f32 %s2208_s5  ;;  %v333_v49 = vstv %s3676_s4  ;;  %p363_p10 = scmp.ge.s32.totalorder %s3740_s29, 0  ;;  %v1210_v17 = vld [vmem:[%s4534_s1 + $0x408] sm:$0xff]  ;;  %v3975_v54 = vld [vmem:[%s3335_s10 + $0x60] sm:$0xff] }
  0x3a   : > { %2338 = vmatmul.mubr.msk.f32.gmra.mrb[6].mxu1 %vm406_vm0, %v411_v14  ;;  %1316 = vmatprep.mubr.f32.mxu0 %v3614_v37  ;;  %v3726_v14 = vld [vmem:[%s3335_s10 + $0x30] sm:$0xff]  ;;  %s356_s5 = scalar_select %p355_p8, %s3740_s29, 0  ;;  %v3836_v62 = vmul.f32 %v333_v49, %v326_v48  ;;  %v3899_v31 = vpack.c.bf16 %v1210_v17, %v1209_v16 }
  0x3b   : > { %2340 = vmatprep.mubr.msk.f32.mxu1 %vm3378_vm1, %v559_v53  ;;  %2876 = vmatpush3.bf16.msra.mxu0 %v2875_v63  ;;  %v562_v37 = vrot.slane %v3726_v14, 4  ;;  %v2917_v53 = vpack.c.bf16 %v1206_v35, %v1205_v36  ;;  %v418_v59 = vsel %vm406_vm0, %v416_v33, %v417_v34  ;;  %p364_p11 = scmp.lt.s32.totalorder %s3740_s29, 16  ;;  %s3824_s13 = sadd.s32 3, %s3118_s25  ;;  %v3839_v63 = vld [vmem:[%s3335_s10 + $0x40] sm:$0xff]  ;;  %v3937_v35 = vld [vmem:[%s3335_s10 + $0x58] sm:$0xff] }
  0x3c   : > { %2908 = vmatpush3.bf16.msra.mxu1 %v2907_v1  ;;  %2878 = vmatprep.subr.bf16.mxu0 %v2877_v3  ;;  %v3842_v1 = vld [vmem:[%s3335_s10 + $0x48] sm:$0xff]  ;;  %s4581_s5 = smov (!%p2209_p9, %s356_s5), 15  ;;  %v2887_v3 = vpack.c.bf16 %v1158_v44, %v1157_v43  ;;  %p373_p13 = scmp.gt.s32.totalorder %s3824_s13, 0  ;;  %v569_v44 = vrot.slane %v3937_v35, 4 }
  0x3d   : > { %2322 = vmatmul.mubr.msk.f32.gmra.mrb[8].mxu0 %vm3378_vm1, %v413_v57  ;;  %2910 = vmatprep.subr.bf16.mxu1 %v2909_v7  ;;  %v1176_v57 = vld [vmem:[%s4534_s1 + $0x2f8] sm:$0xff]  ;;  %v3851_v4 = vsel %vm406_vm0, %v562_v37, %v563_v46  ;;  %p3857_p12 = pnand %p364_p11, %p363_p10  ;;  %v1159_v7 = vld [vmem:[%s4534_s1 + $0x270] sm:$0xff]  ;;  %s342_s30 = scalar_lea.vmem %s3242_s24, %s2207_s26  ;;  %v566_v25 = vrot.slane %v3842_v1, 4 }
  0x3e   : > { %1462 = vmatmul.mubr.f32.gmra.mrb[8].mxu1 %v415_v61  ;;  %1321 = vmatprep.mubr.f32.mxu0 %v3616_v38  ;;  %v1208_v38 = vld [vmem:[%s4534_s1 + $0x3f8] sm:$0xff]  ;;  %v2889_v6 = vpack.c.bf16 %v1176_v57, %v1175_v55  ;;  %s2214_s20 = sshll.u32 %s4581_s5, 4  ;;  %p381_p0 = scmp.ge.s32.totalorder %s3824_s13, 0  ;;  %v343_v26 = vld [vmem:[%s342_s30] sm:$0xff]  ;;  %v344_v27 = vld [vmem:[%s342_s30 + $0x8] sm:$0xff] }
  0x3f   : > { %1466 = vmatprep.mubr.f32.mxu1 %v3745_v20  ;;  %2880 = vmatpush3.bf16.msra.mxu0 %v2879_v19  ;;  %v2921_v12 = vpack.c.bf16 %v1208_v38, %v1207_v60  ;;  %v565_v19 = vrot.slane %v3839_v63, 4  ;;  %s2215_s26 = scalar_select %p3857_p12, 0, 1  ;;  %v3984_v55 = vld [vmem:[%s3335_s10 + $0x68] sm:$0xff] }
  0x40   : > { %2912 = vmatpush3.bf16.msra.mxu1 %v2911_v21  ;;  %2882 = vmatprep.subr.bf16.mxu0 %v2881_v23  ;;  %v420_v21 = vrot.slane %v3836_v62, 4  ;;  %v2891_v23 = vpack.c.bf16 %v1160_v9, %v1159_v7  ;;  %s374_s5 = scalar_select %p373_p13, %s3824_s13, 0  ;;  %v572_v38 = vrot.slane %v3984_v55, 4 }
  0x41   : > { %1322 = vmatmul.mubr.f32.gmra.mrb[10].mxu0 %v415_v61  ;;  %2914 = vmatprep.subr.bf16.mxu1 %v2913_v29  ;;  %v351_v29 = vstv %s3786_s9  ;;  %p2216_p1 = scmp.lt.s32.totalorder %s3824_s13, 15  ;;  %p382_p2 = scmp.lt.s32.totalorder %s3824_s13, 16 }
  0x42   : > { %2341 = vmatmul.mubr.msk.f32.gmra.mrb[10].mxu1 %vm406_vm0, %v414_v58  ;;  %1326 = vmatprep.mubr.f32.mxu0 %v3707_v13  ;;  %v3834_v58 = vmul.f32 %v333_v49, %v325_v47  ;;  %v1192_v13 = vld [vmem:[%s4534_s1 + $0x378] sm:$0xff]  ;;  %s360_s9 = scalar_lea.vmem %s3242_s24, %s2214_s20  ;;  %v3911_v36 = vmul.f32 %v351_v29, %v344_v27  ;;  %s3920_s4 = sadd.s32 4, %s3118_s25 }
  0x43   : > { %2343 = vmatprep.mubr.msk.f32.mxu1 %vm3378_vm1, %v562_v37  ;;  %2884 = vmatpush3.bf16.msra.mxu0 %v2883_v40  ;;  %v2923_v30 = vpack.c.bf16 %v1192_v13, %v1191_v11  ;;  %p3915_p3 = pnand %p382_p2, %p381_p0  ;;  %s3930_s21 = scvt.s32.f32 %s2215_s26  ;;  %v361_v47 = vld [vmem:[%s360_s9] sm:$0xff]  ;;  %v362_v48 = vld [vmem:[%s360_s9 + $0x8] sm:$0xff]  ;;  %v4021_v11 = vld [vmem:[%s3335_s10 + $0x70] sm:$0xff] }
  0x44   : > { %2916 = vmatpush3.bf16.msra.mxu1 %v2915_v50  ;;  %2886 = vmatprep.subr.bf16.mxu0 %v2885_v51  ;;  %v419_v61 = vrot.slane %v3834_v58, 4  ;;  %p666_p4 = scmp.gt.s32.totalorder %s3920_s4, 0  ;;  %s4583_s5 = smov (!%p2216_p1, %s374_s5), 15  ;;  %v423_v43 = vrot.slane %v3911_v36, 4  ;;  %v574_v16 = vrot.slane %v4021_v11, 4 }
  0x45   : > { %2324 = vmatmul.mubr.msk.f32.gmra.mrb[12].mxu0 %vm3378_vm1, %v416_v33  ;;  %2918 = vmatprep.subr.bf16.mxu1 %v2917_v53  ;;  %v352_v33 = vmul.f32 %v351_v29, %v343_v26  ;;  %p2224_p5 = scmp.lt.s32.totalorder %s3920_s4, 15  ;;  %v369_v49 = vstv %s3930_s21  ;;  %s2221_s28 = sshll.u32 %s4583_s5, 4 }
  0x46   : > { %1472 = vmatmul.mubr.f32.gmra.mrb[12].mxu1 %v418_v59  ;;  %1331 = vmatprep.mubr.f32.mxu0 %v3709_v15  ;;  %v421_v32 = vsel %vm406_vm0, %v419_v61, %v420_v21  ;;  %v3925_v15 = vsel %vm406_vm0, %v565_v19, %v566_v25  ;;  %s2222_s13 = scalar_select %p3915_p3, 0, 1  ;;  %v370_v51 = vmul.f32 %v369_v49, %v361_v47 }
  0x47   : > { %1476 = vmatprep.mubr.f32.mxu1 %v3851_v4  ;;  %2888 = vmatpush3.bf16.msra.mxu0 %v2887_v3  ;;  %v422_v37 = vrot.slane %v352_v33, 4  ;;  %s667_s6 = scalar_select %p666_p4, %s3920_s4, 0  ;;  %v371_v52 = vmul.f32 %v369_v49, %v362_v48  ;;  %v1214_v49 = vld [vmem:[%s4534_s1 + $0x428] sm:$0xff] }
  0x48   : > { %2920 = vmatpush3.bf16.msra.mxu1 %v2919_v5  ;;  %2890 = vmatprep.subr.bf16.mxu0 %v2889_v6  ;;  %p674_p6 = scmp.ge.s32.totalorder %s3920_s4, 0  ;;  %p675_p7 = scmp.lt.s32.totalorder %s3920_s4, 16  ;;  %v425_v57 = vrot.slane %v370_v51, 4 }
  0x49   : > { %1332 = vmatmul.mubr.f32.gmra.mrb[14].mxu0 %v418_v59  ;;  %2922 = vmatprep.subr.bf16.mxu1 %v2921_v12  ;;  %s3961_s29 = sadd.s32 5, %s3118_s25  ;;  %v424_v50 = vsel %vm406_vm0, %v422_v37, %v423_v43  ;;  %s3966_s30 = scvt.s32.f32 %s2222_s13  ;;  %v571_v59 = vrot.slane %v3975_v54, 4  ;;  %v426_v60 = vrot.slane %v371_v52, 4  ;;  %v4037_v12 = vld [vmem:[%s3335_s10 + $0x78] sm:$0xff] }
  0x4a   : > { %2344 = vmatmul.mubr.msk.f32.gmra.mrb[14].mxu1 %vm406_vm0, %v417_v34  ;;  %1336 = vmatprep.mubr.f32.mxu0 %v3834_v58  ;;  %v3928_v34 = vld [vmem:[%s3335_s10 + $0x50] sm:$0xff]  ;;  %p684_p8 = scmp.gt.s32.totalorder %s3961_s29, 0  ;;  %s4585_s6 = smov (!%p2224_p5, %s667_s6), 15 }
  0x4b   : > { %2346 = vmatprep.mubr.msk.f32.mxu1 %vm3378_vm1, %v565_v19  ;;  %2892 = vmatpush3.bf16.msra.mxu0 %v2891_v23  ;;  %v568_v40 = vrot.slane %v3928_v34, 4  ;;  %s378_s19 = scalar_lea.vmem %s3242_s24, %s2221_s28  ;;  %p3991_p9 = pnand %p675_p7, %p674_p6  ;;  %v387_v3 = vstv %s3966_s30  ;;  %v427_v5 = vsel %vm406_vm0, %v425_v57, %v426_v60  ;;  %v4018_v9 = vsel %vm406_vm0, %v571_v59, %v572_v38 }
  0x4c   : > { %2924 = vmatpush3.bf16.msra.mxu1 %v2923_v30  ;;  %2926 = vmatprep.subr.bf16.mxu0 %v3899_v31  ;;  %s685_s7 = scalar_select %p684_p8, %s3961_s29, 0  ;;  %v379_v58 = vld [vmem:[%s378_s19] sm:$0xff] }
  0x4d   : > { %2326 = vmatmul.mubr.msk.f32.gmra.mrb[16].mxu0 %vm3378_vm1, %v419_v61  ;;  %2957 = vmatprep.subr.bf16.mxu1 %v3899_v31  ;;  %v3972_v53 = vsel %vm406_vm0, %v568_v40, %v569_v44  ;;  %p2231_p10 = scmp.lt.s32.totalorder %s3961_s29, 15  ;;  %p692_p11 = scmp.ge.s32.totalorder %s3961_s29, 0  ;;  %v388_v6 = vmul.f32 %v387_v3, %v379_v58  ;;  %v575_v61 = vrot.slane %v4037_v12, 4 }
  0x4e   : > { %1482 = vmatmul.mubr.f32.gmra.mrb[16].mxu1 %v421_v32  ;;  %1341 = vmatprep.mubr.f32.mxu0 %v3836_v62  ;;  %v380_v62 = vld [vmem:[%s378_s19 + $0x8] sm:$0xff]  ;;  %p693_p12 = scmp.lt.s32.totalorder %s3961_s29, 16  ;;  %s2229_s8 = sshll.u32 %s4585_s6, 4 }
  0x4f   : > { %1486 = vmatprep.mubr.f32.mxu1 %v3925_v15  ;;  %s2230_s11 = scalar_select %p3991_p9, 0, 1  ;;  %v389_v7 = vmul.f32 %v387_v3, %v380_v62  ;;  %v428_v13 = vrot.slane %v388_v6, 4  ;;  %v4066_v26 = vsel %vm406_vm0, %v574_v16, %v575_v61  ;;  %v1218_v3 = vld [vmem:[%s4534_s1 + $0x448] sm:$0xff] }
  0x50   : > { %s4587_s7 = smov (!%p2231_p10, %s685_s7), 15  ;;  %p4027_p13 = pnand %p693_p12, %p692_p11 }
  0x51   : > { %1342 = vmatmul.mubr.f32.gmra.mrb[18].mxu0 %v421_v32  ;;  %s4032_s20 = sadd.s32 6, %s3118_s25  ;;  %s671_s26 = scalar_lea.vmem %s3242_s24, %s2229_s8  ;;  %v429_v17 = vrot.slane %v389_v7, 4  ;;  %v1211_v32 = vld [vmem:[%s4534_s1 + $0x410] sm:$0xff] }
  0x52   : > { %2347 = vmatmul.mubr.msk.f32.gmra.mrb[18].mxu1 %vm406_vm0, %v420_v21  ;;  %1346 = vmatprep.mubr.f32.mxu0 %v352_v33  ;;  %s4040_s5 = scvt.s32.f32 %s2230_s11  ;;  %s2236_s9 = sshll.u32 %s4587_s7, 4  ;;  %v672_v21 = vld [vmem:[%s671_s26] sm:$0xff]  ;;  %v673_v27 = vld [vmem:[%s671_s26 + $0x8] sm:$0xff]  ;;  %v1212_v33 = vld [vmem:[%s4534_s1 + $0x418] sm:$0xff] }
  0x53   : > { %2349 = vmatprep.mubr.msk.f32.mxu1 %vm3378_vm1, %v568_v40  ;;  %p702_p0 = scmp.gt.s32.totalorder %s4032_s20, 0  ;;  %p2238_p1 = scmp.lt.s32.totalorder %s4032_s20, 15  ;;  %v430_v19 = vsel %vm406_vm0, %v428_v13, %v429_v17  ;;  %v2929_v47 = vpack.c.bf16 %v1212_v33, %v1211_v32  ;;  %v1223_v33 = vld [vmem:[%s4534_s1 + $0x470] sm:$0xff] }
  0x54   : > { %s2237_s10 = scalar_select %p4027_p13, 0, 1  ;;  %v680_v23 = vstv %s4040_s5 }
  0x55   : > { %2328 = vmatmul.mubr.msk.f32.gmra.mrb[20].mxu0 %vm3378_vm1, %v422_v37  ;;  %s4051_s22 = sadd.s32 7, %s3118_s25  ;;  %p710_p2 = scmp.ge.s32.totalorder %s4032_s20, 0  ;;  %v681_v29 = vmul.f32 %v680_v23, %v672_v21  ;;  %v4083_v30 = vmul.f32 %v680_v23, %v673_v27  ;;  %v1221_v23 = vld [vmem:[%s4534_s1 + $0x460] sm:$0xff]  ;;  %v1222_v27 = vld [vmem:[%s4534_s1 + $0x468] sm:$0xff] }
  0x56   : > { %1492 = vmatmul.mubr.f32.gmra.mrb[20].mxu1 %v424_v50  ;;  %1351 = vmatprep.mubr.f32.mxu0 %v3911_v36  ;;  %p711_p3 = scmp.lt.s32.totalorder %s4032_s20, 16  ;;  %p720_p4 = scmp.gt.s32.totalorder %s4051_s22, 0 }
  0x57   : > { %1496 = vmatprep.mubr.f32.mxu1 %v3972_v53  ;;  %s703_s4 = scalar_select %p702_p0, %s4032_s20, 0  ;;  %v825_v36 = vrot.slane %v681_v29, 4  ;;  %v826_v37 = vrot.slane %v4083_v30, 4 }
  0x58   : > { %s689_s21 = scalar_lea.vmem %s3242_s24, %s2236_s9  ;;  %s4072_s13 = scvt.s32.f32 %s2237_s10 }
  0x59   : > { %1352 = vmatmul.mubr.f32.gmra.mrb[22].mxu0 %v424_v50  ;;  %p4078_p5 = pnand %p711_p3, %p710_p2  ;;  %s4589_s4 = smov (!%p2238_p1, %s703_s4), 15  ;;  %v690_v40 = vld [vmem:[%s689_s21] sm:$0xff]  ;;  %v691_v48 = vld [vmem:[%s689_s21 + $0x8] sm:$0xff]  ;;  %v4136_v50 = vsel %vm406_vm0, %v825_v36, %v826_v37 }
  0x5a   : > { %2350 = vmatmul.mubr.msk.f32.gmra.mrb[22].mxu1 %vm406_vm0, %v423_v43  ;;  %1356 = vmatprep.mubr.f32.mxu0 %v370_v51  ;;  %s4088_s28 = scalar_select %p720_p4, %s4051_s22, 0  ;;  %v698_v43 = vstv %s4072_s13 }
  0x5b   : > { %2352 = vmatprep.mubr.msk.f32.mxu1 %vm3378_vm1, %v571_v59  ;;  %p728_p6 = scmp.ge.s32.totalorder %s4051_s22, 0  ;;  %p729_p7 = scmp.lt.s32.totalorder %s4051_s22, 16  ;;  %v4138_v51 = vmul.f32 %v698_v43, %v691_v48 }
  0x5c   : > { %s2244_s7 = scalar_select %p4078_p5, 0, 1 }
  0x5d   : > { %2330 = vmatmul.mubr.msk.f32.gmra.mrb[24].mxu0 %vm3378_vm1, %v425_v57  ;;  %s2243_s8 = sshll.u32 %s4589_s4, 4  ;;  %p2245_p8 = scmp.lt.s32.totalorder %s4051_s22, 15 }
  0x5e   : > { %1502 = vmatmul.mubr.f32.gmra.mrb[24].mxu1 %v427_v5  ;;  %1361 = vmatprep.mubr.f32.mxu0 %v371_v52  ;;  %p4116_p9 = pnand %p729_p7, %p728_p6  ;;  %s4121_s9 = sadd.s32 8, %s3118_s25  ;;  %v1216_v52 = vld [vmem:[%s4534_s1 + $0x438] sm:$0xff] }
  0x5f   : > { %1506 = vmatprep.mubr.f32.mxu1 %v4018_v9  ;;  %s707_s10 = scalar_lea.vmem %s3242_s24, %s2243_s8  ;;  %s4127_s4 = scvt.s32.f32 %s2244_s7 }
  0x60   : > { %s4591_s28 = smov (!%p2245_p8, %s4088_s28), 15  ;;  %p738_p10 = scmp.gt.s32.totalorder %s4121_s9, 0  ;;  %v708_v59 = vld [vmem:[%s707_s10] sm:$0xff]  ;;  %v709_v58 = vld [vmem:[%s707_s10 + $0x8] sm:$0xff] }
  0x61   : > { %1362 = vmatmul.mubr.f32.gmra.mrb[26].mxu0 %v427_v5  ;;  %s4148_s21 = sadd.s32 9, %s3118_s25  ;;  %p746_p11 = scmp.ge.s32.totalorder %s4121_s9, 0 }
  0x62   : > { %2353 = vmatmul.mubr.msk.f32.gmra.mrb[26].mxu1 %vm406_vm0, %v426_v60  ;;  %1366 = vmatprep.mubr.f32.mxu0 %v388_v6  ;;  %s2251_s13 = scalar_select %p4116_p9, 0, 1  ;;  %v716_v60 = vstv %s4127_s4 }
  0x63   : > { %2355 = vmatprep.mubr.msk.f32.mxu1 %vm3378_vm1, %v574_v16  ;;  %p747_p12 = scmp.lt.s32.totalorder %s4121_s9, 16  ;;  %p756_p13 = scmp.gt.s32.totalorder %s4148_s21, 0 }
  0x64   : > { %s2250_s19 = sshll.u32 %s4591_s28, 4  ;;  %p2252_p0 = scmp.lt.s32.totalorder %s4121_s9, 15 }
  0x65   : > { %2332 = vmatmul.mubr.msk.f32.gmra.mrb[28].mxu0 %vm3378_vm1, %v428_v13  ;;  %s739_s27 = scalar_select %p738_p10, %s4121_s9, 0  ;;  %v1220_v13 = vld [vmem:[%s4534_s1 + $0x458] sm:$0xff] }
  0x66   : > { %1512 = vmatmul.mubr.f32.gmra.mrb[28].mxu1 %v430_v19  ;;  %1371 = vmatprep.mubr.f32.mxu0 %v389_v7  ;;  %s4183_s28 = scvt.s32.f32 %s2251_s13  ;;  %p4189_p1 = pnand %p747_p12, %p746_p11  ;;  %v1219_v7 = vld [vmem:[%s4534_s1 + $0x450] sm:$0xff] }
  0x67   : > { %1516 = vmatprep.mubr.f32.mxu1 %v4066_v26  ;;  %s757_s26 = scalar_select %p756_p13, %s4148_s21, 0 }
  0x68   : > { %s725_s5 = scalar_lea.vmem %s3242_s24, %s2250_s19  ;;  %p2259_p2 = scmp.lt.s32.totalorder %s4148_s21, 15 }
  0x69   : > { %1372 = vmatmul.mubr.f32.gmra.mrb[30].mxu0 %v430_v19  ;;  %s4593_s27 = smov (!%p2252_p0, %s739_s27), 15  ;;  %v734_v19 = vstv %s4183_s28  ;;  %p764_p3 = scmp.ge.s32.totalorder %s4148_s21, 0  ;;  %v727_v21 = vld [vmem:[%s725_s5 + $0x8] sm:$0xff] }
  0x6a   : > { %2356 = vmatmul.mubr.msk.f32.gmra.mrb[30].mxu1 %vm406_vm0, %v429_v17  ;;  %1586 = vmatprep.mubr.f32.mxu0 %v3527_v8  ;;  %v1213_v8 = vld [vmem:[%s4534_s1 + $0x420] sm:$0xff]  ;;  %s2258_s29 = scalar_select %p4189_p1, 0, 1  ;;  %v4251_v32 = vmul.f32 %v734_v19, %v727_v21 }
  0x6b   : > { %1731 = vmatprep.mubr.f32.mxu1 %v681_v29  ;;  %v726_v17 = vld [vmem:[%s725_s5] sm:$0xff]  ;;  %p765_p4 = scmp.lt.s32.totalorder %s4148_s21, 16  ;;  %s4595_s26 = smov (!%p2259_p2, %s757_s26), 15 }
  0x6c   : > { %s2257_s9 = sshll.u32 %s4593_s27, 4  ;;  %s4232_s22 = sadd.s32 10, %s3118_s25 }
  0x6d   : > { %1587 = vmatmul.mubr.f32.vlgmr.msra.gmra.mrb[32].mxu0 %v3364_v24  ;;  %v699_v24 = vmul.f32 %v698_v43, %v690_v40  ;;  %s4253_s27 = scvt.s32.f32 %s2258_s29  ;;  %p4259_p5 = pnand %p765_p4, %p764_p3 }
  0x6e   : > { %2366 = vmatmul.mubr.msk.f32.vlgmr.msra.gmra.mrb[32].mxu1 %vm3378_vm1, %v825_v36  ;;  %2928 = vmatpush3.bf16.msra.mxu0 %v3899_v31  ;;  %s743_s23 = scalar_lea.vmem %s3242_s24, %s2257_s9  ;;  %p774_p6 = scmp.gt.s32.totalorder %s4232_s22, 0  ;;  %v1224_v36 = vld [vmem:[%s4534_s1 + $0x478] sm:$0xff] }
  0x6f   : > { %2965 = vmatpush3.bf16.msra.mxu1 %v3899_v31  ;;  %2357 = vmatprep.mubr.msk.f32.mxu0 %vm406_vm0, %v554_v56  ;;  %v2933_v31 = vpack.c.bf16 %v1214_v49, %v1213_v8  ;;  %v1215_v56 = vld [vmem:[%s4534_s1 + $0x430] sm:$0xff]  ;;  %v828_v57 = vrot.slane %v699_v24, 4  ;;  %s2264_s28 = sshll.u32 %s4595_s26, 4  ;;  %p782_p7 = scmp.ge.s32.totalorder %s4232_s22, 0  ;;  %v744_v43 = vld [vmem:[%s743_s23] sm:$0xff]  ;;  %v745_v48 = vld [vmem:[%s743_s23 + $0x8] sm:$0xff] }
  0x70   : > { %1736 = vmatprep.mubr.f32.mxu1 %v4083_v30  ;;  %2930 = vmatprep.subr.bf16.mxu0 %v2929_v47  ;;  %v2937_v62 = vpack.c.bf16 %v1216_v52, %v1215_v56  ;;  %p783_p8 = scmp.lt.s32.totalorder %s4232_s22, 16  ;;  %p2266_p9 = scmp.lt.s32.totalorder %s4232_s22, 15 }
  0x71   : > { %1592 = vmatmul.mubr.f32.gmra.mrb[34].mxu0 %v3444_v45  ;;  %2958 = vmatprep.subr.bf16.mxu1 %v2929_v47  ;;  %v829_v45 = vrot.slane %v4138_v51, 4  ;;  %s2265_s4 = scalar_select %p4259_p5, 0, 1 }
  0x72   : > { %1737 = vmatmul.mubr.f32.gmra.mrb[34].mxu1 %v4136_v50  ;;  %1596 = vmatprep.mubr.f32.mxu0 %v3633_v42  ;;  %v1217_v42 = vld [vmem:[%s4534_s1 + $0x440] sm:$0xff]  ;;  %s775_s13 = scalar_select %p774_p6, %s4232_s22, 0 }
  0x73   : > { %1741 = vmatprep.mubr.f32.mxu1 %v699_v24  ;;  %2932 = vmatpush3.bf16.msra.mxu0 %v2929_v47  ;;  %v4197_v5 = vsel %vm406_vm0, %v828_v57, %v829_v45  ;;  %v2941_v6 = vpack.c.bf16 %v1218_v3, %v1217_v42  ;;  %s4287_s6 = sadd.s32 11, %s3118_s25  ;;  %p4298_p10 = pnand %p783_p8, %p782_p7 }
  0x74   : > { %2966 = vmatpush3.bf16.msra.mxu1 %v2929_v47  ;;  %2934 = vmatprep.subr.bf16.mxu0 %v2933_v31  ;;  %v752_v47 = vstv %s4253_s27  ;;  %s4310_s25 = scvt.s32.f32 %s2265_s4  ;;  %s761_s9 = scalar_lea.vmem %s3242_s24, %s2264_s28 }
  0x75   : > { %1597 = vmatmul.mubr.f32.gmra.mrb[36].mxu0 %v3498_v2  ;;  %2959 = vmatprep.subr.bf16.mxu1 %v2933_v31  ;;  %v717_v2 = vmul.f32 %v716_v60, %v708_v59  ;;  %v753_v8 = vmul.f32 %v752_v47, %v744_v43  ;;  %v4308_v49 = vmul.f32 %v752_v47, %v745_v48  ;;  %p792_p11 = scmp.gt.s32.totalorder %s4287_s6, 0  ;;  %s4597_s13 = smov (!%p2266_p9, %s775_s13), 15 }
  0x76   : > { %2368 = vmatmul.mubr.msk.f32.gmra.mrb[36].mxu1 %vm3378_vm1, %v828_v57  ;;  %2358 = vmatprep.mubr.msk.f32.mxu0 %vm406_vm0, %v557_v22  ;;  %v4199_v22 = vmul.f32 %v716_v60, %v709_v58  ;;  %s2272_s26 = scalar_select %p4298_p10, 0, 1  ;;  %v770_v56 = vstv %s4310_s25 }
  0x77   : > { %1746 = vmatprep.mubr.f32.mxu1 %v4138_v51  ;;  %2936 = vmatpush3.bf16.msra.mxu0 %v2933_v31  ;;  %v831_v16 = vrot.slane %v717_v2, 4  ;;  %v838_v24 = vrot.slane %v4308_v49, 4  ;;  %p800_p12 = scmp.ge.s32.totalorder %s4287_s6, 0  ;;  %p801_p13 = scmp.lt.s32.totalorder %s4287_s6, 16 }
  0x78   : > { %2967 = vmatpush3.bf16.msra.mxu1 %v2933_v31  ;;  %2938 = vmatprep.subr.bf16.mxu0 %v2937_v62  ;;  %v762_v31 = vld [vmem:[%s761_s9] sm:$0xff]  ;;  %s793_s22 = scalar_select %p792_p11, %s4287_s6, 0 }
  0x79   : > { %1602 = vmatmul.mubr.f32.gmra.mrb[38].mxu0 %v3530_v10  ;;  %2960 = vmatprep.subr.bf16.mxu1 %v2937_v62  ;;  %v832_v10 = vrot.slane %v4199_v22, 4  ;;  %s2271_s30 = sshll.u32 %s4597_s13, 4  ;;  %p2273_p0 = scmp.lt.s32.totalorder %s4287_s6, 15 }
  0x7a   : > { %1747 = vmatmul.mubr.f32.gmra.mrb[38].mxu1 %v4197_v5  ;;  %1606 = vmatprep.mubr.f32.mxu0 %v3745_v20  ;;  %v2945_v20 = vpack.c.bf16 %v1220_v13, %v1219_v7  ;;  %s787_s19 = scvt.s32.f32 %s2272_s26  ;;  %p4345_p1 = pnand %p801_p13, %p800_p12 }
  0x7b   : > { %1751 = vmatprep.mubr.f32.mxu1 %v717_v2  ;;  %2940 = vmatpush3.bf16.msra.mxu0 %v2937_v62  ;;  %v4249_v29 = vsel %vm406_vm0, %v831_v16, %v832_v10  ;;  %s779_s8 = scalar_lea.vmem %s3242_s24, %s2271_s30  ;;  %s4599_s22 = smov (!%p2273_p0, %s793_s22), 15 }
  0x7c   : > { %2968 = vmatpush3.bf16.msra.mxu1 %v2937_v62  ;;  %2942 = vmatprep.subr.bf16.mxu0 %v2941_v6  ;;  %v780_v59 = vld [vmem:[%s779_s8] sm:$0xff]  ;;  %v788_v60 = vstv %s787_s19  ;;  %s2279_s27 = scalar_select %p4345_p1, 0, 1  ;;  %v781_v58 = vld [vmem:[%s779_s8 + $0x8] sm:$0xff] }
  0x7d   : > { %1607 = vmatmul.mubr.f32.gmra.mrb[40].mxu0 %v3619_v39  ;;  %2961 = vmatprep.subr.bf16.mxu1 %v2941_v6  ;;  %v735_v39 = vmul.f32 %v734_v19, %v726_v17  ;;  %s2278_s11 = sshll.u32 %s4599_s22, 4  ;;  %v790_v62 = vmul.f32 %v788_v60, %v781_v58  ;;  %s2165_s5 = sshll.u32 %s3581_s12, 3 }
  0x7e   : > { %2370 = vmatmul.mubr.msk.f32.gmra.mrb[40].mxu1 %vm3378_vm1, %v831_v16  ;;  %2359 = vmatprep.mubr.msk.f32.mxu0 %vm406_vm0, %v560_v0  ;;  %v2949_v0 = vpack.c.bf16 %v1222_v27, %v1221_v23  ;;  %s805_s23 = scvt.s32.f32 %s2279_s27  ;;  %s797_s28 = scalar_lea.vmem %s3242_s24, %s2278_s11 }
  0x7f   : > { %1756 = vmatprep.mubr.f32.mxu1 %v4199_v22  ;;  %2944 = vmatpush3.bf16.msra.mxu0 %v2941_v6  ;;  %v834_v40 = vrot.slane %v735_v39, 4  ;;  %v844_v42 = vrot.slane %v790_v62, 4  ;;  %v798_v3 = vld [vmem:[%s797_s28] sm:$0xff]  ;;  %s4493_s4 = scalar_lea.vmem %s4536_s3, %s2165_s5 }
  0x80   : > { %2969 = vmatpush3.bf16.msra.mxu1 %v2941_v6  ;;  %2946 = vmatprep.subr.bf16.mxu0 %v2945_v20  ;;  %v806_v2 = vstv %s805_s23  ;;  %v799_v6 = vld [vmem:[%s797_s28 + $0x8] sm:$0xff] }
  0x81   : > { %1612 = vmatmul.mubr.f32.gmra.mrb[42].mxu0 %v3622_v41  ;;  %2962 = vmatprep.subr.bf16.mxu1 %v2945_v20  ;;  %v835_v41 = vrot.slane %v4251_v32, 4 }
  0x82   : > { %1757 = vmatmul.mubr.f32.gmra.mrb[42].mxu1 %v4249_v29  ;;  %1616 = vmatprep.mubr.f32.mxu0 %v3851_v4  ;;  %v2953_v4 = vpack.c.bf16 %v1224_v36, %v1223_v33 }
  0x83   : > { %1761 = vmatprep.mubr.f32.mxu1 %v735_v39  ;;  %2948 = vmatpush3.bf16.msra.mxu0 %v2945_v20 }
  0x84   : > { %2970 = vmatpush3.bf16.msra.mxu1 %v2945_v20  ;;  %2950 = vmatprep.subr.bf16.mxu0 %v2949_v0 }
  0x85   : > { %1617 = vmatmul.mubr.f32.gmra.mrb[44].mxu0 %v3726_v14  ;;  %2963 = vmatprep.subr.bf16.mxu1 %v2949_v0  ;;  %v4306_v14 = vsel %vm406_vm0, %v834_v40, %v835_v41 }
  0x86   : > { %2372 = vmatmul.mubr.msk.f32.gmra.mrb[44].mxu1 %vm3378_vm1, %v834_v40  ;;  %2360 = vmatprep.mubr.msk.f32.mxu0 %vm406_vm0, %v563_v46  ;;  %v837_v46 = vrot.slane %v753_v8, 4 }
  0x87   : > { %1766 = vmatprep.mubr.f32.mxu1 %v4251_v32  ;;  %2952 = vmatpush3.bf16.msra.mxu0 %v2949_v0 }
  0x88   : > { %2971 = vmatpush3.bf16.msra.mxu1 %v2949_v0  ;;  %2954 = vmatprep.subr.bf16.mxu0 %v2953_v4  ;;  %v839_v52 = vsel %vm406_vm0, %v837_v46, %v838_v24 }
  0x89   : > { %1622 = vmatmul.mubr.f32.gmra.mrb[46].mxu0 %v3729_v18  ;;  %2964 = vmatprep.subr.bf16.mxu1 %v2953_v4  ;;  %v763_v18 = vld [vmem:[%s761_s9 + $0x8] sm:$0xff] }
  0x8a   : > { %1767 = vmatmul.mubr.f32.gmra.mrb[46].mxu1 %v4306_v14  ;;  %1626 = vmatprep.mubr.f32.mxu0 %v3925_v15  ;;  %v771_v15 = vmul.f32 %v770_v56, %v762_v31  ;;  %v772_v57 = vmul.f32 %v770_v56, %v763_v18 }
  0x8b   : > { %1771 = vmatprep.mubr.f32.mxu1 %v753_v8  ;;  %2956 = vmatpush3.bf16.msra.mxu0 %v2953_v4 }
  0x8c   : > { %2972 = vmatpush3.bf16.msra.mxu1 %v2953_v4 }
  0x8d   : > { %1627 = vmatmul.mubr.f32.gmra.mrb[48].mxu0 %v3839_v63  ;;  %v840_v63 = vrot.slane %v771_v15, 4 }
  0x8e   : > { %2374 = vmatmul.mubr.msk.f32.gmra.mrb[48].mxu1 %vm3378_vm1, %v837_v46  ;;  %2361 = vmatprep.mubr.msk.f32.mxu0 %vm406_vm0, %v566_v25  ;;  %v841_v25 = vrot.slane %v772_v57, 4 }
  0x8f   : > { %1776 = vmatprep.mubr.f32.mxu1 %v4308_v49 }
  0x91   : > { %1632 = vmatmul.mubr.f32.gmra.mrb[50].mxu0 %v3842_v1  ;;  %v789_v1 = vmul.f32 %v788_v60, %v780_v59 }
  0x92   : > { %1777 = vmatmul.mubr.f32.gmra.mrb[50].mxu1 %v839_v52  ;;  %1636 = vmatprep.mubr.f32.mxu0 %v3972_v53  ;;  %v842_v53 = vsel %vm406_vm0, %v840_v63, %v841_v25 }
  0x93   : > { %1781 = vmatprep.mubr.f32.mxu1 %v771_v15 }
  0x95   : > { %1637 = vmatmul.mubr.f32.gmra.mrb[52].mxu0 %v3928_v34  ;;  %v843_v34 = vrot.slane %v789_v1, 4 }
  0x96   : > { %2376 = vmatmul.mubr.msk.f32.gmra.mrb[52].mxu1 %vm3378_vm1, %v840_v63  ;;  %2362 = vmatprep.mubr.msk.f32.mxu0 %vm406_vm0, %v569_v44  ;;  %v807_v44 = vmul.f32 %v806_v2, %v798_v3 }
  0x97   : > { %1786 = vmatprep.mubr.f32.mxu1 %v772_v57 }
  0x98   : > { %v846_v7 = vrot.slane %v807_v44, 4 }
  0x99   : > { %1642 = vmatmul.mubr.f32.gmra.mrb[54].mxu0 %v3937_v35  ;;  %v845_v35 = vsel %vm406_vm0, %v843_v34, %v844_v42 }
  0x9a   : > { %1787 = vmatmul.mubr.f32.gmra.mrb[54].mxu1 %v842_v53  ;;  %1646 = vmatprep.mubr.f32.mxu0 %v4018_v9  ;;  %v808_v9 = vmul.f32 %v806_v2, %v799_v6 }
  0x9b   : > { %1791 = vmatprep.mubr.f32.mxu1 %v789_v1 }
  0x9d   : > { %1647 = vmatmul.mubr.f32.gmra.mrb[56].mxu0 %v3975_v54  ;;  %v847_v54 = vrot.slane %v808_v9, 4 }
  0x9e   : > { %2378 = vmatmul.mubr.msk.f32.gmra.mrb[56].mxu1 %vm3378_vm1, %v843_v34  ;;  %2363 = vmatprep.mubr.msk.f32.mxu0 %vm406_vm0, %v572_v38 }
  0x9f   : > { %1796 = vmatprep.mubr.f32.mxu1 %v790_v62  ;;  %v848_v38 = vsel %vm406_vm0, %v846_v7, %v847_v54 }
  0xa1   : > { %1652 = vmatmul.mubr.f32.gmra.mrb[58].mxu0 %v3984_v55 }
  0xa2   : > { %1797 = vmatmul.mubr.f32.gmra.mrb[58].mxu1 %v845_v35  ;;  %1656 = vmatprep.mubr.f32.mxu0 %v4066_v26 }
  0xa3   : > { %1801 = vmatprep.mubr.f32.mxu1 %v807_v44 }
  0xa5   : > { %1657 = vmatmul.mubr.f32.gmra.mrb[60].mxu0 %v4021_v11  ;;  %v4406_v11 = vld [vmem:[%s4535_s2] ss:$0 sm:$0xff] }
  0xa6   : > { %2380 = vmatmul.mubr.msk.f32.gmra.mrb[60].mxu1 %vm3378_vm1, %v846_v7  ;;  %2364 = vmatprep.mubr.msk.f32.mxu0 %vm406_vm0, %v575_v61 }
  0xa7   : > { %1806 = vmatprep.mubr.f32.mxu1 %v808_v9 }
  0xa9   : > { %1662 = vmatmul.mubr.f32.gmra.mrb[62].mxu0 %v4037_v12 }
  0xaa   : > { %1807 = vmatmul.mubr.f32.gmra.mrb[62].mxu1 %v848_v38  ;;  %2773 = vmatprep.mubr.f32.mxu0 %v4136_v50 }
  0xab   : > { %2785 = vmatprep.mubr.f32.mxu1 %v839_v52 }
  0xad   : > { %2774 = vmatmul.mubr.msk.f32.vlgmr.msra.gmra.mrb[64].mxu0 %vm406_vm0, %v826_v37 }
  0xae   : > { %2786 = vmatmul.mubr.msk.f32.vlgmr.msra.gmra.mrb[64].mxu1 %vm406_vm0, %v838_v24  ;;  %2776 = vmatprep.mubr.f32.mxu0 %v4197_v5 }
  0xaf   : > { %2788 = vmatprep.mubr.f32.mxu1 %v842_v53 }
  0xb1   : > { %2777 = vmatmul.mubr.msk.f32.gmra.mrb[66].mxu0 %vm406_vm0, %v829_v45 }
  0xb2   : > { %2789 = vmatmul.mubr.msk.f32.gmra.mrb[66].mxu1 %vm406_vm0, %v841_v25  ;;  %2779 = vmatprep.mubr.f32.mxu0 %v4249_v29 }
  0xb3   : > { %2791 = vmatprep.mubr.f32.mxu1 %v845_v35 }
  0xb5   : > { %2780 = vmatmul.mubr.msk.f32.gmra.mrb[68].mxu0 %vm406_vm0, %v832_v10 }
  0xb6   : > { %2792 = vmatmul.mubr.msk.f32.gmra.mrb[68].mxu1 %vm406_vm0, %v844_v42  ;;  %2782 = vmatprep.mubr.f32.mxu0 %v4306_v14 }
  0xb7   : > { %2794 = vmatprep.mubr.f32.mxu1 %v848_v38 }
  0xb9   : > { %2783 = vmatmul.mubr.msk.f32.gmra.mrb[70].mxu0 %vm406_vm0, %v835_v41 }
  0xba   : > { %2795 = vmatmul.mubr.msk.f32.gmra.mrb[70].mxu1 %vm406_vm0, %v847_v54 }
 0x100   : > { %v2421_v28 = vpop.f32.mrb[0].mxu0 }
 0x101   : > { %v2501_v55 = vpop.f32.mrb[0].mxu1  ;;  %v2422_v12 = vpop.f32.mrb[1].mxu0 }
 0x102   : > { %v2423_v61 = vadd.f32 %v2422_v12, %v2421_v28  ;;  %v2502_v26 = vpop.f32.mrb[1].mxu1 }
 0x103   : > { %v2503_v30 = vadd.f32 %v2502_v26, %v2501_v55 }
 0x104   : > { %v1299_v37 = vadd.f32 %v2423_v61, %v4406_v11  ;;  %v2424_v50 = vpop.f32.mrb[2].mxu0 }
 0x105   : > { %v2504_v51 = vpop.f32.mrb[2].mxu1  ;;  %v2425_v45 = vpop.f32.mrb[3].mxu0 }
 0x106   : > { %v4409_v5 = vadd.f32 %v2503_v30, %v1299_v37  ;;  %v2426_v22 = vadd.f32 %v2425_v45, %v2424_v50  ;;  %v2505_v13 = vpop.f32.mrb[3].mxu1 }
 0x107   : > { %v2506_v16 = vadd.f32 %v2505_v13, %v2504_v51 }
 0x108   : > { %v1304_v10 = vadd.f32 %v2426_v22, %v4406_v11  ;;  %v2427_v17 = vpop.f32.mrb[4].mxu0 }
 0x109   : > { %v2507_v19 = vpop.f32.mrb[4].mxu1  ;;  %v2428_v21 = vpop.f32.mrb[5].mxu0 }
 0x10a   : > { %v4412_v20 = vadd.f32 %v2506_v16, %v1304_v10  ;;  %v2429_v23 = vadd.f32 %v2428_v21, %v2427_v17  ;;  %v2508_v27 = vpop.f32.mrb[5].mxu1 }
 0x10b   : > { %v2509_v39 = vadd.f32 %v2508_v27, %v2507_v19 }
 0x10c   : > { %v1309_v29 = vadd.f32 %v2429_v23, %v4406_v11  ;;  %v2430_v32 = vpop.f32.mrb[6].mxu0 }
 0x10d   : > { %v2510_v0 = vpop.f32.mrb[6].mxu1  ;;  %v2431_v33 = vpop.f32.mrb[7].mxu0 }
 0x10e   : > { %v4415_v36 = vadd.f32 %v2509_v39, %v1309_v29  ;;  %v2432_v40 = vadd.f32 %v2431_v33, %v2430_v32  ;;  %v2511_v41 = vpop.f32.mrb[7].mxu1 }
 0x10f   : > { %v2512_v43 = vadd.f32 %v2511_v41, %v2510_v0 }
 0x110   : > { %v1314_v47 = vadd.f32 %v2432_v40, %v4406_v11  ;;  %v2433_v48 = vpop.f32.mrb[8].mxu0 }
 0x111   : > { %v2513_v4 = vpop.f32.mrb[8].mxu1  ;;  %v2434_v8 = vpop.f32.mrb[9].mxu0 }
 0x112   : > { %v4418_v14 = vadd.f32 %v2512_v43, %v1314_v47  ;;  %v2435_v49 = vadd.f32 %v2434_v8, %v2433_v48  ;;  %v2514_v46 = vpop.f32.mrb[9].mxu1 }
 0x113   : > { %v2515_v24 = vadd.f32 %v2514_v46, %v2513_v4 }
 0x114   : > { %v1319_v31 = vadd.f32 %v2435_v49, %v4406_v11  ;;  %v2436_v56 = vpop.f32.mrb[10].mxu0 }
 0x115   : > { %v2516_v18 = vpop.f32.mrb[10].mxu1  ;;  %v2437_v15 = vpop.f32.mrb[11].mxu0 }
 0x116   : > { %v4421_v52 = vadd.f32 %v2515_v24, %v1319_v31  ;;  %v2438_v57 = vadd.f32 %v2437_v15, %v2436_v56  ;;  %v2517_v63 = vpop.f32.mrb[11].mxu1 }
 0x117   : > { %v2518_v25 = vadd.f32 %v2517_v63, %v2516_v18 }
 0x118   : > { %v1324_v59 = vadd.f32 %v2438_v57, %v4406_v11  ;;  %v2439_v60 = vpop.f32.mrb[12].mxu0 }
 0x119   : > { %v2519_v58 = vpop.f32.mrb[12].mxu1  ;;  %v2440_v1 = vpop.f32.mrb[13].mxu0 }
 0x11a   : > { %v4424_v53 = vadd.f32 %v2518_v25, %v1324_v59  ;;  %v2441_v62 = vadd.f32 %v2440_v1, %v2439_v60  ;;  %v2520_v34 = vpop.f32.mrb[13].mxu1 }
 0x11b   : > { %v2521_v42 = vadd.f32 %v2520_v34, %v2519_v58 }
 0x11c   : > { %v1329_v3 = vadd.f32 %v2441_v62, %v4406_v11  ;;  %v2442_v2 = vpop.f32.mrb[14].mxu0 }
 0x11d   : > { %v2522_v6 = vpop.f32.mrb[14].mxu1  ;;  %v2443_v44 = vpop.f32.mrb[15].mxu0 }
 0x11e   : > { %v4427_v35 = vadd.f32 %v2521_v42, %v1329_v3  ;;  %v2444_v9 = vadd.f32 %v2443_v44, %v2442_v2  ;;  %v2523_v7 = vpop.f32.mrb[15].mxu1 }
 0x11f   : > { %v2524_v54 = vadd.f32 %v2523_v7, %v2522_v6 }
 0x120   : > { %v1334_v38 = vadd.f32 %v2444_v9, %v4406_v11  ;;  %v2445_v28 = vpop.f32.mrb[16].mxu0 }
 0x121   : > { %v2525_v55 = vpop.f32.mrb[16].mxu1  ;;  %v2446_v12 = vpop.f32.mrb[17].mxu0 }
 0x122   : > { %v4430_v61 = vadd.f32 %v2524_v54, %v1334_v38  ;;  %v2447_v26 = vadd.f32 %v2446_v12, %v2445_v28  ;;  %v2526_v30 = vpop.f32.mrb[17].mxu1 }
 0x123   : > { %v2527_v37 = vadd.f32 %v2526_v30, %v2525_v55 }
 0x124   : > { %v1339_v50 = vadd.f32 %v2447_v26, %v4406_v11  ;;  %v2448_v51 = vpop.f32.mrb[18].mxu0 }
 0x125   : > { %v2528_v45 = vpop.f32.mrb[18].mxu1  ;;  %v2449_v22 = vpop.f32.mrb[19].mxu0 }
 0x126   : > { %v4433_v13 = vadd.f32 %v2527_v37, %v1339_v50  ;;  %v2450_v16 = vadd.f32 %v2449_v22, %v2448_v51  ;;  %v2529_v10 = vpop.f32.mrb[19].mxu1 }
 0x127   : > { %v2530_v17 = vadd.f32 %v2529_v10, %v2528_v45 }
 0x128   : > { %v1344_v19 = vadd.f32 %v2450_v16, %v4406_v11  ;;  %v2451_v21 = vpop.f32.mrb[20].mxu0 }
 0x129   : > { %v2531_v23 = vpop.f32.mrb[20].mxu1  ;;  %v2452_v27 = vpop.f32.mrb[21].mxu0 }
 0x12a   : > { %v4436_v39 = vadd.f32 %v2530_v17, %v1344_v19  ;;  %v2453_v29 = vadd.f32 %v2452_v27, %v2451_v21  ;;  %v2532_v32 = vpop.f32.mrb[21].mxu1 }
 0x12b   : > { %v2533_v0 = vadd.f32 %v2532_v32, %v2531_v23 }
 0x12c   : > { %v1349_v33 = vadd.f32 %v2453_v29, %v4406_v11  ;;  %v2454_v40 = vpop.f32.mrb[22].mxu0 }
 0x12d   : > { %v2534_v41 = vpop.f32.mrb[22].mxu1  ;;  %v2455_v43 = vpop.f32.mrb[23].mxu0 }
 0x12e   : > { %v4439_v47 = vadd.f32 %v2533_v0, %v1349_v33  ;;  %v2456_v48 = vadd.f32 %v2455_v43, %v2454_v40  ;;  %v2535_v4 = vpop.f32.mrb[23].mxu1 }
 0x12f   : > { %v2536_v8 = vadd.f32 %v2535_v4, %v2534_v41 }
 0x130   : > { %v1354_v49 = vadd.f32 %v2456_v48, %v4406_v11  ;;  %v2457_v46 = vpop.f32.mrb[24].mxu0 }
 0x131   : > { %v2537_v24 = vpop.f32.mrb[24].mxu1  ;;  %v2458_v31 = vpop.f32.mrb[25].mxu0 }
 0x132   : > { %v4442_v56 = vadd.f32 %v2536_v8, %v1354_v49  ;;  %v2459_v18 = vadd.f32 %v2458_v31, %v2457_v46  ;;  %v2538_v15 = vpop.f32.mrb[25].mxu1 }
 0x133   : > { %v2539_v57 = vadd.f32 %v2538_v15, %v2537_v24 }
 0x134   : > { %v1359_v63 = vadd.f32 %v2459_v18, %v4406_v11  ;;  %v2460_v25 = vpop.f32.mrb[26].mxu0 }
 0x135   : > { %v2540_v59 = vpop.f32.mrb[26].mxu1  ;;  %v2461_v60 = vpop.f32.mrb[27].mxu0 }
 0x136   : > { %v4445_v58 = vadd.f32 %v2539_v57, %v1359_v63  ;;  %v2462_v1 = vadd.f32 %v2461_v60, %v2460_v25  ;;  %v2541_v62 = vpop.f32.mrb[27].mxu1 }
 0x137   : > { %v2542_v34 = vadd.f32 %v2541_v62, %v2540_v59 }
 0x138   : > { %v1364_v42 = vadd.f32 %v2462_v1, %v4406_v11  ;;  %v2463_v3 = vpop.f32.mrb[28].mxu0 }
 0x139   : > { %v2543_v2 = vpop.f32.mrb[28].mxu1  ;;  %v2464_v6 = vpop.f32.mrb[29].mxu0 }
 0x13a   : > { %v4448_v44 = vadd.f32 %v2542_v34, %v1364_v42  ;;  %v2465_v9 = vadd.f32 %v2464_v6, %v2463_v3  ;;  %v2544_v7 = vpop.f32.mrb[29].mxu1 }
 0x13b   : > { %v2545_v54 = vadd.f32 %v2544_v7, %v2543_v2 }
 0x13c   : > { %v1369_v38 = vadd.f32 %v2465_v9, %v4406_v11  ;;  %v2466_v28 = vpop.f32.mrb[30].mxu0 }
 0x13d   : > { %v2546_v55 = vpop.f32.mrb[30].mxu1  ;;  %v2467_v12 = vpop.f32.mrb[31].mxu0 }
 0x13e   : > { %v4451_v26 = vadd.f32 %v2545_v54, %v1369_v38  ;;  %v2468_v30 = vadd.f32 %v2467_v12, %v2466_v28  ;;  %v2547_v37 = vpop.f32.mrb[31].mxu1 }
 0x13f   : > { %v2548_v50 = vadd.f32 %v2547_v37, %v2546_v55 }
 0x140   : > { %v1374_v51 = vadd.f32 %v2468_v30, %v4406_v11  ;;  %v2581_v45 = vpop.f32.mrb[32].mxu0 }
 0x141   : > { %v2661_v22 = vpop.f32.mrb[32].mxu1  ;;  %v2582_v16 = vpop.f32.mrb[33].mxu0 }
 0x142   : > { %v4454_v10 = vadd.f32 %v2548_v50, %v1374_v51  ;;  %v2583_v17 = vadd.f32 %v2582_v16, %v2581_v45  ;;  %v2662_v19 = vpop.f32.mrb[33].mxu1 }
 0x143   : > { %v2663_v21 = vadd.f32 %v2662_v19, %v2661_v22 }
 0x144   : > { %v1589_v23 = vadd.f32 %v2583_v17, %v4409_v5  ;;  %v2584_v27 = vpop.f32.mrb[34].mxu0 }
 0x145   : > { %v2664_v29 = vpop.f32.mrb[34].mxu1  ;;  %v2585_v32 = vpop.f32.mrb[35].mxu0 }
 0x146   : > { %v2586_v0 = vadd.f32 %v2585_v32, %v2584_v27  ;;  %v2665_v33 = vpop.f32.mrb[35].mxu1  ;;  %v4457_v40 = vadd.f32 %v2663_v21, %v1589_v23 }
 0x147   : > { %v2666_v41 = vadd.f32 %v2665_v33, %v2664_v29 }
 0x148   : > { %v1594_v11 = vadd.f32 %v2586_v0, %v4412_v20  ;;  %v2587_v43 = vpop.f32.mrb[36].mxu0 }
 0x149   : > { %v2667_v48 = vpop.f32.mrb[36].mxu1  ;;  %v2588_v4 = vpop.f32.mrb[37].mxu0 }
 0x14a   : > { %v2589_v8 = vadd.f32 %v2588_v4, %v2587_v43  ;;  %v2668_v49 = vpop.f32.mrb[37].mxu1  ;;  %v4460_v46 = vadd.f32 %v2666_v41, %v1594_v11 }
 0x14b   : > { %v2669_v24 = vadd.f32 %v2668_v49, %v2667_v48 }
 0x14c   : > { %v1599_v5 = vadd.f32 %v2589_v8, %v4415_v36  ;;  %v2590_v31 = vpop.f32.mrb[38].mxu0 }
 0x14d   : > { %v2670_v18 = vpop.f32.mrb[38].mxu1  ;;  %v2591_v15 = vpop.f32.mrb[39].mxu0 }
 0x14e   : > { %v2592_v57 = vadd.f32 %v2591_v15, %v2590_v31  ;;  %v2671_v63 = vpop.f32.mrb[39].mxu1  ;;  %v4463_v25 = vadd.f32 %v2669_v24, %v1599_v5 }
 0x14f   : > { %v2672_v59 = vadd.f32 %v2671_v63, %v2670_v18 }
 0x150   : > { %v1604_v20 = vadd.f32 %v2592_v57, %v4418_v14  ;;  %v2593_v60 = vpop.f32.mrb[40].mxu0 }
 0x151   : > { %v2673_v1 = vpop.f32.mrb[40].mxu1  ;;  %v2594_v62 = vpop.f32.mrb[41].mxu0 }
 0x152   : > { %v2595_v34 = vadd.f32 %v2594_v62, %v2593_v60  ;;  %v2674_v42 = vpop.f32.mrb[41].mxu1  ;;  %v4466_v3 = vadd.f32 %v2672_v59, %v1604_v20 }
 0x153   : > { %v2675_v2 = vadd.f32 %v2674_v42, %v2673_v1 }
 0x154   : > { %v1609_v36 = vadd.f32 %v2595_v34, %v4421_v52  ;;  %v2596_v6 = vpop.f32.mrb[42].mxu0 }
 0x155   : > { %v2676_v9 = vpop.f32.mrb[42].mxu1  ;;  %v2597_v7 = vpop.f32.mrb[43].mxu0 }
 0x156   : > { %v2598_v54 = vadd.f32 %v2597_v7, %v2596_v6  ;;  %v2677_v38 = vpop.f32.mrb[43].mxu1  ;;  %v4469_v28 = vadd.f32 %v2675_v2, %v1609_v36 }
 0x157   : > { %v2678_v55 = vadd.f32 %v2677_v38, %v2676_v9 }
 0x158   : > { %v1614_v14 = vadd.f32 %v2598_v54, %v4424_v53  ;;  %v2599_v12 = vpop.f32.mrb[44].mxu0 }
 0x159   : > { %v2679_v30 = vpop.f32.mrb[44].mxu1  ;;  %v2600_v37 = vpop.f32.mrb[45].mxu0 }
 0x15a   : > { %v2601_v50 = vadd.f32 %v2600_v37, %v2599_v12  ;;  %v2680_v51 = vpop.f32.mrb[45].mxu1  ;;  %v4472_v45 = vadd.f32 %v2678_v55, %v1614_v14 }
 0x15b   : > { %v2681_v22 = vadd.f32 %v2680_v51, %v2679_v30 }
 0x15c   : > { %v1619_v52 = vadd.f32 %v2601_v50, %v4427_v35  ;;  %v2602_v16 = vpop.f32.mrb[46].mxu0 }
 0x15d   : > { %v2682_v17 = vpop.f32.mrb[46].mxu1  ;;  %v2603_v19 = vpop.f32.mrb[47].mxu0 }
 0x15e   : > { %v2604_v21 = vadd.f32 %v2603_v19, %v2602_v16  ;;  %v2683_v23 = vpop.f32.mrb[47].mxu1  ;;  %v4475_v27 = vadd.f32 %v2681_v22, %v1619_v52 }
 0x15f   : > { %v2684_v29 = vadd.f32 %v2683_v23, %v2682_v17 }
 0x160   : > { %v1624_v53 = vadd.f32 %v2604_v21, %v4430_v61  ;;  %v2605_v32 = vpop.f32.mrb[48].mxu0 }
 0x161   : > { %v2685_v0 = vpop.f32.mrb[48].mxu1  ;;  %v2606_v33 = vpop.f32.mrb[49].mxu0 }
 0x162   : > { %v2607_v41 = vadd.f32 %v2606_v33, %v2605_v32  ;;  %v2686_v11 = vpop.f32.mrb[49].mxu1  ;;  %v4478_v43 = vadd.f32 %v2684_v29, %v1624_v53 }
 0x163   : > { %v2687_v48 = vadd.f32 %v2686_v11, %v2685_v0 }
 0x164   : > { %v1629_v35 = vadd.f32 %v2607_v41, %v4433_v13  ;;  %v2608_v4 = vpop.f32.mrb[50].mxu0 }
 0x165   : > { %v2688_v8 = vpop.f32.mrb[50].mxu1  ;;  %v2609_v49 = vpop.f32.mrb[51].mxu0 }
 0x166   : > { %v2610_v24 = vadd.f32 %v2609_v49, %v2608_v4  ;;  %v2689_v5 = vpop.f32.mrb[51].mxu1  ;;  %v1774_v31 = vadd.f32 %v2687_v48, %v1629_v35 }
 0x167   : > { %v2690_v18 = vadd.f32 %v2689_v5, %v2688_v8 }
 0x168   : > { %v1634_v15 = vadd.f32 %v2610_v24, %v4436_v39  ;;  %v2611_v61 = vpop.f32.mrb[52].mxu0 }
 0x169   : > { %v2691_v57 = vpop.f32.mrb[52].mxu1  ;;  %v2612_v63 = vpop.f32.mrb[53].mxu0 }
 0x16a   : > { %v2613_v59 = vadd.f32 %v2612_v63, %v2611_v61  ;;  %v2692_v20 = vpop.f32.mrb[53].mxu1  ;;  %v1779_v60 = vadd.f32 %v2690_v18, %v1634_v15 }
 0x16b   : > { %v2693_v1 = vadd.f32 %v2692_v20, %v2691_v57 }
 0x16c   : > { %v1639_v62 = vadd.f32 %v2613_v59, %v4439_v47  ;;  %v2614_v34 = vpop.f32.mrb[54].mxu0 }
 0x16d   : > { %v2694_v13 = vpop.f32.mrb[54].mxu1  ;;  %v2615_v42 = vpop.f32.mrb[55].mxu0 }
 0x16e   : > { %v2616_v2 = vadd.f32 %v2615_v42, %v2614_v34  ;;  %v2695_v36 = vpop.f32.mrb[55].mxu1  ;;  %v1784_v6 = vadd.f32 %v2693_v1, %v1639_v62 }
 0x16f   : > { %v2696_v9 = vadd.f32 %v2695_v36, %v2694_v13 }
 0x170   : > { %v1644_v7 = vadd.f32 %v2616_v2, %v4442_v56  ;;  %v2617_v54 = vpop.f32.mrb[56].mxu0 }
 0x171   : > { %v2697_v39 = vpop.f32.mrb[56].mxu1  ;;  %v2618_v38 = vpop.f32.mrb[57].mxu0 }
 0x172   : > { %v2619_v55 = vadd.f32 %v2618_v38, %v2617_v54  ;;  %v2698_v14 = vpop.f32.mrb[57].mxu1  ;;  %v1789_v12 = vadd.f32 %v2696_v9, %v1644_v7 }
 0x173   : > { %v2699_v30 = vadd.f32 %v2698_v14, %v2697_v39 }
 0x174   : > { %v1649_v37 = vadd.f32 %v2619_v55, %v4445_v58  ;;  %v2620_v50 = vpop.f32.mrb[58].mxu0 }
 0x175   : > { %v2700_v47 = vpop.f32.mrb[58].mxu1  ;;  %v2621_v51 = vpop.f32.mrb[59].mxu0 }
 0x176   : > { %v2622_v22 = vadd.f32 %v2621_v51, %v2620_v50  ;;  %v2701_v52 = vpop.f32.mrb[59].mxu1  ;;  %v1794_v16 = vadd.f32 %v2699_v30, %v1649_v37 }
 0x177   : > { %v2702_v17 = vadd.f32 %v2701_v52, %v2700_v47 }
 0x178   : > { %v1654_v19 = vadd.f32 %v2622_v22, %v4448_v44  ;;  %v2623_v56 = vpop.f32.mrb[60].mxu0 }
 0x179   : > { %v2703_v21 = vpop.f32.mrb[60].mxu1  ;;  %v2624_v23 = vpop.f32.mrb[61].mxu0 }
 0x17a   : > { %v2625_v29 = vadd.f32 %v2624_v23, %v2623_v56  ;;  %v2704_v53 = vpop.f32.mrb[61].mxu1  ;;  %v1799_v32 = vadd.f32 %v2702_v17, %v1654_v19 }
 0x17b   : > { %v2705_v0 = vadd.f32 %v2704_v53, %v2703_v21 }
 0x17c   : > { %v1659_v33 = vadd.f32 %v2625_v29, %v4451_v26  ;;  %v2626_v58 = vpop.f32.mrb[62].mxu0 }
 0x17d   : > { %v2706_v41 = vpop.f32.mrb[62].mxu1  ;;  %v2627_v11 = vpop.f32.mrb[63].mxu0 }
 0x17e   : > { %v2628_v48 = vadd.f32 %v2627_v11, %v2626_v58  ;;  %v2707_v35 = vpop.f32.mrb[63].mxu1  ;;  %v1804_v4 = vadd.f32 %v2705_v0, %v1659_v33 }
 0x17f   : > { %v2708_v8 = vadd.f32 %v2707_v35, %v2706_v41 }
 0x180   : > { %v1664_v49 = vadd.f32 %v2628_v48, %v4454_v10  ;;  %v2775_v44 = vpop.f32.mrb[64].mxu0 }
 0x181   : > { %v1884_v24 = vadd.f32 %v2775_v44, %v4460_v46  ;;  %v2787_v5 = vpop.f32.mrb[64].mxu1  ;;  %v1878_v18 = vpop.f32.mrb[65].mxu0 }
 0x182   : > { %v1924_v26 = vadd.f32 %v2787_v5, %v1779_v60  ;;  %v1879_v15 = vadd.f32 %v1878_v18, %v4457_v40  ;;  %v1918_v61 = vpop.f32.mrb[65].mxu1  ;;  %v1809_v57 = vadd.f32 %v2708_v8, %v1664_v49 }
 0x183   : > { %v1958_v10 = vmax.f32 %v1884_v24, 0.0  ;;  %v1919_v63 = vadd.f32 %v1918_v61, %v1774_v31 }
 0x184   : > { %v1966_v59 = vmax.f32 %v1924_v26, 0.0  ;;  %v1957_v46 = vmax.f32 %v1879_v15, 0.0  ;;  %v2778_v20 = vpop.f32.mrb[66].mxu0 }
 0x185   : > { %1974 = vst [vmem:[%s4493_s4 + $0x8] sm:$0xff] %v1958_v10  ;;  %v1965_v1 = vmax.f32 %v1919_v63, 0.0  ;;  %v1894_v62 = vadd.f32 %v2778_v20, %v4466_v3  ;;  %v2790_v34 = vpop.f32.mrb[66].mxu1  ;;  %v1888_v13 = vpop.f32.mrb[67].mxu0 }
 0x186   : > { %1982 = vst [vmem:[%s4493_s4 + $0x48] sm:$0xff] %v1966_v59  ;;  %1973 = vst [vmem:[%s4493_s4] sm:$0xff] %v1957_v46  ;;  %v1934_v40 = vadd.f32 %v2790_v34, %v1789_v12  ;;  %v1889_v60 = vadd.f32 %v1888_v13, %v4463_v25  ;;  %v1928_v42 = vpop.f32.mrb[67].mxu1 }
 0x187   : > { %1981 = vst [vmem:[%s4493_s4 + $0x40] sm:$0xff] %v1965_v1  ;;  %v1960_v31 = vmax.f32 %v1894_v62, 0.0  ;;  %v1929_v2 = vadd.f32 %v1928_v42, %v1784_v6 }
 0x188   : > { %v1968_v36 = vmax.f32 %v1934_v40, 0.0  ;;  %v1959_v9 = vmax.f32 %v1889_v60, 0.0  ;;  %v2781_v7 = vpop.f32.mrb[68].mxu0 }
 0x189   : > { %1976 = vst [vmem:[%s4493_s4 + $0x18] sm:$0xff] %v1960_v31  ;;  %v1967_v3 = vmax.f32 %v1929_v2, 0.0  ;;  %v1904_v54 = vadd.f32 %v2781_v7, %v4472_v45  ;;  %v2793_v39 = vpop.f32.mrb[68].mxu1  ;;  %v1898_v38 = vpop.f32.mrb[69].mxu0 }
 0x18a   : > { %1984 = vst [vmem:[%s4493_s4 + $0x58] sm:$0xff] %v1968_v36  ;;  %1975 = vst [vmem:[%s4493_s4 + $0x10] sm:$0xff] %v1959_v9  ;;  %v1944_v25 = vadd.f32 %v2793_v39, %v1799_v32  ;;  %v1899_v55 = vadd.f32 %v1898_v38, %v4469_v28  ;;  %v1938_v14 = vpop.f32.mrb[69].mxu1 }
 0x18b   : > { %1983 = vst [vmem:[%s4493_s4 + $0x50] sm:$0xff] %v1967_v3  ;;  %v1962_v6 = vmax.f32 %v1904_v54, 0.0  ;;  %v1939_v12 = vadd.f32 %v1938_v14, %v1794_v16 }
 0x18c   : > { %v1970_v30 = vmax.f32 %v1944_v25, 0.0  ;;  %v1961_v37 = vmax.f32 %v1899_v55, 0.0  ;;  %v2784_v50 = vpop.f32.mrb[70].mxu0 }
 0x18d   : > { %1978 = vst [vmem:[%s4493_s4 + $0x28] sm:$0xff] %v1962_v6  ;;  %v1969_v45 = vmax.f32 %v1939_v12, 0.0  ;;  %v1914_v47 = vadd.f32 %v2784_v50, %v4478_v43  ;;  %v2796_v51 = vpop.f32.mrb[70].mxu1  ;;  %v1908_v22 = vpop.f32.mrb[71].mxu0 }
 0x18e   : > { %1986 = vst [vmem:[%s4493_s4 + $0x68] sm:$0xff] %v1970_v30  ;;  %1977 = vst [vmem:[%s4493_s4 + $0x20] sm:$0xff] %v1961_v37  ;;  %v1954_v28 = vadd.f32 %v2796_v51, %v1809_v57  ;;  %v1909_v52 = vadd.f32 %v1908_v22, %v4475_v27  ;;  %v1948_v17 = vpop.f32.mrb[71].mxu1 }
 0x18f   : > { %1985 = vst [vmem:[%s4493_s4 + $0x60] sm:$0xff] %v1969_v45  ;;  %v1964_v16 = vmax.f32 %v1914_v47, 0.0  ;;  %v1949_v19 = vadd.f32 %v1948_v17, %v1804_v4 }
 0x190   : > { %v1972_v56 = vmax.f32 %v1954_v28, 0.0  ;;  %v1963_v21 = vmax.f32 %v1909_v52, 0.0 }
 0x191   : > { %1980 = vst [vmem:[%s4493_s4 + $0x38] sm:$0xff] %v1964_v16  ;;  %v1971_v23 = vmax.f32 %v1949_v19, 0.0 }
 0x192   : > { %1988 = vst [vmem:[%s4493_s4 + $0x78] sm:$0xff] %v1972_v56  ;;  %1979 = vst [vmem:[%s4493_s4 + $0x30] sm:$0xff] %v1963_v21 }
 0x193   : > { %1987 = vst [vmem:[%s4493_s4 + $0x70] sm:$0xff] %v1971_v23 }
 0x194 PF: > { %s13_s16 = sadd.s32 1, %s3051_s16   ;;  %s4556_s12 = smov %s3043_s14 }
 0x195   : > { %p10_p2 = scmp.ge.s32.totalorder %s13_s16, 6   ;;  %s4557_s13 = smov %s3047_s15 }
 0x196   : > { %s4558_s14 = smov %s4561_s17  ;;  %s4559_s15 = smov %s4565_s18 }
 0x197   :  { %12 = sbr.rel (!%p10_p2) target bundleno = 3 (0x3), region = 89 }

// kernel: dilated_block_forward.5
= control target key start
LH: loop header
LB: loop body
LE: loop exit
PB: predicated region body
PF: predicated region fallthrough
CT: control target
= control target key end

     0   :  { %s3070_s12 = smov 0   ;;  %s3072_s13 = smov 0   ;;  %s4473_s0 = inlined_call_operand.vmem [shape: f32[2,16,16,128], index: 0, kind: input, shape index: {}]   ;;  %s4474_s1 = inlined_call_operand.vmem [shape: f32[1152,128], index: 1, kind: input, shape index: {}]   ;;  %s4475_s2 = inlined_call_operand.vmem [shape: f32[1,128], index: 2, kind: input, shape index: {}]   ;;  %s4476_s3 = inlined_call_operand.vmem [shape: f32[2,16,16,128], index: 3, kind: output, shape index: {}]  }
   0x1   :  { %s3074_s14 = smov 0   ;;  %s3076_s15 = smov 0  }
   0x2   :  { %s3078_s16 = smov 0  }
   0x3 LB: > { %s28_s17 = sadd.s32 1, %s3040_s14  ;;  %s32_s18 = sadd.s32 1, %s3044_s15  ;;  %s3048_s16 = sphi %s3078_s16, %s13_s16   ;;  %s3044_s15 = sphi %s3076_s15, %s4494_s15   ;;  %s3040_s14 = sphi %s3074_s14, %s4493_s14   ;;  %s3036_s13 = sphi %s3072_s13, %s4492_s13   ;;  %s3032_s12 = sphi %s3070_s12, %s4491_s12  }
   0x4   : > { %p30_p0 = scmp.ge.s32.totalorder %s28_s17, 2  ;;  %p2192_p1 = scmp.ge.s32.totalorder %s3048_s16, 1 }
   0x5   : > { %p177_p2 = scmp.lt.s32.totalorder %s3048_s16, 5 }
   0x6   : > { %s4496_s17 = smov (%p30_p0, %s28_s17), 0  ;;  %s4498_s18 = smov (!%p30_p0, %s32_s18), %s3044_s15 }
   0x7   : > { %p178_p3 = pnand %p2192_p1, %p177_p2  ;;  %p34_p4 = scmp.ge.s32.totalorder %s4498_s18, 2 }
   0x8   : > { %v1138_v0 = vld [vmem:[%s4474_s1 + $0x80] sm:$0xff] (!%p178_p3)  ;;  %v1139_v1 = vld [vmem:[%s4474_s1 + $0x88] sm:$0xff] (!%p178_p3)  ;;  %p216_p5 = scmp.lt.s32.totalorder (!%p178_p3), %s3036_s13, 1  ;;  %s3115_s25 = sshll.u32 (!%p178_p3), %s3032_s12, 3  ;;  %v1140_v11 = vld [vmem:[%s4474_s1 + $0x90] sm:$0xff] (!%p178_p3)  ;;  %vm406_vm0 = vcmask (!%p178_p3), 1041408  }
   0x9   : > { %s4500_s18 = smov (%p34_p4, %s4498_s18), 0  ;;  %181 = sbr.rel (%p178_p3) target bundleno = 404 (0x194), region = 32 }
   0xa   : > { %v1170_v2 = vld [vmem:[%s4474_s1 + $0x180] sm:$0xff] (!%p178_p3)  ;;  %v2794_v3 = vpack.c.bf16 (!%p178_p3), %v1139_v1, %v1138_v0  ;;  %v1171_v4 = vld [vmem:[%s4474_s1 + $0x188] sm:$0xff] (!%p178_p3)  ;;  %s3127_s5 = sadd.s32 (!%p178_p3), 4294967294, %s3115_s25  ;;  %v1141_v13 = vld [vmem:[%s4474_s1 + $0x98] sm:$0xff] (!%p178_p3)  ;;  %s2305_s19 = sshll.u32 (!%p178_p3), %s3032_s12, 7  ;;  %vm487_vm2 = vcmask (!%p178_p3), 1045504  }
   0xb   : > { %v1122_v5 = vld [vmem:[%s4474_s1] sm:$0xff] (!%p178_p3)  ;;  %v1123_v6 = vld [vmem:[%s4474_s1 + $0x8] sm:$0xff] (!%p178_p3)  ;;  %v2826_v7 = vpack.c.bf16 (!%p178_p3), %v1171_v4, %v1170_v2  ;;  %v1172_v14 = vld [vmem:[%s4474_s1 + $0x190] sm:$0xff] (!%p178_p3)  ;;  %p248_p6 = scmp.gt.s32.totalorder (!%p178_p3), %s3127_s5, 0  ;;  %v2798_v16 = vpack.c.bf16 (!%p178_p3), %v1141_v13, %v1140_v11  ;;  %p2200_p7 = scmp.lt.s32.totalorder (!%p178_p3), %s3127_s5, 15 }
   0xc   : > { %v2796_v8 = vpack.c.bf16 (!%p178_p3), %v1123_v6, %v1122_v5  ;;  %v1154_v9 = vld [vmem:[%s4474_s1 + $0x100] sm:$0xff] (!%p178_p3)  ;;  %v1155_v10 = vld [vmem:[%s4474_s1 + $0x108] sm:$0xff] (!%p178_p3)  ;;  %2795 = vmatprep.subr.bf16.mxu0 (!%p178_p3), %v2794_v3  ;;  %v1173_v15 = vld [vmem:[%s4474_s1 + $0x198] sm:$0xff] (!%p178_p3)  ;;  %p256_p8 = scmp.ge.s32.totalorder (!%p178_p3), %s3127_s5, 0  ;;  %p257_p9 = scmp.lt.s32.totalorder (!%p178_p3), %s3127_s5, 16 }
   0xd   : > { %v2828_v12 = vpack.c.bf16 (!%p178_p3), %v1155_v10, %v1154_v9  ;;  %2827 = vmatprep.subr.bf16.mxu1 (!%p178_p3), %v2826_v7  ;;  %v2830_v17 = vpack.c.bf16 (!%p178_p3), %v1173_v15, %v1172_v14  ;;  %v1124_v18 = vld [vmem:[%s4474_s1 + $0x10] sm:$0xff] (!%p178_p3)  ;;  %v1125_v19 = vld [vmem:[%s4474_s1 + $0x18] sm:$0xff] (!%p178_p3)  ;;  %v1142_v23 = vld [vmem:[%s4474_s1 + $0xa0] sm:$0xff] (!%p178_p3)  ;;  %s3242_s26 = sadd.s32 (!%p178_p3), 4294967295, %s3115_s25  ;;  %p231_p2 = scmp.lt.s32.totalorder (!%p178_p3), %s3115_s25, 15 }
   0xe   : > { %2797 = vmatpush3.bf16.msra.mxu0 (!%p178_p3), %v2796_v8  ;;  %v1156_v20 = vld [vmem:[%s4474_s1 + $0x110] sm:$0xff] (!%p178_p3)  ;;  %v2800_v21 = vpack.c.bf16 (!%p178_p3), %v1125_v19, %v1124_v18  ;;  %v1157_v22 = vld [vmem:[%s4474_s1 + $0x118] sm:$0xff] (!%p178_p3)  ;;  %v1143_v24 = vld [vmem:[%s4474_s1 + $0xa8] sm:$0xff] (!%p178_p3)  ;;  %p3199_p10 = pnand (!%p178_p3), %p257_p9, %p256_p8  ;;  %p266_p11 = scmp.gt.s32.totalorder (!%p178_p3), %s3242_s26, 0 }
   0xf   : > { %2829 = vmatpush3.bf16.msra.mxu1 (!%p178_p3), %v2828_v12  ;;  %2799 = vmatprep.subr.bf16.mxu0 (!%p178_p3), %v2798_v16  ;;  %v2832_v25 = vpack.c.bf16 (!%p178_p3), %v1157_v22, %v1156_v20  ;;  %v2802_v26 = vpack.c.bf16 (!%p178_p3), %v1143_v24, %v1142_v23  ;;  %v1174_v27 = vld [vmem:[%s4474_s1 + $0x1a0] sm:$0xff] (!%p178_p3)  ;;  %v1175_v28 = vld [vmem:[%s4474_s1 + $0x1a8] sm:$0xff] (!%p178_p3)  ;;  %v1144_v35 = vld [vmem:[%s4474_s1 + $0xb0] sm:$0xff] (!%p178_p3)  ;;  %p2207_p12 = scmp.lt.s32.totalorder (!%p178_p3), %s3242_s26, 15  ;;  %p274_p13 = scmp.ge.s32.totalorder (!%p178_p3), %s3242_s26, 0 }
  0x10   : > { %s4502_s13 = smov (!%p216_p5, %s3036_s13), 1  ;;  %2831 = vmatprep.subr.bf16.mxu1 %v2830_v17  ;;  %v1126_v29 = vld [vmem:[%s4474_s1 + $0x20] sm:$0xff]  ;;  %v2834_v30 = vpack.c.bf16 %v1175_v28, %v1174_v27  ;;  %v1127_v31 = vld [vmem:[%s4474_s1 + $0x28] sm:$0xff]  ;;  %v1145_v36 = vld [vmem:[%s4474_s1 + $0xb8] sm:$0xff]  ;;  %p275_p0 = scmp.lt.s32.totalorder %s3242_s26, 16 }
  0x11   : > { %s249_s27 = scalar_select %p248_p6, %s3127_s5, 0  ;;  %v1158_v32 = vld [vmem:[%s4474_s1 + $0x120] sm:$0xff]  ;;  %v1159_v33 = vld [vmem:[%s4474_s1 + $0x128] sm:$0xff]  ;;  %v2804_v34 = vpack.c.bf16 %v1127_v31, %v1126_v29  ;;  %v1176_v37 = vld [vmem:[%s4474_s1 + $0x1b0] sm:$0xff]  ;;  %v2806_v39 = vpack.c.bf16 %v1145_v36, %v1144_v35 }
  0x12   : > { %s2288_s8 = sshll.u32 %s4502_s13, 8  ;;  %2801 = vmatpush3.bf16.msra.mxu0 %v2800_v21  ;;  %v2836_v38 = vpack.c.bf16 %v1159_v33, %v1158_v32  ;;  %v1177_v40 = vld [vmem:[%s4474_s1 + $0x1b8] sm:$0xff]  ;;  %v1128_v41 = vld [vmem:[%s4474_s1 + $0x30] sm:$0xff]  ;;  %v1146_v46 = vld [vmem:[%s4474_s1 + $0xc0] sm:$0xff]  ;;  %p3295_p1 = pnand %p275_p0, %p274_p13 }
  0x13   : > { %s4504_s27 = smov (!%p2200_p7, %s249_s27), 15  ;;  %2833 = vmatpush3.bf16.msra.mxu1 %v2832_v25  ;;  %2803 = vmatprep.subr.bf16.mxu0 %v2802_v26  ;;  %v1129_v42 = vld [vmem:[%s4474_s1 + $0x38] sm:$0xff]  ;;  %v2838_v43 = vpack.c.bf16 %v1177_v40, %v1176_v37  ;;  %v1160_v44 = vld [vmem:[%s4474_s1 + $0x130] sm:$0xff]  ;;  %s3239_s24 = scalar_lea.vmem %s4473_s0, %s2288_s8  ;;  %v1147_v47 = vld [vmem:[%s4474_s1 + $0xc8] sm:$0xff] }
  0x14   : > { %s2206_s5 = scalar_select %p3199_p10, 0, 1  ;;  %2835 = vmatprep.subr.bf16.mxu1 %v2834_v30  ;;  %v1161_v45 = vld [vmem:[%s4474_s1 + $0x138] sm:$0xff]  ;;  %v1178_v48 = vld [vmem:[%s4474_s1 + $0x1c0] sm:$0xff]  ;;  %v1179_v49 = vld [vmem:[%s4474_s1 + $0x1c8] sm:$0xff]  ;;  %v2808_v50 = vpack.c.bf16 %v1129_v42, %v1128_v41  ;;  %v2810_v52 = vpack.c.bf16 %v1147_v47, %v1146_v46 }
  0x15   : > { %s2205_s8 = sshll.u32 %s4504_s27, 4  ;;  %s3257_s10 = scalar_lea.vmem %s3239_s24, %s2305_s19  ;;  %v2840_v51 = vpack.c.bf16 %v1161_v45, %v1160_v44  ;;  %v1130_v53 = vld [vmem:[%s4474_s1 + $0x40] sm:$0xff]  ;;  %v1131_v54 = vld [vmem:[%s4474_s1 + $0x48] sm:$0xff]  ;;  %v2842_v56 = vpack.c.bf16 %v1179_v49, %v1178_v48  ;;  %v1148_v58 = vld [vmem:[%s4474_s1 + $0xd0] sm:$0xff] }
  0x16   : > { %2805 = vmatpush3.bf16.msra.mxu0 %v2804_v34  ;;  %v1162_v55 = vld [vmem:[%s4474_s1 + $0x140] sm:$0xff]  ;;  %v1163_v57 = vld [vmem:[%s4474_s1 + $0x148] sm:$0xff]  ;;  %v1149_v59 = vld [vmem:[%s4474_s1 + $0xd8] sm:$0xff]  ;;  %s267_s7 = scalar_select %p266_p11, %s3242_s26, 0  ;;  %v2812_v62 = vpack.c.bf16 %v1131_v54, %v1130_v53 }
  0x17   : > { %2837 = vmatpush3.bf16.msra.mxu1 %v2836_v38  ;;  %2807 = vmatprep.subr.bf16.mxu0 %v2806_v39  ;;  %v1180_v60 = vld [vmem:[%s4474_s1 + $0x1d0] sm:$0xff]  ;;  %v1181_v61 = vld [vmem:[%s4474_s1 + $0x1d8] sm:$0xff]  ;;  %s3293_s12 = scvt.s32.f32 %s2206_s5  ;;  %v2844_v63 = vpack.c.bf16 %v1163_v57, %v1162_v55  ;;  %v2814_v0 = vpack.c.bf16 %v1149_v59, %v1148_v58  ;;  %s3315_s30 = scalar_lea.vmem %s3239_s24, %s2205_s8  ;;  %v1150_v6 = vld [vmem:[%s4474_s1 + $0xe0] sm:$0xff] }
  0x18   : > { %2839 = vmatprep.subr.bf16.mxu1 %v2838_v43  ;;  %s4506_s7 = smov (!%p2207_p12, %s267_s7), 15  ;;  %v1132_v1 = vld [vmem:[%s4474_s1 + $0x50] sm:$0xff]  ;;  %v1133_v2 = vld [vmem:[%s4474_s1 + $0x58] sm:$0xff]  ;;  %v2846_v4 = vpack.c.bf16 %v1181_v61, %v1180_v60  ;;  %v1151_v7 = vld [vmem:[%s4474_s1 + $0xe8] sm:$0xff]  ;;  %s2197_s29 = sshll.u32 %s4502_s13, 5 }
  0x19   : > { %v1164_v3 = vld [vmem:[%s4474_s1 + $0x150] sm:$0xff]  ;;  %v1165_v5 = vld [vmem:[%s4474_s1 + $0x158] sm:$0xff]  ;;  %s2213_s27 = scalar_select %p3295_p1, 0, 1  ;;  %v1182_v8 = vld [vmem:[%s4474_s1 + $0x1e0] sm:$0xff]  ;;  %v262_v10 = vstv %s3293_s12  ;;  %v2816_v11 = vpack.c.bf16 %v1133_v2, %v1132_v1  ;;  %v2818_v16 = vpack.c.bf16 %v1151_v7, %v1150_v6 }
  0x1a   : > { %2809 = vmatpush3.bf16.msra.mxu0 %v2808_v50  ;;  %v1183_v9 = vld [vmem:[%s4474_s1 + $0x1e8] sm:$0xff]  ;;  %s2212_s28 = sshll.u32 %s4506_s7, 4  ;;  %v1134_v12 = vld [vmem:[%s4474_s1 + $0x60] sm:$0xff]  ;;  %v2848_v15 = vpack.c.bf16 %v1165_v5, %v1164_v3  ;;  %v1152_v18 = vld [vmem:[%s4474_s1 + $0xf0] sm:$0xff]  ;;  %p283_p3 = scmp.gt.s32.totalorder %s3115_s25, 0 }
  0x1b   : > { %2841 = vmatpush3.bf16.msra.mxu1 %v2840_v51  ;;  %2811 = vmatprep.subr.bf16.mxu0 %v2810_v52  ;;  %v1135_v13 = vld [vmem:[%s4474_s1 + $0x68] sm:$0xff]  ;;  %v1166_v14 = vld [vmem:[%s4474_s1 + $0x160] sm:$0xff]  ;;  %s232_s12 = scalar_select %p231_p2, %s3115_s25, 15  ;;  %v2850_v20 = vpack.c.bf16 %v1183_v9, %v1182_v8  ;;  %v1153_v21 = vld [vmem:[%s4474_s1 + $0xf8] sm:$0xff] }
  0x1c   : > { %2843 = vmatprep.subr.bf16.mxu1 %v2842_v56  ;;  %v1167_v17 = vld [vmem:[%s4474_s1 + $0x168] sm:$0xff]  ;;  %v254_v19 = vld [vmem:[%s3315_s30] sm:$0xff]  ;;  %p291_p4 = scmp.ge.s32.totalorder %s3115_s25, 0  ;;  %p292_p5 = scmp.lt.s32.totalorder %s3115_s25, 16  ;;  %v1184_v25 = vld [vmem:[%s4474_s1 + $0x1f0] sm:$0xff]  ;;  %v2820_v29 = vpack.c.bf16 %v1135_v13, %v1134_v12  ;;  %v2822_v31 = vpack.c.bf16 %v1153_v21, %v1152_v18 }
  0x1d   : > { %v255_v22 = vld [vmem:[%s3315_s30 + $0x8] sm:$0xff]  ;;  %v3363_v23 = vmul.f32 %v262_v10, %v254_v19  ;;  %v3366_v24 = vld [vmem:[%s3257_s10] sm:$0xff]  ;;  %s2196_s4 = sshll.u32 %s232_s12, 1  ;;  %v1185_v26 = vld [vmem:[%s4474_s1 + $0x1f8] sm:$0xff]  ;;  %s3386_s12 = sadd.s32 1, %s3115_s25  ;;  %v2852_v30 = vpack.c.bf16 %v1167_v17, %v1166_v14 }
  0x1e   : > { %2813 = vmatpush3.bf16.msra.mxu0 %v2812_v62  ;;  %v586_v27 = vrot.slane %v3366_v24, 6  ;;  %vm3377_vm1 = vmneg %vm406_vm0  ;;  %s3383_s30 = sadd.s32 %s2197_s29, %s2196_s4  ;;  %s3392_s22 = scvt.s32.f32 %s2213_s27  ;;  %v1136_v32 = vld [vmem:[%s4474_s1 + $0x70] sm:$0xff]  ;;  %v1137_v33 = vld [vmem:[%s4474_s1 + $0x78] sm:$0xff]  ;;  %v3403_v35 = vmul.f32 %v262_v10, %v255_v22  ;;  %v2854_v36 = vpack.c.bf16 %v1185_v26, %v1184_v25 }
  0x1f   : > { %2845 = vmatpush3.bf16.msra.mxu1 %v2844_v63  ;;  %2815 = vmatprep.subr.bf16.mxu0 %v2814_v0  ;;  %v1168_v34 = vld [vmem:[%s4474_s1 + $0x170] sm:$0xff]  ;;  %s271_s23 = scalar_lea.vmem %s3239_s24, %s2212_s28  ;;  %p301_p6 = scmp.gt.s32.totalorder %s3386_s12, 0  ;;  %v1169_v37 = vld [vmem:[%s4474_s1 + $0x178] sm:$0xff]  ;;  %v1202_v38 = vld [vmem:[%s4474_s1 + $0x280] sm:$0xff]  ;;  %v2824_v42 = vpack.c.bf16 %v1137_v33, %v1136_v32  ;;  %v488_v47 = vrot.slane %v3363_v23, 2  ;;  %v407_v56 = vrot.slane %v3363_v23, 6 }
  0x20   : > { %2847 = vmatprep.subr.bf16.mxu1 %v2846_v4  ;;  %1337 = vmatprep.mubr.f32.mxu0 %v3363_v23  ;;  %v1203_v39 = vld [vmem:[%s4474_s1 + $0x288] sm:$0xff]  ;;  %p3426_p7 = pnand %p292_p5, %p291_p4  ;;  %p2221_p8 = scmp.lt.s32.totalorder %s3386_s12, 15  ;;  %v1234_v40 = vld [vmem:[%s4474_s1 + $0x380] sm:$0xff]  ;;  %v280_v45 = vstv %s3392_s22  ;;  %v2856_v46 = vpack.c.bf16 %v1169_v37, %v1168_v34  ;;  %v489_v48 = vrot.slane %v3403_v35, 2  ;;  %v1204_v58 = vld [vmem:[%s4474_s1 + $0x290] sm:$0xff]  ;;  %v408_v61 = vrot.slane %v3403_v35, 6 }
  0x21   : > { %2331 = vmatprep.mubr.msk.f32.mxu1 %vm3377_vm1, %v586_v27  ;;  %v1235_v41 = vld [vmem:[%s4474_s1 + $0x388] sm:$0xff]  ;;  %s284_s8 = scalar_select %p283_p3, %s3115_s25, 0  ;;  %v1186_v43 = vld [vmem:[%s4474_s1 + $0x200] sm:$0xff]  ;;  %v2858_v49 = vpack.c.bf16 %v1203_v39, %v1202_v38  ;;  %v1205_v59 = vld [vmem:[%s4474_s1 + $0x298] sm:$0xff] }
  0x22   : > { %2817 = vmatpush3.bf16.msra.mxu0 %v2816_v11  ;;  %v3444_v44 = vld [vmem:[%s3257_s10 + $0x8] sm:$0xff]  ;;  %s3450_s27 = scalar_select %p301_p6, %s3386_s12, 0  ;;  %v272_v51 = vld [vmem:[%s271_s23] sm:$0xff]  ;;  %v2890_v53 = vpack.c.bf16 %v1235_v41, %v1234_v40  ;;  %v1236_v0 = vld [vmem:[%s4474_s1 + $0x390] sm:$0xff]  ;;  %v490_v2 = vsel %vm487_vm2, %v488_v47, %v489_v48  ;;  %v2862_v6 = vpack.c.bf16 %v1205_v59, %v1204_v58 }
  0x23   : > { %2849 = vmatpush3.bf16.msra.mxu1 %v2848_v15  ;;  %2819 = vmatprep.subr.bf16.mxu0 %v2818_v16  ;;  %v1187_v50 = vld [vmem:[%s4474_s1 + $0x208] sm:$0xff]  ;;  %s4508_s8 = smov (!%p231_p2, %s284_s8), 15  ;;  %v1218_v54 = vld [vmem:[%s4474_s1 + $0x300] sm:$0xff]  ;;  %v587_v57 = vrot.slane %v3444_v44, 6  ;;  %p309_p9 = scmp.ge.s32.totalorder %s3386_s12, 0  ;;  %v3477_v62 = vmul.f32 %v280_v45, %v272_v51  ;;  %v1237_v1 = vld [vmem:[%s4474_s1 + $0x398] sm:$0xff]  ;;  %v409_v15 = vsel %vm406_vm0, %v407_v56, %v408_v61 }
  0x24   : > { %2851 = vmatprep.subr.bf16.mxu1 %v2850_v20  ;;  %v273_v52 = vld [vmem:[%s271_s23 + $0x8] sm:$0xff]  ;;  %s2220_s28 = scalar_select %p3426_p7, 0, 1  ;;  %v2860_v60 = vpack.c.bf16 %v1187_v50, %v1186_v43  ;;  %v3496_v4 = vld [vmem:[%s3257_s10 + $0x10] sm:$0xff]  ;;  %v1189_v7 = vld [vmem:[%s4474_s1 + $0x218] sm:$0xff]  ;;  %v2894_v11 = vpack.c.bf16 %v1237_v1, %v1236_v0 }
  0x25   : > { %v1219_v55 = vld [vmem:[%s4474_s1 + $0x308] sm:$0xff]  ;;  %s2219_s29 = sshll.u32 %s4508_s8, 4  ;;  %v3479_v63 = vmul.f32 %v280_v45, %v273_v52  ;;  %v1188_v5 = vld [vmem:[%s4474_s1 + $0x210] sm:$0xff]  ;;  %s4510_s27 = smov (!%p2221_p8, %s3450_s27), 15  ;;  %v1221_v9 = vld [vmem:[%s4474_s1 + $0x318] sm:$0xff]  ;;  %v588_v10 = vsel %vm406_vm0, %v586_v27, %v587_v57  ;;  %v491_v16 = vrot.slane %v3477_v62, 2 }
  0x26   : > { %2821 = vmatpush3.bf16.msra.mxu0 %v2820_v29  ;;  %s3488_s8 = scalar_lea.vmem %s3239_s24, %s2219_s29  ;;  %s3490_s26 = scvt.s32.f32 %s2220_s28  ;;  %v2892_v3 = vpack.c.bf16 %v1219_v55, %v1218_v54  ;;  %v1220_v8 = vld [vmem:[%s4474_s1 + $0x310] sm:$0xff]  ;;  %v3525_v12 = vld [vmem:[%s3257_s10 + $0x18] sm:$0xff]  ;;  %v1206_v13 = vld [vmem:[%s4474_s1 + $0x2a0] sm:$0xff]  ;;  %v589_v20 = vrot.slane %v3496_v4, 6  ;;  %v2864_v21 = vpack.c.bf16 %v1189_v7, %v1188_v5  ;;  %v410_v33 = vrot.slane %v3477_v62, 6 }
  0x27   : > { %2853 = vmatpush3.bf16.msra.mxu1 %v2852_v30  ;;  %2823 = vmatprep.subr.bf16.mxu0 %v2822_v31  ;;  %p310_p10 = scmp.lt.s32.totalorder %s3386_s12, 16  ;;  %s3517_s13 = sadd.s32 2, %s3115_s25  ;;  %v1207_v14 = vld [vmem:[%s4474_s1 + $0x2a8] sm:$0xff]  ;;  %v492_v17 = vrot.slane %v3479_v63, 2  ;;  %v1238_v18 = vld [vmem:[%s4474_s1 + $0x3a0] sm:$0xff]  ;;  %v2896_v25 = vpack.c.bf16 %v1221_v9, %v1220_v8  ;;  %v590_v26 = vrot.slane %v3525_v12, 6 }
  0x28   : > { %2855 = vmatprep.subr.bf16.mxu1 %v2854_v36  ;;  %s2226_s5 = sshll.u32 %s4510_s27, 4  ;;  %p319_p11 = scmp.gt.s32.totalorder %s3517_s13, 0  ;;  %v1239_v19 = vld [vmem:[%s4474_s1 + $0x3a8] sm:$0xff]  ;;  %v3557_v22 = vld [vmem:[%s4474_s1 + $0x220] sm:$0xff]  ;;  %v297_v30 = vstv %s3490_s26  ;;  %v2866_v31 = vpack.c.bf16 %v1207_v14, %v1206_v13  ;;  %v1208_v37 = vld [vmem:[%s4474_s1 + $0x2b0] sm:$0xff]  ;;  %v411_v40 = vrot.slane %v3479_v63, 6 }
  0x29   : > { %p3548_p12 = pnand %p310_p10, %p309_p9  ;;  %v3562_v23 = vld [vmem:[%s4474_s1 + $0x228] sm:$0xff]  ;;  %s3565_s12 = scalar_lea.vmem %s3239_s24, %s2226_s5  ;;  %v289_v27 = vld [vmem:[%s3488_s8] sm:$0xff]  ;;  %v2898_v34 = vpack.c.bf16 %v1239_v19, %v1238_v18  ;;  %v1209_v38 = vld [vmem:[%s4474_s1 + $0x2b8] sm:$0xff]  ;;  %v493_v39 = vsel %vm487_vm2, %v491_v16, %v492_v17 }
  0x2a   : > { %2825 = vmatpush3.bf16.msra.mxu0 %v2824_v42  ;;  %v290_v29 = vld [vmem:[%s3488_s8 + $0x8] sm:$0xff]  ;;  %v1222_v32 = vld [vmem:[%s4474_s1 + $0x320] sm:$0xff]  ;;  %s320_s6 = scalar_select %p319_p11, %s3517_s13, 0  ;;  %v1240_v41 = vld [vmem:[%s4474_s1 + $0x3b0] sm:$0xff]  ;;  %v3608_v42 = vmul.f32 %v297_v30, %v289_v27  ;;  %v2870_v50 = vpack.c.bf16 %v1209_v38, %v1208_v37  ;;  %v412_v58 = vsel %vm406_vm0, %v410_v33, %v411_v40 }
  0x2b   : > { %2857 = vmatpush3.bf16.msra.mxu1 %v2856_v46  ;;  %2859 = vmatprep.subr.bf16.mxu0 %v2858_v49  ;;  %s2227_s9 = scalar_select %p3548_p12, 0, 1  ;;  %v1223_v36 = vld [vmem:[%s4474_s1 + $0x328] sm:$0xff]  ;;  %v3610_v43 = vmul.f32 %v297_v30, %v290_v29  ;;  %v3613_v45 = vld [vmem:[%s3257_s10 + $0x20] sm:$0xff]  ;;  %v2868_v46 = vpack.c.bf16 %v3562_v23, %v3557_v22  ;;  %v1192_v51 = vld [vmem:[%s4474_s1 + $0x230] sm:$0xff] }
  0x2c   : > { %2891 = vmatprep.subr.bf16.mxu1 %v2890_v53  ;;  %p2228_p13 = scmp.lt.s32.totalorder %s3517_s13, 15  ;;  %v3618_v47 = vld [vmem:[%s3257_s10 + $0x28] sm:$0xff]  ;;  %p327_p0 = scmp.ge.s32.totalorder %s3517_s13, 0  ;;  %v2900_v49 = vpack.c.bf16 %v1223_v36, %v1222_v32  ;;  %v1193_v52 = vld [vmem:[%s4474_s1 + $0x238] sm:$0xff]  ;;  %v3632_v53 = vld [vmem:[%s4474_s1 + $0x330] sm:$0xff]  ;;  %v592_v59 = vrot.slane %v3613_v45, 6 }
  0x2d   : > { %2315 = vmatmul.mubr.msk.f32.vlgmr.msra.gmra.mrb[0].mxu0 %vm3377_vm1, %v407_v56  ;;  %s3597_s7 = scvt.s32.f32 %s2227_s9  ;;  %p328_p1 = scmp.lt.s32.totalorder %s3517_s13, 16  ;;  %v1225_v55 = vld [vmem:[%s4474_s1 + $0x338] sm:$0xff]  ;;  %v1210_v56 = vld [vmem:[%s4474_s1 + $0x2c0] sm:$0xff]  ;;  %v1211_v57 = vld [vmem:[%s4474_s1 + $0x2c8] sm:$0xff]  ;;  %v495_v0 = vrot.slane %v3610_v43, 2  ;;  %v2872_v5 = vpack.c.bf16 %v1193_v52, %v1192_v51  ;;  %v413_v13 = vrot.slane %v3608_v42, 6 }
  0x2e   : > { %1483 = vmatmul.mubr.f32.vlgmr.msra.gmra.mrb[0].mxu1 %v490_v2  ;;  %2861 = vmatpush3.bf16.msra.mxu0 %v2860_v60  ;;  %s4512_s6 = smov (!%p2228_p13, %s320_s6), 15  ;;  %s3656_s20 = sadd.s32 3, %s3115_s25  ;;  %v1242_v60 = vld [vmem:[%s4474_s1 + $0x3c0] sm:$0xff]  ;;  %v1243_v61 = vld [vmem:[%s4474_s1 + $0x3c8] sm:$0xff]  ;;  %v2904_v7 = vpack.c.bf16 %v1225_v55, %v3632_v53  ;;  %v2874_v8 = vpack.c.bf16 %v1211_v57, %v1210_v56  ;;  %v1212_v16 = vld [vmem:[%s4474_s1 + $0x2d0] sm:$0xff]  ;;  %v414_v19 = vrot.slane %v3610_v43, 6 }
  0x2f   : > { %2893 = vmatpush3.bf16.msra.mxu1 %v2892_v3  ;;  %1342 = vmatprep.mubr.f32.mxu0 %v3403_v35  ;;  %v1241_v35 = vld [vmem:[%s4474_s1 + $0x3b8] sm:$0xff]  ;;  %p3645_p2 = pnand %p328_p1, %p327_p0  ;;  %s2233_s13 = sshll.u32 %s4512_s6, 4  ;;  %v307_v1 = vld [vmem:[%s3565_s12] sm:$0xff]  ;;  %v308_v2 = vld [vmem:[%s3565_s12 + $0x8] sm:$0xff]  ;;  %v315_v3 = vstv %s3597_s7  ;;  %v2906_v14 = vpack.c.bf16 %v1243_v61, %v1242_v60 }
  0x30   : > { %1487 = vmatprep.mubr.f32.mxu1 %v588_v10  ;;  %2863 = vmatprep.subr.bf16.mxu0 %v2862_v6  ;;  %v2902_v54 = vpack.c.bf16 %v1241_v35, %v1240_v41  ;;  %p337_p3 = scmp.gt.s32.totalorder %s3656_s20, 0  ;;  %s3674_s6 = scalar_lea.vmem %s3239_s24, %s2233_s13  ;;  %v593_v6 = vrot.slane %v3618_v47, 6  ;;  %v1194_v9 = vld [vmem:[%s4474_s1 + $0x240] sm:$0xff]  ;;  %v1195_v10 = vld [vmem:[%s4474_s1 + $0x248] sm:$0xff]  ;;  %v1213_v18 = vld [vmem:[%s4474_s1 + $0x2d8] sm:$0xff] }
  0x31   : > { %1343 = vmatmul.mubr.f32.gmra.mrb[2].mxu0 %v409_v15  ;;  %2895 = vmatprep.subr.bf16.mxu1 %v2894_v11  ;;  %p2235_p4 = scmp.lt.s32.totalorder %s3656_s20, 15  ;;  %v1226_v11 = vld [vmem:[%s4474_s1 + $0x340] sm:$0xff]  ;;  %v1227_v15 = vld [vmem:[%s4474_s1 + $0x348] sm:$0xff]  ;;  %p345_p5 = scmp.ge.s32.totalorder %s3656_s20, 0  ;;  %v1244_v22 = vld [vmem:[%s4474_s1 + $0x3d0] sm:$0xff]  ;;  %v2878_v30 = vpack.c.bf16 %v1213_v18, %v1212_v16 }
  0x32   : > { %2332 = vmatmul.mubr.msk.f32.gmra.mrb[2].mxu1 %vm487_vm2, %v489_v48  ;;  %1347 = vmatprep.mubr.f32.mxu0 %v3477_v62  ;;  %v591_v48 = vsel %vm406_vm0, %v589_v20, %v590_v26  ;;  %v494_v62 = vrot.slane %v3608_v42, 2  ;;  %s2234_s19 = scalar_select %p3645_p2, 0, 1  ;;  %v3727_v23 = vld [vmem:[%s3257_s10 + $0x30] sm:$0xff]  ;;  %v2876_v26 = vpack.c.bf16 %v1195_v10, %v1194_v9  ;;  %v594_v27 = vsel %vm406_vm0, %v592_v59, %v593_v6  ;;  %v1197_v32 = vld [vmem:[%s4474_s1 + $0x258] sm:$0xff]  ;;  %v1214_v37 = vld [vmem:[%s4474_s1 + $0x2e0] sm:$0xff] }
  0x33   : > { %2334 = vmatprep.mubr.msk.f32.mxu1 %vm3377_vm1, %v589_v20  ;;  %2865 = vmatpush3.bf16.msra.mxu0 %v2864_v21  ;;  %s338_s28 = scalar_select %p337_p3, %s3656_s20, 0  ;;  %v3708_v20 = vmul.f32 %v315_v3, %v307_v1  ;;  %v3710_v21 = vmul.f32 %v315_v3, %v308_v2  ;;  %v2908_v29 = vpack.c.bf16 %v1227_v15, %v1226_v11  ;;  %v1229_v36 = vld [vmem:[%s4474_s1 + $0x358] sm:$0xff]  ;;  %v1215_v38 = vld [vmem:[%s4474_s1 + $0x2e8] sm:$0xff]  ;;  %v1246_v35 = vld [vmem:[%s4474_s1 + $0x3e0] sm:$0xff] }
  0x34   : > { %2897 = vmatpush3.bf16.msra.mxu1 %v2896_v25  ;;  %2867 = vmatprep.subr.bf16.mxu0 %v2866_v31  ;;  %s3712_s11 = scvt.s32.f32 %s2234_s19  ;;  %v3730_v25 = vld [vmem:[%s3257_s10 + $0x38] sm:$0xff]  ;;  %p346_p6 = scmp.lt.s32.totalorder %s3656_s20, 16  ;;  %v1196_v31 = vld [vmem:[%s4474_s1 + $0x250] sm:$0xff]  ;;  %v1198_v55 = vld [vmem:[%s4474_s1 + $0x260] sm:$0xff] }
  0x35   : > { %2317 = vmatmul.mubr.msk.f32.gmra.mrb[4].mxu0 %vm3377_vm1, %v410_v33  ;;  %2899 = vmatprep.subr.bf16.mxu1 %v2898_v34  ;;  %s4514_s28 = smov (!%p2235_p4, %s338_s28), 15  ;;  %v1228_v33 = vld [vmem:[%s4474_s1 + $0x350] sm:$0xff]  ;;  %s3748_s23 = sadd.s32 4, %s3115_s25  ;;  %v497_v40 = vrot.slane %v3708_v20, 2  ;;  %v498_v41 = vrot.slane %v3710_v21, 2  ;;  %v596_v51 = vrot.slane %v3730_v25, 6 }
  0x36   : > { %1493 = vmatmul.mubr.f32.gmra.mrb[4].mxu1 %v493_v39  ;;  %1352 = vmatprep.mubr.f32.mxu0 %v3479_v63  ;;  %v1245_v63 = vld [vmem:[%s4474_s1 + $0x3d8] sm:$0xff]  ;;  %s2240_s13 = sshll.u32 %s4514_s28, 4  ;;  %p355_p7 = scmp.gt.s32.totalorder %s3748_s23, 0  ;;  %v415_v39 = vsel %vm406_vm0, %v413_v13, %v414_v19  ;;  %v333_v52 = vstv %s3712_s11  ;;  %v2912_v53 = vpack.c.bf16 %v1229_v36, %v1228_v33  ;;  %v1199_v56 = vld [vmem:[%s4474_s1 + $0x268] sm:$0xff]  ;;  %v1230_v57 = vld [vmem:[%s4474_s1 + $0x360] sm:$0xff]  ;;  %v417_v2 = vrot.slane %v3710_v21, 6 }
  0x37   : > { %1497 = vmatprep.mubr.f32.mxu1 %v591_v48  ;;  %2869 = vmatpush3.bf16.msra.mxu0 %v2868_v46  ;;  %v2910_v34 = vpack.c.bf16 %v1245_v63, %v1244_v22  ;;  %p3771_p8 = pnand %p346_p6, %p345_p5  ;;  %v595_v46 = vrot.slane %v3727_v23, 6  ;;  %v325_v48 = vld [vmem:[%s3674_s6] sm:$0xff]  ;;  %s3785_s20 = scalar_lea.vmem %s3239_s24, %s2240_s13  ;;  %v1231_v60 = vld [vmem:[%s4474_s1 + $0x368] sm:$0xff]  ;;  %v1216_v61 = vld [vmem:[%s4474_s1 + $0x2f0] sm:$0xff]  ;;  %v499_v1 = vsel %vm487_vm2, %v497_v40, %v498_v41 }
  0x38   : > { %2901 = vmatpush3.bf16.msra.mxu1 %v2900_v49  ;;  %2871 = vmatprep.subr.bf16.mxu0 %v2870_v50  ;;  %v326_v49 = vld [vmem:[%s3674_s6 + $0x8] sm:$0xff]  ;;  %v2880_v50 = vpack.c.bf16 %v1197_v32, %v1196_v31  ;;  %s356_s11 = scalar_select %p355_p7, %s3748_s23, 0  ;;  %v1248_v3 = vld [vmem:[%s4474_s1 + $0x3f0] sm:$0xff]  ;;  %v2916_v10 = vpack.c.bf16 %v1231_v60, %v1230_v57  ;;  %v1233_v18 = vld [vmem:[%s4474_s1 + $0x378] sm:$0xff] }
  0x39   : > { %1353 = vmatmul.mubr.f32.gmra.mrb[6].mxu0 %v412_v58  ;;  %2903 = vmatprep.subr.bf16.mxu1 %v2902_v54  ;;  %s2241_s26 = scalar_select %p3771_p8, 0, 1  ;;  %v2882_v54 = vpack.c.bf16 %v1215_v38, %v1214_v37  ;;  %v416_v58 = vrot.slane %v3708_v20, 6  ;;  %v3837_v6 = vmul.f32 %v333_v52, %v326_v49  ;;  %v597_v9 = vsel %vm406_vm0, %v595_v46, %v596_v51  ;;  %v1232_v15 = vld [vmem:[%s4474_s1 + $0x370] sm:$0xff]  ;;  %v1250_v19 = vld [vmem:[%s4474_s1 + $0x400] sm:$0xff]  ;;  %v344_v32 = vld [vmem:[%s3785_s20 + $0x8] sm:$0xff] }
  0x3a   : > { %2335 = vmatmul.mubr.msk.f32.gmra.mrb[6].mxu1 %vm487_vm2, %v492_v17  ;;  %1357 = vmatprep.mubr.f32.mxu0 %v3608_v42  ;;  %v496_v17 = vsel %vm487_vm2, %v494_v62, %v495_v0  ;;  %v1247_v42 = vld [vmem:[%s4474_s1 + $0x3e8] sm:$0xff]  ;;  %v1217_v62 = vld [vmem:[%s4474_s1 + $0x2f8] sm:$0xff]  ;;  %p2242_p9 = scmp.lt.s32.totalorder %s3748_s23, 15  ;;  %p363_p10 = scmp.ge.s32.totalorder %s3748_s23, 0  ;;  %v2920_v33 = vpack.c.bf16 %v1233_v18, %v1232_v15  ;;  %v3977_v60 = vld [vmem:[%s3257_s10 + $0x60] sm:$0xff] }
  0x3b   : > { %2337 = vmatprep.mubr.msk.f32.mxu1 %vm3377_vm1, %v592_v59  ;;  %2873 = vmatpush3.bf16.msra.mxu0 %v2872_v5  ;;  %v2914_v59 = vpack.c.bf16 %v1247_v42, %v1246_v35  ;;  %s3821_s8 = scvt.s32.f32 %s2241_s26  ;;  %v3835_v5 = vld [vmem:[%s3257_s10 + $0x40] sm:$0xff]  ;;  %p364_p11 = scmp.lt.s32.totalorder %s3748_s23, 16  ;;  %v2886_v11 = vpack.c.bf16 %v1217_v62, %v1216_v61  ;;  %v418_v22 = vsel %vm406_vm0, %v416_v58, %v417_v2  ;;  %v420_v37 = vrot.slane %v3837_v6, 6  ;;  %v3929_v35 = vld [vmem:[%s3257_s10 + $0x58] sm:$0xff]  ;;  %v3983_v61 = vld [vmem:[%s3257_s10 + $0x68] sm:$0xff] }
  0x3c   : > { %2905 = vmatpush3.bf16.msra.mxu1 %v2904_v7  ;;  %2875 = vmatprep.subr.bf16.mxu0 %v2874_v8  ;;  %v3840_v7 = vld [vmem:[%s3257_s10 + $0x48] sm:$0xff]  ;;  %v2884_v8 = vpack.c.bf16 %v1199_v56, %v1198_v55  ;;  %s4516_s11 = smov (!%p2242_p9, %s356_s11), 15  ;;  %s3867_s28 = sadd.s32 5, %s3115_s25  ;;  %v598_v63 = vrot.slane %v3835_v5, 6 }
  0x3d   : > { %2319 = vmatmul.mubr.msk.f32.gmra.mrb[8].mxu0 %vm3377_vm1, %v413_v13  ;;  %2907 = vmatprep.subr.bf16.mxu1 %v2906_v14  ;;  %v1200_v13 = vld [vmem:[%s4474_s1 + $0x270] sm:$0xff]  ;;  %v1201_v14 = vld [vmem:[%s4474_s1 + $0x278] sm:$0xff]  ;;  %p3862_p12 = pnand %p364_p11, %p363_p10  ;;  %p373_p13 = scmp.gt.s32.totalorder %s3867_s28, 0  ;;  %v351_v31 = vstv %s3821_s8 }
  0x3e   : > { %1503 = vmatmul.mubr.f32.gmra.mrb[8].mxu1 %v496_v17  ;;  %1362 = vmatprep.mubr.f32.mxu0 %v3610_v43  ;;  %v1249_v43 = vld [vmem:[%s4474_s1 + $0x3f8] sm:$0xff]  ;;  %s2247_s6 = sshll.u32 %s4516_s11, 4  ;;  %p2249_p0 = scmp.lt.s32.totalorder %s3867_s28, 15  ;;  %v3916_v40 = vmul.f32 %v351_v31, %v344_v32  ;;  %v666_v32 = vrot.slane %v3366_v24, 2 }
  0x3f   : > { %1507 = vmatprep.mubr.f32.mxu1 %v594_v27  ;;  %2877 = vmatpush3.bf16.msra.mxu0 %v2876_v26  ;;  %v2918_v16 = vpack.c.bf16 %v1249_v43, %v1248_v3  ;;  %v3884_v26 = vrot.slane %v3837_v6, 2  ;;  %v2888_v27 = vpack.c.bf16 %v1201_v14, %v1200_v13  ;;  %s2248_s26 = scalar_select %p3862_p12, 0, 1  ;;  %v605_v43 = vrot.slane %v3983_v61, 6 }
  0x40   : > { %2909 = vmatpush3.bf16.msra.mxu1 %v2908_v29  ;;  %2879 = vmatprep.subr.bf16.mxu0 %v2878_v30  ;;  %v599_v29 = vrot.slane %v3840_v7, 6  ;;  %v343_v30 = vld [vmem:[%s3785_s20] sm:$0xff]  ;;  %s374_s11 = scalar_select %p373_p13, %s3867_s28, 0  ;;  %v3951_v49 = vrot.slane %v3916_v40, 2  ;;  %v423_v55 = vrot.slane %v3916_v40, 6 }
  0x41   : > { %1363 = vmatmul.mubr.f32.gmra.mrb[10].mxu0 %v415_v39  ;;  %2911 = vmatprep.subr.bf16.mxu1 %v2910_v34  ;;  %p381_p1 = scmp.ge.s32.totalorder %s3867_s28, 0  ;;  %v3914_v39 = vmul.f32 %v351_v31, %v343_v30  ;;  %s360_s20 = scalar_lea.vmem %s3239_s24, %s2247_s6 }
  0x42   : > { %2338 = vmatmul.mubr.msk.f32.gmra.mrb[10].mxu1 %vm487_vm2, %v495_v0  ;;  %1367 = vmatprep.mubr.f32.mxu0 %v3708_v20  ;;  %v3832_v0 = vmul.f32 %v333_v52, %v325_v48  ;;  %v1251_v20 = vld [vmem:[%s4474_s1 + $0x408] sm:$0xff]  ;;  %s368_s8 = scvt.s32.f32 %s2248_s26  ;;  %p382_p2 = scmp.lt.s32.totalorder %s3867_s28, 16  ;;  %v361_v51 = vld [vmem:[%s360_s20] sm:$0xff] }
  0x43   : > { %2340 = vmatprep.mubr.msk.f32.mxu1 %vm3377_vm1, %v595_v46  ;;  %2881 = vmatpush3.bf16.msra.mxu0 %v2880_v50  ;;  %v3894_v34 = vpack.c.bf16 %v1251_v20, %v1250_v19  ;;  %s4518_s11 = smov (!%p2249_p0, %s374_s11), 15  ;;  %v503_v48 = vrot.slane %v3914_v39, 2  ;;  %v602_v50 = vrot.slane %v3929_v35, 6  ;;  %v4018_v19 = vld [vmem:[%s3257_s10 + $0x70] sm:$0xff]  ;;  %v4024_v20 = vld [vmem:[%s3257_s10 + $0x78] sm:$0xff]  ;;  %s4131_s12 = sadd.s32 7, %s3115_s25 }
  0x44   : > { %2913 = vmatpush3.bf16.msra.mxu1 %v2912_v53  ;;  %2883 = vmatprep.subr.bf16.mxu0 %v2882_v54  ;;  %v500_v17 = vrot.slane %v3832_v0, 2  ;;  %v3897_v36 = vrot.slane %v3832_v0, 6  ;;  %p3944_p3 = pnand %p382_p2, %p381_p1  ;;  %v369_v52 = vstv %s368_s8  ;;  %v362_v53 = vld [vmem:[%s360_s20 + $0x8] sm:$0xff]  ;;  %v3958_v54 = vrot.slane %v3914_v39, 6  ;;  %s2254_s9 = sshll.u32 %s4518_s11, 4 }
  0x45   : > { %2321 = vmatmul.mubr.msk.f32.gmra.mrb[12].mxu0 %vm3377_vm1, %v416_v58  ;;  %2915 = vmatprep.subr.bf16.mxu1 %v2914_v59  ;;  %v3969_v56 = vsel %vm487_vm2, %v503_v48, %v3951_v49  ;;  %v3971_v57 = vmul.f32 %v369_v52, %v361_v51  ;;  %v3973_v58 = vmul.f32 %v369_v52, %v362_v53  ;;  %s378_s22 = scalar_lea.vmem %s3239_s24, %s2254_s9  ;;  %v1253_v51 = vld [vmem:[%s4474_s1 + $0x418] sm:$0xff]  ;;  %v669_v52 = vrot.slane %v3496_v4, 2  ;;  %p765_p9 = scmp.gt.s32.totalorder %s4131_s12, 0 }
  0x46   : > { %1513 = vmatmul.mubr.f32.gmra.mrb[12].mxu1 %v499_v1  ;;  %1372 = vmatprep.mubr.f32.mxu0 %v3710_v21  ;;  %v3912_v38 = vsel %vm487_vm2, %v500_v17, %v3884_v26  ;;  %v600_v21 = vsel %vm406_vm0, %v598_v63, %v599_v29  ;;  %v3940_v42 = vsel %vm406_vm0, %v3897_v36, %v420_v37  ;;  %s2255_s13 = scalar_select %p3944_p3, 0, 1  ;;  %v604_v1 = vrot.slane %v3977_v60, 6 }
  0x47   : > { %1517 = vmatprep.mubr.f32.mxu1 %v597_v9  ;;  %2885 = vmatpush3.bf16.msra.mxu0 %v2884_v8  ;;  %v3990_v62 = vsel %vm406_vm0, %v3958_v54, %v423_v55  ;;  %v506_v2 = vrot.slane %v3971_v57, 2  ;;  %v3995_v3 = vrot.slane %v3973_v58, 2  ;;  %v379_v8 = vld [vmem:[%s378_s22] sm:$0xff]  ;;  %v426_v13 = vrot.slane %v3973_v58, 6  ;;  %p2264_p10 = scmp.lt.s32.totalorder %s4131_s12, 15  ;;  %s4153_s23 = sadd.s32 8, %s3115_s25 }
  0x48   : > { %2917 = vmatpush3.bf16.msra.mxu1 %v2916_v10  ;;  %2887 = vmatprep.subr.bf16.mxu0 %v2886_v11  ;;  %s386_s5 = scvt.s32.f32 %s2255_s13  ;;  %v380_v10 = vld [vmem:[%s378_s22 + $0x8] sm:$0xff]  ;;  %v4000_v11 = vrot.slane %v3971_v57, 6  ;;  %v606_v18 = vsel %vm406_vm0, %v604_v1, %v605_v43  ;;  %v608_v29 = vrot.slane %v4024_v20, 6  ;;  %v667_v37 = vrot.slane %v3444_v44, 2  ;;  %p773_p11 = scmp.ge.s32.totalorder %s4131_s12, 0 }
  0x49   : > { %1373 = vmatmul.mubr.f32.gmra.mrb[14].mxu0 %v418_v22  ;;  %2919 = vmatprep.subr.bf16.mxu1 %v2918_v16  ;;  %v4010_v14 = vsel %vm487_vm2, %v506_v2, %v3995_v3  ;;  %v670_v53 = vrot.slane %v3525_v12, 2  ;;  %p774_p12 = scmp.lt.s32.totalorder %s4131_s12, 16  ;;  %p783_p13 = scmp.gt.s32.totalorder %s4153_s23, 0 }
  0x4a   : > { %2341 = vmatmul.mubr.msk.f32.gmra.mrb[14].mxu1 %vm487_vm2, %v498_v41  ;;  %1377 = vmatprep.mubr.f32.mxu0 %v3832_v0  ;;  %v3921_v41 = vld [vmem:[%s3257_s10 + $0x50] sm:$0xff]  ;;  %v387_v9 = vstv %s386_s5  ;;  %v4030_v22 = vsel %vm406_vm0, %v4000_v11, %v426_v13  ;;  %v668_v48 = vsel %vm487_vm2, %v666_v32, %v667_v37  ;;  %s4066_s10 = sadd.s32 6, %s3115_s25  ;;  %p791_p1 = scmp.ge.s32.totalorder %s4153_s23, 0  ;;  %v679_v13 = vrot.slane %v3840_v7, 2 }
  0x4b   : > { %2343 = vmatprep.mubr.msk.f32.mxu1 %vm3377_vm1, %v598_v63  ;;  %2889 = vmatpush3.bf16.msra.mxu0 %v2888_v27  ;;  %v601_v46 = vrot.slane %v3921_v41, 6  ;;  %v4012_v15 = vmul.f32 %v387_v9, %v379_v8  ;;  %v4014_v16 = vmul.f32 %v387_v9, %v380_v10  ;;  %v607_v63 = vrot.slane %v4018_v19, 6  ;;  %p747_p4 = scmp.gt.s32.totalorder %s4066_s10, 0  ;;  %p2257_p5 = scmp.lt.s32.totalorder %s4066_s10, 15  ;;  %v1263_v9 = vld [vmem:[%s4474_s1 + $0x468] sm:$0xff]  ;;  %v1264_v10 = vld [vmem:[%s4474_s1 + $0x470] sm:$0xff] }
  0x4c   : > { %2921 = vmatpush3.bf16.msra.mxu1 %v2920_v33  ;;  %2923 = vmatprep.subr.bf16.mxu0 %v3894_v34  ;;  %p755_p6 = scmp.ge.s32.totalorder %s4066_s10, 0  ;;  %p756_p7 = scmp.lt.s32.totalorder %s4066_s10, 16  ;;  %v676_v8 = vrot.slane %v3730_v25, 2 }
  0x4d   : > { %2323 = vmatmul.mubr.msk.f32.gmra.mrb[16].mxu0 %vm3377_vm1, %v3897_v36  ;;  %2954 = vmatprep.subr.bf16.mxu1 %v3894_v34  ;;  %v603_v59 = vsel %vm406_vm0, %v601_v46, %v602_v50  ;;  %v509_v17 = vrot.slane %v4012_v15, 2  ;;  %v4035_v27 = vrot.slane %v4014_v16, 2  ;;  %v4040_v30 = vrot.slane %v4012_v15, 6  ;;  %v1252_v50 = vld [vmem:[%s4474_s1 + $0x410] sm:$0xff]  ;;  %s748_s6 = scalar_select %p747_p4, %s4066_s10, 0 }
  0x4e   : > { %1523 = vmatmul.mubr.f32.gmra.mrb[16].mxu1 %v3912_v38  ;;  %1382 = vmatprep.mubr.f32.mxu0 %v3837_v6  ;;  %v429_v31 = vrot.slane %v4014_v16, 6  ;;  %v2926_v55 = vpack.c.bf16 %v1253_v51, %v1252_v50  ;;  %p4120_p8 = pnand %p756_p7, %p755_p6  ;;  %p4186_p0 = pnand %p774_p12, %p773_p11 }
  0x4f   : > { %1527 = vmatprep.mubr.f32.mxu1 %v600_v21  ;;  %v4051_v33 = vsel %vm487_vm2, %v509_v17, %v4035_v27  ;;  %v609_v21 = vsel %vm406_vm0, %v607_v63, %v608_v29  ;;  %s4520_s6 = smov (!%p2257_p5, %s748_s6), 15  ;;  %p792_p2 = scmp.lt.s32.totalorder %s4153_s23, 16 }
  0x50   : > { %s2262_s10 = sshll.u32 %s4520_s6, 4  ;;  %p2271_p3 = scmp.lt.s32.totalorder %s4153_s23, 15 }
  0x51   : > { %1383 = vmatmul.mubr.f32.gmra.mrb[18].mxu0 %v3940_v42  ;;  %s2263_s28 = scalar_select %p4120_p8, 0, 1 }
  0x52   : > { %2344 = vmatmul.mubr.msk.f32.gmra.mrb[18].mxu1 %vm487_vm2, %v3884_v26  ;;  %1387 = vmatprep.mubr.f32.mxu0 %v3914_v39  ;;  %s766_s21 = scalar_select %p765_p9, %s4131_s12, 0 }
  0x53   : > { %2346 = vmatprep.mubr.msk.f32.mxu1 %vm3377_vm1, %v601_v46  ;;  %v4062_v46 = vsel %vm406_vm0, %v4040_v30, %v429_v31  ;;  %s752_s29 = scalar_lea.vmem %s3239_s24, %s2262_s10  ;;  %s4180_s13 = scvt.s32.f32 %s2263_s28  ;;  %v681_v31 = vrot.slane %v3921_v41, 2 }
  0x54   : > { %s4522_s21 = smov (!%p2264_p10, %s766_s21), 15  ;;  %v754_v17 = vld [vmem:[%s752_s29 + $0x8] sm:$0xff]  ;;  %p4228_p4 = pnand %p792_p2, %p791_p1 }
  0x55   : > { %2325 = vmatmul.mubr.msk.f32.gmra.mrb[20].mxu0 %vm3377_vm1, %v3958_v54  ;;  %s4198_s6 = scalar_select %p783_p13, %s4153_s23, 0 }
  0x56   : > { %1533 = vmatmul.mubr.f32.gmra.mrb[20].mxu1 %v3969_v56  ;;  %1392 = vmatprep.mubr.f32.mxu0 %v3916_v40  ;;  %s2270_s12 = scalar_select %p4186_p0, 0, 1 }
  0x57   : > { %1537 = vmatprep.mubr.f32.mxu1 %v603_v59  ;;  %v1254_v59 = vld [vmem:[%s4474_s1 + $0x420] sm:$0xff]  ;;  %s2269_s19 = sshll.u32 %s4522_s21, 4  ;;  %s4233_s4 = sadd.s32 9, %s3115_s25 }
  0x58   : > { %s770_s27 = scalar_lea.vmem %s3239_s24, %s2269_s19  ;;  %s4240_s21 = scvt.s32.f32 %s2270_s12 }
  0x59   : > { %1393 = vmatmul.mubr.f32.gmra.mrb[22].mxu0 %v3990_v62  ;;  %s4524_s6 = smov (!%p2271_p3, %s4198_s6), 15  ;;  %p801_p5 = scmp.gt.s32.totalorder %s4233_s4, 0  ;;  %v771_v32 = vld [vmem:[%s770_s27] sm:$0xff] }
  0x5a   : > { %2347 = vmatmul.mubr.msk.f32.gmra.mrb[22].mxu1 %vm487_vm2, %v3951_v49  ;;  %1397 = vmatprep.mubr.f32.mxu0 %v3971_v57  ;;  %s2277_s25 = scalar_select %p4228_p4, 0, 1 }
  0x5b   : > { %2349 = vmatprep.mubr.msk.f32.mxu1 %vm3377_vm1, %v604_v1  ;;  %v1255_v1 = vld [vmem:[%s4474_s1 + $0x428] sm:$0xff]  ;;  %p809_p6 = scmp.ge.s32.totalorder %s4233_s4, 0  ;;  %p810_p7 = scmp.lt.s32.totalorder %s4233_s4, 16 }
  0x5c   : > { %s2276_s23 = sshll.u32 %s4524_s6, 4  ;;  %p2278_p8 = scmp.lt.s32.totalorder %s4233_s4, 15 }
  0x5d   : > { %2327 = vmatmul.mubr.msk.f32.gmra.mrb[24].mxu0 %vm3377_vm1, %v4000_v11  ;;  %s802_s26 = scalar_select %p801_p5, %s4233_s4, 0 }
  0x5e   : > { %1543 = vmatmul.mubr.f32.gmra.mrb[24].mxu1 %v4010_v14  ;;  %1402 = vmatprep.mubr.f32.mxu0 %v3973_v58  ;;  %s796_s11 = scvt.s32.f32 %s2277_s25  ;;  %p4280_p9 = pnand %p810_p7, %p809_p6 }
  0x5f   : > { %1547 = vmatprep.mubr.f32.mxu1 %v606_v18  ;;  %v753_v18 = vld [vmem:[%s752_s29] sm:$0xff]  ;;  %s788_s8 = scalar_lea.vmem %s3239_s24, %s2276_s23  ;;  %s4526_s26 = smov (!%p2278_p8, %s802_s26), 15 }
  0x60   : > { %s2284_s29 = scalar_select %p4280_p9, 0, 1 }
  0x61   : > { %1403 = vmatmul.mubr.f32.gmra.mrb[26].mxu0 %v4030_v22  ;;  %s2198_s22 = sshll.u32 %s3383_s30, 3 }
  0x62   : > { %2350 = vmatmul.mubr.msk.f32.gmra.mrb[26].mxu1 %vm487_vm2, %v3995_v3  ;;  %1407 = vmatprep.mubr.f32.mxu0 %v4012_v15  ;;  %s814_s9 = scvt.s32.f32 %s2284_s29  ;;  %s4433_s12 = scalar_lea.vmem %s4476_s3, %s2198_s22 }
  0x63   : > { %2352 = vmatprep.mubr.msk.f32.mxu1 %vm3377_vm1, %v607_v63  ;;  %v761_v63 = vstv %s4180_s13  ;;  %s2283_s13 = sshll.u32 %s4526_s26, 4 }
  0x64   : > { %v4237_v29 = vmul.f32 %v761_v63, %v754_v17  ;;  %s806_s6 = scalar_lea.vmem %s3239_s24, %s2283_s13 }
  0x65   : > { %2329 = vmatmul.mubr.msk.f32.gmra.mrb[28].mxu0 %vm3377_vm1, %v4040_v30 }
  0x66   : > { %1553 = vmatmul.mubr.f32.gmra.mrb[28].mxu1 %v4051_v33  ;;  %1412 = vmatprep.mubr.f32.mxu0 %v4014_v16 }
  0x67   : > { %1557 = vmatprep.mubr.f32.mxu1 %v609_v21  ;;  %v772_v21 = vld [vmem:[%s770_s27 + $0x8] sm:$0xff] }
  0x69   : > { %1413 = vmatmul.mubr.f32.gmra.mrb[30].mxu0 %v4062_v46 }
  0x6a   : > { %2353 = vmatmul.mubr.msk.f32.gmra.mrb[30].mxu1 %vm487_vm2, %v4035_v27  ;;  %1627 = vmatprep.mubr.f32.mxu0 %v668_v48 }
  0x6b   : > { %1772 = vmatprep.mubr.f32.mxu1 %v3832_v0  ;;  %v2930_v0 = vpack.c.bf16 %v1255_v1, %v1254_v59  ;;  %v789_v59 = vld [vmem:[%s788_s8] sm:$0xff]  ;;  %v797_v1 = vstv %s796_s11 }
  0x6d   : > { %1628 = vmatmul.mubr.f32.vlgmr.msra.gmra.mrb[32].mxu0 %v3366_v24  ;;  %v671_v24 = vsel %vm487_vm2, %v669_v52, %v670_v53 }
  0x6e   : > { %2363 = vmatmul.mubr.msk.f32.vlgmr.msra.gmra.mrb[32].mxu1 %vm3377_vm1, %v3897_v36  ;;  %2925 = vmatpush3.bf16.msra.mxu0 %v3894_v34  ;;  %v1256_v36 = vld [vmem:[%s4474_s1 + $0x430] sm:$0xff] }
  0x6f   : > { %2962 = vmatpush3.bf16.msra.mxu1 %v3894_v34  ;;  %2354 = vmatprep.mubr.msk.f32.mxu0 %vm487_vm2, %v667_v37  ;;  %v1257_v34 = vld [vmem:[%s4474_s1 + $0x438] sm:$0xff]  ;;  %v779_v37 = vstv %s4240_s21 }
  0x70   : > { %1777 = vmatprep.mubr.f32.mxu1 %v3837_v6  ;;  %2927 = vmatprep.subr.bf16.mxu0 %v2926_v55  ;;  %v673_v6 = vrot.slane %v3618_v47, 2  ;;  %v2934_v2 = vpack.c.bf16 %v1257_v34, %v1256_v36  ;;  %v4274_v51 = vmul.f32 %v779_v37, %v772_v21 }
  0x71   : > { %1633 = vmatmul.mubr.f32.gmra.mrb[34].mxu0 %v3444_v44  ;;  %2955 = vmatprep.subr.bf16.mxu1 %v2926_v55  ;;  %v672_v44 = vrot.slane %v3613_v45, 2 }
  0x72   : > { %1778 = vmatmul.mubr.f32.gmra.mrb[34].mxu1 %v3940_v42  ;;  %1637 = vmatprep.mubr.f32.mxu0 %v671_v24  ;;  %v1259_v42 = vld [vmem:[%s4474_s1 + $0x448] sm:$0xff]  ;;  %v850_v52 = vrot.slane %v4274_v51, 6  ;;  %v798_v24 = vmul.f32 %v797_v1, %v789_v59 }
  0x73   : > { %1782 = vmatprep.mubr.f32.mxu1 %v3914_v39  ;;  %2929 = vmatpush3.bf16.msra.mxu0 %v2926_v55  ;;  %v1258_v39 = vld [vmem:[%s4474_s1 + $0x440] sm:$0xff] }
  0x74   : > { %2963 = vmatpush3.bf16.msra.mxu1 %v2926_v55  ;;  %2931 = vmatprep.subr.bf16.mxu0 %v2930_v0  ;;  %v2938_v43 = vpack.c.bf16 %v1259_v42, %v1258_v39  ;;  %v685_v55 = vrot.slane %v3983_v61, 2  ;;  %v807_v39 = vld [vmem:[%s806_s6] sm:$0xff]  ;;  %v815_v42 = vstv %s814_s9 }
  0x75   : > { %1638 = vmatmul.mubr.f32.gmra.mrb[36].mxu0 %v3496_v4  ;;  %2956 = vmatprep.subr.bf16.mxu1 %v2930_v0  ;;  %v674_v4 = vsel %vm487_vm2, %v672_v44, %v673_v6 }
  0x76   : > { %2365 = vmatmul.mubr.msk.f32.gmra.mrb[36].mxu1 %vm3377_vm1, %v3958_v54  ;;  %2355 = vmatprep.mubr.msk.f32.mxu0 %vm487_vm2, %v670_v53  ;;  %v1261_v54 = vld [vmem:[%s4474_s1 + $0x458] sm:$0xff]  ;;  %v684_v53 = vrot.slane %v3977_v60, 2 }
  0x77   : > { %1787 = vmatprep.mubr.f32.mxu1 %v3916_v40  ;;  %2933 = vmatpush3.bf16.msra.mxu0 %v2930_v0  ;;  %v1260_v40 = vld [vmem:[%s4474_s1 + $0x450] sm:$0xff] }
  0x78   : > { %2964 = vmatpush3.bf16.msra.mxu1 %v2930_v0  ;;  %2935 = vmatprep.subr.bf16.mxu0 %v2934_v2  ;;  %v686_v36 = vsel %vm487_vm2, %v684_v53, %v685_v55 }
  0x79   : > { %1643 = vmatmul.mubr.f32.gmra.mrb[38].mxu0 %v3525_v12  ;;  %2957 = vmatprep.subr.bf16.mxu1 %v2934_v2  ;;  %v675_v12 = vrot.slane %v3727_v23, 2 }
  0x7a   : > { %1788 = vmatmul.mubr.f32.gmra.mrb[38].mxu1 %v3990_v62  ;;  %1647 = vmatprep.mubr.f32.mxu0 %v674_v4  ;;  %v2942_v62 = vpack.c.bf16 %v1261_v54, %v1260_v40  ;;  %v808_v4 = vld [vmem:[%s806_s6 + $0x8] sm:$0xff] }
  0x7b   : > { %1792 = vmatprep.mubr.f32.mxu1 %v3971_v57  ;;  %2937 = vmatpush3.bf16.msra.mxu0 %v2934_v2  ;;  %v1262_v57 = vld [vmem:[%s4474_s1 + $0x460] sm:$0xff]  ;;  %v817_v54 = vmul.f32 %v815_v42, %v808_v4 }
  0x7c   : > { %2965 = vmatpush3.bf16.msra.mxu1 %v2934_v2  ;;  %2939 = vmatprep.subr.bf16.mxu0 %v2938_v43  ;;  %v688_v2 = vrot.slane %v4024_v20, 2 }
  0x7d   : > { %1648 = vmatmul.mubr.f32.gmra.mrb[40].mxu0 %v3613_v45  ;;  %2958 = vmatprep.subr.bf16.mxu1 %v2938_v43  ;;  %v677_v45 = vsel %vm487_vm2, %v675_v12, %v676_v8 }
  0x7e   : > { %2367 = vmatmul.mubr.msk.f32.gmra.mrb[40].mxu1 %vm3377_vm1, %v4000_v11  ;;  %2356 = vmatprep.mubr.msk.f32.mxu0 %vm487_vm2, %v673_v6  ;;  %v1265_v11 = vld [vmem:[%s4474_s1 + $0x478] sm:$0xff]  ;;  %v687_v6 = vrot.slane %v4018_v19, 2 }
  0x7f   : > { %1797 = vmatprep.mubr.f32.mxu1 %v3973_v58  ;;  %2941 = vmatpush3.bf16.msra.mxu0 %v2938_v43  ;;  %v2946_v58 = vpack.c.bf16 %v1263_v9, %v1262_v57 }
  0x80   : > { %2966 = vmatpush3.bf16.msra.mxu1 %v2938_v43  ;;  %2943 = vmatprep.subr.bf16.mxu0 %v2942_v62  ;;  %v689_v40 = vsel %vm487_vm2, %v687_v6, %v688_v2 }
  0x81   : > { %1653 = vmatmul.mubr.f32.gmra.mrb[42].mxu0 %v3618_v47  ;;  %2959 = vmatprep.subr.bf16.mxu1 %v2942_v62  ;;  %v678_v47 = vrot.slane %v3835_v5, 2 }
  0x82   : > { %1798 = vmatmul.mubr.f32.gmra.mrb[42].mxu1 %v4030_v22  ;;  %1657 = vmatprep.mubr.f32.mxu0 %v677_v45  ;;  %v4222_v22 = vmul.f32 %v761_v63, %v753_v18  ;;  %v930_v45 = vrot.slane %v4274_v51, 2 }
  0x83   : > { %1802 = vmatprep.mubr.f32.mxu1 %v4012_v15  ;;  %2945 = vmatpush3.bf16.msra.mxu0 %v2942_v62  ;;  %v2950_v15 = vpack.c.bf16 %v1265_v11, %v1264_v10 }
  0x84   : > { %2967 = vmatpush3.bf16.msra.mxu1 %v2942_v62  ;;  %2947 = vmatprep.subr.bf16.mxu0 %v2946_v58  ;;  %v927_v62 = vrot.slane %v4237_v29, 2 }
  0x85   : > { %1658 = vmatmul.mubr.f32.gmra.mrb[44].mxu0 %v3727_v23  ;;  %2960 = vmatprep.subr.bf16.mxu1 %v2946_v58  ;;  %v680_v23 = vsel %vm487_vm2, %v678_v47, %v679_v13 }
  0x86   : > { %2369 = vmatmul.mubr.msk.f32.gmra.mrb[44].mxu1 %vm3377_vm1, %v4040_v30  ;;  %2357 = vmatprep.mubr.msk.f32.mxu0 %vm487_vm2, %v676_v8  ;;  %v847_v30 = vrot.slane %v4237_v29, 6  ;;  %v856_v8 = vrot.slane %v817_v54, 6 }
  0x87   : > { %1807 = vmatprep.mubr.f32.mxu1 %v4014_v16  ;;  %2949 = vmatpush3.bf16.msra.mxu0 %v2946_v58  ;;  %v846_v16 = vrot.slane %v4222_v22, 6 }
  0x88   : > { %2968 = vmatpush3.bf16.msra.mxu1 %v2946_v58  ;;  %2951 = vmatprep.subr.bf16.mxu0 %v2950_v15 }
  0x89   : > { %1663 = vmatmul.mubr.f32.gmra.mrb[46].mxu0 %v3730_v25  ;;  %2961 = vmatprep.subr.bf16.mxu1 %v2950_v15  ;;  %v682_v25 = vrot.slane %v3929_v35, 2  ;;  %v848_v48 = vsel %vm406_vm0, %v846_v16, %v847_v30 }
  0x8a   : > { %1808 = vmatmul.mubr.f32.gmra.mrb[46].mxu1 %v4062_v46  ;;  %1667 = vmatprep.mubr.f32.mxu0 %v680_v23  ;;  %v4269_v46 = vmul.f32 %v779_v37, %v771_v32 }
  0x8b   : > { %1812 = vmatprep.mubr.f32.mxu1 %v4222_v22  ;;  %2953 = vmatpush3.bf16.msra.mxu0 %v2950_v15  ;;  %v683_v50 = vsel %vm487_vm2, %v681_v31, %v682_v25 }
  0x8c   : > { %2969 = vmatpush3.bf16.msra.mxu1 %v2950_v15  ;;  %v929_v9 = vrot.slane %v4269_v46, 2 }
  0x8d   : > { %1668 = vmatmul.mubr.f32.gmra.mrb[48].mxu0 %v3835_v5  ;;  %v849_v5 = vrot.slane %v4269_v46, 6 }
  0x8e   : > { %2371 = vmatmul.mubr.msk.f32.gmra.mrb[48].mxu1 %vm3377_vm1, %v846_v16  ;;  %2358 = vmatprep.mubr.msk.f32.mxu0 %vm487_vm2, %v679_v13  ;;  %v931_v28 = vsel %vm487_vm2, %v929_v9, %v930_v45 }
  0x8f   : > { %1817 = vmatprep.mubr.f32.mxu1 %v4237_v29  ;;  %v851_v0 = vsel %vm406_vm0, %v849_v5, %v850_v52 }
  0x91   : > { %1673 = vmatmul.mubr.f32.gmra.mrb[50].mxu0 %v3840_v7  ;;  %v790_v7 = vld [vmem:[%s788_s8 + $0x8] sm:$0xff] }
  0x92   : > { %1818 = vmatmul.mubr.f32.gmra.mrb[50].mxu1 %v848_v48  ;;  %1677 = vmatprep.mubr.f32.mxu0 %v683_v50  ;;  %v799_v34 = vmul.f32 %v797_v1, %v790_v7 }
  0x93   : > { %1822 = vmatprep.mubr.f32.mxu1 %v4269_v46 }
  0x94   : > { %v853_v44 = vrot.slane %v799_v34, 6  ;;  %v933_v58 = vrot.slane %v799_v34, 2 }
  0x95   : > { %1678 = vmatmul.mubr.f32.gmra.mrb[52].mxu0 %v3921_v41  ;;  %v852_v41 = vrot.slane %v798_v24, 6 }
  0x96   : > { %2373 = vmatmul.mubr.msk.f32.gmra.mrb[52].mxu1 %vm3377_vm1, %v849_v5  ;;  %2359 = vmatprep.mubr.msk.f32.mxu0 %vm487_vm2, %v682_v25 }
  0x97   : > { %1827 = vmatprep.mubr.f32.mxu1 %v4274_v51  ;;  %v854_v43 = vsel %vm406_vm0, %v852_v41, %v853_v44 }
  0x99   : > { %1683 = vmatmul.mubr.f32.gmra.mrb[54].mxu0 %v3929_v35  ;;  %v816_v35 = vmul.f32 %v815_v42, %v807_v39 }
  0x9a   : > { %1828 = vmatmul.mubr.f32.gmra.mrb[54].mxu1 %v851_v0  ;;  %1687 = vmatprep.mubr.f32.mxu0 %v686_v36 }
  0x9b   : > { %1832 = vmatprep.mubr.f32.mxu1 %v798_v24  ;;  %v855_v12 = vrot.slane %v816_v35, 6  ;;  %v935_v11 = vrot.slane %v816_v35, 2 }
  0x9d   : > { %1688 = vmatmul.mubr.f32.gmra.mrb[56].mxu0 %v3977_v60  ;;  %v926_v60 = vrot.slane %v4222_v22, 2  ;;  %v857_v57 = vsel %vm406_vm0, %v855_v12, %v856_v8 }
  0x9e   : > { %2375 = vmatmul.mubr.msk.f32.gmra.mrb[56].mxu1 %vm3377_vm1, %v852_v41  ;;  %2360 = vmatprep.mubr.msk.f32.mxu0 %vm487_vm2, %v685_v55 }
  0x9f   : > { %1837 = vmatprep.mubr.f32.mxu1 %v799_v34 }
  0xa1   : > { %1693 = vmatmul.mubr.f32.gmra.mrb[58].mxu0 %v3983_v61  ;;  %v928_v61 = vsel %vm487_vm2, %v926_v60, %v927_v62 }
  0xa2   : > { %1838 = vmatmul.mubr.f32.gmra.mrb[58].mxu1 %v854_v43  ;;  %1697 = vmatprep.mubr.f32.mxu0 %v689_v40 }
  0xa3   : > { %1842 = vmatprep.mubr.f32.mxu1 %v816_v35 }
  0xa5   : > { %1698 = vmatmul.mubr.f32.gmra.mrb[60].mxu0 %v4018_v19  ;;  %v932_v19 = vrot.slane %v798_v24, 2 }
  0xa6   : > { %2377 = vmatmul.mubr.msk.f32.gmra.mrb[60].mxu1 %vm3377_vm1, %v855_v12  ;;  %2361 = vmatprep.mubr.msk.f32.mxu0 %vm487_vm2, %v688_v2 }
  0xa7   : > { %1847 = vmatprep.mubr.f32.mxu1 %v817_v54  ;;  %v934_v10 = vsel %vm487_vm2, %v932_v19, %v933_v58 }
  0xa9   : > { %1703 = vmatmul.mubr.f32.gmra.mrb[62].mxu0 %v4024_v20  ;;  %v936_v20 = vrot.slane %v817_v54, 2 }
  0xaa   : > { %1848 = vmatmul.mubr.f32.gmra.mrb[62].mxu1 %v857_v57  ;;  %2770 = vmatprep.mubr.f32.mxu0 %v3912_v38 }
  0xab   : > { %2782 = vmatprep.mubr.f32.mxu1 %v928_v61  ;;  %v937_v38 = vsel %vm487_vm2, %v935_v11, %v936_v20 }
  0xad   : > { %2771 = vmatmul.mubr.msk.f32.vlgmr.msra.gmra.mrb[64].mxu0 %vm487_vm2, %v3884_v26 }
  0xae   : > { %2783 = vmatmul.mubr.msk.f32.vlgmr.msra.gmra.mrb[64].mxu1 %vm487_vm2, %v927_v62  ;;  %2773 = vmatprep.mubr.f32.mxu0 %v3969_v56  ;;  %v4346_v56 = vld [vmem:[%s4475_s2] ss:$0 sm:$0xff] }
  0xaf   : > { %2785 = vmatprep.mubr.f32.mxu1 %v931_v28 }
  0xb1   : > { %2774 = vmatmul.mubr.msk.f32.gmra.mrb[66].mxu0 %vm487_vm2, %v3951_v49 }
  0xb2   : > { %2786 = vmatmul.mubr.msk.f32.gmra.mrb[66].mxu1 %vm487_vm2, %v930_v45  ;;  %2776 = vmatprep.mubr.f32.mxu0 %v4010_v14 }
  0xb3   : > { %2788 = vmatprep.mubr.f32.mxu1 %v934_v10 }
  0xb5   : > { %2777 = vmatmul.mubr.msk.f32.gmra.mrb[68].mxu0 %vm487_vm2, %v3995_v3 }
  0xb6   : > { %2789 = vmatmul.mubr.msk.f32.gmra.mrb[68].mxu1 %vm487_vm2, %v933_v58  ;;  %2779 = vmatprep.mubr.f32.mxu0 %v4051_v33 }
  0xb7   : > { %2791 = vmatprep.mubr.f32.mxu1 %v937_v38 }
  0xb9   : > { %2780 = vmatmul.mubr.msk.f32.gmra.mrb[70].mxu0 %vm487_vm2, %v4035_v27 }
  0xba   : > { %2792 = vmatmul.mubr.msk.f32.gmra.mrb[70].mxu1 %vm487_vm2, %v936_v20 }
 0x100   : > { %v2418_v26 = vpop.f32.mrb[0].mxu0 }
 0x101   : > { %v2498_v49 = vpop.f32.mrb[0].mxu1  ;;  %v2419_v14 = vpop.f32.mrb[1].mxu0 }
 0x102   : > { %v2420_v47 = vadd.f32 %v2419_v14, %v2418_v26  ;;  %v2499_v3 = vpop.f32.mrb[1].mxu1 }
 0x103   : > { %v2500_v13 = vadd.f32 %v2499_v3, %v2498_v49 }
 0x104   : > { %v1340_v18 = vadd.f32 %v2420_v47, %v4346_v56  ;;  %v2421_v33 = vpop.f32.mrb[2].mxu0 }
 0x105   : > { %v2501_v63 = vpop.f32.mrb[2].mxu1  ;;  %v2422_v17 = vpop.f32.mrb[3].mxu0 }
 0x106   : > { %v4349_v15 = vadd.f32 %v2500_v13, %v1340_v18  ;;  %v2423_v27 = vadd.f32 %v2422_v17, %v2421_v33  ;;  %v2502_v22 = vpop.f32.mrb[3].mxu1 }
 0x107   : > { %v2503_v23 = vadd.f32 %v2502_v22, %v2501_v63 }
 0x108   : > { %v1345_v29 = vadd.f32 %v2423_v27, %v4346_v56  ;;  %v2424_v16 = vpop.f32.mrb[4].mxu0 }
 0x109   : > { %v2504_v30 = vpop.f32.mrb[4].mxu1  ;;  %v2425_v31 = vpop.f32.mrb[5].mxu0 }
 0x10a   : > { %v4352_v25 = vadd.f32 %v2503_v23, %v1345_v29  ;;  %v2426_v32 = vadd.f32 %v2425_v31, %v2424_v16  ;;  %v2505_v37 = vpop.f32.mrb[5].mxu1 }
 0x10b   : > { %v2506_v21 = vadd.f32 %v2505_v37, %v2504_v30 }
 0x10c   : > { %v1350_v46 = vadd.f32 %v2426_v32, %v4346_v56  ;;  %v2427_v48 = vpop.f32.mrb[6].mxu0 }
 0x10d   : > { %v2507_v50 = vpop.f32.mrb[6].mxu1  ;;  %v2428_v51 = vpop.f32.mrb[7].mxu0 }
 0x10e   : > { %v4355_v5 = vadd.f32 %v2506_v21, %v1350_v46  ;;  %v2429_v52 = vadd.f32 %v2428_v51, %v2427_v48  ;;  %v2508_v53 = vpop.f32.mrb[7].mxu1 }
 0x10f   : > { %v2509_v55 = vadd.f32 %v2508_v53, %v2507_v50 }
 0x110   : > { %v1355_v59 = vadd.f32 %v2429_v52, %v4346_v56  ;;  %v2430_v1 = vpop.f32.mrb[8].mxu0 }
 0x111   : > { %v2510_v7 = vpop.f32.mrb[8].mxu1  ;;  %v2431_v24 = vpop.f32.mrb[9].mxu0 }
 0x112   : > { %v4358_v0 = vadd.f32 %v2509_v55, %v1355_v59  ;;  %v2432_v36 = vadd.f32 %v2431_v24, %v2430_v1  ;;  %v2511_v34 = vpop.f32.mrb[9].mxu1 }
 0x113   : > { %v2512_v41 = vadd.f32 %v2511_v34, %v2510_v7 }
 0x114   : > { %v1360_v44 = vadd.f32 %v2432_v36, %v4346_v56  ;;  %v2433_v6 = vpop.f32.mrb[10].mxu0 }
 0x115   : > { %v2513_v2 = vpop.f32.mrb[10].mxu1  ;;  %v2434_v39 = vpop.f32.mrb[11].mxu0 }
 0x116   : > { %v4361_v42 = vadd.f32 %v2512_v41, %v1360_v44  ;;  %v2435_v4 = vadd.f32 %v2434_v39, %v2433_v6  ;;  %v2514_v35 = vpop.f32.mrb[11].mxu1 }
 0x117   : > { %v2515_v43 = vadd.f32 %v2514_v35, %v2513_v2 }
 0x118   : > { %v1365_v40 = vadd.f32 %v2435_v4, %v4346_v56  ;;  %v2436_v54 = vpop.f32.mrb[12].mxu0 }
 0x119   : > { %v2516_v12 = vpop.f32.mrb[12].mxu1  ;;  %v2437_v8 = vpop.f32.mrb[13].mxu0 }
 0x11a   : > { %v4364_v60 = vadd.f32 %v2515_v43, %v1365_v40  ;;  %v2438_v62 = vadd.f32 %v2437_v8, %v2436_v54  ;;  %v2517_v57 = vpop.f32.mrb[13].mxu1 }
 0x11b   : > { %v2518_v61 = vadd.f32 %v2517_v57, %v2516_v12 }
 0x11c   : > { %v1370_v9 = vadd.f32 %v2438_v62, %v4346_v56  ;;  %v2439_v45 = vpop.f32.mrb[14].mxu0 }
 0x11d   : > { %v2519_v28 = vpop.f32.mrb[14].mxu1  ;;  %v2440_v19 = vpop.f32.mrb[15].mxu0 }
 0x11e   : > { %v4367_v58 = vadd.f32 %v2518_v61, %v1370_v9  ;;  %v2441_v10 = vadd.f32 %v2440_v19, %v2439_v45  ;;  %v2520_v11 = vpop.f32.mrb[15].mxu1 }
 0x11f   : > { %v2521_v20 = vadd.f32 %v2520_v11, %v2519_v28 }
 0x120   : > { %v1375_v38 = vadd.f32 %v2441_v10, %v4346_v56  ;;  %v2442_v26 = vpop.f32.mrb[16].mxu0 }
 0x121   : > { %v2522_v49 = vpop.f32.mrb[16].mxu1  ;;  %v2443_v14 = vpop.f32.mrb[17].mxu0 }
 0x122   : > { %v4370_v47 = vadd.f32 %v2521_v20, %v1375_v38  ;;  %v2444_v3 = vadd.f32 %v2443_v14, %v2442_v26  ;;  %v2523_v13 = vpop.f32.mrb[17].mxu1 }
 0x123   : > { %v2524_v18 = vadd.f32 %v2523_v13, %v2522_v49 }
 0x124   : > { %v1380_v33 = vadd.f32 %v2444_v3, %v4346_v56  ;;  %v2445_v63 = vpop.f32.mrb[18].mxu0 }
 0x125   : > { %v2525_v17 = vpop.f32.mrb[18].mxu1  ;;  %v2446_v27 = vpop.f32.mrb[19].mxu0 }
 0x126   : > { %v4373_v22 = vadd.f32 %v2524_v18, %v1380_v33  ;;  %v2447_v23 = vadd.f32 %v2446_v27, %v2445_v63  ;;  %v2526_v29 = vpop.f32.mrb[19].mxu1 }
 0x127   : > { %v2527_v16 = vadd.f32 %v2526_v29, %v2525_v17 }
 0x128   : > { %v1385_v30 = vadd.f32 %v2447_v23, %v4346_v56  ;;  %v2448_v31 = vpop.f32.mrb[20].mxu0 }
 0x129   : > { %v2528_v32 = vpop.f32.mrb[20].mxu1  ;;  %v2449_v37 = vpop.f32.mrb[21].mxu0 }
 0x12a   : > { %v4376_v21 = vadd.f32 %v2527_v16, %v1385_v30  ;;  %v2450_v46 = vadd.f32 %v2449_v37, %v2448_v31  ;;  %v2529_v48 = vpop.f32.mrb[21].mxu1 }
 0x12b   : > { %v2530_v50 = vadd.f32 %v2529_v48, %v2528_v32 }
 0x12c   : > { %v1390_v51 = vadd.f32 %v2450_v46, %v4346_v56  ;;  %v2451_v52 = vpop.f32.mrb[22].mxu0 }
 0x12d   : > { %v2531_v53 = vpop.f32.mrb[22].mxu1  ;;  %v2452_v55 = vpop.f32.mrb[23].mxu0 }
 0x12e   : > { %v4379_v59 = vadd.f32 %v2530_v50, %v1390_v51  ;;  %v2453_v1 = vadd.f32 %v2452_v55, %v2451_v52  ;;  %v2532_v7 = vpop.f32.mrb[23].mxu1 }
 0x12f   : > { %v2533_v24 = vadd.f32 %v2532_v7, %v2531_v53 }
 0x130   : > { %v1395_v36 = vadd.f32 %v2453_v1, %v4346_v56  ;;  %v2454_v34 = vpop.f32.mrb[24].mxu0 }
 0x131   : > { %v2534_v41 = vpop.f32.mrb[24].mxu1  ;;  %v2455_v44 = vpop.f32.mrb[25].mxu0 }
 0x132   : > { %v4382_v6 = vadd.f32 %v2533_v24, %v1395_v36  ;;  %v2456_v2 = vadd.f32 %v2455_v44, %v2454_v34  ;;  %v2535_v39 = vpop.f32.mrb[25].mxu1 }
 0x133   : > { %v2536_v4 = vadd.f32 %v2535_v39, %v2534_v41 }
 0x134   : > { %v1400_v35 = vadd.f32 %v2456_v2, %v4346_v56  ;;  %v2457_v43 = vpop.f32.mrb[26].mxu0 }
 0x135   : > { %v2537_v40 = vpop.f32.mrb[26].mxu1  ;;  %v2458_v54 = vpop.f32.mrb[27].mxu0 }
 0x136   : > { %v4385_v12 = vadd.f32 %v2536_v4, %v1400_v35  ;;  %v2459_v8 = vadd.f32 %v2458_v54, %v2457_v43  ;;  %v2538_v62 = vpop.f32.mrb[27].mxu1 }
 0x137   : > { %v2539_v57 = vadd.f32 %v2538_v62, %v2537_v40 }
 0x138   : > { %v1405_v61 = vadd.f32 %v2459_v8, %v4346_v56  ;;  %v2460_v9 = vpop.f32.mrb[28].mxu0 }
 0x139   : > { %v2540_v45 = vpop.f32.mrb[28].mxu1  ;;  %v2461_v28 = vpop.f32.mrb[29].mxu0 }
 0x13a   : > { %v4388_v19 = vadd.f32 %v2539_v57, %v1405_v61  ;;  %v2462_v10 = vadd.f32 %v2461_v28, %v2460_v9  ;;  %v2541_v11 = vpop.f32.mrb[29].mxu1 }
 0x13b   : > { %v2542_v20 = vadd.f32 %v2541_v11, %v2540_v45 }
 0x13c   : > { %v1410_v38 = vadd.f32 %v2462_v10, %v4346_v56  ;;  %v2463_v26 = vpop.f32.mrb[30].mxu0 }
 0x13d   : > { %v2543_v49 = vpop.f32.mrb[30].mxu1  ;;  %v2464_v14 = vpop.f32.mrb[31].mxu0 }
 0x13e   : > { %v4391_v3 = vadd.f32 %v2542_v20, %v1410_v38  ;;  %v2465_v13 = vadd.f32 %v2464_v14, %v2463_v26  ;;  %v2544_v18 = vpop.f32.mrb[31].mxu1 }
 0x13f   : > { %v2545_v33 = vadd.f32 %v2544_v18, %v2543_v49 }
 0x140   : > { %v1415_v63 = vadd.f32 %v2465_v13, %v4346_v56  ;;  %v2578_v17 = vpop.f32.mrb[32].mxu0 }
 0x141   : > { %v2658_v27 = vpop.f32.mrb[32].mxu1  ;;  %v2579_v23 = vpop.f32.mrb[33].mxu0 }
 0x142   : > { %v4394_v29 = vadd.f32 %v2545_v33, %v1415_v63  ;;  %v2580_v16 = vadd.f32 %v2579_v23, %v2578_v17  ;;  %v2659_v30 = vpop.f32.mrb[33].mxu1 }
 0x143   : > { %v2660_v31 = vadd.f32 %v2659_v30, %v2658_v27 }
 0x144   : > { %v1630_v32 = vadd.f32 %v2580_v16, %v4349_v15  ;;  %v2581_v37 = vpop.f32.mrb[34].mxu0 }
 0x145   : > { %v2661_v46 = vpop.f32.mrb[34].mxu1  ;;  %v2582_v48 = vpop.f32.mrb[35].mxu0 }
 0x146   : > { %v2583_v50 = vadd.f32 %v2582_v48, %v2581_v37  ;;  %v2662_v51 = vpop.f32.mrb[35].mxu1  ;;  %v4397_v52 = vadd.f32 %v2660_v31, %v1630_v32 }
 0x147   : > { %v2663_v53 = vadd.f32 %v2662_v51, %v2661_v46 }
 0x148   : > { %v1635_v56 = vadd.f32 %v2583_v50, %v4352_v25  ;;  %v2584_v55 = vpop.f32.mrb[36].mxu0 }
 0x149   : > { %v2664_v1 = vpop.f32.mrb[36].mxu1  ;;  %v2585_v7 = vpop.f32.mrb[37].mxu0 }
 0x14a   : > { %v2586_v24 = vadd.f32 %v2585_v7, %v2584_v55  ;;  %v2665_v36 = vpop.f32.mrb[37].mxu1  ;;  %v4400_v34 = vadd.f32 %v2663_v53, %v1635_v56 }
 0x14b   : > { %v2666_v41 = vadd.f32 %v2665_v36, %v2664_v1 }
 0x14c   : > { %v1640_v15 = vadd.f32 %v2586_v24, %v4355_v5  ;;  %v2587_v44 = vpop.f32.mrb[38].mxu0 }
 0x14d   : > { %v2667_v2 = vpop.f32.mrb[38].mxu1  ;;  %v2588_v39 = vpop.f32.mrb[39].mxu0 }
 0x14e   : > { %v2589_v4 = vadd.f32 %v2588_v39, %v2587_v44  ;;  %v2668_v35 = vpop.f32.mrb[39].mxu1  ;;  %v4403_v43 = vadd.f32 %v2666_v41, %v1640_v15 }
 0x14f   : > { %v2669_v40 = vadd.f32 %v2668_v35, %v2667_v2 }
 0x150   : > { %v1645_v25 = vadd.f32 %v2589_v4, %v4358_v0  ;;  %v2590_v54 = vpop.f32.mrb[40].mxu0 }
 0x151   : > { %v2670_v8 = vpop.f32.mrb[40].mxu1  ;;  %v2591_v62 = vpop.f32.mrb[41].mxu0 }
 0x152   : > { %v2592_v57 = vadd.f32 %v2591_v62, %v2590_v54  ;;  %v2671_v61 = vpop.f32.mrb[41].mxu1  ;;  %v4406_v9 = vadd.f32 %v2669_v40, %v1645_v25 }
 0x153   : > { %v2672_v45 = vadd.f32 %v2671_v61, %v2670_v8 }
 0x154   : > { %v1650_v5 = vadd.f32 %v2592_v57, %v4361_v42  ;;  %v2593_v28 = vpop.f32.mrb[42].mxu0 }
 0x155   : > { %v2673_v10 = vpop.f32.mrb[42].mxu1  ;;  %v2594_v11 = vpop.f32.mrb[43].mxu0 }
 0x156   : > { %v2595_v20 = vadd.f32 %v2594_v11, %v2593_v28  ;;  %v2674_v38 = vpop.f32.mrb[43].mxu1  ;;  %v4409_v26 = vadd.f32 %v2672_v45, %v1650_v5 }
 0x157   : > { %v2675_v49 = vadd.f32 %v2674_v38, %v2673_v10 }
 0x158   : > { %v1655_v0 = vadd.f32 %v2595_v20, %v4364_v60  ;;  %v2596_v14 = vpop.f32.mrb[44].mxu0 }
 0x159   : > { %v2676_v13 = vpop.f32.mrb[44].mxu1  ;;  %v2597_v18 = vpop.f32.mrb[45].mxu0 }
 0x15a   : > { %v2598_v33 = vadd.f32 %v2597_v18, %v2596_v14  ;;  %v2677_v63 = vpop.f32.mrb[45].mxu1  ;;  %v4412_v17 = vadd.f32 %v2675_v49, %v1655_v0 }
 0x15b   : > { %v2678_v27 = vadd.f32 %v2677_v63, %v2676_v13 }
 0x15c   : > { %v1660_v42 = vadd.f32 %v2598_v33, %v4367_v58  ;;  %v2599_v23 = vpop.f32.mrb[46].mxu0 }
 0x15d   : > { %v2679_v16 = vpop.f32.mrb[46].mxu1  ;;  %v2600_v30 = vpop.f32.mrb[47].mxu0 }
 0x15e   : > { %v2601_v31 = vadd.f32 %v2600_v30, %v2599_v23  ;;  %v2680_v32 = vpop.f32.mrb[47].mxu1  ;;  %v4415_v37 = vadd.f32 %v2678_v27, %v1660_v42 }
 0x15f   : > { %v2681_v46 = vadd.f32 %v2680_v32, %v2679_v16 }
 0x160   : > { %v1665_v60 = vadd.f32 %v2601_v31, %v4370_v47  ;;  %v2602_v48 = vpop.f32.mrb[48].mxu0 }
 0x161   : > { %v2682_v50 = vpop.f32.mrb[48].mxu1  ;;  %v2603_v51 = vpop.f32.mrb[49].mxu0 }
 0x162   : > { %v2604_v53 = vadd.f32 %v2603_v51, %v2602_v48  ;;  %v2683_v56 = vpop.f32.mrb[49].mxu1  ;;  %v4418_v55 = vadd.f32 %v2681_v46, %v1665_v60 }
 0x163   : > { %v2684_v1 = vadd.f32 %v2683_v56, %v2682_v50 }
 0x164   : > { %v1670_v58 = vadd.f32 %v2604_v53, %v4373_v22  ;;  %v2605_v7 = vpop.f32.mrb[50].mxu0 }
 0x165   : > { %v2685_v24 = vpop.f32.mrb[50].mxu1  ;;  %v2606_v36 = vpop.f32.mrb[51].mxu0 }
 0x166   : > { %v2607_v41 = vadd.f32 %v2606_v36, %v2605_v7  ;;  %v2686_v15 = vpop.f32.mrb[51].mxu1  ;;  %v1815_v44 = vadd.f32 %v2684_v1, %v1670_v58 }
 0x167   : > { %v2687_v2 = vadd.f32 %v2686_v15, %v2685_v24 }
 0x168   : > { %v1675_v39 = vadd.f32 %v2607_v41, %v4376_v21  ;;  %v2608_v47 = vpop.f32.mrb[52].mxu0 }
 0x169   : > { %v2688_v4 = vpop.f32.mrb[52].mxu1  ;;  %v2609_v35 = vpop.f32.mrb[53].mxu0 }
 0x16a   : > { %v2610_v40 = vadd.f32 %v2609_v35, %v2608_v47  ;;  %v2689_v25 = vpop.f32.mrb[53].mxu1  ;;  %v1820_v54 = vadd.f32 %v2687_v2, %v1675_v39 }
 0x16b   : > { %v2690_v8 = vadd.f32 %v2689_v25, %v2688_v4 }
 0x16c   : > { %v1680_v62 = vadd.f32 %v2610_v40, %v4379_v59  ;;  %v2611_v57 = vpop.f32.mrb[54].mxu0 }
 0x16d   : > { %v2691_v22 = vpop.f32.mrb[54].mxu1  ;;  %v2612_v61 = vpop.f32.mrb[55].mxu0 }
 0x16e   : > { %v2613_v45 = vadd.f32 %v2612_v61, %v2611_v57  ;;  %v2692_v5 = vpop.f32.mrb[55].mxu1  ;;  %v1825_v28 = vadd.f32 %v2690_v8, %v1680_v62 }
 0x16f   : > { %v2693_v10 = vadd.f32 %v2692_v5, %v2691_v22 }
 0x170   : > { %v1685_v11 = vadd.f32 %v2613_v45, %v4382_v6  ;;  %v2614_v20 = vpop.f32.mrb[56].mxu0 }
 0x171   : > { %v2694_v21 = vpop.f32.mrb[56].mxu1  ;;  %v2615_v38 = vpop.f32.mrb[57].mxu0 }
 0x172   : > { %v2616_v49 = vadd.f32 %v2615_v38, %v2614_v20  ;;  %v2695_v0 = vpop.f32.mrb[57].mxu1  ;;  %v1830_v14 = vadd.f32 %v2693_v10, %v1685_v11 }
 0x173   : > { %v2696_v13 = vadd.f32 %v2695_v0, %v2694_v21 }
 0x174   : > { %v1690_v18 = vadd.f32 %v2616_v49, %v4385_v12  ;;  %v2617_v33 = vpop.f32.mrb[58].mxu0 }
 0x175   : > { %v2697_v59 = vpop.f32.mrb[58].mxu1  ;;  %v2618_v63 = vpop.f32.mrb[59].mxu0 }
 0x176   : > { %v2619_v27 = vadd.f32 %v2618_v63, %v2617_v33  ;;  %v2698_v42 = vpop.f32.mrb[59].mxu1  ;;  %v1835_v23 = vadd.f32 %v2696_v13, %v1690_v18 }
 0x177   : > { %v2699_v16 = vadd.f32 %v2698_v42, %v2697_v59 }
 0x178   : > { %v1695_v30 = vadd.f32 %v2619_v27, %v4388_v19  ;;  %v2620_v6 = vpop.f32.mrb[60].mxu0 }
 0x179   : > { %v2700_v31 = vpop.f32.mrb[60].mxu1  ;;  %v2621_v32 = vpop.f32.mrb[61].mxu0 }
 0x17a   : > { %v2622_v46 = vadd.f32 %v2621_v32, %v2620_v6  ;;  %v2701_v60 = vpop.f32.mrb[61].mxu1  ;;  %v1840_v48 = vadd.f32 %v2699_v16, %v1695_v30 }
 0x17b   : > { %v2702_v50 = vadd.f32 %v2701_v60, %v2700_v31 }
 0x17c   : > { %v1700_v51 = vadd.f32 %v2622_v46, %v4391_v3  ;;  %v2623_v12 = vpop.f32.mrb[62].mxu0 }
 0x17d   : > { %v2703_v53 = vpop.f32.mrb[62].mxu1  ;;  %v2624_v56 = vpop.f32.mrb[63].mxu0 }
 0x17e   : > { %v2625_v1 = vadd.f32 %v2624_v56, %v2623_v12  ;;  %v2704_v58 = vpop.f32.mrb[63].mxu1  ;;  %v1845_v7 = vadd.f32 %v2702_v50, %v1700_v51 }
 0x17f   : > { %v2705_v24 = vadd.f32 %v2704_v58, %v2703_v53 }
 0x180   : > { %v1705_v36 = vadd.f32 %v2625_v1, %v4394_v29  ;;  %v2772_v19 = vpop.f32.mrb[64].mxu0 }
 0x181   : > { %v1925_v41 = vadd.f32 %v2772_v19, %v4400_v34  ;;  %v2784_v15 = vpop.f32.mrb[64].mxu1  ;;  %v1919_v2 = vpop.f32.mrb[65].mxu0 }
 0x182   : > { %v1965_v3 = vadd.f32 %v2784_v15, %v1820_v54  ;;  %v1920_v39 = vadd.f32 %v1919_v2, %v4397_v52  ;;  %v1959_v47 = vpop.f32.mrb[65].mxu1  ;;  %v1850_v4 = vadd.f32 %v2705_v24, %v1705_v36 }
 0x183   : > { %v1999_v29 = vmax.f32 %v1925_v41, 0.0  ;;  %v1960_v35 = vadd.f32 %v1959_v47, %v1815_v44 }
 0x184   : > { %v2007_v40 = vmax.f32 %v1965_v3, 0.0  ;;  %v1998_v34 = vmax.f32 %v1920_v39, 0.0  ;;  %v2775_v25 = vpop.f32.mrb[66].mxu0 }
 0x185   : > { %2015 = vst [vmem:[%s4433_s12 + $0x8] sm:$0xff] %v1999_v29  ;;  %v2006_v8 = vmax.f32 %v1960_v35, 0.0  ;;  %v1935_v62 = vadd.f32 %v2775_v25, %v4406_v9  ;;  %v2787_v57 = vpop.f32.mrb[66].mxu1  ;;  %v1929_v22 = vpop.f32.mrb[67].mxu0 }
 0x186   : > { %2023 = vst [vmem:[%s4433_s12 + $0x48] sm:$0xff] %v2007_v40  ;;  %2014 = vst [vmem:[%s4433_s12] sm:$0xff] %v1998_v34  ;;  %v1975_v52 = vadd.f32 %v2787_v57, %v1830_v14  ;;  %v1930_v54 = vadd.f32 %v1929_v22, %v4403_v43  ;;  %v1969_v61 = vpop.f32.mrb[67].mxu1 }
 0x187   : > { %2022 = vst [vmem:[%s4433_s12 + $0x40] sm:$0xff] %v2006_v8  ;;  %v2001_v44 = vmax.f32 %v1935_v62, 0.0  ;;  %v1970_v45 = vadd.f32 %v1969_v61, %v1825_v28 }
 0x188   : > { %v2009_v5 = vmax.f32 %v1975_v52, 0.0  ;;  %v2000_v10 = vmax.f32 %v1930_v54, 0.0  ;;  %v2778_v11 = vpop.f32.mrb[68].mxu0 }
 0x189   : > { %2017 = vst [vmem:[%s4433_s12 + $0x18] sm:$0xff] %v2001_v44  ;;  %v2008_v9 = vmax.f32 %v1970_v45, 0.0  ;;  %v1945_v20 = vadd.f32 %v2778_v11, %v4412_v17  ;;  %v2790_v21 = vpop.f32.mrb[68].mxu1  ;;  %v1939_v38 = vpop.f32.mrb[69].mxu0 }
 0x18a   : > { %2025 = vst [vmem:[%s4433_s12 + $0x58] sm:$0xff] %v2009_v5  ;;  %2016 = vst [vmem:[%s4433_s12 + $0x10] sm:$0xff] %v2000_v10  ;;  %v1985_v43 = vadd.f32 %v2790_v21, %v1840_v48  ;;  %v1940_v49 = vadd.f32 %v1939_v38, %v4409_v26  ;;  %v1979_v0 = vpop.f32.mrb[69].mxu1 }
 0x18b   : > { %2024 = vst [vmem:[%s4433_s12 + $0x50] sm:$0xff] %v2008_v9  ;;  %v2003_v28 = vmax.f32 %v1945_v20, 0.0  ;;  %v1980_v14 = vadd.f32 %v1979_v0, %v1835_v23 }
 0x18c   : > { %v2011_v13 = vmax.f32 %v1985_v43, 0.0  ;;  %v2002_v18 = vmax.f32 %v1940_v49, 0.0  ;;  %v2781_v33 = vpop.f32.mrb[70].mxu0 }
 0x18d   : > { %2019 = vst [vmem:[%s4433_s12 + $0x28] sm:$0xff] %v2003_v28  ;;  %v2010_v17 = vmax.f32 %v1980_v14, 0.0  ;;  %v1955_v59 = vadd.f32 %v2781_v33, %v4418_v55  ;;  %v2793_v63 = vpop.f32.mrb[70].mxu1  ;;  %v1949_v27 = vpop.f32.mrb[71].mxu0 }
 0x18e   : > { %2027 = vst [vmem:[%s4433_s12 + $0x68] sm:$0xff] %v2011_v13  ;;  %2018 = vst [vmem:[%s4433_s12 + $0x20] sm:$0xff] %v2002_v18  ;;  %v1995_v26 = vadd.f32 %v2793_v63, %v1850_v4  ;;  %v1950_v42 = vadd.f32 %v1949_v27, %v4415_v37  ;;  %v1989_v16 = vpop.f32.mrb[71].mxu1 }
 0x18f   : > { %2026 = vst [vmem:[%s4433_s12 + $0x60] sm:$0xff] %v2010_v17  ;;  %v2005_v23 = vmax.f32 %v1955_v59, 0.0  ;;  %v1990_v30 = vadd.f32 %v1989_v16, %v1845_v7 }
 0x190   : > { %v2013_v6 = vmax.f32 %v1995_v26, 0.0  ;;  %v2004_v31 = vmax.f32 %v1950_v42, 0.0 }
 0x191   : > { %2021 = vst [vmem:[%s4433_s12 + $0x38] sm:$0xff] %v2005_v23  ;;  %v2012_v32 = vmax.f32 %v1990_v30, 0.0 }
 0x192   : > { %2029 = vst [vmem:[%s4433_s12 + $0x78] sm:$0xff] %v2013_v6  ;;  %2020 = vst [vmem:[%s4433_s12 + $0x30] sm:$0xff] %v2004_v31 }
 0x193   : > { %2028 = vst [vmem:[%s4433_s12 + $0x70] sm:$0xff] %v2012_v32 }
 0x194 PF: > { %s13_s16 = sadd.s32 1, %s3048_s16   ;;  %s4491_s12 = smov %s3040_s14 }
 0x195   : > { %p10_p10 = scmp.ge.s32.totalorder %s13_s16, 6   ;;  %s4492_s13 = smov %s3044_s15 }
 0x196   : > { %s4493_s14 = smov %s4496_s17  ;;  %s4494_s15 = smov %s4500_s18 }
 0x197   :  { %12 = sbr.rel (!%p10_p10) target bundleno = 3 (0x3), region = 85 }

</bundles_post_ra>
